<compile_context>
chip_gen: v7x
topology: tpu7x:2x2x1
jax: 0.10.0
libtpu: 0.0.40
codegen_flags: <defaults>
</compile_context>

<pallas_src>
import jax
import jax.numpy as jnp
from jax.experimental import pallas as pl
from jax.experimental.pallas import tpu as pltpu

CPAD = 128  # lane-padded output-channel count (dense 128-wide stores)


def conv_block_kernel(x2_ref, w_ref, o_ref, sum_ref, ssq_ref, lhs_ref):
    """Fused Conv3x3(s=1,p=1,no-bias) + ReLU + MaxPool2x2 + per-image BN partial stats.

    x2_ref : (1, 2, H+2, Wq, Cin)  padded input split by output-column parity:
             x2[0, b, h, wq, :] == x_padded[h, 2*wq + b, :]
    w_ref  : (9*Cin, 128)          conv weight, rows ordered (kh, kw, cin), Cout zero-padded
    o_ref  : (1, Hp, Wp, 128)      pooled activations (lane-dense)
    sum_ref, ssq_ref : (1, 1, 128) per-image sum / sum-of-squares over spatial positions
    lhs_ref: (2*H*Wp, 9*Cin)       VMEM scratch: im2col matrix built in-kernel
    """
    Hpad, Wq, cin = x2_ref.shape[2], x2_ref.shape[3], x2_ref.shape[4]
    H, Wp = Hpad - 2, Wq - 1
    Hp = H // 2
    HWp = H * Wp
    cpad = o_ref.shape[3]

    # ---- in-kernel im2col: rows = (w-parity dw, h, wp), cols = (kh, kw, cin) ----
    # conv[h, 2*wp+dw, :] = sum_{kh,kw} xpad[h+kh, 2*wp+dw+kw, :] @ W[kh,kw]
    #                     = sum_{kh,kw} x2[(dw+kw)%2, h+kh, wp+(dw+kw)//2, :] @ W[kh,kw]
    for dw in range(2):
        for kh in range(3):
            for kw in range(3):
                b, bh = (dw + kw) % 2, (dw + kw) // 2
                k = kh * 3 + kw
                xs = x2_ref[0, b, kh:kh + H, bh:bh + Wp, :]          # (H, Wp, Cin)
                lhs_ref[dw * HWp:(dw + 1) * HWp, k * cin:(k + 1) * cin] = (
                    xs.reshape(HWp, cin))

    # ---- one MXU matmul over all conv-output positions (both w parities stacked) ----
    y = jnp.dot(lhs_ref[...], w_ref[...], preferred_element_type=jnp.float32)
    y = jnp.maximum(y, 0.0)                                          # ReLU

    # ---- MaxPool(2,2): w-direction = parity halves, h-direction = aligned row halves ----
    pw = jnp.maximum(y[:HWp, :], y[HWp:, :])                         # (H*Wp, 128)
    p3 = pw.reshape(Hp, 2 * Wp, cpad)
    pooled = jnp.maximum(p3[:, :Wp, :], p3[:, Wp:, :])               # (Hp, Wp, 128)

    o_ref[...] = pooled[None].astype(o_ref.dtype)

    # per-image partial BatchNorm statistics (reduced across the batch in glue)
    sum_ref[...] = jnp.sum(pooled, axis=(0, 1), keepdims=True)
    ssq_ref[...] = jnp.sum(pooled * pooled, axis=(0, 1), keepdims=True)


def conv_block(x, w):
    """Conv3x3 + ReLU + MaxPool2x2 for one block; returns pooled output + BN partial stats.

    x: (N, H, W, Cin) channels-last (already BN'd by the previous block).
    w: (3, 3, Cin, Cout) HWIO conv weight.
    Returns pooled (N, Hp, Wp, 128) [channels >= Cout are exactly zero], psum, pssq (N,1,128).
    """
    N, H, W, Cin = x.shape
    cout = w.shape[-1]
    assert H % 2 == 0 and W % 2 == 0 and cout <= CPAD
    Hp, Wp = H // 2, W // 2
    Wq = (W + 2) // 2

    # lane-dense weight: zero-pad Cout -> 128 and flatten (kh, kw, cin) into rows.
    w2d = jnp.pad(w, ((0, 0),) * 3 + ((0, CPAD - cout),)).reshape(9 * Cin, CPAD)

    # pad + split by output-column parity.  This is 1x the activation size (no 9x im2col
    # in HBM) and XLA fuses it with the previous block's BN affine.
    xp = jnp.pad(x, ((0, 0), (1, 1), (1, 1), (0, 0)))
    x2 = xp.reshape(N, H + 2, Wq, 2, Cin).transpose(0, 3, 1, 2, 4)   # (N, 2, H+2, Wq, Cin)

    cost = pl.CostEstimate(
        flops=2 * N * H * W * 9 * Cin * CPAD,
        transcendentals=0,
        bytes_accessed=4 * (x2.size + w2d.size + N * Hp * Wp * CPAD + 2 * N * CPAD))

    pooled, psum, pssq = pl.pallas_call(
        conv_block_kernel,
        out_shape=(jax.ShapeDtypeStruct((N, Hp, Wp, CPAD), jnp.float32),
                   jax.ShapeDtypeStruct((N, 1, CPAD), jnp.float32),
                   jax.ShapeDtypeStruct((N, 1, CPAD), jnp.float32)),
        grid=(N,),
        in_specs=[pl.BlockSpec((1, 2, H + 2, Wq, Cin), lambda n: (n, 0, 0, 0, 0)),
                  pl.BlockSpec((9 * Cin, CPAD), lambda n: (0, 0))],
        out_specs=(pl.BlockSpec((1, Hp, Wp, CPAD), lambda n: (n, 0, 0, 0)),
                   pl.BlockSpec((1, 1, CPAD), lambda n: (n, 0, 0)),
                   pl.BlockSpec((1, 1, CPAD), lambda n: (n, 0, 0))),
        scratch_shapes=[pltpu.VMEM((2 * H * Wp, 9 * Cin), jnp.float32)],
        # per-image partial stats -> no revisited accumulator -> grid can be 'parallel'
        # (shards across TensorCores on v7x; harmless on v5e/v6e).
        compiler_params=pltpu.CompilerParams(dimension_semantics=("parallel",)),
        cost_estimate=cost,
    )(x2, w2d)
    return pooled, psum, pssq


def encoder_cnn_forward(x_nchw, params, eps=1e-5):
    """EncoderCNN forward (train-mode BatchNorm). NCHW in / NCHW out, like PyTorch."""
    x = jnp.transpose(x_nchw, (0, 2, 3, 1))                  # channels-last
    for w, gamma, beta in params:
        cout = w.shape[-1]
        pooled, psum, pssq = conv_block(x, w)
        N, Hp, Wp, _ = pooled.shape
        count = N * Hp * Wp
        tot = jnp.sum(psum, axis=0)[0, :cout]
        tot2 = jnp.sum(pssq, axis=0)[0, :cout]
        mean = tot / count
        var = tot2 / count - mean * mean                     # biased var (PyTorch train BN)
        scale = gamma * jax.lax.rsqrt(var + eps)
        shift = beta - mean * scale
        # BN affine: for inner blocks XLA fuses this with the next conv_block's
        # pad/parity-split prep, so there is no standalone bn_apply kernel.
        # TODO(synk): running_mean/running_var buffer updates (training-time side effect
        # of nn.BatchNorm2d) are not reproduced; only the forward normalization is.
        x = pooled[..., :cout] * scale + shift
    return jnp.transpose(x, (0, 3, 1, 2))                    # back to NCHW


# ----------------------------------------------------------------------------
# Pure-JAX reference for the correctness check.
# ----------------------------------------------------------------------------
def reference_forward(x_nchw, params, eps=1e-5):
    x = jnp.transpose(x_nchw, (0, 2, 3, 1))
    for w, gamma, beta in params:
        y = jax.lax.conv_general_dilated(
            x, w, window_strides=(1, 1), padding=((1, 1), (1, 1)),
            dimension_numbers=("NHWC", "HWIO", "NHWC"),
            precision=jax.lax.Precision.HIGHEST)
        y = jnp.maximum(y, 0.0)
        y = jax.lax.reduce_window(y, -jnp.inf, jax.lax.max,
                                  (1, 2, 2, 1), (1, 2, 2, 1), "VALID")
        mean = jnp.mean(y, axis=(0, 1, 2))
        var = jnp.var(y, axis=(0, 1, 2))                     # biased, as PyTorch BN uses
        x = (y - mean) * (gamma * jax.lax.rsqrt(var + eps)) + beta
    return jnp.transpose(x, (0, 3, 1, 2))


if __name__ == "__main__":
    key = jax.random.PRNGKey(0)

    # EncoderCNN(blocks=2): channels 1 -> 32 -> 64.  Spatial 32x32 keeps each block's pooled
    # width a multiple of 8, so all in-kernel reshapes/slices stay sublane-tile aligned.
    N, H, W = 2, 32, 32
    blocks = 2
    filters = 32
    filter_list = [1] + [filters * 2 ** i for i in range(blocks)]      # [1, 32, 64]

    params = []
    for in_c, out_c in zip(filter_list, filter_list[1:]):
        key, wk, gk, bk = jax.random.split(key, 4)
        bound = (9 * in_c) ** -0.5
        w = jax.random.uniform(wk, (3, 3, in_c, out_c), jnp.float32, -bound, bound)
        gamma = 1.0 + 0.1 * jax.random.normal(gk, (out_c,), jnp.float32)
        beta = 0.1 * jax.random.normal(bk, (out_c,), jnp.float32)
        params.append((w, gamma, beta))

    key, xk = jax.random.split(key)
    x = jax.random.normal(xk, (N, 1, H, W), jnp.float32)

    out = jax.block_until_ready(encoder_cnn_forward(x, params))
    ref = jax.block_until_ready(reference_forward(x, params))

    expected = (N, filter_list[-1], H // 2 ** blocks, W // 2 ** blocks)
    assert out.shape == expected, (out.shape, expected)
    max_err = float(jnp.max(jnp.abs(out - ref)))
    assert max_err < 2e-3, f"mismatch vs reference: {max_err}"

    print("KERNEL_OK")
</pallas_src>

<mosaic_0001>
module attributes {stable_mosaic.version = 11 : i64} {
  func.func @conv_block_kernel(%arg0: i32, %arg1: memref<1x2x34x17x1xf32, #tpu.memory_space<vmem>>, %arg2: memref<9x128xf32, #tpu.memory_space<vmem>>, %arg3: memref<1x16x16x128xf32, #tpu.memory_space<vmem>>, %arg4: memref<1x1x128xf32, #tpu.memory_space<vmem>>, %arg5: memref<1x1x128xf32, #tpu.memory_space<vmem>>, %arg6: memref<1024x9xf32, #tpu.memory_space<vmem>>) attributes {dimension_semantics = [#tpu.dimension_semantics<parallel>], iteration_bounds = array<i64: 2>, scalar_prefetch = 0 : i64, scratch_operands = 1 : i64, tpu.core_type = #tpu.core_type<tc>, window_params = [{transform_indices = @transform_0, window_bounds = array<i64: 1, 2, 34, 17, 1>}, {pipeline_mode = #tpu.pipeline_mode<synchronous>, transform_indices = @transform_1, window_bounds = array<i64: 9, 128>}, {transform_indices = @transform_2, window_bounds = array<i64: 1, 16, 16, 128>}, {transform_indices = @transform_3, window_bounds = array<i64: 1, 1, 128>}, {transform_indices = @transform_4, window_bounds = array<i64: 1, 1, 128>}]} {
    %c0 = arith.constant 0 : index
    %c0_0 = arith.constant 0 : index
    %c0_1 = arith.constant 0 : index
    %c0_2 = arith.constant 0 : index
    %c0_3 = arith.constant 0 : index
    %0 = vector.load %arg1[%c0, %c0_0, %c0_1, %c0_2, %c0_3] : memref<1x2x34x17x1xf32, #tpu.memory_space<vmem>>, vector<1x1x32x16x1xf32>
    %1 = vector.shape_cast %0 : vector<1x1x32x16x1xf32> to vector<32x16x1xf32>
    %2 = vector.shape_cast %1 : vector<32x16x1xf32> to vector<512x1xf32>
    %c0_4 = arith.constant 0 : index
    %c0_5 = arith.constant 0 : index
    %3 = vector.load %arg6[%c0_4, %c0_5] : memref<1024x9xf32, #tpu.memory_space<vmem>>, vector<512x1xf32>
    tpu.vector_store %arg6[%c0_4, %c0_5], %2 {strides = array<i32>} : memref<1024x9xf32, #tpu.memory_space<vmem>>, vector<512x1xf32>,
    %c0_6 = arith.constant 0 : index
    %c1 = arith.constant 1 : index
    %c0_7 = arith.constant 0 : index
    %c0_8 = arith.constant 0 : index
    %c0_9 = arith.constant 0 : index
    %4 = vector.load %arg1[%c0_6, %c1, %c0_7, %c0_8, %c0_9] : memref<1x2x34x17x1xf32, #tpu.memory_space<vmem>>, vector<1x1x32x16x1xf32>
    %5 = vector.shape_cast %4 : vector<1x1x32x16x1xf32> to vector<32x16x1xf32>
    %6 = vector.shape_cast %5 : vector<32x16x1xf32> to vector<512x1xf32>
    %c0_10 = arith.constant 0 : index
    %c1_11 = arith.constant 1 : index
    %7 = vector.load %arg6[%c0_10, %c1_11] : memref<1024x9xf32, #tpu.memory_space<vmem>>, vector<512x1xf32>
    tpu.vector_store %arg6[%c0_10, %c1_11], %6 {strides = array<i32>} : memref<1024x9xf32, #tpu.memory_space<vmem>>, vector<512x1xf32>,
    %c0_12 = arith.constant 0 : index
    %c0_13 = arith.constant 0 : index
    %c0_14 = arith.constant 0 : index
    %c1_15 = arith.constant 1 : index
    %c0_16 = arith.constant 0 : index
    %8 = vector.load %arg1[%c0_12, %c0_13, %c0_14, %c1_15, %c0_16] : memref<1x2x34x17x1xf32, #tpu.memory_space<vmem>>, vector<1x1x32x16x1xf32>
    %9 = vector.shape_cast %8 : vector<1x1x32x16x1xf32> to vector<32x16x1xf32>
    %10 = vector.shape_cast %9 : vector<32x16x1xf32> to vector<512x1xf32>
    %c0_17 = arith.constant 0 : index
    %c2 = arith.constant 2 : index
    %11 = vector.load %arg6[%c0_17, %c2] : memref<1024x9xf32, #tpu.memory_space<vmem>>, vector<512x1xf32>
    tpu.vector_store %arg6[%c0_17, %c2], %10 {strides = array<i32>} : memref<1024x9xf32, #tpu.memory_space<vmem>>, vector<512x1xf32>,
    %c0_18 = arith.constant 0 : index
    %c0_19 = arith.constant 0 : index
    %c1_20 = arith.constant 1 : index
    %c0_21 = arith.constant 0 : index
    %c0_22 = arith.constant 0 : index
    %12 = vector.load %arg1[%c0_18, %c0_19, %c1_20, %c0_21, %c0_22] : memref<1x2x34x17x1xf32, #tpu.memory_space<vmem>>, vector<1x1x32x16x1xf32>
    %13 = vector.shape_cast %12 : vector<1x1x32x16x1xf32> to vector<32x16x1xf32>
    %14 = vector.shape_cast %13 : vector<32x16x1xf32> to vector<512x1xf32>
    %c0_23 = arith.constant 0 : index
    %c3 = arith.constant 3 : index
    %15 = vector.load %arg6[%c0_23, %c3] : memref<1024x9xf32, #tpu.memory_space<vmem>>, vector<512x1xf32>
    tpu.vector_store %arg6[%c0_23, %c3], %14 {strides = array<i32>} : memref<1024x9xf32, #tpu.memory_space<vmem>>, vector<512x1xf32>,
    %c0_24 = arith.constant 0 : index
    %c1_25 = arith.constant 1 : index
    %c1_26 = arith.constant 1 : index
    %c0_27 = arith.constant 0 : index
    %c0_28 = arith.constant 0 : index
    %16 = vector.load %arg1[%c0_24, %c1_25, %c1_26, %c0_27, %c0_28] : memref<1x2x34x17x1xf32, #tpu.memory_space<vmem>>, vector<1x1x32x16x1xf32>
    %17 = vector.shape_cast %16 : vector<1x1x32x16x1xf32> to vector<32x16x1xf32>
    %18 = vector.shape_cast %17 : vector<32x16x1xf32> to vector<512x1xf32>
    %c0_29 = arith.constant 0 : index
    %c4 = arith.constant 4 : index
    %19 = vector.load %arg6[%c0_29, %c4] : memref<1024x9xf32, #tpu.memory_space<vmem>>, vector<512x1xf32>
    tpu.vector_store %arg6[%c0_29, %c4], %18 {strides = array<i32>} : memref<1024x9xf32, #tpu.memory_space<vmem>>, vector<512x1xf32>,
    %c0_30 = arith.constant 0 : index
    %c0_31 = arith.constant 0 : index
    %c1_32 = arith.constant 1 : index
    %c1_33 = arith.constant 1 : index
    %c0_34 = arith.constant 0 : index
    %20 = vector.load %arg1[%c0_30, %c0_31, %c1_32, %c1_33, %c0_34] : memref<1x2x34x17x1xf32, #tpu.memory_space<vmem>>, vector<1x1x32x16x1xf32>
    %21 = vector.shape_cast %20 : vector<1x1x32x16x1xf32> to vector<32x16x1xf32>
    %22 = vector.shape_cast %21 : vector<32x16x1xf32> to vector<512x1xf32>
    %c0_35 = arith.constant 0 : index
    %c5 = arith.constant 5 : index
    %23 = vector.load %arg6[%c0_35, %c5] : memref<1024x9xf32, #tpu.memory_space<vmem>>, vector<512x1xf32>
    tpu.vector_store %arg6[%c0_35, %c5], %22 {strides = array<i32>} : memref<1024x9xf32, #tpu.memory_space<vmem>>, vector<512x1xf32>,
    %c0_36 = arith.constant 0 : index
    %c0_37 = arith.constant 0 : index
    %c2_38 = arith.constant 2 : index
    %c0_39 = arith.constant 0 : index
    %c0_40 = arith.constant 0 : index
    %24 = vector.load %arg1[%c0_36, %c0_37, %c2_38, %c0_39, %c0_40] : memref<1x2x34x17x1xf32, #tpu.memory_space<vmem>>, vector<1x1x32x16x1xf32>
    %25 = vector.shape_cast %24 : vector<1x1x32x16x1xf32> to vector<32x16x1xf32>
    %26 = vector.shape_cast %25 : vector<32x16x1xf32> to vector<512x1xf32>
    %c0_41 = arith.constant 0 : index
    %c6 = arith.constant 6 : index
    %27 = vector.load %arg6[%c0_41, %c6] : memref<1024x9xf32, #tpu.memory_space<vmem>>, vector<512x1xf32>
    tpu.vector_store %arg6[%c0_41, %c6], %26 {strides = array<i32>} : memref<1024x9xf32, #tpu.memory_space<vmem>>, vector<512x1xf32>,
    %c0_42 = arith.constant 0 : index
    %c1_43 = arith.constant 1 : index
    %c2_44 = arith.constant 2 : index
    %c0_45 = arith.constant 0 : index
    %c0_46 = arith.constant 0 : index
    %28 = vector.load %arg1[%c0_42, %c1_43, %c2_44, %c0_45, %c0_46] : memref<1x2x34x17x1xf32, #tpu.memory_space<vmem>>, vector<1x1x32x16x1xf32>
    %29 = vector.shape_cast %28 : vector<1x1x32x16x1xf32> to vector<32x16x1xf32>
    %30 = vector.shape_cast %29 : vector<32x16x1xf32> to vector<512x1xf32>
    %c0_47 = arith.constant 0 : index
    %c7 = arith.constant 7 : index
    %31 = vector.load %arg6[%c0_47, %c7] : memref<1024x9xf32, #tpu.memory_space<vmem>>, vector<512x1xf32>
    tpu.vector_store %arg6[%c0_47, %c7], %30 {strides = array<i32>} : memref<1024x9xf32, #tpu.memory_space<vmem>>, vector<512x1xf32>,
    %c0_48 = arith.constant 0 : index
    %c0_49 = arith.constant 0 : index
    %c2_50 = arith.constant 2 : index
    %c1_51 = arith.constant 1 : index
    %c0_52 = arith.constant 0 : index
    %32 = vector.load %arg1[%c0_48, %c0_49, %c2_50, %c1_51, %c0_52] : memref<1x2x34x17x1xf32, #tpu.memory_space<vmem>>, vector<1x1x32x16x1xf32>
    %33 = vector.shape_cast %32 : vector<1x1x32x16x1xf32> to vector<32x16x1xf32>
    %34 = vector.shape_cast %33 : vector<32x16x1xf32> to vector<512x1xf32>
    %c0_53 = arith.constant 0 : index
    %c8 = arith.constant 8 : index
    %35 = vector.load %arg6[%c0_53, %c8] : memref<1024x9xf32, #tpu.memory_space<vmem>>, vector<512x1xf32>
    tpu.vector_store %arg6[%c0_53, %c8], %34 {strides = array<i32>} : memref<1024x9xf32, #tpu.memory_space<vmem>>, vector<512x1xf32>,
    %c0_54 = arith.constant 0 : index
    %c1_55 = arith.constant 1 : index
    %c0_56 = arith.constant 0 : index
    %c0_57 = arith.constant 0 : index
    %c0_58 = arith.constant 0 : index
    %36 = vector.load %arg1[%c0_54, %c1_55, %c0_56, %c0_57, %c0_58] : memref<1x2x34x17x1xf32, #tpu.memory_space<vmem>>, vector<1x1x32x16x1xf32>
    %37 = vector.shape_cast %36 : vector<1x1x32x16x1xf32> to vector<32x16x1xf32>
    %38 = vector.shape_cast %37 : vector<32x16x1xf32> to vector<512x1xf32>
    %c512 = arith.constant 512 : index
    %c0_59 = arith.constant 0 : index
    %39 = vector.load %arg6[%c512, %c0_59] : memref<1024x9xf32, #tpu.memory_space<vmem>>, vector<512x1xf32>
    tpu.vector_store %arg6[%c512, %c0_59], %38 {strides = array<i32>} : memref<1024x9xf32, #tpu.memory_space<vmem>>, vector<512x1xf32>,
    %c0_60 = arith.constant 0 : index
    %c0_61 = arith.constant 0 : index
    %c0_62 = arith.constant 0 : index
    %c1_63 = arith.constant 1 : index
    %c0_64 = arith.constant 0 : index
    %40 = vector.load %arg1[%c0_60, %c0_61, %c0_62, %c1_63, %c0_64] : memref<1x2x34x17x1xf32, #tpu.memory_space<vmem>>, vector<1x1x32x16x1xf32>
    %41 = vector.shape_cast %40 : vector<1x1x32x16x1xf32> to vector<32x16x1xf32>
    %42 = vector.shape_cast %41 : vector<32x16x1xf32> to vector<512x1xf32>
    %c512_65 = arith.constant 512 : index
    %c1_66 = arith.constant 1 : index
    %43 = vector.load %arg6[%c512_65, %c1_66] : memref<1024x9xf32, #tpu.memory_space<vmem>>, vector<512x1xf32>
    tpu.vector_store %arg6[%c512_65, %c1_66], %42 {strides = array<i32>} : memref<1024x9xf32, #tpu.memory_space<vmem>>, vector<512x1xf32>,
    %c0_67 = arith.constant 0 : index
    %c1_68 = arith.constant 1 : index
    %c0_69 = arith.constant 0 : index
    %c1_70 = arith.constant 1 : index
    %c0_71 = arith.constant 0 : index
    %44 = vector.load %arg1[%c0_67, %c1_68, %c0_69, %c1_70, %c0_71] : memref<1x2x34x17x1xf32, #tpu.memory_space<vmem>>, vector<1x1x32x16x1xf32>
    %45 = vector.shape_cast %44 : vector<1x1x32x16x1xf32> to vector<32x16x1xf32>
    %46 = vector.shape_cast %45 : vector<32x16x1xf32> to vector<512x1xf32>
    %c512_72 = arith.constant 512 : index
    %c2_73 = arith.constant 2 : index
    %47 = vector.load %arg6[%c512_72, %c2_73] : memref<1024x9xf32, #tpu.memory_space<vmem>>, vector<512x1xf32>
    tpu.vector_store %arg6[%c512_72, %c2_73], %46 {strides = array<i32>} : memref<1024x9xf32, #tpu.memory_space<vmem>>, vector<512x1xf32>,
    %c0_74 = arith.constant 0 : index
    %c1_75 = arith.constant 1 : index
    %c1_76 = arith.constant 1 : index
    %c0_77 = arith.constant 0 : index
    %c0_78 = arith.constant 0 : index
    %48 = vector.load %arg1[%c0_74, %c1_75, %c1_76, %c0_77, %c0_78] : memref<1x2x34x17x1xf32, #tpu.memory_space<vmem>>, vector<1x1x32x16x1xf32>
    %49 = vector.shape_cast %48 : vector<1x1x32x16x1xf32> to vector<32x16x1xf32>
    %50 = vector.shape_cast %49 : vector<32x16x1xf32> to vector<512x1xf32>
    %c512_79 = arith.constant 512 : index
    %c3_80 = arith.constant 3 : index
    %51 = vector.load %arg6[%c512_79, %c3_80] : memref<1024x9xf32, #tpu.memory_space<vmem>>, vector<512x1xf32>
    tpu.vector_store %arg6[%c512_79, %c3_80], %50 {strides = array<i32>} : memref<1024x9xf32, #tpu.memory_space<vmem>>, vector<512x1xf32>,
    %c0_81 = arith.constant 0 : index
    %c0_82 = arith.constant 0 : index
    %c1_83 = arith.constant 1 : index
    %c1_84 = arith.constant 1 : index
    %c0_85 = arith.constant 0 : index
    %52 = vector.load %arg1[%c0_81, %c0_82, %c1_83, %c1_84, %c0_85] : memref<1x2x34x17x1xf32, #tpu.memory_space<vmem>>, vector<1x1x32x16x1xf32>
    %53 = vector.shape_cast %52 : vector<1x1x32x16x1xf32> to vector<32x16x1xf32>
    %54 = vector.shape_cast %53 : vector<32x16x1xf32> to vector<512x1xf32>
    %c512_86 = arith.constant 512 : index
    %c4_87 = arith.constant 4 : index
    %55 = vector.load %arg6[%c512_86, %c4_87] : memref<1024x9xf32, #tpu.memory_space<vmem>>, vector<512x1xf32>
    tpu.vector_store %arg6[%c512_86, %c4_87], %54 {strides = array<i32>} : memref<1024x9xf32, #tpu.memory_space<vmem>>, vector<512x1xf32>,
    %c0_88 = arith.constant 0 : index
    %c1_89 = arith.constant 1 : index
    %c1_90 = arith.constant 1 : index
    %c1_91 = arith.constant 1 : index
    %c0_92 = arith.constant 0 : index
    %56 = vector.load %arg1[%c0_88, %c1_89, %c1_90, %c1_91, %c0_92] : memref<1x2x34x17x1xf32, #tpu.memory_space<vmem>>, vector<1x1x32x16x1xf32>
    %57 = vector.shape_cast %56 : vector<1x1x32x16x1xf32> to vector<32x16x1xf32>
    %58 = vector.shape_cast %57 : vector<32x16x1xf32> to vector<512x1xf32>
    %c512_93 = arith.constant 512 : index
    %c5_94 = arith.constant 5 : index
    %59 = vector.load %arg6[%c512_93, %c5_94] : memref<1024x9xf32, #tpu.memory_space<vmem>>, vector<512x1xf32>
    tpu.vector_store %arg6[%c512_93, %c5_94], %58 {strides = array<i32>} : memref<1024x9xf32, #tpu.memory_space<vmem>>, vector<512x1xf32>,
    %c0_95 = arith.constant 0 : index
    %c1_96 = arith.constant 1 : index
    %c2_97 = arith.constant 2 : index
    %c0_98 = arith.constant 0 : index
    %c0_99 = arith.constant 0 : index
    %60 = vector.load %arg1[%c0_95, %c1_96, %c2_97, %c0_98, %c0_99] : memref<1x2x34x17x1xf32, #tpu.memory_space<vmem>>, vector<1x1x32x16x1xf32>
    %61 = vector.shape_cast %60 : vector<1x1x32x16x1xf32> to vector<32x16x1xf32>
    %62 = vector.shape_cast %61 : vector<32x16x1xf32> to vector<512x1xf32>
    %c512_100 = arith.constant 512 : index
    %c6_101 = arith.constant 6 : index
    %63 = vector.load %arg6[%c512_100, %c6_101] : memref<1024x9xf32, #tpu.memory_space<vmem>>, vector<512x1xf32>
    tpu.vector_store %arg6[%c512_100, %c6_101], %62 {strides = array<i32>} : memref<1024x9xf32, #tpu.memory_space<vmem>>, vector<512x1xf32>,
    %c0_102 = arith.constant 0 : index
    %c0_103 = arith.constant 0 : index
    %c2_104 = arith.constant 2 : index
    %c1_105 = arith.constant 1 : index
    %c0_106 = arith.constant 0 : index
    %64 = vector.load %arg1[%c0_102, %c0_103, %c2_104, %c1_105, %c0_106] : memref<1x2x34x17x1xf32, #tpu.memory_space<vmem>>, vector<1x1x32x16x1xf32>
    %65 = vector.shape_cast %64 : vector<1x1x32x16x1xf32> to vector<32x16x1xf32>
    %66 = vector.shape_cast %65 : vector<32x16x1xf32> to vector<512x1xf32>
    %c512_107 = arith.constant 512 : index
    %c7_108 = arith.constant 7 : index
    %67 = vector.load %arg6[%c512_107, %c7_108] : memref<1024x9xf32, #tpu.memory_space<vmem>>, vector<512x1xf32>
    tpu.vector_store %arg6[%c512_107, %c7_108], %66 {strides = array<i32>} : memref<1024x9xf32, #tpu.memory_space<vmem>>, vector<512x1xf32>,
    %c0_109 = arith.constant 0 : index
    %c1_110 = arith.constant 1 : index
    %c2_111 = arith.constant 2 : index
    %c1_112 = arith.constant 1 : index
    %c0_113 = arith.constant 0 : index
    %68 = vector.load %arg1[%c0_109, %c1_110, %c2_111, %c1_112, %c0_113] : memref<1x2x34x17x1xf32, #tpu.memory_space<vmem>>, vector<1x1x32x16x1xf32>
    %69 = vector.shape_cast %68 : vector<1x1x32x16x1xf32> to vector<32x16x1xf32>
    %70 = vector.shape_cast %69 : vector<32x16x1xf32> to vector<512x1xf32>
    %c512_114 = arith.constant 512 : index
    %c8_115 = arith.constant 8 : index
    %71 = vector.load %arg6[%c512_114, %c8_115] : memref<1024x9xf32, #tpu.memory_space<vmem>>, vector<512x1xf32>
    tpu.vector_store %arg6[%c512_114, %c8_115], %70 {strides = array<i32>} : memref<1024x9xf32, #tpu.memory_space<vmem>>, vector<512x1xf32>,
    %c0_116 = arith.constant 0 : index
    %c0_117 = arith.constant 0 : index
    %72 = vector.load %arg6[%c0_116, %c0_117] : memref<1024x9xf32, #tpu.memory_space<vmem>>, vector<1024x9xf32>
    %c0_118 = arith.constant 0 : index
    %c0_119 = arith.constant 0 : index
    %73 = vector.load %arg2[%c0_118, %c0_119] : memref<9x128xf32, #tpu.memory_space<vmem>>, vector<9x128xf32>
    %cst = arith.constant dense<0.000000e+00> : vector<1024x128xf32>
    %74 = tpu.matmul %72, %73, %cst {dimension_numbers = #tpu.dot_dimension_numbers<[1], [0], [0], [1], [0, 0, 1, 1], [], []>} : vector<1024x9xf32>, vector<9x128xf32>, vector<1024x128xf32> -> vector<1024x128xf32>
    %cst_120 = arith.constant 0.000000e+00 : f32
    %75 = vector.broadcast %cst_120 : f32 to vector<1024x128xf32>
    %76 = arith.maximumf %74, %75 : vector<1024x128xf32>
    %77 = vector.extract_strided_slice %76 {offsets = [0, 0], sizes = [512, 128], strides = [1, 1]} : vector<1024x128xf32> to vector<512x128xf32>
    %78 = vector.extract_strided_slice %76 {offsets = [512, 0], sizes = [512, 128], strides = [1, 1]} : vector<1024x128xf32> to vector<512x128xf32>
    %79 = arith.maximumf %77, %78 : vector<512x128xf32>
    %80 = vector.shape_cast %79 : vector<512x128xf32> to vector<16x32x128xf32>
    %81 = vector.extract_strided_slice %80 {offsets = [0, 0, 0], sizes = [16, 16, 128], strides = [1, 1, 1]} : vector<16x32x128xf32> to vector<16x16x128xf32>
    %82 = vector.extract_strided_slice %80 {offsets = [0, 16, 0], sizes = [16, 16, 128], strides = [1, 1, 1]} : vector<16x32x128xf32> to vector<16x16x128xf32>
    %83 = arith.maximumf %81, %82 : vector<16x16x128xf32>
    %84 = vector.shape_cast %83 : vector<16x16x128xf32> to vector<1x16x16x128xf32>
    %c0_121 = arith.constant 0 : index
    %c0_122 = arith.constant 0 : index
    %c0_123 = arith.constant 0 : index
    %c0_124 = arith.constant 0 : index
    %85 = vector.load %arg3[%c0_121, %c0_122, %c0_123, %c0_124] : memref<1x16x16x128xf32, #tpu.memory_space<vmem>>, vector<1x16x16x128xf32>
    tpu.vector_store %arg3[%c0_121, %c0_122, %c0_123, %c0_124], %84 {strides = array<i32>} : memref<1x16x16x128xf32, #tpu.memory_space<vmem>>, vector<1x16x16x128xf32>,
    %cst_125 = arith.constant dense<0.000000e+00> : vector<128xf32>
    %86 = vector.multi_reduction <add>, %83, %cst_125 [0, 1] : vector<16x16x128xf32> to vector<128xf32>
    %87 = vector.shape_cast %86 : vector<128xf32> to vector<1x1x128xf32>
    %c0_126 = arith.constant 0 : index
    %c0_127 = arith.constant 0 : index
    %c0_128 = arith.constant 0 : index
    %88 = vector.load %arg4[%c0_126, %c0_127, %c0_128] : memref<1x1x128xf32, #tpu.memory_space<vmem>>, vector<1x1x128xf32>
    tpu.vector_store %arg4[%c0_126, %c0_127, %c0_128], %87 {strides = array<i32>} : memref<1x1x128xf32, #tpu.memory_space<vmem>>, vector<1x1x128xf32>,
    %89 = arith.mulf %83, %83 : vector<16x16x128xf32>
    %cst_129 = arith.constant dense<0.000000e+00> : vector<128xf32>
    %90 = vector.multi_reduction <add>, %89, %cst_129 [0, 1] : vector<16x16x128xf32> to vector<128xf32>
    %91 = vector.shape_cast %90 : vector<128xf32> to vector<1x1x128xf32>
    %c0_130 = arith.constant 0 : index
    %c0_131 = arith.constant 0 : index
    %c0_132 = arith.constant 0 : index
    %92 = vector.load %arg5[%c0_130, %c0_131, %c0_132] : memref<1x1x128xf32, #tpu.memory_space<vmem>>, vector<1x1x128xf32>
    tpu.vector_store %arg5[%c0_130, %c0_131, %c0_132], %91 {strides = array<i32>} : memref<1x1x128xf32, #tpu.memory_space<vmem>>, vector<1x1x128xf32>,
    return
  }
  func.func @transform_0(%arg0: i32) -> (i32, i32, i32, i32, i32) {
    %c0_i32 = arith.constant 0 : i32
    %c0_i32_0 = arith.constant 0 : i32
    %c0_i32_1 = arith.constant 0 : i32
    %c0_i32_2 = arith.constant 0 : i32
    %c0_i32_3 = arith.constant 0 : i32
    return %arg0, %c0_i32, %c0_i32_0, %c0_i32_1, %c0_i32_2 : i32, i32, i32, i32, i32
  }
  func.func @transform_1(%arg0: i32) -> (i32, i32) {
    %c0_i32 = arith.constant 0 : i32
    %c0_i32_0 = arith.constant 0 : i32
    %c0_i32_1 = arith.constant 0 : i32
    return %c0_i32, %c0_i32_0 : i32, i32
  }
  func.func @transform_2(%arg0: i32) -> (i32, i32, i32, i32) {
    %c0_i32 = arith.constant 0 : i32
    %c0_i32_0 = arith.constant 0 : i32
    %c0_i32_1 = arith.constant 0 : i32
    %c0_i32_2 = arith.constant 0 : i32
    return %arg0, %c0_i32, %c0_i32_0, %c0_i32_1 : i32, i32, i32, i32
  }
  func.func @transform_3(%arg0: i32) -> (i32, i32, i32) {
    %c0_i32 = arith.constant 0 : i32
    %c0_i32_0 = arith.constant 0 : i32
    %c0_i32_1 = arith.constant 0 : i32
    return %arg0, %c0_i32, %c0_i32_0 : i32, i32, i32
  }
  func.func @transform_4(%arg0: i32) -> (i32, i32, i32) {
    %c0_i32 = arith.constant 0 : i32
    %c0_i32_0 = arith.constant 0 : i32
    %c0_i32_1 = arith.constant 0 : i32
    return %arg0, %c0_i32, %c0_i32_0 : i32, i32, i32
  }
}

</mosaic_0001>

<bundles_post_ra>
// kernel: tpu_custom_call.1
= control target key start
LH: loop header
LB: loop body
LE: loop exit
PB: predicated region body
PF: predicated region fallthrough
CT: control target
= control target key end

     0   :  { %10 = vsyncpa [#allocation4], 0  ;;  %s14600_s0 = inlined_call_operand.vmem [shape: f32[2,2,34,17,1], index: 0, kind: input, shape index: {}]   ;;  %s14601_s1 = inlined_call_operand.vmem [shape: f32[9,128], index: 1, kind: input, shape index: {}]   ;;  %s14602_s2 = inlined_call_operand.hbm [shape: f32[2,16,16,128], index: 2, kind: output, shape index: {0}]   ;;  %s14603_s3 = inlined_call_operand.hbm [shape: f32[2,1,128], index: 3, kind: output, shape index: {1}]   ;;  %s14604_s4 = inlined_call_operand.hbm [shape: f32[2,1,128], index: 4, kind: output, shape index: {2}]  }
   0x1   :  { %12 = vsyncpa [#allocation4 + $0x1], 0 }
   0x2   :  { %13 = vsyncpa [#allocation6], 0 }
   0x3   :  { %15 = vsyncpa [#allocation6 + $0x1], 0  ;;  %s10036_s15 = smov 0   ;;  %s10038_s16 = smov 0  }
   0x4   :  { %s10040_s17 = smov 0   ;;  %s10042_s18 = smov 0  }
   0x5 LB: > { %s10057_s19 = sadd.s32 4294967295, %s9996_s18   ;;  %s8377_s20 = sadd.s32 4294967294, %s9996_s18   ;;  %s9996_s18 = sphi %s10042_s18, %s14799_s18   ;;  %s9992_s17 = sphi %s10040_s17, %s14798_s17   ;;  %s9988_s16 = sphi %s10038_s16, %s14797_s16   ;;  %s9984_s15 = sphi %s10036_s15, %s14796_s15  }
   0x6   : > { %s10061_s21 = sadd.s32 1, %s9996_s18   ;;  %s75_s22 = sadd.s32 1, %s9992_s17 }
   0x7   : > { %s72_s23 = ssub.s32 %s9996_s18, %s10061_s21  ;;  %p85_p0 = scmp.ne.s32.totalorder %s9992_s17, %s9988_s16 }
   0x8   : > { %p73_p1 = scmp.eq.s32.totalorder %s72_s23, 0  ;;  %p86_p2 = scmp.eq.s32.totalorder %s10057_s19, 1 }
   0x9   : > { %p91_p3 = scmp.ne.s32.totalorder %s9988_s16, %s9984_s15  ;;  %p92_p4 = scmp.eq.s32.totalorder %s8377_s20, 1 }
   0xa   : > { %s10074_s24 = scalar_select %p73_p1, %s9992_s17, %s75_s22  }
   0xb   : > { %p10076_p5 = por %p86_p2, %p85_p0  ;;  %p10080_p6 = por %p92_p4, %p91_p3 }
   0xc   : > { %p8380_p7 = scmp.ge.s32.totalorder %s9996_s18, 1  ;;  %p173_p8 = scmp.lt.s32.totalorder %s9996_s18, 3 }
   0xe   : > { %p174_p9 = pnand %p8380_p7, %p173_p8 }
  0x10   : > { %177 = sbr.rel (%p174_p9) target bundleno = 2481 (0x9b1), region = 28 }
  0x17   : > { %p207_p10 = scmp.lt.s32.totalorder %s10057_s19, 1  ;;  %s9998_s6 = smov 1   ;;  %vm276_vm0 = vcmask 7168   ;;  %vm662_vm1 = vcmask 15368   ;;  %vm1047_vm2 = vcmask 23568   ;;  %vm1433_vm3 = vcmask 31768  }
  0x18   : > { %s9999_s7 = smov 2   ;;  %s10000_s8 = smov 3   ;;  %vm1819_vm4 = vcmask 39968   ;;  %vm2204_vm5 = vcmask 48168   ;;  %vm2590_vm6 = vcmask 56368   ;;  %vm2976_vm7 = vcmask 64568  }
  0x19   : > { %s208_s27 = scalar_select %p207_p10, %s10057_s19, 1  ;;  %vm7141_vm8 = vcmask 1040384   ;;  %vm10005_vm9 = vmmov 1   ;;  %vm3361_vm11 = vcmask 72768   ;;  %vm6756_vm12 = vcmask 72704  }
  0x1a   : > { %s10001_s9 = smov 4   ;;  %s10002_s10 = smov 5   ;;  %vm9807_vm10 = vmpackc.low %vm7141_vm8, %vm10005_vm9 }
  0x1b   : > { %s9814_s28 = smul.u32 1632, %s208_s27  ;;  %s10003_s11 = smov 6  }
  0x1c   : > { %s10004_s12 = smov 7   ;;  %s10006_s27 = smov 8  }
  0x1d   : > { %s10091_s5 = scalar_lea.vmem %s14600_s0, %s9814_s28  ;;  %s14183_s28 = sand.u32 1, %s9988_s16  }
  0x1e   : > { %v8383_v0 = vld [vmem:[%s10091_s5 + $0x330] sm:$0xff]  ;;  %v8385_v1 = vld [vmem:[%s10091_s5 + $0x348] sm:$0xff]  ;;  %v8384_v2 = vld [vmem:[%s10091_s5 + $0x338] sm:$0xff]  ;;  %s8381_s29 = sshll.u32 %s14183_s28, 8 }
  0x1f   : > { %470 = vrot.lane.b32.xlu0 %v8383_v0, %s9998_s6  ;;  %474 = vrot.lane.b32.xlu1 %v8385_v1, %s9998_s6  ;;  %v8386_v3 = vld [vmem:[%s10091_s5 + $0x350] sm:$0xff]  ;;  %v8387_v4 = vld [vmem:[%s10091_s5 + $0x360] sm:$0xff]  ;;  %s14201_s30 = scalar_lea.vmem [#allocation3], %s8381_s29 }
  0x20   : > { %v8388_v5 = vld [vmem:[%s10091_s5 + $0x368] sm:$0xff]  ;;  %v8389_v6 = vld [vmem:[%s10091_s5 + $0x378] sm:$0xff]  ;;  %v8390_v7 = vld [vmem:[%s10091_s5 + $0x380] sm:$0xff] }
  0x21   : > { %v8391_v8 = vld [vmem:[%s10091_s5 + $0x390] sm:$0xff]  ;;  %v8392_v9 = vld [vmem:[%s10091_s5 + $0x398] sm:$0xff]  ;;  %v8393_v10 = vld [vmem:[%s10091_s5 + $0x3a8] sm:$0xff] }
  0x22   : > { %v8394_v11 = vld [vmem:[%s10091_s5 + $0x3b0] sm:$0xff]  ;;  %v212_v12 = vld [vmem:[%s10091_s5] sm:$0xff]  ;;  %v10119_v13 = vld [vmem:[%s10091_s5 + $0x18] sm:$0xff] }
  0x23   : > { %472 = vrot.lane.b32.xlu0 %v8384_v2, %s9998_s6  ;;  %476 = vrot.lane.b32.xlu1 %v8386_v3, %s9998_s6  ;;  %v8395_v14 = vld [vmem:[%s10091_s5 + $0x3c0] sm:$0xff]  ;;  %v8396_v15 = vld [vmem:[%s10091_s5 + $0x3c8] sm:$0xff]  ;;  %277 = vst.msk [vmem:[#allocation2] sm:$0xff] %vm276_vm0, %v212_v12  ;;  %279 = vst.msk [vmem:[#allocation2 + $0x10] sm:$0xff] %vm276_vm0, %v10119_v13 }
  0x24   : > { %v213_v16 = vld [vmem:[%s10091_s5 + $0x8] sm:$0xff]  ;;  %v10129_v17 = vld [vmem:[%s10091_s5 + $0x20] sm:$0xff]  ;;  %v10134_v18 = vld [vmem:[%s10091_s5 + $0x30] sm:$0xff] }
  0x25   : > { %278 = vst.msk [vmem:[#allocation2 + $0x8] sm:$0xff] %vm276_vm0, %v213_v16  ;;  %280 = vst.msk [vmem:[#allocation2 + $0x18] sm:$0xff] %vm276_vm0, %v10129_v17  ;;  %v10137_v19 = vld [vmem:[%s10091_s5 + $0x38] sm:$0xff]  ;;  %v10146_v20 = vld [vmem:[%s10091_s5 + $0x48] sm:$0xff] }
  0x26   : > { %281 = vst.msk [vmem:[#allocation2 + $0x20] sm:$0xff] %vm276_vm0, %v10134_v18  ;;  %282 = vst.msk [vmem:[#allocation2 + $0x28] sm:$0xff] %vm276_vm0, %v10137_v19  ;;  %v8397_v21 = vld [vmem:[%s10091_s5 + $0x3d8] sm:$0xff]  ;;  %v8398_v22 = vld [vmem:[%s10091_s5 + $0x3e0] sm:$0xff] }
  0x27   : > { %478 = vrot.lane.b32.xlu0 %v8387_v4, %s9998_s6  ;;  %480 = vrot.lane.b32.xlu1 %v8388_v5, %s9998_s6  ;;  %283 = vst.msk [vmem:[#allocation2 + $0x30] sm:$0xff] %vm276_vm0, %v10146_v20  ;;  %v10153_v23 = vld [vmem:[%s10091_s5 + $0x50] sm:$0xff]  ;;  %v10158_v24 = vld [vmem:[%s10091_s5 + $0x60] sm:$0xff] }
  0x28   : > { %284 = vst.msk [vmem:[#allocation2 + $0x38] sm:$0xff] %vm276_vm0, %v10153_v23  ;;  %v10161_v25 = vld [vmem:[%s10091_s5 + $0x68] sm:$0xff]  ;;  %285 = vst.msk [vmem:[#allocation2 + $0x40] sm:$0xff] %vm276_vm0, %v10158_v24  ;;  %v10168_v26 = vld [vmem:[%s10091_s5 + $0x78] sm:$0xff] }
  0x29   : > { %286 = vst.msk [vmem:[#allocation2 + $0x48] sm:$0xff] %vm276_vm0, %v10161_v25  ;;  %v10171_v27 = vld [vmem:[%s10091_s5 + $0x80] sm:$0xff]  ;;  %v8399_v28 = vld [vmem:[%s10091_s5 + $0x3f0] sm:$0xff]  ;;  %287 = vst.msk [vmem:[#allocation2 + $0x50] sm:$0xff] %vm276_vm0, %v10168_v26 }
  0x2a   : > { %288 = vst.msk [vmem:[#allocation2 + $0x58] sm:$0xff] %vm276_vm0, %v10171_v27  ;;  %v8400_v29 = vld [vmem:[%s10091_s5 + $0x3f8] sm:$0xff]  ;;  %v10182_v30 = vld [vmem:[%s10091_s5 + $0x90] sm:$0xff]  ;;  %v10192_v32 = vld [vmem:[%s10091_s5 + $0xa8] sm:$0xff] }
  0x2b   : > { %482 = vrot.lane.b32.xlu0 %v8389_v6, %s9998_s6  ;;  %484 = vrot.lane.b32.xlu1 %v8390_v7, %s9998_s6  ;;  %v10185_v31 = vld [vmem:[%s10091_s5 + $0x98] sm:$0xff]  ;;  %289 = vst.msk [vmem:[#allocation2 + $0x60] sm:$0xff] %vm276_vm0, %v10182_v30  ;;  %v10195_v33 = vld [vmem:[%s10091_s5 + $0xb0] sm:$0xff]  ;;  %291 = vst.msk [vmem:[#allocation2 + $0x70] sm:$0xff] %vm276_vm0, %v10192_v32 }
  0x2c   : > { %290 = vst.msk [vmem:[#allocation2 + $0x68] sm:$0xff] %vm276_vm0, %v10185_v31  ;;  %292 = vst.msk [vmem:[#allocation2 + $0x78] sm:$0xff] %vm276_vm0, %v10195_v33  ;;  %v10202_v34 = vld [vmem:[%s10091_s5 + $0xc0] sm:$0xff]  ;;  %v8401_v35 = vld [vmem:[%s10091_s5 + $0x408] sm:$0xff] }
  0x2d   : > { %293 = vst.msk [vmem:[#allocation2 + $0x80] sm:$0xff] %vm276_vm0, %v10202_v34  ;;  %v10210_v36 = vld [vmem:[%s10091_s5 + $0xc8] sm:$0xff]  ;;  %v8402_v37 = vld [vmem:[%s10091_s5 + $0x410] sm:$0xff]  ;;  %v10216_v38 = vld [vmem:[%s10091_s5 + $0xd8] sm:$0xff] }
  0x2e   : > { %294 = vst.msk [vmem:[#allocation2 + $0x88] sm:$0xff] %vm276_vm0, %v10210_v36  ;;  %v10219_v39 = vld [vmem:[%s10091_s5 + $0xe0] sm:$0xff]  ;;  %295 = vst.msk [vmem:[#allocation2 + $0x90] sm:$0xff] %vm276_vm0, %v10216_v38  ;;  %v10226_v40 = vld [vmem:[%s10091_s5 + $0xf0] sm:$0xff] }
  0x2f   : > { %486 = vrot.lane.b32.xlu0 %v8391_v8, %s9998_s6  ;;  %488 = vrot.lane.b32.xlu1 %v8392_v9, %s9998_s6  ;;  %296 = vst.msk [vmem:[#allocation2 + $0x98] sm:$0xff] %vm276_vm0, %v10219_v39  ;;  %297 = vst.msk [vmem:[#allocation2 + $0xa0] sm:$0xff] %vm276_vm0, %v10226_v40  ;;  %v10231_v41 = vld [vmem:[%s10091_s5 + $0xf8] sm:$0xff]  ;;  %v10238_v42 = vld [vmem:[%s10091_s5 + $0x108] sm:$0xff] }
  0x30   : > { %298 = vst.msk [vmem:[#allocation2 + $0xa8] sm:$0xff] %vm276_vm0, %v10231_v41  ;;  %v10241_v43 = vld [vmem:[%s10091_s5 + $0x110] sm:$0xff]  ;;  %v8403_v44 = vld [vmem:[%s10091_s5 + $0x420] sm:$0xff]  ;;  %v8404_v45 = vld [vmem:[%s10091_s5 + $0x428] sm:$0xff] }
  0x31   : > { %299 = vst.msk [vmem:[#allocation2 + $0xb0] sm:$0xff] %vm276_vm0, %v10238_v42  ;;  %300 = vst.msk [vmem:[#allocation2 + $0xb8] sm:$0xff] %vm276_vm0, %v10241_v43  ;;  %v10250_v46 = vld [vmem:[%s10091_s5 + $0x120] sm:$0xff]  ;;  %v10255_v47 = vld [vmem:[%s10091_s5 + $0x128] sm:$0xff] }
  0x32   : > { %301 = vst.msk [vmem:[#allocation2 + $0xc0] sm:$0xff] %vm276_vm0, %v10250_v46  ;;  %302 = vst.msk [vmem:[#allocation2 + $0xc8] sm:$0xff] %vm276_vm0, %v10255_v47  ;;  %v10260_v48 = vld [vmem:[%s10091_s5 + $0x138] sm:$0xff]  ;;  %v10263_v49 = vld [vmem:[%s10091_s5 + $0x140] sm:$0xff] }
  0x33   : > { %490 = vrot.lane.b32.xlu0 %v8393_v10, %s9998_s6  ;;  %492 = vrot.lane.b32.xlu1 %v8394_v11, %s9998_s6  ;;  %303 = vst.msk [vmem:[#allocation2 + $0xd0] sm:$0xff] %vm276_vm0, %v10260_v48  ;;  %304 = vst.msk [vmem:[#allocation2 + $0xd8] sm:$0xff] %vm276_vm0, %v10263_v49  ;;  %v8405_v50 = vld [vmem:[%s10091_s5 + $0x438] sm:$0xff]  ;;  %v8406_v51 = vld [vmem:[%s10091_s5 + $0x440] sm:$0xff] }
  0x34   : > { %v10274_v52 = vld [vmem:[%s10091_s5 + $0x150] sm:$0xff]  ;;  %v10279_v53 = vld [vmem:[%s10091_s5 + $0x158] sm:$0xff]  ;;  %v10288_v56 = vld [vmem:[%s10091_s5 + $0x168] sm:$0xff] }
  0x35   : > { %305 = vst.msk [vmem:[#allocation2 + $0xe0] sm:$0xff] %vm276_vm0, %v10274_v52  ;;  %306 = vst.msk [vmem:[#allocation2 + $0xe8] sm:$0xff] %vm276_vm0, %v10279_v53  ;;  %v8407_v54 = vld [vmem:[%s10091_s5 + $0x450] sm:$0xff]  ;;  %v8408_v55 = vld [vmem:[%s10091_s5 + $0x458] sm:$0xff] }
  0x36   : > { %307 = vst.msk [vmem:[#allocation2 + $0xf0] sm:$0xff] %vm276_vm0, %v10288_v56  ;;  %v10293_v57 = vld [vmem:[%s10091_s5 + $0x170] sm:$0xff]  ;;  %v8409_v58 = vld [vmem:[%s10091_s5 + $0x468] sm:$0xff]  ;;  %v10302_v60 = vld [vmem:[%s10091_s5 + $0x180] sm:$0xff] }
  0x37   : > { %494 = vrot.lane.b32.xlu0 %v8395_v14, %s9998_s6  ;;  %496 = vrot.lane.b32.xlu1 %v8396_v15, %s9998_s6  ;;  %308 = vst.msk [vmem:[#allocation2 + $0xf8] sm:$0xff] %vm276_vm0, %v10293_v57  ;;  %v8410_v59 = vld [vmem:[%s10091_s5 + $0x470] sm:$0xff]  ;;  %309 = vst.msk [vmem:[#allocation2 + $0x100] sm:$0xff] %vm276_vm0, %v10302_v60  ;;  %v10307_v61 = vld [vmem:[%s10091_s5 + $0x188] sm:$0xff] }
  0x38   : > { %310 = vst.msk [vmem:[#allocation2 + $0x108] sm:$0xff] %vm276_vm0, %v10307_v61  ;;  %v8411_v62 = vld [vmem:[%s10091_s5 + $0x480] sm:$0xff]  ;;  %v8412_v63 = vld [vmem:[%s10091_s5 + $0x488] sm:$0xff]  ;;  %v10316_v0 = vld [vmem:[%s10091_s5 + $0x198] sm:$0xff] }
  0x39   : > { %311 = vst.msk [vmem:[#allocation2 + $0x110] sm:$0xff] %vm276_vm0, %v10316_v0  ;;  %v10321_v1 = vld [vmem:[%s10091_s5 + $0x1a0] sm:$0xff]  ;;  %v8413_v2 = vld [vmem:[%s10091_s5 + $0x498] sm:$0xff]  ;;  %v10330_v4 = vld [vmem:[%s10091_s5 + $0x1b0] sm:$0xff] }
  0x3a   : > { %312 = vst.msk [vmem:[#allocation2 + $0x118] sm:$0xff] %vm276_vm0, %v10321_v1  ;;  %v8414_v3 = vld [vmem:[%s10091_s5 + $0x4a0] sm:$0xff]  ;;  %313 = vst.msk [vmem:[#allocation2 + $0x120] sm:$0xff] %vm276_vm0, %v10330_v4  ;;  %v10335_v5 = vld [vmem:[%s10091_s5 + $0x1b8] sm:$0xff] }
  0x3b   : > { %498 = vrot.lane.b32.xlu0 %v8397_v21, %s9998_s6  ;;  %500 = vrot.lane.b32.xlu1 %v8398_v22, %s9998_s6  ;;  %314 = vst.msk [vmem:[#allocation2 + $0x128] sm:$0xff] %vm276_vm0, %v10335_v5  ;;  %v8415_v6 = vld [vmem:[%s10091_s5 + $0x4b0] sm:$0xff]  ;;  %v8416_v7 = vld [vmem:[%s10091_s5 + $0x4b8] sm:$0xff] }
  0x3c   : > { %v10344_v8 = vld [vmem:[%s10091_s5 + $0x1c8] sm:$0xff]  ;;  %v10349_v9 = vld [vmem:[%s10091_s5 + $0x1d0] sm:$0xff]  ;;  %v10358_v12 = vld [vmem:[%s10091_s5 + $0x1e0] sm:$0xff] }
  0x3d   : > { %315 = vst.msk [vmem:[#allocation2 + $0x130] sm:$0xff] %vm276_vm0, %v10344_v8  ;;  %316 = vst.msk [vmem:[#allocation2 + $0x138] sm:$0xff] %vm276_vm0, %v10349_v9  ;;  %v8417_v10 = vld [vmem:[%s10091_s5 + $0x4c8] sm:$0xff]  ;;  %v8418_v11 = vld [vmem:[%s10091_s5 + $0x4d0] sm:$0xff] }
  0x3e   : > { %317 = vst.msk [vmem:[#allocation2 + $0x140] sm:$0xff] %vm276_vm0, %v10358_v12  ;;  %v10363_v14 = vld [vmem:[%s10091_s5 + $0x1e8] sm:$0xff]  ;;  %v8419_v15 = vld [vmem:[%s10091_s5 + $0x4e0] sm:$0xff]  ;;  %v10372_v21 = vld [vmem:[%s10091_s5 + $0x1f8] sm:$0xff] }
  0x3f   : > { %502 = vrot.lane.b32.xlu0 %v8399_v28, %s9998_s6  ;;  %504 = vrot.lane.b32.xlu1 %v8400_v29, %s9998_s6  ;;  %318 = vst.msk [vmem:[#allocation2 + $0x148] sm:$0xff] %vm276_vm0, %v10363_v14  ;;  %v8420_v16 = vld [vmem:[%s10091_s5 + $0x4e8] sm:$0xff]  ;;  %319 = vst.msk [vmem:[#allocation2 + $0x150] sm:$0xff] %vm276_vm0, %v10372_v21  ;;  %v10377_v22 = vld [vmem:[%s10091_s5 + $0x200] sm:$0xff] }
  0x40   : > { %320 = vst.msk [vmem:[#allocation2 + $0x158] sm:$0xff] %vm276_vm0, %v10377_v22  ;;  %v8421_v28 = vld [vmem:[%s10091_s5 + $0x4f8] sm:$0xff]  ;;  %v8422_v29 = vld [vmem:[%s10091_s5 + $0x500] sm:$0xff] }
  0x43   : > { %506 = vrot.lane.b32.xlu0 %v8401_v35, %s9998_s6  ;;  %508 = vrot.lane.b32.xlu1 %v8402_v37, %s9998_s6  ;;  %v10386_v35 = vld [vmem:[%s10091_s5 + $0x210] sm:$0xff]  ;;  %v10391_v37 = vld [vmem:[%s10091_s5 + $0x218] sm:$0xff] }
  0x44   : > { %321 = vst.msk [vmem:[#allocation2 + $0x160] sm:$0xff] %vm276_vm0, %v10386_v35  ;;  %322 = vst.msk [vmem:[#allocation2 + $0x168] sm:$0xff] %vm276_vm0, %v10391_v37 }
  0x47   : > { %510 = vrot.lane.b32.xlu0 %v8403_v44, %s9998_s6  ;;  %512 = vrot.lane.b32.xlu1 %v8404_v45, %s9998_s6  ;;  %v8423_v44 = vld [vmem:[%s10091_s5 + $0x510] sm:$0xff]  ;;  %v8424_v45 = vld [vmem:[%s10091_s5 + $0x518] sm:$0xff] }
  0x4b   : > { %514 = vrot.lane.b32.xlu0 %v8405_v50, %s9998_s6  ;;  %516 = vrot.lane.b32.xlu1 %v8406_v51, %s9998_s6  ;;  %v10400_v50 = vld [vmem:[%s10091_s5 + $0x228] sm:$0xff]  ;;  %v10405_v51 = vld [vmem:[%s10091_s5 + $0x230] sm:$0xff] }
  0x4c   : > { %323 = vst.msk [vmem:[#allocation2 + $0x170] sm:$0xff] %vm276_vm0, %v10400_v50  ;;  %324 = vst.msk [vmem:[#allocation2 + $0x178] sm:$0xff] %vm276_vm0, %v10405_v51 }
  0x4f   : > { %518 = vrot.lane.b32.xlu0 %v8407_v54, %s9998_s6  ;;  %520 = vrot.lane.b32.xlu1 %v8408_v55, %s9998_s6  ;;  %v8425_v54 = vld [vmem:[%s10091_s5 + $0x528] sm:$0xff]  ;;  %v8426_v55 = vld [vmem:[%s10091_s5 + $0x530] sm:$0xff] }
  0x53   : > { %522 = vrot.lane.b32.xlu0 %v8409_v58, %s9998_s6  ;;  %524 = vrot.lane.b32.xlu1 %v8410_v59, %s9998_s6  ;;  %v10414_v58 = vld [vmem:[%s10091_s5 + $0x240] sm:$0xff]  ;;  %v10419_v59 = vld [vmem:[%s10091_s5 + $0x248] sm:$0xff] }
  0x54   : > { %325 = vst.msk [vmem:[#allocation2 + $0x180] sm:$0xff] %vm276_vm0, %v10414_v58  ;;  %326 = vst.msk [vmem:[#allocation2 + $0x188] sm:$0xff] %vm276_vm0, %v10419_v59 }
  0x57   : > { %526 = vrot.lane.b32.xlu0 %v8411_v62, %s9998_s6  ;;  %528 = vrot.lane.b32.xlu1 %v8412_v63, %s9998_s6  ;;  %v8427_v62 = vld [vmem:[%s10091_s5 + $0x540] sm:$0xff]  ;;  %v8428_v63 = vld [vmem:[%s10091_s5 + $0x548] sm:$0xff] }
  0x5b   : > { %530 = vrot.lane.b32.xlu0 %v8413_v2, %s9998_s6  ;;  %532 = vrot.lane.b32.xlu1 %v8414_v3, %s9998_s6  ;;  %v10428_v2 = vld [vmem:[%s10091_s5 + $0x258] sm:$0xff]  ;;  %v10433_v3 = vld [vmem:[%s10091_s5 + $0x260] sm:$0xff] }
  0x5c   : > { %327 = vst.msk [vmem:[#allocation2 + $0x190] sm:$0xff] %vm276_vm0, %v10428_v2  ;;  %328 = vst.msk [vmem:[#allocation2 + $0x198] sm:$0xff] %vm276_vm0, %v10433_v3 }
  0x5f   : > { %534 = vrot.lane.b32.xlu0 %v8415_v6, %s9998_s6  ;;  %536 = vrot.lane.b32.xlu1 %v8416_v7, %s9998_s6  ;;  %v8429_v6 = vld [vmem:[%s10091_s5 + $0x558] sm:$0xff]  ;;  %v8430_v7 = vld [vmem:[%s10091_s5 + $0x560] sm:$0xff] }
  0x63   : > { %538 = vrot.lane.b32.xlu0 %v8417_v10, %s9998_s6  ;;  %540 = vrot.lane.b32.xlu1 %v8418_v11, %s9998_s6  ;;  %v10442_v10 = vld [vmem:[%s10091_s5 + $0x270] sm:$0xff]  ;;  %v10447_v11 = vld [vmem:[%s10091_s5 + $0x278] sm:$0xff] }
  0x64   : > { %329 = vst.msk [vmem:[#allocation2 + $0x1a0] sm:$0xff] %vm276_vm0, %v10442_v10  ;;  %330 = vst.msk [vmem:[#allocation2 + $0x1a8] sm:$0xff] %vm276_vm0, %v10447_v11 }
  0x67   : > { %542 = vrot.lane.b32.xlu0 %v8419_v15, %s9998_s6  ;;  %544 = vrot.lane.b32.xlu1 %v8420_v16, %s9998_s6  ;;  %v8431_v15 = vld [vmem:[%s10091_s5 + $0x570] sm:$0xff]  ;;  %v8432_v16 = vld [vmem:[%s10091_s5 + $0x578] sm:$0xff] }
  0x6b   : > { %546 = vrot.lane.b32.xlu0 %v8421_v28, %s9998_s6  ;;  %548 = vrot.lane.b32.xlu1 %v8422_v29, %s9998_s6  ;;  %v10456_v28 = vld [vmem:[%s10091_s5 + $0x288] sm:$0xff]  ;;  %v10461_v29 = vld [vmem:[%s10091_s5 + $0x290] sm:$0xff] }
  0x6c   : > { %331 = vst.msk [vmem:[#allocation2 + $0x1b0] sm:$0xff] %vm276_vm0, %v10456_v28  ;;  %332 = vst.msk [vmem:[#allocation2 + $0x1b8] sm:$0xff] %vm276_vm0, %v10461_v29 }
  0x6f   : > { %550 = vrot.lane.b32.xlu0 %v8423_v44, %s9998_s6  ;;  %552 = vrot.lane.b32.xlu1 %v8424_v45, %s9998_s6  ;;  %v8433_v44 = vld [vmem:[%s10091_s5 + $0x588] sm:$0xff]  ;;  %v8434_v45 = vld [vmem:[%s10091_s5 + $0x590] sm:$0xff] }
  0x73   : > { %554 = vrot.lane.b32.xlu0 %v8425_v54, %s9998_s6  ;;  %556 = vrot.lane.b32.xlu1 %v8426_v55, %s9998_s6  ;;  %v10470_v54 = vld [vmem:[%s10091_s5 + $0x2a0] sm:$0xff]  ;;  %v10475_v55 = vld [vmem:[%s10091_s5 + $0x2a8] sm:$0xff] }
  0x74   : > { %14632 = vst [vmem:[#allocation10_spill] sm:$0xff] %v10470_v54  ;;  %333 = vst.msk [vmem:[#allocation2 + $0x1c0] sm:$0xff] %vm276_vm0, %v10470_v54 }
  0x75   : > { %14633 = vst [vmem:[#allocation11_spill] sm:$0xff] %v10475_v55  ;;  %334 = vst.msk [vmem:[#allocation2 + $0x1c8] sm:$0xff] %vm276_vm0, %v10475_v55 }
  0x77   : > { %558 = vrot.lane.b32.xlu0 %v8427_v62, %s9998_s6  ;;  %560 = vrot.lane.b32.xlu1 %v8428_v63, %s9998_s6  ;;  %v8435_v62 = vld [vmem:[%s10091_s5 + $0x5a0] sm:$0xff]  ;;  %v8436_v63 = vld [vmem:[%s10091_s5 + $0x5a8] sm:$0xff] }
  0x7b   : > { %562 = vrot.lane.b32.xlu0 %v8429_v6, %s9998_s6  ;;  %564 = vrot.lane.b32.xlu1 %v8430_v7, %s9998_s6  ;;  %v10484_v6 = vld [vmem:[%s10091_s5 + $0x2b8] sm:$0xff]  ;;  %v10489_v7 = vld [vmem:[%s10091_s5 + $0x2c0] sm:$0xff] }
  0x7c   : > { %14634 = vst [vmem:[#allocation12_spill] sm:$0xff] %v10484_v6  ;;  %335 = vst.msk [vmem:[#allocation2 + $0x1d0] sm:$0xff] %vm276_vm0, %v10484_v6  ;;  %v10517_v6 = vld [vmem:[%s10091_s5 + $0x2f0] sm:$0xff] }
  0x7d   : > { %14635 = vst [vmem:[#allocation13_spill] sm:$0xff] %v10489_v7  ;;  %336 = vst.msk [vmem:[#allocation2 + $0x1d8] sm:$0xff] %vm276_vm0, %v10489_v7  ;;  %v10512_v7 = vld [vmem:[%s10091_s5 + $0x2e8] sm:$0xff] }
  0x7e   : > { %14638 = vst [vmem:[#allocation16_spill] sm:$0xff] %v10512_v7  ;;  %339 = vst.msk [vmem:[#allocation2 + $0x1f0] sm:$0xff] %vm276_vm0, %v10512_v7 }
  0x7f   : > { %566 = vrot.lane.b32.xlu0 %v8431_v15, %s9998_s6  ;;  %568 = vrot.lane.b32.xlu1 %v8432_v16, %s9998_s6  ;;  %v8437_v15 = vld [vmem:[%s10091_s5 + $0x5b8] sm:$0xff]  ;;  %v8438_v16 = vld [vmem:[%s10091_s5 + $0x5c0] sm:$0xff]  ;;  %14639 = vst [vmem:[#allocation17_spill] sm:$0xff] %v10517_v6  ;;  %340 = vst.msk [vmem:[#allocation2 + $0x1f8] sm:$0xff] %vm276_vm0, %v10517_v6 }
  0x80   : > { %v8443_v6 = vld [vmem:[%s10091_s5 + $0x600] sm:$0xff] }
  0x83   : > { %570 = vrot.lane.b32.xlu0 %v8433_v44, %s9998_s6  ;;  %572 = vrot.lane.b32.xlu1 %v8434_v45, %s9998_s6  ;;  %v10498_v44 = vld [vmem:[%s10091_s5 + $0x2d0] sm:$0xff]  ;;  %v10503_v45 = vld [vmem:[%s10091_s5 + $0x2d8] sm:$0xff] }
  0x84   : > { %14636 = vst [vmem:[#allocation14_spill] sm:$0xff] %v10498_v44  ;;  %337 = vst.msk [vmem:[#allocation2 + $0x1e0] sm:$0xff] %vm276_vm0, %v10498_v44 }
  0x85   : > { %14637 = vst [vmem:[#allocation15_spill] sm:$0xff] %v10503_v45  ;;  %338 = vst.msk [vmem:[#allocation2 + $0x1e8] sm:$0xff] %vm276_vm0, %v10503_v45 }
  0x87   : > { %574 = vrot.lane.b32.xlu0 %v8435_v62, %s9998_s6  ;;  %576 = vrot.lane.b32.xlu1 %v8436_v63, %s9998_s6  ;;  %v8439_v62 = vld [vmem:[%s10091_s5 + $0x5d0] sm:$0xff]  ;;  %v8440_v63 = vld [vmem:[%s10091_s5 + $0x5d8] sm:$0xff] }
  0x8b   : > { %578 = vrot.lane.b32.xlu0 %v8437_v15, %s9998_s6  ;;  %580 = vrot.lane.b32.xlu1 %v8438_v16, %s9998_s6  ;;  %v8441_v15 = vld [vmem:[%s10091_s5 + $0x5e8] sm:$0xff]  ;;  %v8442_v16 = vld [vmem:[%s10091_s5 + $0x5f0] sm:$0xff] }
  0x8f   : > { %582 = vrot.lane.b32.xlu0 %v8439_v62, %s9998_s6  ;;  %584 = vrot.lane.b32.xlu1 %v8440_v63, %s9998_s6  ;;  %v8444_v62 = vld [vmem:[%s10091_s5 + $0x608] sm:$0xff] }
  0x91   : > { %v471_v45 = vpop.permute.xlu0 %470  ;;  %v475_v44 = vpop.permute.xlu1 %474 }
  0x92   : > { %663 = vst.msk [vmem:[#allocation2] sm:$0xff] %vm662_vm1, %v471_v45  ;;  %665 = vst.msk [vmem:[#allocation2 + $0x10] sm:$0xff] %vm662_vm1, %v475_v44  ;;  %v8445_v45 = vld [vmem:[%s10091_s5 + $0x618] sm:$0xff]  ;;  %v8446_v44 = vld [vmem:[%s10091_s5 + $0x620] sm:$0xff] }
  0x93   : > { %586 = vrot.lane.b32.xlu0 %v8441_v15, %s9998_s6  ;;  %588 = vrot.lane.b32.xlu1 %v8442_v16, %s9998_s6 }
  0x95   : > { %v473_v63 = vpop.permute.xlu0 %472  ;;  %v477_v7 = vpop.permute.xlu1 %476 }
  0x96   : > { %664 = vst.msk [vmem:[#allocation2 + $0x8] sm:$0xff] %vm662_vm1, %v473_v63  ;;  %666 = vst.msk [vmem:[#allocation2 + $0x18] sm:$0xff] %vm662_vm1, %v477_v7  ;;  %v727_v63 = vld [vmem:[%s10091_s5 + $0x1] sm:$0xff]  ;;  %v728_v7 = vld [vmem:[%s10091_s5 + $0x9] sm:$0xff] }
  0x97   : > { %590 = vrot.lane.b32.xlu0 %v8443_v6, %s9998_s6  ;;  %592 = vrot.lane.b32.xlu1 %v8444_v62, %s9998_s6 }
  0x99   : > { %v479_v15 = vpop.permute.xlu0 %478  ;;  %v481_v16 = vpop.permute.xlu1 %480 }
  0x9a   : > { %667 = vst.msk [vmem:[#allocation2 + $0x20] sm:$0xff] %vm662_vm1, %v479_v15  ;;  %668 = vst.msk [vmem:[#allocation2 + $0x28] sm:$0xff] %vm662_vm1, %v481_v16  ;;  %v729_v15 = vld [vmem:[%s10091_s5 + $0x19] sm:$0xff] }
  0x9b   : > { %594 = vrot.lane.b32.xlu0 %v8445_v45, %s9998_s6  ;;  %596 = vrot.lane.b32.xlu1 %v8446_v44, %s9998_s6  ;;  %v730_v45 = vld [vmem:[%s10091_s5 + $0x21] sm:$0xff] }
  0x9d   : > { %v483_v6 = vpop.permute.xlu0 %482  ;;  %v485_v62 = vpop.permute.xlu1 %484 }
  0x9e   : > { %669 = vst.msk [vmem:[#allocation2 + $0x30] sm:$0xff] %vm662_vm1, %v483_v6  ;;  %670 = vst.msk [vmem:[#allocation2 + $0x38] sm:$0xff] %vm662_vm1, %v485_v62  ;;  %v731_v6 = vld [vmem:[%s10091_s5 + $0x31] sm:$0xff]  ;;  %v732_v62 = vld [vmem:[%s10091_s5 + $0x39] sm:$0xff] }
  0x9f   : > { %855 = vrot.lane.b32.xlu0 %v727_v63, %s9999_s7  ;;  %857 = vrot.lane.b32.xlu1 %v728_v7, %s9999_s7 }
  0xa1   : > { %v487_v44 = vpop.permute.xlu0 %486  ;;  %v489_v16 = vpop.permute.xlu1 %488 }
  0xa2   : > { %671 = vst.msk [vmem:[#allocation2 + $0x40] sm:$0xff] %vm662_vm1, %v487_v44  ;;  %672 = vst.msk [vmem:[#allocation2 + $0x48] sm:$0xff] %vm662_vm1, %v489_v16  ;;  %v733_v44 = vld [vmem:[%s10091_s5 + $0x49] sm:$0xff]  ;;  %v734_v16 = vld [vmem:[%s10091_s5 + $0x51] sm:$0xff] }
  0xa3   : > { %859 = vrot.lane.b32.xlu0 %v729_v15, %s9999_s7  ;;  %861 = vrot.lane.b32.xlu1 %v730_v45, %s9999_s7 }
  0xa5   : > { %v491_v63 = vpop.permute.xlu0 %490  ;;  %v493_v7 = vpop.permute.xlu1 %492 }
  0xa6   : > { %673 = vst.msk [vmem:[#allocation2 + $0x50] sm:$0xff] %vm662_vm1, %v491_v63  ;;  %674 = vst.msk [vmem:[#allocation2 + $0x58] sm:$0xff] %vm662_vm1, %v493_v7  ;;  %v735_v63 = vld [vmem:[%s10091_s5 + $0x61] sm:$0xff]  ;;  %v736_v7 = vld [vmem:[%s10091_s5 + $0x69] sm:$0xff] }
  0xa7   : > { %863 = vrot.lane.b32.xlu0 %v731_v6, %s9999_s7  ;;  %865 = vrot.lane.b32.xlu1 %v732_v62, %s9999_s7 }
  0xa9   : > { %v495_v15 = vpop.permute.xlu0 %494  ;;  %v497_v45 = vpop.permute.xlu1 %496 }
  0xaa   : > { %675 = vst.msk [vmem:[#allocation2 + $0x60] sm:$0xff] %vm662_vm1, %v495_v15  ;;  %676 = vst.msk [vmem:[#allocation2 + $0x68] sm:$0xff] %vm662_vm1, %v497_v45  ;;  %v737_v15 = vld [vmem:[%s10091_s5 + $0x79] sm:$0xff]  ;;  %v738_v45 = vld [vmem:[%s10091_s5 + $0x81] sm:$0xff] }
  0xab   : > { %867 = vrot.lane.b32.xlu0 %v733_v44, %s9999_s7  ;;  %869 = vrot.lane.b32.xlu1 %v734_v16, %s9999_s7 }
  0xad   : > { %v499_v6 = vpop.permute.xlu0 %498  ;;  %v501_v62 = vpop.permute.xlu1 %500 }
  0xae   : > { %677 = vst.msk [vmem:[#allocation2 + $0x70] sm:$0xff] %vm662_vm1, %v499_v6  ;;  %678 = vst.msk [vmem:[#allocation2 + $0x78] sm:$0xff] %vm662_vm1, %v501_v62  ;;  %v739_v6 = vld [vmem:[%s10091_s5 + $0x91] sm:$0xff]  ;;  %v740_v62 = vld [vmem:[%s10091_s5 + $0x99] sm:$0xff] }
  0xaf   : > { %871 = vrot.lane.b32.xlu0 %v735_v63, %s9999_s7  ;;  %873 = vrot.lane.b32.xlu1 %v736_v7, %s9999_s7 }
  0xb1   : > { %v503_v44 = vpop.permute.xlu0 %502  ;;  %v505_v16 = vpop.permute.xlu1 %504 }
  0xb2   : > { %679 = vst.msk [vmem:[#allocation2 + $0x80] sm:$0xff] %vm662_vm1, %v503_v44  ;;  %680 = vst.msk [vmem:[#allocation2 + $0x88] sm:$0xff] %vm662_vm1, %v505_v16  ;;  %v741_v44 = vld [vmem:[%s10091_s5 + $0xa9] sm:$0xff]  ;;  %v742_v16 = vld [vmem:[%s10091_s5 + $0xb1] sm:$0xff] }
  0xb3   : > { %875 = vrot.lane.b32.xlu0 %v737_v15, %s9999_s7  ;;  %877 = vrot.lane.b32.xlu1 %v738_v45, %s9999_s7 }
  0xb5   : > { %v507_v63 = vpop.permute.xlu0 %506  ;;  %v509_v7 = vpop.permute.xlu1 %508 }
  0xb6   : > { %681 = vst.msk [vmem:[#allocation2 + $0x90] sm:$0xff] %vm662_vm1, %v507_v63  ;;  %682 = vst.msk [vmem:[#allocation2 + $0x98] sm:$0xff] %vm662_vm1, %v509_v7  ;;  %v743_v63 = vld [vmem:[%s10091_s5 + $0xc1] sm:$0xff]  ;;  %v744_v7 = vld [vmem:[%s10091_s5 + $0xc9] sm:$0xff] }
  0xb7   : > { %879 = vrot.lane.b32.xlu0 %v739_v6, %s9999_s7  ;;  %881 = vrot.lane.b32.xlu1 %v740_v62, %s9999_s7 }
  0xb9   : > { %v511_v15 = vpop.permute.xlu0 %510  ;;  %v513_v45 = vpop.permute.xlu1 %512 }
  0xba   : > { %683 = vst.msk [vmem:[#allocation2 + $0xa0] sm:$0xff] %vm662_vm1, %v511_v15  ;;  %684 = vst.msk [vmem:[#allocation2 + $0xa8] sm:$0xff] %vm662_vm1, %v513_v45  ;;  %v745_v15 = vld [vmem:[%s10091_s5 + $0xd9] sm:$0xff]  ;;  %v746_v45 = vld [vmem:[%s10091_s5 + $0xe1] sm:$0xff] }
  0xbb   : > { %883 = vrot.lane.b32.xlu0 %v741_v44, %s9999_s7  ;;  %885 = vrot.lane.b32.xlu1 %v742_v16, %s9999_s7 }
  0xbd   : > { %v515_v6 = vpop.permute.xlu0 %514  ;;  %v517_v62 = vpop.permute.xlu1 %516 }
  0xbe   : > { %685 = vst.msk [vmem:[#allocation2 + $0xb0] sm:$0xff] %vm662_vm1, %v515_v6  ;;  %686 = vst.msk [vmem:[#allocation2 + $0xb8] sm:$0xff] %vm662_vm1, %v517_v62  ;;  %v747_v6 = vld [vmem:[%s10091_s5 + $0xf1] sm:$0xff]  ;;  %v748_v62 = vld [vmem:[%s10091_s5 + $0xf9] sm:$0xff] }
  0xbf   : > { %887 = vrot.lane.b32.xlu0 %v743_v63, %s9999_s7  ;;  %889 = vrot.lane.b32.xlu1 %v744_v7, %s9999_s7 }
  0xc1   : > { %v519_v44 = vpop.permute.xlu0 %518  ;;  %v521_v16 = vpop.permute.xlu1 %520 }
  0xc2   : > { %687 = vst.msk [vmem:[#allocation2 + $0xc0] sm:$0xff] %vm662_vm1, %v519_v44  ;;  %688 = vst.msk [vmem:[#allocation2 + $0xc8] sm:$0xff] %vm662_vm1, %v521_v16  ;;  %v749_v44 = vld [vmem:[%s10091_s5 + $0x109] sm:$0xff]  ;;  %v750_v16 = vld [vmem:[%s10091_s5 + $0x111] sm:$0xff] }
  0xc3   : > { %891 = vrot.lane.b32.xlu0 %v745_v15, %s9999_s7  ;;  %893 = vrot.lane.b32.xlu1 %v746_v45, %s9999_s7 }
  0xc5   : > { %v523_v63 = vpop.permute.xlu0 %522  ;;  %v525_v7 = vpop.permute.xlu1 %524 }
  0xc6   : > { %689 = vst.msk [vmem:[#allocation2 + $0xd0] sm:$0xff] %vm662_vm1, %v523_v63  ;;  %690 = vst.msk [vmem:[#allocation2 + $0xd8] sm:$0xff] %vm662_vm1, %v525_v7  ;;  %v751_v63 = vld [vmem:[%s10091_s5 + $0x121] sm:$0xff]  ;;  %v752_v7 = vld [vmem:[%s10091_s5 + $0x129] sm:$0xff] }
  0xc7   : > { %895 = vrot.lane.b32.xlu0 %v747_v6, %s9999_s7  ;;  %897 = vrot.lane.b32.xlu1 %v748_v62, %s9999_s7 }
  0xc9   : > { %v527_v15 = vpop.permute.xlu0 %526  ;;  %v529_v45 = vpop.permute.xlu1 %528 }
  0xca   : > { %691 = vst.msk [vmem:[#allocation2 + $0xe0] sm:$0xff] %vm662_vm1, %v527_v15  ;;  %692 = vst.msk [vmem:[#allocation2 + $0xe8] sm:$0xff] %vm662_vm1, %v529_v45  ;;  %v753_v15 = vld [vmem:[%s10091_s5 + $0x139] sm:$0xff]  ;;  %v754_v45 = vld [vmem:[%s10091_s5 + $0x141] sm:$0xff] }
  0xcb   : > { %899 = vrot.lane.b32.xlu0 %v749_v44, %s9999_s7  ;;  %901 = vrot.lane.b32.xlu1 %v750_v16, %s9999_s7 }
  0xcd   : > { %v531_v6 = vpop.permute.xlu0 %530  ;;  %v533_v62 = vpop.permute.xlu1 %532 }
  0xce   : > { %693 = vst.msk [vmem:[#allocation2 + $0xf0] sm:$0xff] %vm662_vm1, %v531_v6  ;;  %694 = vst.msk [vmem:[#allocation2 + $0xf8] sm:$0xff] %vm662_vm1, %v533_v62  ;;  %v755_v6 = vld [vmem:[%s10091_s5 + $0x151] sm:$0xff]  ;;  %v756_v62 = vld [vmem:[%s10091_s5 + $0x159] sm:$0xff] }
  0xcf   : > { %903 = vrot.lane.b32.xlu0 %v751_v63, %s9999_s7  ;;  %905 = vrot.lane.b32.xlu1 %v752_v7, %s9999_s7 }
  0xd1   : > { %v535_v44 = vpop.permute.xlu0 %534  ;;  %v537_v16 = vpop.permute.xlu1 %536 }
  0xd2   : > { %695 = vst.msk [vmem:[#allocation2 + $0x100] sm:$0xff] %vm662_vm1, %v535_v44  ;;  %696 = vst.msk [vmem:[#allocation2 + $0x108] sm:$0xff] %vm662_vm1, %v537_v16  ;;  %v757_v44 = vld [vmem:[%s10091_s5 + $0x169] sm:$0xff]  ;;  %v758_v16 = vld [vmem:[%s10091_s5 + $0x171] sm:$0xff] }
  0xd3   : > { %907 = vrot.lane.b32.xlu0 %v753_v15, %s9999_s7  ;;  %909 = vrot.lane.b32.xlu1 %v754_v45, %s9999_s7 }
  0xd5   : > { %v539_v63 = vpop.permute.xlu0 %538  ;;  %v541_v7 = vpop.permute.xlu1 %540 }
  0xd6   : > { %697 = vst.msk [vmem:[#allocation2 + $0x110] sm:$0xff] %vm662_vm1, %v539_v63  ;;  %698 = vst.msk [vmem:[#allocation2 + $0x118] sm:$0xff] %vm662_vm1, %v541_v7  ;;  %v759_v63 = vld [vmem:[%s10091_s5 + $0x181] sm:$0xff]  ;;  %v760_v7 = vld [vmem:[%s10091_s5 + $0x189] sm:$0xff] }
  0xd7   : > { %911 = vrot.lane.b32.xlu0 %v755_v6, %s9999_s7  ;;  %913 = vrot.lane.b32.xlu1 %v756_v62, %s9999_s7 }
  0xd9   : > { %v543_v15 = vpop.permute.xlu0 %542  ;;  %v545_v45 = vpop.permute.xlu1 %544 }
  0xda   : > { %699 = vst.msk [vmem:[#allocation2 + $0x120] sm:$0xff] %vm662_vm1, %v543_v15  ;;  %700 = vst.msk [vmem:[#allocation2 + $0x128] sm:$0xff] %vm662_vm1, %v545_v45  ;;  %v761_v15 = vld [vmem:[%s10091_s5 + $0x199] sm:$0xff]  ;;  %v762_v45 = vld [vmem:[%s10091_s5 + $0x1a1] sm:$0xff] }
  0xdb   : > { %915 = vrot.lane.b32.xlu0 %v757_v44, %s9999_s7  ;;  %917 = vrot.lane.b32.xlu1 %v758_v16, %s9999_s7 }
  0xdd   : > { %v547_v6 = vpop.permute.xlu0 %546  ;;  %v549_v62 = vpop.permute.xlu1 %548 }
  0xde   : > { %701 = vst.msk [vmem:[#allocation2 + $0x130] sm:$0xff] %vm662_vm1, %v547_v6  ;;  %702 = vst.msk [vmem:[#allocation2 + $0x138] sm:$0xff] %vm662_vm1, %v549_v62  ;;  %v763_v6 = vld [vmem:[%s10091_s5 + $0x1b1] sm:$0xff]  ;;  %v764_v62 = vld [vmem:[%s10091_s5 + $0x1b9] sm:$0xff] }
  0xdf   : > { %919 = vrot.lane.b32.xlu0 %v759_v63, %s9999_s7  ;;  %921 = vrot.lane.b32.xlu1 %v760_v7, %s9999_s7 }
  0xe1   : > { %v551_v44 = vpop.permute.xlu0 %550  ;;  %v553_v16 = vpop.permute.xlu1 %552 }
  0xe2   : > { %703 = vst.msk [vmem:[#allocation2 + $0x140] sm:$0xff] %vm662_vm1, %v551_v44  ;;  %704 = vst.msk [vmem:[#allocation2 + $0x148] sm:$0xff] %vm662_vm1, %v553_v16  ;;  %v765_v44 = vld [vmem:[%s10091_s5 + $0x1c9] sm:$0xff]  ;;  %v766_v16 = vld [vmem:[%s10091_s5 + $0x1d1] sm:$0xff] }
  0xe3   : > { %923 = vrot.lane.b32.xlu0 %v761_v15, %s9999_s7  ;;  %925 = vrot.lane.b32.xlu1 %v762_v45, %s9999_s7 }
  0xe5   : > { %v555_v63 = vpop.permute.xlu0 %554  ;;  %v557_v7 = vpop.permute.xlu1 %556 }
  0xe6   : > { %705 = vst.msk [vmem:[#allocation2 + $0x150] sm:$0xff] %vm662_vm1, %v555_v63  ;;  %706 = vst.msk [vmem:[#allocation2 + $0x158] sm:$0xff] %vm662_vm1, %v557_v7  ;;  %v767_v63 = vld [vmem:[%s10091_s5 + $0x1e1] sm:$0xff]  ;;  %v768_v7 = vld [vmem:[%s10091_s5 + $0x1e9] sm:$0xff] }
  0xe7   : > { %927 = vrot.lane.b32.xlu0 %v763_v6, %s9999_s7  ;;  %929 = vrot.lane.b32.xlu1 %v764_v62, %s9999_s7 }
  0xe9   : > { %v559_v15 = vpop.permute.xlu0 %558  ;;  %v561_v45 = vpop.permute.xlu1 %560 }
  0xea   : > { %707 = vst.msk [vmem:[#allocation2 + $0x160] sm:$0xff] %vm662_vm1, %v559_v15  ;;  %708 = vst.msk [vmem:[#allocation2 + $0x168] sm:$0xff] %vm662_vm1, %v561_v45  ;;  %v769_v15 = vld [vmem:[%s10091_s5 + $0x1f9] sm:$0xff]  ;;  %v770_v45 = vld [vmem:[%s10091_s5 + $0x201] sm:$0xff] }
  0xeb   : > { %931 = vrot.lane.b32.xlu0 %v765_v44, %s9999_s7  ;;  %933 = vrot.lane.b32.xlu1 %v766_v16, %s9999_s7 }
  0xed   : > { %v563_v6 = vpop.permute.xlu0 %562  ;;  %v565_v62 = vpop.permute.xlu1 %564 }
  0xee   : > { %709 = vst.msk [vmem:[#allocation2 + $0x170] sm:$0xff] %vm662_vm1, %v563_v6  ;;  %710 = vst.msk [vmem:[#allocation2 + $0x178] sm:$0xff] %vm662_vm1, %v565_v62  ;;  %v771_v6 = vld [vmem:[%s10091_s5 + $0x211] sm:$0xff]  ;;  %v772_v62 = vld [vmem:[%s10091_s5 + $0x219] sm:$0xff] }
  0xef   : > { %935 = vrot.lane.b32.xlu0 %v767_v63, %s9999_s7  ;;  %937 = vrot.lane.b32.xlu1 %v768_v7, %s9999_s7 }
  0xf1   : > { %v567_v44 = vpop.permute.xlu0 %566  ;;  %v569_v16 = vpop.permute.xlu1 %568 }
  0xf2   : > { %711 = vst.msk [vmem:[#allocation2 + $0x180] sm:$0xff] %vm662_vm1, %v567_v44  ;;  %712 = vst.msk [vmem:[#allocation2 + $0x188] sm:$0xff] %vm662_vm1, %v569_v16  ;;  %v773_v44 = vld [vmem:[%s10091_s5 + $0x229] sm:$0xff]  ;;  %v774_v16 = vld [vmem:[%s10091_s5 + $0x231] sm:$0xff] }
  0xf3   : > { %939 = vrot.lane.b32.xlu0 %v769_v15, %s9999_s7  ;;  %941 = vrot.lane.b32.xlu1 %v770_v45, %s9999_s7 }
  0xf5   : > { %v571_v63 = vpop.permute.xlu0 %570  ;;  %v573_v7 = vpop.permute.xlu1 %572 }
  0xf6   : > { %713 = vst.msk [vmem:[#allocation2 + $0x190] sm:$0xff] %vm662_vm1, %v571_v63  ;;  %714 = vst.msk [vmem:[#allocation2 + $0x198] sm:$0xff] %vm662_vm1, %v573_v7  ;;  %v775_v63 = vld [vmem:[%s10091_s5 + $0x241] sm:$0xff]  ;;  %v776_v7 = vld [vmem:[%s10091_s5 + $0x249] sm:$0xff] }
  0xf7   : > { %943 = vrot.lane.b32.xlu0 %v771_v6, %s9999_s7  ;;  %945 = vrot.lane.b32.xlu1 %v772_v62, %s9999_s7 }
  0xf9   : > { %v575_v15 = vpop.permute.xlu0 %574  ;;  %v577_v45 = vpop.permute.xlu1 %576 }
  0xfa   : > { %715 = vst.msk [vmem:[#allocation2 + $0x1a0] sm:$0xff] %vm662_vm1, %v575_v15  ;;  %716 = vst.msk [vmem:[#allocation2 + $0x1a8] sm:$0xff] %vm662_vm1, %v577_v45  ;;  %v777_v15 = vld [vmem:[%s10091_s5 + $0x259] sm:$0xff]  ;;  %v778_v45 = vld [vmem:[%s10091_s5 + $0x261] sm:$0xff] }
  0xfb   : > { %947 = vrot.lane.b32.xlu0 %v773_v44, %s9999_s7  ;;  %949 = vrot.lane.b32.xlu1 %v774_v16, %s9999_s7 }
  0xfd   : > { %v579_v6 = vpop.permute.xlu0 %578  ;;  %v581_v62 = vpop.permute.xlu1 %580 }
  0xfe   : > { %717 = vst.msk [vmem:[#allocation2 + $0x1b0] sm:$0xff] %vm662_vm1, %v579_v6  ;;  %718 = vst.msk [vmem:[#allocation2 + $0x1b8] sm:$0xff] %vm662_vm1, %v581_v62  ;;  %v779_v6 = vld [vmem:[%s10091_s5 + $0x271] sm:$0xff]  ;;  %v780_v62 = vld [vmem:[%s10091_s5 + $0x279] sm:$0xff] }
  0xff   : > { %951 = vrot.lane.b32.xlu0 %v775_v63, %s9999_s7  ;;  %953 = vrot.lane.b32.xlu1 %v776_v7, %s9999_s7 }
 0x101   : > { %v583_v44 = vpop.permute.xlu0 %582  ;;  %v585_v16 = vpop.permute.xlu1 %584 }
 0x102   : > { %719 = vst.msk [vmem:[#allocation2 + $0x1c0] sm:$0xff] %vm662_vm1, %v583_v44  ;;  %720 = vst.msk [vmem:[#allocation2 + $0x1c8] sm:$0xff] %vm662_vm1, %v585_v16  ;;  %v781_v44 = vld [vmem:[%s10091_s5 + $0x289] sm:$0xff]  ;;  %v782_v16 = vld [vmem:[%s10091_s5 + $0x291] sm:$0xff] }
 0x103   : > { %955 = vrot.lane.b32.xlu0 %v777_v15, %s9999_s7  ;;  %957 = vrot.lane.b32.xlu1 %v778_v45, %s9999_s7 }
 0x105   : > { %v587_v63 = vpop.permute.xlu0 %586  ;;  %v589_v7 = vpop.permute.xlu1 %588 }
 0x106   : > { %721 = vst.msk [vmem:[#allocation2 + $0x1d0] sm:$0xff] %vm662_vm1, %v587_v63  ;;  %722 = vst.msk [vmem:[#allocation2 + $0x1d8] sm:$0xff] %vm662_vm1, %v589_v7  ;;  %v783_v63 = vld [vmem:[%s10091_s5 + $0x2a1] sm:$0xff]  ;;  %v784_v7 = vld [vmem:[%s10091_s5 + $0x2a9] sm:$0xff] }
 0x107   : > { %959 = vrot.lane.b32.xlu0 %v779_v6, %s9999_s7  ;;  %961 = vrot.lane.b32.xlu1 %v780_v62, %s9999_s7 }
 0x109   : > { %v591_v15 = vpop.permute.xlu0 %590  ;;  %v593_v45 = vpop.permute.xlu1 %592 }
 0x10a   : > { %723 = vst.msk [vmem:[#allocation2 + $0x1e0] sm:$0xff] %vm662_vm1, %v591_v15  ;;  %724 = vst.msk [vmem:[#allocation2 + $0x1e8] sm:$0xff] %vm662_vm1, %v593_v45  ;;  %v785_v15 = vld [vmem:[%s10091_s5 + $0x2b9] sm:$0xff] }
 0x10b   : > { %963 = vrot.lane.b32.xlu0 %v781_v44, %s9999_s7  ;;  %965 = vrot.lane.b32.xlu1 %v782_v16, %s9999_s7  ;;  %v786_v44 = vld [vmem:[%s10091_s5 + $0x2c1] sm:$0xff] }
 0x10d   : > { %v595_v6 = vpop.permute.xlu0 %594  ;;  %v597_v62 = vpop.permute.xlu1 %596 }
 0x10e   : > { %725 = vst.msk [vmem:[#allocation2 + $0x1f0] sm:$0xff] %vm662_vm1, %v595_v6  ;;  %726 = vst.msk [vmem:[#allocation2 + $0x1f8] sm:$0xff] %vm662_vm1, %v597_v62  ;;  %v787_v6 = vld [vmem:[%s10091_s5 + $0x2d1] sm:$0xff]  ;;  %v788_v62 = vld [vmem:[%s10091_s5 + $0x2d9] sm:$0xff] }
 0x10f   : > { %967 = vrot.lane.b32.xlu0 %v783_v63, %s9999_s7  ;;  %969 = vrot.lane.b32.xlu1 %v784_v7, %s9999_s7  ;;  %v789_v7 = vld [vmem:[%s10091_s5 + $0x2e9] sm:$0xff] }
 0x111   : > { %v856_v16 = vpop.permute.xlu0 %855  ;;  %v858_v45 = vpop.permute.xlu1 %857 }
 0x112   : > { %1048 = vst.msk [vmem:[#allocation2] sm:$0xff] %vm1047_vm2, %v856_v16  ;;  %1049 = vst.msk [vmem:[#allocation2 + $0x8] sm:$0xff] %vm1047_vm2, %v858_v45  ;;  %v790_v16 = vld [vmem:[%s10091_s5 + $0x2f1] sm:$0xff] }
 0x113   : > { %971 = vrot.lane.b32.xlu0 %v785_v15, %s9999_s7  ;;  %973 = vrot.lane.b32.xlu1 %v786_v44, %s9999_s7 }
 0x115   : > { %v860_v63 = vpop.permute.xlu0 %859  ;;  %v862_v55 = vpop.permute.xlu1 %861 }
 0x116   : > { %1050 = vst.msk [vmem:[#allocation2 + $0x10] sm:$0xff] %vm1047_vm2, %v860_v63  ;;  %1051 = vst.msk [vmem:[#allocation2 + $0x18] sm:$0xff] %vm1047_vm2, %v862_v55 }
 0x117   : > { %975 = vrot.lane.b32.xlu0 %v787_v6, %s9999_s7  ;;  %977 = vrot.lane.b32.xlu1 %v788_v62, %s9999_s7 }
 0x119   : > { %v864_v54 = vpop.permute.xlu0 %863  ;;  %v866_v45 = vpop.permute.xlu1 %865 }
 0x11a   : > { %1052 = vst.msk [vmem:[#allocation2 + $0x20] sm:$0xff] %vm1047_vm2, %v864_v54  ;;  %1053 = vst.msk [vmem:[#allocation2 + $0x28] sm:$0xff] %vm1047_vm2, %v866_v45 }
 0x11b   : > { %979 = vrot.lane.b32.xlu0 %v789_v7, %s9999_s7  ;;  %981 = vrot.lane.b32.xlu1 %v790_v16, %s9999_s7 }
 0x11d   : > { %v868_v15 = vpop.permute.xlu0 %867  ;;  %v870_v44 = vpop.permute.xlu1 %869 }
 0x11e   : > { %1054 = vst.msk [vmem:[#allocation2 + $0x30] sm:$0xff] %vm1047_vm2, %v868_v15  ;;  %1055 = vst.msk [vmem:[#allocation2 + $0x38] sm:$0xff] %vm1047_vm2, %v870_v44  ;;  %v14644_v15 = vld [vmem:[#allocation14_spill] sm:$0xff]  ;;  %v14645_v44 = vld [vmem:[#allocation15_spill] sm:$0xff] }
 0x11f   : > { %1241 = vrot.lane.b32.xlu0 %v10119_v13, %s10000_s8  ;;  %1243 = vrot.lane.b32.xlu1 %v10129_v17, %s10000_s8 }
 0x121   : > { %v872_v54 = vpop.permute.xlu0 %871  ;;  %v874_v55 = vpop.permute.xlu1 %873 }
 0x122   : > { %1056 = vst.msk [vmem:[#allocation2 + $0x40] sm:$0xff] %vm1047_vm2, %v872_v54  ;;  %1057 = vst.msk [vmem:[#allocation2 + $0x48] sm:$0xff] %vm1047_vm2, %v874_v55 }
 0x123   : > { %1245 = vrot.lane.b32.xlu0 %v10134_v18, %s10000_s8  ;;  %1247 = vrot.lane.b32.xlu1 %v10137_v19, %s10000_s8 }
 0x125   : > { %v876_v6 = vpop.permute.xlu0 %875  ;;  %v878_v62 = vpop.permute.xlu1 %877 }
 0x126   : > { %1058 = vst.msk [vmem:[#allocation2 + $0x50] sm:$0xff] %vm1047_vm2, %v876_v6  ;;  %1059 = vst.msk [vmem:[#allocation2 + $0x58] sm:$0xff] %vm1047_vm2, %v878_v62  ;;  %v14646_v6 = vld [vmem:[#allocation16_spill] sm:$0xff]  ;;  %v14647_v62 = vld [vmem:[#allocation17_spill] sm:$0xff] }
 0x127   : > { %1249 = vrot.lane.b32.xlu0 %v10146_v20, %s10000_s8  ;;  %1251 = vrot.lane.b32.xlu1 %v10153_v23, %s10000_s8 }
 0x129   : > { %v880_v13 = vpop.permute.xlu0 %879  ;;  %v882_v17 = vpop.permute.xlu1 %881 }
 0x12a   : > { %1060 = vst.msk [vmem:[#allocation2 + $0x60] sm:$0xff] %vm1047_vm2, %v880_v13  ;;  %1061 = vst.msk [vmem:[#allocation2 + $0x68] sm:$0xff] %vm1047_vm2, %v882_v17  ;;  %v8509_v13 = vld [vmem:[%s10091_s5 + $0x300] sm:$0xff]  ;;  %v8510_v17 = vld [vmem:[%s10091_s5 + $0x308] sm:$0xff] }
 0x12b   : > { %1253 = vrot.lane.b32.xlu0 %v10158_v24, %s10000_s8  ;;  %1255 = vrot.lane.b32.xlu1 %v10161_v25, %s10000_s8 }
 0x12d   : > { %v884_v18 = vpop.permute.xlu0 %883  ;;  %v886_v19 = vpop.permute.xlu1 %885 }
 0x12e   : > { %1062 = vst.msk [vmem:[#allocation2 + $0x70] sm:$0xff] %vm1047_vm2, %v884_v18  ;;  %1063 = vst.msk [vmem:[#allocation2 + $0x78] sm:$0xff] %vm1047_vm2, %v886_v19 }
 0x12f   : > { %1257 = vrot.lane.b32.xlu0 %v10168_v26, %s10000_s8  ;;  %1259 = vrot.lane.b32.xlu1 %v10171_v27, %s10000_s8 }
 0x131   : > { %v888_v20 = vpop.permute.xlu0 %887  ;;  %v890_v23 = vpop.permute.xlu1 %889 }
 0x132   : > { %1064 = vst.msk [vmem:[#allocation2 + $0x80] sm:$0xff] %vm1047_vm2, %v888_v20  ;;  %1065 = vst.msk [vmem:[#allocation2 + $0x88] sm:$0xff] %vm1047_vm2, %v890_v23  ;;  %v8511_v20 = vld [vmem:[%s10091_s5 + $0x348] sm:$0xff]  ;;  %v8512_v23 = vld [vmem:[%s10091_s5 + $0x350] sm:$0xff] }
 0x133   : > { %1261 = vrot.lane.b32.xlu0 %v10182_v30, %s10000_s8  ;;  %1263 = vrot.lane.b32.xlu1 %v10185_v31, %s10000_s8 }
 0x135   : > { %v892_v24 = vpop.permute.xlu0 %891  ;;  %v894_v25 = vpop.permute.xlu1 %893 }
 0x136   : > { %1066 = vst.msk [vmem:[#allocation2 + $0x90] sm:$0xff] %vm1047_vm2, %v892_v24  ;;  %1067 = vst.msk [vmem:[#allocation2 + $0x98] sm:$0xff] %vm1047_vm2, %v894_v25 }
 0x137   : > { %1265 = vrot.lane.b32.xlu0 %v10192_v32, %s10000_s8  ;;  %1267 = vrot.lane.b32.xlu1 %v10195_v33, %s10000_s8 }
 0x139   : > { %v896_v26 = vpop.permute.xlu0 %895  ;;  %v898_v27 = vpop.permute.xlu1 %897 }
 0x13a   : > { %1068 = vst.msk [vmem:[#allocation2 + $0xa0] sm:$0xff] %vm1047_vm2, %v896_v26  ;;  %1069 = vst.msk [vmem:[#allocation2 + $0xa8] sm:$0xff] %vm1047_vm2, %v898_v27  ;;  %v8513_v26 = vld [vmem:[%s10091_s5 + $0x360] sm:$0xff]  ;;  %v8514_v27 = vld [vmem:[%s10091_s5 + $0x368] sm:$0xff] }
 0x13b   : > { %1269 = vrot.lane.b32.xlu0 %v10202_v34, %s10000_s8  ;;  %1271 = vrot.lane.b32.xlu1 %v10210_v36, %s10000_s8 }
 0x13d   : > { %v900_v30 = vpop.permute.xlu0 %899  ;;  %v902_v31 = vpop.permute.xlu1 %901 }
 0x13e   : > { %1070 = vst.msk [vmem:[#allocation2 + $0xb0] sm:$0xff] %vm1047_vm2, %v900_v30  ;;  %1071 = vst.msk [vmem:[#allocation2 + $0xb8] sm:$0xff] %vm1047_vm2, %v902_v31 }
 0x13f   : > { %1273 = vrot.lane.b32.xlu0 %v10216_v38, %s10000_s8  ;;  %1275 = vrot.lane.b32.xlu1 %v10219_v39, %s10000_s8 }
 0x141   : > { %v904_v32 = vpop.permute.xlu0 %903  ;;  %v906_v33 = vpop.permute.xlu1 %905 }
 0x142   : > { %1072 = vst.msk [vmem:[#allocation2 + $0xc0] sm:$0xff] %vm1047_vm2, %v904_v32  ;;  %1073 = vst.msk [vmem:[#allocation2 + $0xc8] sm:$0xff] %vm1047_vm2, %v906_v33  ;;  %v8515_v32 = vld [vmem:[%s10091_s5 + $0x378] sm:$0xff]  ;;  %v8516_v33 = vld [vmem:[%s10091_s5 + $0x380] sm:$0xff] }
 0x143   : > { %1277 = vrot.lane.b32.xlu0 %v10226_v40, %s10000_s8  ;;  %1279 = vrot.lane.b32.xlu1 %v10231_v41, %s10000_s8 }
 0x145   : > { %v908_v34 = vpop.permute.xlu0 %907  ;;  %v910_v36 = vpop.permute.xlu1 %909 }
 0x146   : > { %1074 = vst.msk [vmem:[#allocation2 + $0xd0] sm:$0xff] %vm1047_vm2, %v908_v34  ;;  %1075 = vst.msk [vmem:[#allocation2 + $0xd8] sm:$0xff] %vm1047_vm2, %v910_v36 }
 0x147   : > { %1281 = vrot.lane.b32.xlu0 %v10238_v42, %s10000_s8  ;;  %1283 = vrot.lane.b32.xlu1 %v10241_v43, %s10000_s8 }
 0x149   : > { %v912_v38 = vpop.permute.xlu0 %911  ;;  %v914_v39 = vpop.permute.xlu1 %913 }
 0x14a   : > { %1076 = vst.msk [vmem:[#allocation2 + $0xe0] sm:$0xff] %vm1047_vm2, %v912_v38  ;;  %1077 = vst.msk [vmem:[#allocation2 + $0xe8] sm:$0xff] %vm1047_vm2, %v914_v39  ;;  %v8517_v38 = vld [vmem:[%s10091_s5 + $0x390] sm:$0xff]  ;;  %v8518_v39 = vld [vmem:[%s10091_s5 + $0x398] sm:$0xff] }
 0x14b   : > { %1285 = vrot.lane.b32.xlu0 %v10250_v46, %s10000_s8  ;;  %1287 = vrot.lane.b32.xlu1 %v10255_v47, %s10000_s8 }
 0x14d   : > { %v916_v40 = vpop.permute.xlu0 %915  ;;  %v918_v41 = vpop.permute.xlu1 %917 }
 0x14e   : > { %1078 = vst.msk [vmem:[#allocation2 + $0xf0] sm:$0xff] %vm1047_vm2, %v916_v40  ;;  %1079 = vst.msk [vmem:[#allocation2 + $0xf8] sm:$0xff] %vm1047_vm2, %v918_v41 }
 0x14f   : > { %1289 = vrot.lane.b32.xlu0 %v10260_v48, %s10000_s8  ;;  %1291 = vrot.lane.b32.xlu1 %v10263_v49, %s10000_s8 }
 0x151   : > { %v920_v42 = vpop.permute.xlu0 %919  ;;  %v922_v43 = vpop.permute.xlu1 %921 }
 0x152   : > { %1080 = vst.msk [vmem:[#allocation2 + $0x100] sm:$0xff] %vm1047_vm2, %v920_v42  ;;  %1081 = vst.msk [vmem:[#allocation2 + $0x108] sm:$0xff] %vm1047_vm2, %v922_v43  ;;  %v8519_v42 = vld [vmem:[%s10091_s5 + $0x3a8] sm:$0xff]  ;;  %v8520_v43 = vld [vmem:[%s10091_s5 + $0x3b0] sm:$0xff] }
 0x153   : > { %1293 = vrot.lane.b32.xlu0 %v10274_v52, %s10000_s8  ;;  %1295 = vrot.lane.b32.xlu1 %v10279_v53, %s10000_s8 }
 0x155   : > { %v924_v46 = vpop.permute.xlu0 %923  ;;  %v926_v47 = vpop.permute.xlu1 %925 }
 0x156   : > { %1082 = vst.msk [vmem:[#allocation2 + $0x110] sm:$0xff] %vm1047_vm2, %v924_v46  ;;  %1083 = vst.msk [vmem:[#allocation2 + $0x118] sm:$0xff] %vm1047_vm2, %v926_v47 }
 0x157   : > { %1297 = vrot.lane.b32.xlu0 %v10288_v56, %s10000_s8  ;;  %1299 = vrot.lane.b32.xlu1 %v10293_v57, %s10000_s8 }
 0x159   : > { %v928_v48 = vpop.permute.xlu0 %927  ;;  %v930_v49 = vpop.permute.xlu1 %929 }
 0x15a   : > { %1084 = vst.msk [vmem:[#allocation2 + $0x120] sm:$0xff] %vm1047_vm2, %v928_v48  ;;  %1085 = vst.msk [vmem:[#allocation2 + $0x128] sm:$0xff] %vm1047_vm2, %v930_v49  ;;  %v8521_v48 = vld [vmem:[%s10091_s5 + $0x3c0] sm:$0xff]  ;;  %v8522_v49 = vld [vmem:[%s10091_s5 + $0x3c8] sm:$0xff] }
 0x15b   : > { %1301 = vrot.lane.b32.xlu0 %v10302_v60, %s10000_s8  ;;  %1303 = vrot.lane.b32.xlu1 %v10307_v61, %s10000_s8 }
 0x15d   : > { %v932_v52 = vpop.permute.xlu0 %931  ;;  %v934_v53 = vpop.permute.xlu1 %933 }
 0x15e   : > { %1086 = vst.msk [vmem:[#allocation2 + $0x130] sm:$0xff] %vm1047_vm2, %v932_v52  ;;  %1087 = vst.msk [vmem:[#allocation2 + $0x138] sm:$0xff] %vm1047_vm2, %v934_v53 }
 0x15f   : > { %1305 = vrot.lane.b32.xlu0 %v10316_v0, %s10000_s8  ;;  %1307 = vrot.lane.b32.xlu1 %v10321_v1, %s10000_s8 }
 0x161   : > { %v936_v56 = vpop.permute.xlu0 %935  ;;  %v938_v57 = vpop.permute.xlu1 %937 }
 0x162   : > { %1088 = vst.msk [vmem:[#allocation2 + $0x140] sm:$0xff] %vm1047_vm2, %v936_v56  ;;  %1089 = vst.msk [vmem:[#allocation2 + $0x148] sm:$0xff] %vm1047_vm2, %v938_v57  ;;  %v8523_v56 = vld [vmem:[%s10091_s5 + $0x3d8] sm:$0xff]  ;;  %v8524_v57 = vld [vmem:[%s10091_s5 + $0x3e0] sm:$0xff] }
 0x163   : > { %1309 = vrot.lane.b32.xlu0 %v10330_v4, %s10000_s8  ;;  %1311 = vrot.lane.b32.xlu1 %v10335_v5, %s10000_s8 }
 0x165   : > { %v940_v60 = vpop.permute.xlu0 %939  ;;  %v942_v61 = vpop.permute.xlu1 %941 }
 0x166   : > { %1090 = vst.msk [vmem:[#allocation2 + $0x150] sm:$0xff] %vm1047_vm2, %v940_v60  ;;  %1091 = vst.msk [vmem:[#allocation2 + $0x158] sm:$0xff] %vm1047_vm2, %v942_v61 }
 0x167   : > { %1313 = vrot.lane.b32.xlu0 %v10344_v8, %s10000_s8  ;;  %1315 = vrot.lane.b32.xlu1 %v10349_v9, %s10000_s8 }
 0x169   : > { %v944_v0 = vpop.permute.xlu0 %943  ;;  %v946_v1 = vpop.permute.xlu1 %945 }
 0x16a   : > { %1092 = vst.msk [vmem:[#allocation2 + $0x160] sm:$0xff] %vm1047_vm2, %v944_v0  ;;  %1093 = vst.msk [vmem:[#allocation2 + $0x168] sm:$0xff] %vm1047_vm2, %v946_v1  ;;  %v8525_v0 = vld [vmem:[%s10091_s5 + $0x3f0] sm:$0xff]  ;;  %v8526_v1 = vld [vmem:[%s10091_s5 + $0x3f8] sm:$0xff] }
 0x16b   : > { %1317 = vrot.lane.b32.xlu0 %v10358_v12, %s10000_s8  ;;  %1319 = vrot.lane.b32.xlu1 %v10363_v14, %s10000_s8 }
 0x16d   : > { %v948_v4 = vpop.permute.xlu0 %947  ;;  %v950_v5 = vpop.permute.xlu1 %949 }
 0x16e   : > { %1094 = vst.msk [vmem:[#allocation2 + $0x170] sm:$0xff] %vm1047_vm2, %v948_v4  ;;  %1095 = vst.msk [vmem:[#allocation2 + $0x178] sm:$0xff] %vm1047_vm2, %v950_v5 }
 0x16f   : > { %1321 = vrot.lane.b32.xlu0 %v10372_v21, %s10000_s8  ;;  %1323 = vrot.lane.b32.xlu1 %v10377_v22, %s10000_s8 }
 0x171   : > { %v952_v8 = vpop.permute.xlu0 %951  ;;  %v954_v9 = vpop.permute.xlu1 %953 }
 0x172   : > { %1096 = vst.msk [vmem:[#allocation2 + $0x180] sm:$0xff] %vm1047_vm2, %v952_v8  ;;  %1097 = vst.msk [vmem:[#allocation2 + $0x188] sm:$0xff] %vm1047_vm2, %v954_v9  ;;  %v8527_v8 = vld [vmem:[%s10091_s5 + $0x408] sm:$0xff]  ;;  %v8528_v9 = vld [vmem:[%s10091_s5 + $0x410] sm:$0xff] }
 0x173   : > { %1325 = vrot.lane.b32.xlu0 %v10386_v35, %s10000_s8  ;;  %1327 = vrot.lane.b32.xlu1 %v10391_v37, %s10000_s8 }
 0x175   : > { %v956_v12 = vpop.permute.xlu0 %955  ;;  %v958_v14 = vpop.permute.xlu1 %957 }
 0x176   : > { %1098 = vst.msk [vmem:[#allocation2 + $0x190] sm:$0xff] %vm1047_vm2, %v956_v12  ;;  %1099 = vst.msk [vmem:[#allocation2 + $0x198] sm:$0xff] %vm1047_vm2, %v958_v14 }
 0x177   : > { %1329 = vrot.lane.b32.xlu0 %v10400_v50, %s10000_s8  ;;  %1331 = vrot.lane.b32.xlu1 %v10405_v51, %s10000_s8 }
 0x179   : > { %v960_v21 = vpop.permute.xlu0 %959  ;;  %v962_v22 = vpop.permute.xlu1 %961 }
 0x17a   : > { %1100 = vst.msk [vmem:[#allocation2 + $0x1a0] sm:$0xff] %vm1047_vm2, %v960_v21  ;;  %1101 = vst.msk [vmem:[#allocation2 + $0x1a8] sm:$0xff] %vm1047_vm2, %v962_v22  ;;  %v8529_v21 = vld [vmem:[%s10091_s5 + $0x420] sm:$0xff]  ;;  %v8530_v22 = vld [vmem:[%s10091_s5 + $0x428] sm:$0xff] }
 0x17b   : > { %1333 = vrot.lane.b32.xlu0 %v10414_v58, %s10000_s8  ;;  %1335 = vrot.lane.b32.xlu1 %v10419_v59, %s10000_s8 }
 0x17d   : > { %v964_v35 = vpop.permute.xlu0 %963  ;;  %v966_v37 = vpop.permute.xlu1 %965 }
 0x17e   : > { %1102 = vst.msk [vmem:[#allocation2 + $0x1b0] sm:$0xff] %vm1047_vm2, %v964_v35  ;;  %1103 = vst.msk [vmem:[#allocation2 + $0x1b8] sm:$0xff] %vm1047_vm2, %v966_v37 }
 0x17f   : > { %1337 = vrot.lane.b32.xlu0 %v10428_v2, %s10000_s8  ;;  %1339 = vrot.lane.b32.xlu1 %v10433_v3, %s10000_s8 }
 0x181   : > { %v968_v50 = vpop.permute.xlu0 %967  ;;  %v970_v51 = vpop.permute.xlu1 %969 }
 0x182   : > { %1104 = vst.msk [vmem:[#allocation2 + $0x1c0] sm:$0xff] %vm1047_vm2, %v968_v50  ;;  %1105 = vst.msk [vmem:[#allocation2 + $0x1c8] sm:$0xff] %vm1047_vm2, %v970_v51  ;;  %v8531_v50 = vld [vmem:[%s10091_s5 + $0x438] sm:$0xff]  ;;  %v8532_v51 = vld [vmem:[%s10091_s5 + $0x440] sm:$0xff] }
 0x183   : > { %1341 = vrot.lane.b32.xlu0 %v10442_v10, %s10000_s8  ;;  %1343 = vrot.lane.b32.xlu1 %v10447_v11, %s10000_s8  ;;  %v14640_v10 = vld [vmem:[#allocation10_spill] sm:$0xff]  ;;  %v14641_v11 = vld [vmem:[#allocation11_spill] sm:$0xff] }
 0x185   : > { %v972_v58 = vpop.permute.xlu0 %971  ;;  %v974_v59 = vpop.permute.xlu1 %973 }
 0x186   : > { %1106 = vst.msk [vmem:[#allocation2 + $0x1d0] sm:$0xff] %vm1047_vm2, %v972_v58  ;;  %1107 = vst.msk [vmem:[#allocation2 + $0x1d8] sm:$0xff] %vm1047_vm2, %v974_v59 }
 0x187   : > { %1345 = vrot.lane.b32.xlu0 %v10456_v28, %s10000_s8  ;;  %1347 = vrot.lane.b32.xlu1 %v10461_v29, %s10000_s8  ;;  %v14642_v28 = vld [vmem:[#allocation12_spill] sm:$0xff]  ;;  %v14643_v29 = vld [vmem:[#allocation13_spill] sm:$0xff] }
 0x189   : > { %v976_v2 = vpop.permute.xlu0 %975  ;;  %v978_v3 = vpop.permute.xlu1 %977 }
 0x18a   : > { %1108 = vst.msk [vmem:[#allocation2 + $0x1e0] sm:$0xff] %vm1047_vm2, %v976_v2  ;;  %1109 = vst.msk [vmem:[#allocation2 + $0x1e8] sm:$0xff] %vm1047_vm2, %v978_v3  ;;  %v8533_v2 = vld [vmem:[%s10091_s5 + $0x450] sm:$0xff]  ;;  %v8534_v3 = vld [vmem:[%s10091_s5 + $0x458] sm:$0xff] }
 0x18b   : > { %1349 = vrot.lane.b32.xlu0 %v14640_v10, %s10000_s8  ;;  %1351 = vrot.lane.b32.xlu1 %v14641_v11, %s10000_s8 }
 0x18d   : > { %v980_v63 = vpop.permute.xlu0 %979  ;;  %v982_v7 = vpop.permute.xlu1 %981 }
 0x18e   : > { %1110 = vst.msk [vmem:[#allocation2 + $0x1f0] sm:$0xff] %vm1047_vm2, %v980_v63  ;;  %1111 = vst.msk [vmem:[#allocation2 + $0x1f8] sm:$0xff] %vm1047_vm2, %v982_v7  ;;  %v8535_v63 = vld [vmem:[%s10091_s5 + $0x468] sm:$0xff]  ;;  %v8536_v7 = vld [vmem:[%s10091_s5 + $0x470] sm:$0xff] }
 0x18f   : > { %1353 = vrot.lane.b32.xlu0 %v14642_v28, %s10000_s8  ;;  %1355 = vrot.lane.b32.xlu1 %v14643_v29, %s10000_s8 }
 0x191   : > { %v1242_v16 = vpop.permute.xlu0 %1241  ;;  %v1244_v45 = vpop.permute.xlu1 %1243 }
 0x192   : > { %1434 = vst.msk [vmem:[#allocation2] sm:$0xff] %vm1433_vm3, %v1242_v16  ;;  %1435 = vst.msk [vmem:[#allocation2 + $0x8] sm:$0xff] %vm1433_vm3, %v1244_v45  ;;  %v8537_v16 = vld [vmem:[%s10091_s5 + $0x480] sm:$0xff]  ;;  %v8538_v45 = vld [vmem:[%s10091_s5 + $0x488] sm:$0xff] }
 0x193   : > { %1357 = vrot.lane.b32.xlu0 %v14644_v15, %s10000_s8  ;;  %1359 = vrot.lane.b32.xlu1 %v14645_v44, %s10000_s8 }
 0x195   : > { %v1246_v54 = vpop.permute.xlu0 %1245  ;;  %v1248_v55 = vpop.permute.xlu1 %1247 }
 0x196   : > { %1436 = vst.msk [vmem:[#allocation2 + $0x10] sm:$0xff] %vm1433_vm3, %v1246_v54  ;;  %1437 = vst.msk [vmem:[#allocation2 + $0x18] sm:$0xff] %vm1433_vm3, %v1248_v55  ;;  %v8539_v54 = vld [vmem:[%s10091_s5 + $0x498] sm:$0xff]  ;;  %v8540_v55 = vld [vmem:[%s10091_s5 + $0x4a0] sm:$0xff] }
 0x197   : > { %1361 = vrot.lane.b32.xlu0 %v14646_v6, %s10000_s8  ;;  %1363 = vrot.lane.b32.xlu1 %v14647_v62, %s10000_s8 }
 0x199   : > { %v1250_v18 = vpop.permute.xlu0 %1249  ;;  %v1252_v19 = vpop.permute.xlu1 %1251 }
 0x19a   : > { %1438 = vst.msk [vmem:[#allocation2 + $0x20] sm:$0xff] %vm1433_vm3, %v1250_v18  ;;  %1439 = vst.msk [vmem:[#allocation2 + $0x28] sm:$0xff] %vm1433_vm3, %v1252_v19 }
 0x19b   : > { %1365 = vrot.lane.b32.xlu0 %v8509_v13, %s10000_s8  ;;  %1367 = vrot.lane.b32.xlu1 %v8510_v17, %s10000_s8  ;;  %v8541_v13 = vld [vmem:[%s10091_s5 + $0x4b0] sm:$0xff]  ;;  %v8542_v17 = vld [vmem:[%s10091_s5 + $0x4b8] sm:$0xff] }
 0x19d   : > { %v1254_v24 = vpop.permute.xlu0 %1253  ;;  %v1256_v25 = vpop.permute.xlu1 %1255 }
 0x19e   : > { %1440 = vst.msk [vmem:[#allocation2 + $0x30] sm:$0xff] %vm1433_vm3, %v1254_v24  ;;  %1441 = vst.msk [vmem:[#allocation2 + $0x38] sm:$0xff] %vm1433_vm3, %v1256_v25 }
 0x19f   : > { %1627 = vrot.lane.b32.xlu0 %v8511_v20, %s10001_s9  ;;  %1629 = vrot.lane.b32.xlu1 %v8512_v23, %s10001_s9  ;;  %v8543_v20 = vld [vmem:[%s10091_s5 + $0x4c8] sm:$0xff]  ;;  %v8544_v23 = vld [vmem:[%s10091_s5 + $0x4d0] sm:$0xff] }
 0x1a1   : > { %v1258_v30 = vpop.permute.xlu0 %1257  ;;  %v1260_v31 = vpop.permute.xlu1 %1259 }
 0x1a2   : > { %1442 = vst.msk [vmem:[#allocation2 + $0x40] sm:$0xff] %vm1433_vm3, %v1258_v30  ;;  %1443 = vst.msk [vmem:[#allocation2 + $0x48] sm:$0xff] %vm1433_vm3, %v1260_v31 }
 0x1a3   : > { %1631 = vrot.lane.b32.xlu0 %v8513_v26, %s10001_s9  ;;  %1633 = vrot.lane.b32.xlu1 %v8514_v27, %s10001_s9  ;;  %v8545_v26 = vld [vmem:[%s10091_s5 + $0x4e0] sm:$0xff]  ;;  %v8546_v27 = vld [vmem:[%s10091_s5 + $0x4e8] sm:$0xff] }
 0x1a5   : > { %v1262_v34 = vpop.permute.xlu0 %1261  ;;  %v1264_v36 = vpop.permute.xlu1 %1263 }
 0x1a6   : > { %1444 = vst.msk [vmem:[#allocation2 + $0x50] sm:$0xff] %vm1433_vm3, %v1262_v34  ;;  %1445 = vst.msk [vmem:[#allocation2 + $0x58] sm:$0xff] %vm1433_vm3, %v1264_v36 }
 0x1a7   : > { %1635 = vrot.lane.b32.xlu0 %v8515_v32, %s10001_s9  ;;  %1637 = vrot.lane.b32.xlu1 %v8516_v33, %s10001_s9  ;;  %v8547_v32 = vld [vmem:[%s10091_s5 + $0x4f8] sm:$0xff]  ;;  %v8548_v33 = vld [vmem:[%s10091_s5 + $0x500] sm:$0xff] }
 0x1a9   : > { %v1266_v40 = vpop.permute.xlu0 %1265  ;;  %v1268_v41 = vpop.permute.xlu1 %1267 }
 0x1aa   : > { %1446 = vst.msk [vmem:[#allocation2 + $0x60] sm:$0xff] %vm1433_vm3, %v1266_v40  ;;  %1447 = vst.msk [vmem:[#allocation2 + $0x68] sm:$0xff] %vm1433_vm3, %v1268_v41 }
 0x1ab   : > { %1639 = vrot.lane.b32.xlu0 %v8517_v38, %s10001_s9  ;;  %1641 = vrot.lane.b32.xlu1 %v8518_v39, %s10001_s9  ;;  %v8549_v38 = vld [vmem:[%s10091_s5 + $0x510] sm:$0xff]  ;;  %v8550_v39 = vld [vmem:[%s10091_s5 + $0x518] sm:$0xff] }
 0x1ad   : > { %v1270_v46 = vpop.permute.xlu0 %1269  ;;  %v1272_v47 = vpop.permute.xlu1 %1271 }
 0x1ae   : > { %1448 = vst.msk [vmem:[#allocation2 + $0x70] sm:$0xff] %vm1433_vm3, %v1270_v46  ;;  %1449 = vst.msk [vmem:[#allocation2 + $0x78] sm:$0xff] %vm1433_vm3, %v1272_v47 }
 0x1af   : > { %1643 = vrot.lane.b32.xlu0 %v8519_v42, %s10001_s9  ;;  %1645 = vrot.lane.b32.xlu1 %v8520_v43, %s10001_s9  ;;  %v8551_v42 = vld [vmem:[%s10091_s5 + $0x528] sm:$0xff]  ;;  %v8552_v43 = vld [vmem:[%s10091_s5 + $0x530] sm:$0xff] }
 0x1b1   : > { %v1274_v52 = vpop.permute.xlu0 %1273  ;;  %v1276_v53 = vpop.permute.xlu1 %1275 }
 0x1b2   : > { %1450 = vst.msk [vmem:[#allocation2 + $0x80] sm:$0xff] %vm1433_vm3, %v1274_v52  ;;  %1451 = vst.msk [vmem:[#allocation2 + $0x88] sm:$0xff] %vm1433_vm3, %v1276_v53 }
 0x1b3   : > { %1647 = vrot.lane.b32.xlu0 %v8521_v48, %s10001_s9  ;;  %1649 = vrot.lane.b32.xlu1 %v8522_v49, %s10001_s9  ;;  %v8553_v48 = vld [vmem:[%s10091_s5 + $0x540] sm:$0xff]  ;;  %v8554_v49 = vld [vmem:[%s10091_s5 + $0x548] sm:$0xff] }
 0x1b5   : > { %v1278_v60 = vpop.permute.xlu0 %1277  ;;  %v1280_v61 = vpop.permute.xlu1 %1279 }
 0x1b6   : > { %1452 = vst.msk [vmem:[#allocation2 + $0x90] sm:$0xff] %vm1433_vm3, %v1278_v60  ;;  %1453 = vst.msk [vmem:[#allocation2 + $0x98] sm:$0xff] %vm1433_vm3, %v1280_v61 }
 0x1b7   : > { %1651 = vrot.lane.b32.xlu0 %v8523_v56, %s10001_s9  ;;  %1653 = vrot.lane.b32.xlu1 %v8524_v57, %s10001_s9  ;;  %v8555_v56 = vld [vmem:[%s10091_s5 + $0x558] sm:$0xff]  ;;  %v8556_v57 = vld [vmem:[%s10091_s5 + $0x560] sm:$0xff] }
 0x1b9   : > { %v1282_v4 = vpop.permute.xlu0 %1281  ;;  %v1284_v5 = vpop.permute.xlu1 %1283 }
 0x1ba   : > { %1454 = vst.msk [vmem:[#allocation2 + $0xa0] sm:$0xff] %vm1433_vm3, %v1282_v4  ;;  %1455 = vst.msk [vmem:[#allocation2 + $0xa8] sm:$0xff] %vm1433_vm3, %v1284_v5 }
 0x1bb   : > { %1655 = vrot.lane.b32.xlu0 %v8525_v0, %s10001_s9  ;;  %1657 = vrot.lane.b32.xlu1 %v8526_v1, %s10001_s9  ;;  %v8557_v0 = vld [vmem:[%s10091_s5 + $0x570] sm:$0xff]  ;;  %v8558_v1 = vld [vmem:[%s10091_s5 + $0x578] sm:$0xff] }
 0x1bd   : > { %v1286_v12 = vpop.permute.xlu0 %1285  ;;  %v1288_v14 = vpop.permute.xlu1 %1287 }
 0x1be   : > { %1456 = vst.msk [vmem:[#allocation2 + $0xb0] sm:$0xff] %vm1433_vm3, %v1286_v12  ;;  %1457 = vst.msk [vmem:[#allocation2 + $0xb8] sm:$0xff] %vm1433_vm3, %v1288_v14 }
 0x1bf   : > { %1659 = vrot.lane.b32.xlu0 %v8527_v8, %s10001_s9  ;;  %1661 = vrot.lane.b32.xlu1 %v8528_v9, %s10001_s9  ;;  %v8559_v8 = vld [vmem:[%s10091_s5 + $0x588] sm:$0xff]  ;;  %v8560_v9 = vld [vmem:[%s10091_s5 + $0x590] sm:$0xff] }
 0x1c1   : > { %v1290_v35 = vpop.permute.xlu0 %1289  ;;  %v1292_v37 = vpop.permute.xlu1 %1291 }
 0x1c2   : > { %1458 = vst.msk [vmem:[#allocation2 + $0xc0] sm:$0xff] %vm1433_vm3, %v1290_v35  ;;  %1459 = vst.msk [vmem:[#allocation2 + $0xc8] sm:$0xff] %vm1433_vm3, %v1292_v37 }
 0x1c3   : > { %1663 = vrot.lane.b32.xlu0 %v8529_v21, %s10001_s9  ;;  %1665 = vrot.lane.b32.xlu1 %v8530_v22, %s10001_s9  ;;  %v8561_v21 = vld [vmem:[%s10091_s5 + $0x5a0] sm:$0xff]  ;;  %v8562_v22 = vld [vmem:[%s10091_s5 + $0x5a8] sm:$0xff] }
 0x1c5   : > { %v1294_v58 = vpop.permute.xlu0 %1293  ;;  %v1296_v59 = vpop.permute.xlu1 %1295 }
 0x1c6   : > { %1460 = vst.msk [vmem:[#allocation2 + $0xd0] sm:$0xff] %vm1433_vm3, %v1294_v58  ;;  %1461 = vst.msk [vmem:[#allocation2 + $0xd8] sm:$0xff] %vm1433_vm3, %v1296_v59 }
 0x1c7   : > { %1667 = vrot.lane.b32.xlu0 %v8531_v50, %s10001_s9  ;;  %1669 = vrot.lane.b32.xlu1 %v8532_v51, %s10001_s9  ;;  %v8563_v50 = vld [vmem:[%s10091_s5 + $0x5b8] sm:$0xff]  ;;  %v8564_v51 = vld [vmem:[%s10091_s5 + $0x5c0] sm:$0xff] }
 0x1c9   : > { %v1298_v10 = vpop.permute.xlu0 %1297  ;;  %v1300_v11 = vpop.permute.xlu1 %1299 }
 0x1ca   : > { %1462 = vst.msk [vmem:[#allocation2 + $0xe0] sm:$0xff] %vm1433_vm3, %v1298_v10  ;;  %1463 = vst.msk [vmem:[#allocation2 + $0xe8] sm:$0xff] %vm1433_vm3, %v1300_v11 }
 0x1cb   : > { %1671 = vrot.lane.b32.xlu0 %v8533_v2, %s10001_s9  ;;  %1673 = vrot.lane.b32.xlu1 %v8534_v3, %s10001_s9  ;;  %v8565_v2 = vld [vmem:[%s10091_s5 + $0x5d0] sm:$0xff]  ;;  %v8566_v3 = vld [vmem:[%s10091_s5 + $0x5d8] sm:$0xff] }
 0x1cd   : > { %v1302_v28 = vpop.permute.xlu0 %1301  ;;  %v1304_v29 = vpop.permute.xlu1 %1303 }
 0x1ce   : > { %1464 = vst.msk [vmem:[#allocation2 + $0xf0] sm:$0xff] %vm1433_vm3, %v1302_v28  ;;  %1465 = vst.msk [vmem:[#allocation2 + $0xf8] sm:$0xff] %vm1433_vm3, %v1304_v29 }
 0x1cf   : > { %1675 = vrot.lane.b32.xlu0 %v8535_v63, %s10001_s9  ;;  %1677 = vrot.lane.b32.xlu1 %v8536_v7, %s10001_s9  ;;  %v8567_v63 = vld [vmem:[%s10091_s5 + $0x5e8] sm:$0xff]  ;;  %v8568_v7 = vld [vmem:[%s10091_s5 + $0x5f0] sm:$0xff] }
 0x1d1   : > { %v1306_v15 = vpop.permute.xlu0 %1305  ;;  %v1308_v44 = vpop.permute.xlu1 %1307 }
 0x1d2   : > { %1466 = vst.msk [vmem:[#allocation2 + $0x100] sm:$0xff] %vm1433_vm3, %v1306_v15  ;;  %1467 = vst.msk [vmem:[#allocation2 + $0x108] sm:$0xff] %vm1433_vm3, %v1308_v44 }
 0x1d3   : > { %1679 = vrot.lane.b32.xlu0 %v8537_v16, %s10001_s9  ;;  %1681 = vrot.lane.b32.xlu1 %v8538_v45, %s10001_s9  ;;  %v8569_v16 = vld [vmem:[%s10091_s5 + $0x600] sm:$0xff]  ;;  %v8570_v45 = vld [vmem:[%s10091_s5 + $0x608] sm:$0xff] }
 0x1d5   : > { %v1310_v6 = vpop.permute.xlu0 %1309  ;;  %v1312_v62 = vpop.permute.xlu1 %1311 }
 0x1d6   : > { %1468 = vst.msk [vmem:[#allocation2 + $0x110] sm:$0xff] %vm1433_vm3, %v1310_v6  ;;  %1469 = vst.msk [vmem:[#allocation2 + $0x118] sm:$0xff] %vm1433_vm3, %v1312_v62 }
 0x1d7   : > { %1683 = vrot.lane.b32.xlu0 %v8539_v54, %s10001_s9  ;;  %1685 = vrot.lane.b32.xlu1 %v8540_v55, %s10001_s9  ;;  %v8571_v54 = vld [vmem:[%s10091_s5 + $0x618] sm:$0xff]  ;;  %v8572_v55 = vld [vmem:[%s10091_s5 + $0x620] sm:$0xff] }
 0x1d9   : > { %v1314_v18 = vpop.permute.xlu0 %1313  ;;  %v1316_v19 = vpop.permute.xlu1 %1315 }
 0x1da   : > { %1470 = vst.msk [vmem:[#allocation2 + $0x120] sm:$0xff] %vm1433_vm3, %v1314_v18  ;;  %1471 = vst.msk [vmem:[#allocation2 + $0x128] sm:$0xff] %vm1433_vm3, %v1316_v19 }
 0x1db   : > { %1687 = vrot.lane.b32.xlu0 %v8541_v13, %s10001_s9  ;;  %1689 = vrot.lane.b32.xlu1 %v8542_v17, %s10001_s9  ;;  %v8573_v13 = vld [vmem:[%s10091_s5 + $0x630] sm:$0xff]  ;;  %v8574_v17 = vld [vmem:[%s10091_s5 + $0x638] sm:$0xff] }
 0x1dd   : > { %v1318_v24 = vpop.permute.xlu0 %1317  ;;  %v1320_v25 = vpop.permute.xlu1 %1319 }
 0x1de   : > { %1472 = vst.msk [vmem:[#allocation2 + $0x130] sm:$0xff] %vm1433_vm3, %v1318_v24  ;;  %1473 = vst.msk [vmem:[#allocation2 + $0x138] sm:$0xff] %vm1433_vm3, %v1320_v25 }
 0x1df   : > { %1691 = vrot.lane.b32.xlu0 %v8543_v20, %s10001_s9  ;;  %1693 = vrot.lane.b32.xlu1 %v8544_v23, %s10001_s9  ;;  %v8575_v20 = vld [vmem:[%s10091_s5 + $0x19] sm:$0xff]  ;;  %v8576_v23 = vld [vmem:[%s10091_s5 + $0x21] sm:$0xff] }
 0x1e1   : > { %v1322_v30 = vpop.permute.xlu0 %1321  ;;  %v1324_v31 = vpop.permute.xlu1 %1323 }
 0x1e2   : > { %1474 = vst.msk [vmem:[#allocation2 + $0x140] sm:$0xff] %vm1433_vm3, %v1322_v30  ;;  %1475 = vst.msk [vmem:[#allocation2 + $0x148] sm:$0xff] %vm1433_vm3, %v1324_v31 }
 0x1e3   : > { %1695 = vrot.lane.b32.xlu0 %v8545_v26, %s10001_s9  ;;  %1697 = vrot.lane.b32.xlu1 %v8546_v27, %s10001_s9  ;;  %v8577_v26 = vld [vmem:[%s10091_s5 + $0x31] sm:$0xff]  ;;  %v8578_v27 = vld [vmem:[%s10091_s5 + $0x39] sm:$0xff] }
 0x1e5   : > { %v1326_v34 = vpop.permute.xlu0 %1325  ;;  %v1328_v36 = vpop.permute.xlu1 %1327 }
 0x1e6   : > { %1476 = vst.msk [vmem:[#allocation2 + $0x150] sm:$0xff] %vm1433_vm3, %v1326_v34  ;;  %1477 = vst.msk [vmem:[#allocation2 + $0x158] sm:$0xff] %vm1433_vm3, %v1328_v36 }
 0x1e7   : > { %1699 = vrot.lane.b32.xlu0 %v8547_v32, %s10001_s9  ;;  %1701 = vrot.lane.b32.xlu1 %v8548_v33, %s10001_s9  ;;  %v8579_v32 = vld [vmem:[%s10091_s5 + $0x49] sm:$0xff]  ;;  %v8580_v33 = vld [vmem:[%s10091_s5 + $0x51] sm:$0xff] }
 0x1e9   : > { %v1330_v40 = vpop.permute.xlu0 %1329  ;;  %v1332_v41 = vpop.permute.xlu1 %1331 }
 0x1ea   : > { %1478 = vst.msk [vmem:[#allocation2 + $0x160] sm:$0xff] %vm1433_vm3, %v1330_v40  ;;  %1479 = vst.msk [vmem:[#allocation2 + $0x168] sm:$0xff] %vm1433_vm3, %v1332_v41 }
 0x1eb   : > { %1703 = vrot.lane.b32.xlu0 %v8549_v38, %s10001_s9  ;;  %1705 = vrot.lane.b32.xlu1 %v8550_v39, %s10001_s9  ;;  %v8581_v38 = vld [vmem:[%s10091_s5 + $0x61] sm:$0xff]  ;;  %v8582_v39 = vld [vmem:[%s10091_s5 + $0x69] sm:$0xff] }
 0x1ed   : > { %v1334_v46 = vpop.permute.xlu0 %1333  ;;  %v1336_v47 = vpop.permute.xlu1 %1335 }
 0x1ee   : > { %1480 = vst.msk [vmem:[#allocation2 + $0x170] sm:$0xff] %vm1433_vm3, %v1334_v46  ;;  %1481 = vst.msk [vmem:[#allocation2 + $0x178] sm:$0xff] %vm1433_vm3, %v1336_v47 }
 0x1ef   : > { %1707 = vrot.lane.b32.xlu0 %v8551_v42, %s10001_s9  ;;  %1709 = vrot.lane.b32.xlu1 %v8552_v43, %s10001_s9  ;;  %v8583_v42 = vld [vmem:[%s10091_s5 + $0x79] sm:$0xff]  ;;  %v8584_v43 = vld [vmem:[%s10091_s5 + $0x81] sm:$0xff] }
 0x1f1   : > { %v1338_v52 = vpop.permute.xlu0 %1337  ;;  %v1340_v53 = vpop.permute.xlu1 %1339 }
 0x1f2   : > { %1482 = vst.msk [vmem:[#allocation2 + $0x180] sm:$0xff] %vm1433_vm3, %v1338_v52  ;;  %1483 = vst.msk [vmem:[#allocation2 + $0x188] sm:$0xff] %vm1433_vm3, %v1340_v53 }
 0x1f3   : > { %1711 = vrot.lane.b32.xlu0 %v8553_v48, %s10001_s9  ;;  %1713 = vrot.lane.b32.xlu1 %v8554_v49, %s10001_s9  ;;  %v8585_v48 = vld [vmem:[%s10091_s5 + $0x91] sm:$0xff]  ;;  %v8586_v49 = vld [vmem:[%s10091_s5 + $0x99] sm:$0xff] }
 0x1f5   : > { %v1342_v60 = vpop.permute.xlu0 %1341  ;;  %v1344_v61 = vpop.permute.xlu1 %1343 }
 0x1f6   : > { %1484 = vst.msk [vmem:[#allocation2 + $0x190] sm:$0xff] %vm1433_vm3, %v1342_v60  ;;  %1485 = vst.msk [vmem:[#allocation2 + $0x198] sm:$0xff] %vm1433_vm3, %v1344_v61 }
 0x1f7   : > { %1715 = vrot.lane.b32.xlu0 %v8555_v56, %s10001_s9  ;;  %1717 = vrot.lane.b32.xlu1 %v8556_v57, %s10001_s9  ;;  %v8587_v56 = vld [vmem:[%s10091_s5 + $0xa9] sm:$0xff]  ;;  %v8588_v57 = vld [vmem:[%s10091_s5 + $0xb1] sm:$0xff] }
 0x1f9   : > { %v1346_v4 = vpop.permute.xlu0 %1345  ;;  %v1348_v5 = vpop.permute.xlu1 %1347 }
 0x1fa   : > { %1486 = vst.msk [vmem:[#allocation2 + $0x1a0] sm:$0xff] %vm1433_vm3, %v1346_v4  ;;  %1487 = vst.msk [vmem:[#allocation2 + $0x1a8] sm:$0xff] %vm1433_vm3, %v1348_v5 }
 0x1fb   : > { %1719 = vrot.lane.b32.xlu0 %v8557_v0, %s10001_s9  ;;  %1721 = vrot.lane.b32.xlu1 %v8558_v1, %s10001_s9  ;;  %v8589_v0 = vld [vmem:[%s10091_s5 + $0xc1] sm:$0xff]  ;;  %v8590_v1 = vld [vmem:[%s10091_s5 + $0xc9] sm:$0xff] }
 0x1fd   : > { %v1350_v12 = vpop.permute.xlu0 %1349  ;;  %v1352_v14 = vpop.permute.xlu1 %1351 }
 0x1fe   : > { %1488 = vst.msk [vmem:[#allocation2 + $0x1b0] sm:$0xff] %vm1433_vm3, %v1350_v12  ;;  %1489 = vst.msk [vmem:[#allocation2 + $0x1b8] sm:$0xff] %vm1433_vm3, %v1352_v14 }
 0x1ff   : > { %1723 = vrot.lane.b32.xlu0 %v8559_v8, %s10001_s9  ;;  %1725 = vrot.lane.b32.xlu1 %v8560_v9, %s10001_s9  ;;  %v8591_v8 = vld [vmem:[%s10091_s5 + $0xd9] sm:$0xff]  ;;  %v8592_v9 = vld [vmem:[%s10091_s5 + $0xe1] sm:$0xff] }
 0x201   : > { %v1354_v35 = vpop.permute.xlu0 %1353  ;;  %v1356_v37 = vpop.permute.xlu1 %1355 }
 0x202   : > { %1490 = vst.msk [vmem:[#allocation2 + $0x1c0] sm:$0xff] %vm1433_vm3, %v1354_v35  ;;  %1491 = vst.msk [vmem:[#allocation2 + $0x1c8] sm:$0xff] %vm1433_vm3, %v1356_v37 }
 0x203   : > { %1727 = vrot.lane.b32.xlu0 %v8561_v21, %s10001_s9  ;;  %1729 = vrot.lane.b32.xlu1 %v8562_v22, %s10001_s9  ;;  %v8593_v21 = vld [vmem:[%s10091_s5 + $0xf1] sm:$0xff]  ;;  %v8594_v22 = vld [vmem:[%s10091_s5 + $0xf9] sm:$0xff] }
 0x205   : > { %v1358_v58 = vpop.permute.xlu0 %1357  ;;  %v1360_v59 = vpop.permute.xlu1 %1359 }
 0x206   : > { %1492 = vst.msk [vmem:[#allocation2 + $0x1d0] sm:$0xff] %vm1433_vm3, %v1358_v58  ;;  %1493 = vst.msk [vmem:[#allocation2 + $0x1d8] sm:$0xff] %vm1433_vm3, %v1360_v59 }
 0x207   : > { %1731 = vrot.lane.b32.xlu0 %v8563_v50, %s10001_s9  ;;  %1733 = vrot.lane.b32.xlu1 %v8564_v51, %s10001_s9  ;;  %v8595_v50 = vld [vmem:[%s10091_s5 + $0x109] sm:$0xff]  ;;  %v8596_v51 = vld [vmem:[%s10091_s5 + $0x111] sm:$0xff] }
 0x209   : > { %v1362_v10 = vpop.permute.xlu0 %1361  ;;  %v1364_v11 = vpop.permute.xlu1 %1363 }
 0x20a   : > { %1494 = vst.msk [vmem:[#allocation2 + $0x1e0] sm:$0xff] %vm1433_vm3, %v1362_v10  ;;  %1495 = vst.msk [vmem:[#allocation2 + $0x1e8] sm:$0xff] %vm1433_vm3, %v1364_v11 }
 0x20b   : > { %1735 = vrot.lane.b32.xlu0 %v8565_v2, %s10001_s9  ;;  %1737 = vrot.lane.b32.xlu1 %v8566_v3, %s10001_s9  ;;  %v8597_v2 = vld [vmem:[%s10091_s5 + $0x121] sm:$0xff]  ;;  %v8598_v3 = vld [vmem:[%s10091_s5 + $0x129] sm:$0xff] }
 0x20d   : > { %v1366_v28 = vpop.permute.xlu0 %1365  ;;  %v1368_v29 = vpop.permute.xlu1 %1367 }
 0x20e   : > { %1496 = vst.msk [vmem:[#allocation2 + $0x1f0] sm:$0xff] %vm1433_vm3, %v1366_v28  ;;  %1497 = vst.msk [vmem:[#allocation2 + $0x1f8] sm:$0xff] %vm1433_vm3, %v1368_v29 }
 0x20f   : > { %1739 = vrot.lane.b32.xlu0 %v8567_v63, %s10001_s9  ;;  %1741 = vrot.lane.b32.xlu1 %v8568_v7, %s10001_s9  ;;  %v8599_v63 = vld [vmem:[%s10091_s5 + $0x139] sm:$0xff]  ;;  %v8600_v7 = vld [vmem:[%s10091_s5 + $0x141] sm:$0xff] }
 0x211   : > { %v1628_v15 = vpop.permute.xlu0 %1627  ;;  %v1630_v44 = vpop.permute.xlu1 %1629 }
 0x212   : > { %1820 = vst.msk [vmem:[#allocation2] sm:$0xff] %vm1819_vm4, %v1628_v15  ;;  %1821 = vst.msk [vmem:[#allocation2 + $0x8] sm:$0xff] %vm1819_vm4, %v1630_v44 }
 0x213   : > { %1743 = vrot.lane.b32.xlu0 %v8569_v16, %s10001_s9  ;;  %1745 = vrot.lane.b32.xlu1 %v8570_v45, %s10001_s9  ;;  %v8601_v16 = vld [vmem:[%s10091_s5 + $0x151] sm:$0xff]  ;;  %v8602_v45 = vld [vmem:[%s10091_s5 + $0x159] sm:$0xff] }
 0x215   : > { %v1632_v6 = vpop.permute.xlu0 %1631  ;;  %v1634_v62 = vpop.permute.xlu1 %1633 }
 0x216   : > { %1822 = vst.msk [vmem:[#allocation2 + $0x10] sm:$0xff] %vm1819_vm4, %v1632_v6  ;;  %1823 = vst.msk [vmem:[#allocation2 + $0x18] sm:$0xff] %vm1819_vm4, %v1634_v62 }
 0x217   : > { %1747 = vrot.lane.b32.xlu0 %v8571_v54, %s10001_s9  ;;  %1749 = vrot.lane.b32.xlu1 %v8572_v55, %s10001_s9  ;;  %v8603_v54 = vld [vmem:[%s10091_s5 + $0x169] sm:$0xff]  ;;  %v8604_v55 = vld [vmem:[%s10091_s5 + $0x171] sm:$0xff] }
 0x219   : > { %v1636_v18 = vpop.permute.xlu0 %1635  ;;  %v1638_v19 = vpop.permute.xlu1 %1637 }
 0x21a   : > { %1824 = vst.msk [vmem:[#allocation2 + $0x20] sm:$0xff] %vm1819_vm4, %v1636_v18  ;;  %1825 = vst.msk [vmem:[#allocation2 + $0x28] sm:$0xff] %vm1819_vm4, %v1638_v19 }
 0x21b   : > { %1751 = vrot.lane.b32.xlu0 %v8573_v13, %s10001_s9  ;;  %1753 = vrot.lane.b32.xlu1 %v8574_v17, %s10001_s9  ;;  %v8605_v13 = vld [vmem:[%s10091_s5 + $0x181] sm:$0xff]  ;;  %v8606_v17 = vld [vmem:[%s10091_s5 + $0x189] sm:$0xff] }
 0x21d   : > { %v1640_v24 = vpop.permute.xlu0 %1639  ;;  %v1642_v25 = vpop.permute.xlu1 %1641 }
 0x21e   : > { %1826 = vst.msk [vmem:[#allocation2 + $0x30] sm:$0xff] %vm1819_vm4, %v1640_v24  ;;  %1827 = vst.msk [vmem:[#allocation2 + $0x38] sm:$0xff] %vm1819_vm4, %v1642_v25 }
 0x21f   : > { %2012 = vrot.lane.b32.xlu0 %v8575_v20, %s10002_s10  ;;  %2014 = vrot.lane.b32.xlu1 %v8576_v23, %s10002_s10  ;;  %v8607_v20 = vld [vmem:[%s10091_s5 + $0x199] sm:$0xff]  ;;  %v8608_v23 = vld [vmem:[%s10091_s5 + $0x1a1] sm:$0xff] }
 0x221   : > { %v1644_v30 = vpop.permute.xlu0 %1643  ;;  %v1646_v31 = vpop.permute.xlu1 %1645 }
 0x222   : > { %1828 = vst.msk [vmem:[#allocation2 + $0x40] sm:$0xff] %vm1819_vm4, %v1644_v30  ;;  %1829 = vst.msk [vmem:[#allocation2 + $0x48] sm:$0xff] %vm1819_vm4, %v1646_v31 }
 0x223   : > { %2016 = vrot.lane.b32.xlu0 %v8577_v26, %s10002_s10  ;;  %2018 = vrot.lane.b32.xlu1 %v8578_v27, %s10002_s10  ;;  %v8609_v26 = vld [vmem:[%s10091_s5 + $0x1b1] sm:$0xff]  ;;  %v8610_v27 = vld [vmem:[%s10091_s5 + $0x1b9] sm:$0xff] }
 0x225   : > { %v1648_v34 = vpop.permute.xlu0 %1647  ;;  %v1650_v36 = vpop.permute.xlu1 %1649 }
 0x226   : > { %1830 = vst.msk [vmem:[#allocation2 + $0x50] sm:$0xff] %vm1819_vm4, %v1648_v34  ;;  %1831 = vst.msk [vmem:[#allocation2 + $0x58] sm:$0xff] %vm1819_vm4, %v1650_v36 }
 0x227   : > { %2020 = vrot.lane.b32.xlu0 %v8579_v32, %s10002_s10  ;;  %2022 = vrot.lane.b32.xlu1 %v8580_v33, %s10002_s10  ;;  %v8611_v32 = vld [vmem:[%s10091_s5 + $0x1c9] sm:$0xff]  ;;  %v8612_v33 = vld [vmem:[%s10091_s5 + $0x1d1] sm:$0xff] }
 0x229   : > { %v1652_v40 = vpop.permute.xlu0 %1651  ;;  %v1654_v41 = vpop.permute.xlu1 %1653 }
 0x22a   : > { %1832 = vst.msk [vmem:[#allocation2 + $0x60] sm:$0xff] %vm1819_vm4, %v1652_v40  ;;  %1833 = vst.msk [vmem:[#allocation2 + $0x68] sm:$0xff] %vm1819_vm4, %v1654_v41 }
 0x22b   : > { %2024 = vrot.lane.b32.xlu0 %v8581_v38, %s10002_s10  ;;  %2026 = vrot.lane.b32.xlu1 %v8582_v39, %s10002_s10  ;;  %v8613_v38 = vld [vmem:[%s10091_s5 + $0x1e1] sm:$0xff]  ;;  %v8614_v39 = vld [vmem:[%s10091_s5 + $0x1e9] sm:$0xff] }
 0x22d   : > { %v1656_v46 = vpop.permute.xlu0 %1655  ;;  %v1658_v47 = vpop.permute.xlu1 %1657 }
 0x22e   : > { %1834 = vst.msk [vmem:[#allocation2 + $0x70] sm:$0xff] %vm1819_vm4, %v1656_v46  ;;  %1835 = vst.msk [vmem:[#allocation2 + $0x78] sm:$0xff] %vm1819_vm4, %v1658_v47 }
 0x22f   : > { %2028 = vrot.lane.b32.xlu0 %v8583_v42, %s10002_s10  ;;  %2030 = vrot.lane.b32.xlu1 %v8584_v43, %s10002_s10  ;;  %v8615_v42 = vld [vmem:[%s10091_s5 + $0x1f9] sm:$0xff]  ;;  %v8616_v43 = vld [vmem:[%s10091_s5 + $0x201] sm:$0xff] }
 0x231   : > { %v1660_v52 = vpop.permute.xlu0 %1659  ;;  %v1662_v53 = vpop.permute.xlu1 %1661 }
 0x232   : > { %1836 = vst.msk [vmem:[#allocation2 + $0x80] sm:$0xff] %vm1819_vm4, %v1660_v52  ;;  %1837 = vst.msk [vmem:[#allocation2 + $0x88] sm:$0xff] %vm1819_vm4, %v1662_v53 }
 0x233   : > { %2032 = vrot.lane.b32.xlu0 %v8585_v48, %s10002_s10  ;;  %2034 = vrot.lane.b32.xlu1 %v8586_v49, %s10002_s10  ;;  %v8617_v48 = vld [vmem:[%s10091_s5 + $0x211] sm:$0xff]  ;;  %v8618_v49 = vld [vmem:[%s10091_s5 + $0x219] sm:$0xff] }
 0x235   : > { %v1664_v60 = vpop.permute.xlu0 %1663  ;;  %v1666_v61 = vpop.permute.xlu1 %1665 }
 0x236   : > { %1838 = vst.msk [vmem:[#allocation2 + $0x90] sm:$0xff] %vm1819_vm4, %v1664_v60  ;;  %1839 = vst.msk [vmem:[#allocation2 + $0x98] sm:$0xff] %vm1819_vm4, %v1666_v61 }
 0x237   : > { %2036 = vrot.lane.b32.xlu0 %v8587_v56, %s10002_s10  ;;  %2038 = vrot.lane.b32.xlu1 %v8588_v57, %s10002_s10  ;;  %v8619_v56 = vld [vmem:[%s10091_s5 + $0x229] sm:$0xff]  ;;  %v8620_v57 = vld [vmem:[%s10091_s5 + $0x231] sm:$0xff] }
 0x239   : > { %v1668_v4 = vpop.permute.xlu0 %1667  ;;  %v1670_v5 = vpop.permute.xlu1 %1669 }
 0x23a   : > { %1840 = vst.msk [vmem:[#allocation2 + $0xa0] sm:$0xff] %vm1819_vm4, %v1668_v4  ;;  %1841 = vst.msk [vmem:[#allocation2 + $0xa8] sm:$0xff] %vm1819_vm4, %v1670_v5 }
 0x23b   : > { %2040 = vrot.lane.b32.xlu0 %v8589_v0, %s10002_s10  ;;  %2042 = vrot.lane.b32.xlu1 %v8590_v1, %s10002_s10  ;;  %v8621_v0 = vld [vmem:[%s10091_s5 + $0x241] sm:$0xff]  ;;  %v8622_v1 = vld [vmem:[%s10091_s5 + $0x249] sm:$0xff] }
 0x23d   : > { %v1672_v12 = vpop.permute.xlu0 %1671  ;;  %v1674_v14 = vpop.permute.xlu1 %1673 }
 0x23e   : > { %1842 = vst.msk [vmem:[#allocation2 + $0xb0] sm:$0xff] %vm1819_vm4, %v1672_v12  ;;  %1843 = vst.msk [vmem:[#allocation2 + $0xb8] sm:$0xff] %vm1819_vm4, %v1674_v14 }
 0x23f   : > { %2044 = vrot.lane.b32.xlu0 %v8591_v8, %s10002_s10  ;;  %2046 = vrot.lane.b32.xlu1 %v8592_v9, %s10002_s10  ;;  %v8623_v8 = vld [vmem:[%s10091_s5 + $0x259] sm:$0xff]  ;;  %v8624_v9 = vld [vmem:[%s10091_s5 + $0x261] sm:$0xff] }
 0x241   : > { %v1676_v35 = vpop.permute.xlu0 %1675  ;;  %v1678_v37 = vpop.permute.xlu1 %1677 }
 0x242   : > { %1844 = vst.msk [vmem:[#allocation2 + $0xc0] sm:$0xff] %vm1819_vm4, %v1676_v35  ;;  %1845 = vst.msk [vmem:[#allocation2 + $0xc8] sm:$0xff] %vm1819_vm4, %v1678_v37 }
 0x243   : > { %2048 = vrot.lane.b32.xlu0 %v8593_v21, %s10002_s10  ;;  %2050 = vrot.lane.b32.xlu1 %v8594_v22, %s10002_s10  ;;  %v8625_v21 = vld [vmem:[%s10091_s5 + $0x271] sm:$0xff]  ;;  %v8626_v22 = vld [vmem:[%s10091_s5 + $0x279] sm:$0xff] }
 0x245   : > { %v1680_v58 = vpop.permute.xlu0 %1679  ;;  %v1682_v59 = vpop.permute.xlu1 %1681 }
 0x246   : > { %1846 = vst.msk [vmem:[#allocation2 + $0xd0] sm:$0xff] %vm1819_vm4, %v1680_v58  ;;  %1847 = vst.msk [vmem:[#allocation2 + $0xd8] sm:$0xff] %vm1819_vm4, %v1682_v59 }
 0x247   : > { %2052 = vrot.lane.b32.xlu0 %v8595_v50, %s10002_s10  ;;  %2054 = vrot.lane.b32.xlu1 %v8596_v51, %s10002_s10  ;;  %v8627_v50 = vld [vmem:[%s10091_s5 + $0x289] sm:$0xff]  ;;  %v8628_v51 = vld [vmem:[%s10091_s5 + $0x291] sm:$0xff] }
 0x249   : > { %v1684_v10 = vpop.permute.xlu0 %1683  ;;  %v1686_v11 = vpop.permute.xlu1 %1685 }
 0x24a   : > { %1848 = vst.msk [vmem:[#allocation2 + $0xe0] sm:$0xff] %vm1819_vm4, %v1684_v10  ;;  %1849 = vst.msk [vmem:[#allocation2 + $0xe8] sm:$0xff] %vm1819_vm4, %v1686_v11 }
 0x24b   : > { %2056 = vrot.lane.b32.xlu0 %v8597_v2, %s10002_s10  ;;  %2058 = vrot.lane.b32.xlu1 %v8598_v3, %s10002_s10  ;;  %v8629_v2 = vld [vmem:[%s10091_s5 + $0x2a1] sm:$0xff]  ;;  %v8630_v3 = vld [vmem:[%s10091_s5 + $0x2a9] sm:$0xff] }
 0x24d   : > { %v1688_v28 = vpop.permute.xlu0 %1687  ;;  %v1690_v29 = vpop.permute.xlu1 %1689 }
 0x24e   : > { %1850 = vst.msk [vmem:[#allocation2 + $0xf0] sm:$0xff] %vm1819_vm4, %v1688_v28  ;;  %1851 = vst.msk [vmem:[#allocation2 + $0xf8] sm:$0xff] %vm1819_vm4, %v1690_v29 }
 0x24f   : > { %2060 = vrot.lane.b32.xlu0 %v8599_v63, %s10002_s10  ;;  %2062 = vrot.lane.b32.xlu1 %v8600_v7, %s10002_s10  ;;  %v8631_v63 = vld [vmem:[%s10091_s5 + $0x2b9] sm:$0xff]  ;;  %v8632_v7 = vld [vmem:[%s10091_s5 + $0x2c1] sm:$0xff] }
 0x251   : > { %v1692_v15 = vpop.permute.xlu0 %1691  ;;  %v1694_v44 = vpop.permute.xlu1 %1693 }
 0x252   : > { %1852 = vst.msk [vmem:[#allocation2 + $0x100] sm:$0xff] %vm1819_vm4, %v1692_v15  ;;  %1853 = vst.msk [vmem:[#allocation2 + $0x108] sm:$0xff] %vm1819_vm4, %v1694_v44 }
 0x253   : > { %2064 = vrot.lane.b32.xlu0 %v8601_v16, %s10002_s10  ;;  %2066 = vrot.lane.b32.xlu1 %v8602_v45, %s10002_s10  ;;  %v8633_v16 = vld [vmem:[%s10091_s5 + $0x2d1] sm:$0xff]  ;;  %v8634_v45 = vld [vmem:[%s10091_s5 + $0x2d9] sm:$0xff] }
 0x255   : > { %v1696_v6 = vpop.permute.xlu0 %1695  ;;  %v1698_v62 = vpop.permute.xlu1 %1697 }
 0x256   : > { %1854 = vst.msk [vmem:[#allocation2 + $0x110] sm:$0xff] %vm1819_vm4, %v1696_v6  ;;  %1855 = vst.msk [vmem:[#allocation2 + $0x118] sm:$0xff] %vm1819_vm4, %v1698_v62 }
 0x257   : > { %2068 = vrot.lane.b32.xlu0 %v8603_v54, %s10002_s10  ;;  %2070 = vrot.lane.b32.xlu1 %v8604_v55, %s10002_s10  ;;  %v8635_v54 = vld [vmem:[%s10091_s5 + $0x2e9] sm:$0xff]  ;;  %v8636_v55 = vld [vmem:[%s10091_s5 + $0x2f1] sm:$0xff] }
 0x259   : > { %v1700_v18 = vpop.permute.xlu0 %1699  ;;  %v1702_v19 = vpop.permute.xlu1 %1701 }
 0x25a   : > { %1856 = vst.msk [vmem:[#allocation2 + $0x120] sm:$0xff] %vm1819_vm4, %v1700_v18  ;;  %1857 = vst.msk [vmem:[#allocation2 + $0x128] sm:$0xff] %vm1819_vm4, %v1702_v19 }
 0x25b   : > { %2072 = vrot.lane.b32.xlu0 %v8605_v13, %s10002_s10  ;;  %2074 = vrot.lane.b32.xlu1 %v8606_v17, %s10002_s10  ;;  %v8637_v13 = vld [vmem:[%s10091_s5 + $0x301] sm:$0xff]  ;;  %v8638_v17 = vld [vmem:[%s10091_s5 + $0x309] sm:$0xff] }
 0x25d   : > { %v1704_v24 = vpop.permute.xlu0 %1703  ;;  %v1706_v25 = vpop.permute.xlu1 %1705 }
 0x25e   : > { %1858 = vst.msk [vmem:[#allocation2 + $0x130] sm:$0xff] %vm1819_vm4, %v1704_v24  ;;  %1859 = vst.msk [vmem:[#allocation2 + $0x138] sm:$0xff] %vm1819_vm4, %v1706_v25 }
 0x25f   : > { %2076 = vrot.lane.b32.xlu0 %v8607_v20, %s10002_s10  ;;  %2078 = vrot.lane.b32.xlu1 %v8608_v23, %s10002_s10  ;;  %v8639_v20 = vld [vmem:[%s10091_s5 + $0x30] sm:$0xff]  ;;  %v8640_v23 = vld [vmem:[%s10091_s5 + $0x38] sm:$0xff] }
 0x261   : > { %v1708_v30 = vpop.permute.xlu0 %1707  ;;  %v1710_v31 = vpop.permute.xlu1 %1709 }
 0x262   : > { %1860 = vst.msk [vmem:[#allocation2 + $0x140] sm:$0xff] %vm1819_vm4, %v1708_v30  ;;  %1861 = vst.msk [vmem:[#allocation2 + $0x148] sm:$0xff] %vm1819_vm4, %v1710_v31 }
 0x263   : > { %2080 = vrot.lane.b32.xlu0 %v8609_v26, %s10002_s10  ;;  %2082 = vrot.lane.b32.xlu1 %v8610_v27, %s10002_s10  ;;  %v8641_v26 = vld [vmem:[%s10091_s5 + $0x48] sm:$0xff]  ;;  %v8642_v27 = vld [vmem:[%s10091_s5 + $0x50] sm:$0xff] }
 0x265   : > { %v1712_v34 = vpop.permute.xlu0 %1711  ;;  %v1714_v36 = vpop.permute.xlu1 %1713 }
 0x266   : > { %1862 = vst.msk [vmem:[#allocation2 + $0x150] sm:$0xff] %vm1819_vm4, %v1712_v34  ;;  %1863 = vst.msk [vmem:[#allocation2 + $0x158] sm:$0xff] %vm1819_vm4, %v1714_v36 }
 0x267   : > { %2084 = vrot.lane.b32.xlu0 %v8611_v32, %s10002_s10  ;;  %2086 = vrot.lane.b32.xlu1 %v8612_v33, %s10002_s10  ;;  %v8643_v32 = vld [vmem:[%s10091_s5 + $0x60] sm:$0xff]  ;;  %v8644_v33 = vld [vmem:[%s10091_s5 + $0x68] sm:$0xff] }
 0x269   : > { %v1716_v40 = vpop.permute.xlu0 %1715  ;;  %v1718_v41 = vpop.permute.xlu1 %1717 }
 0x26a   : > { %1864 = vst.msk [vmem:[#allocation2 + $0x160] sm:$0xff] %vm1819_vm4, %v1716_v40  ;;  %1865 = vst.msk [vmem:[#allocation2 + $0x168] sm:$0xff] %vm1819_vm4, %v1718_v41 }
 0x26b   : > { %2088 = vrot.lane.b32.xlu0 %v8613_v38, %s10002_s10  ;;  %2090 = vrot.lane.b32.xlu1 %v8614_v39, %s10002_s10  ;;  %v8645_v38 = vld [vmem:[%s10091_s5 + $0x78] sm:$0xff]  ;;  %v8646_v39 = vld [vmem:[%s10091_s5 + $0x80] sm:$0xff] }
 0x26d   : > { %v1720_v46 = vpop.permute.xlu0 %1719  ;;  %v1722_v47 = vpop.permute.xlu1 %1721 }
 0x26e   : > { %1866 = vst.msk [vmem:[#allocation2 + $0x170] sm:$0xff] %vm1819_vm4, %v1720_v46  ;;  %1867 = vst.msk [vmem:[#allocation2 + $0x178] sm:$0xff] %vm1819_vm4, %v1722_v47 }
 0x26f   : > { %2092 = vrot.lane.b32.xlu0 %v8615_v42, %s10002_s10  ;;  %2094 = vrot.lane.b32.xlu1 %v8616_v43, %s10002_s10  ;;  %v8647_v42 = vld [vmem:[%s10091_s5 + $0x90] sm:$0xff]  ;;  %v8648_v43 = vld [vmem:[%s10091_s5 + $0x98] sm:$0xff] }
 0x271   : > { %v1724_v52 = vpop.permute.xlu0 %1723  ;;  %v1726_v53 = vpop.permute.xlu1 %1725 }
 0x272   : > { %1868 = vst.msk [vmem:[#allocation2 + $0x180] sm:$0xff] %vm1819_vm4, %v1724_v52  ;;  %1869 = vst.msk [vmem:[#allocation2 + $0x188] sm:$0xff] %vm1819_vm4, %v1726_v53 }
 0x273   : > { %2096 = vrot.lane.b32.xlu0 %v8617_v48, %s10002_s10  ;;  %2098 = vrot.lane.b32.xlu1 %v8618_v49, %s10002_s10  ;;  %v8649_v48 = vld [vmem:[%s10091_s5 + $0xa8] sm:$0xff]  ;;  %v8650_v49 = vld [vmem:[%s10091_s5 + $0xb0] sm:$0xff] }
 0x275   : > { %v1728_v60 = vpop.permute.xlu0 %1727  ;;  %v1730_v61 = vpop.permute.xlu1 %1729 }
 0x276   : > { %1870 = vst.msk [vmem:[#allocation2 + $0x190] sm:$0xff] %vm1819_vm4, %v1728_v60  ;;  %1871 = vst.msk [vmem:[#allocation2 + $0x198] sm:$0xff] %vm1819_vm4, %v1730_v61 }
 0x277   : > { %2100 = vrot.lane.b32.xlu0 %v8619_v56, %s10002_s10  ;;  %2102 = vrot.lane.b32.xlu1 %v8620_v57, %s10002_s10  ;;  %v8651_v56 = vld [vmem:[%s10091_s5 + $0xc0] sm:$0xff]  ;;  %v8652_v57 = vld [vmem:[%s10091_s5 + $0xc8] sm:$0xff] }
 0x279   : > { %v1732_v4 = vpop.permute.xlu0 %1731  ;;  %v1734_v5 = vpop.permute.xlu1 %1733 }
 0x27a   : > { %1872 = vst.msk [vmem:[#allocation2 + $0x1a0] sm:$0xff] %vm1819_vm4, %v1732_v4  ;;  %1873 = vst.msk [vmem:[#allocation2 + $0x1a8] sm:$0xff] %vm1819_vm4, %v1734_v5 }
 0x27b   : > { %2104 = vrot.lane.b32.xlu0 %v8621_v0, %s10002_s10  ;;  %2106 = vrot.lane.b32.xlu1 %v8622_v1, %s10002_s10  ;;  %v8653_v0 = vld [vmem:[%s10091_s5 + $0xd8] sm:$0xff]  ;;  %v8654_v1 = vld [vmem:[%s10091_s5 + $0xe0] sm:$0xff] }
 0x27d   : > { %v1736_v12 = vpop.permute.xlu0 %1735  ;;  %v1738_v14 = vpop.permute.xlu1 %1737 }
 0x27e   : > { %1874 = vst.msk [vmem:[#allocation2 + $0x1b0] sm:$0xff] %vm1819_vm4, %v1736_v12  ;;  %1875 = vst.msk [vmem:[#allocation2 + $0x1b8] sm:$0xff] %vm1819_vm4, %v1738_v14 }
 0x27f   : > { %2108 = vrot.lane.b32.xlu0 %v8623_v8, %s10002_s10  ;;  %2110 = vrot.lane.b32.xlu1 %v8624_v9, %s10002_s10  ;;  %v8655_v8 = vld [vmem:[%s10091_s5 + $0xf0] sm:$0xff]  ;;  %v8656_v9 = vld [vmem:[%s10091_s5 + $0xf8] sm:$0xff] }
 0x281   : > { %v1740_v35 = vpop.permute.xlu0 %1739  ;;  %v1742_v37 = vpop.permute.xlu1 %1741 }
 0x282   : > { %1876 = vst.msk [vmem:[#allocation2 + $0x1c0] sm:$0xff] %vm1819_vm4, %v1740_v35  ;;  %1877 = vst.msk [vmem:[#allocation2 + $0x1c8] sm:$0xff] %vm1819_vm4, %v1742_v37 }
 0x283   : > { %2112 = vrot.lane.b32.xlu0 %v8625_v21, %s10002_s10  ;;  %2114 = vrot.lane.b32.xlu1 %v8626_v22, %s10002_s10  ;;  %v8657_v21 = vld [vmem:[%s10091_s5 + $0x108] sm:$0xff]  ;;  %v8658_v22 = vld [vmem:[%s10091_s5 + $0x110] sm:$0xff] }
 0x285   : > { %v1744_v58 = vpop.permute.xlu0 %1743  ;;  %v1746_v59 = vpop.permute.xlu1 %1745 }
 0x286   : > { %1878 = vst.msk [vmem:[#allocation2 + $0x1d0] sm:$0xff] %vm1819_vm4, %v1744_v58  ;;  %1879 = vst.msk [vmem:[#allocation2 + $0x1d8] sm:$0xff] %vm1819_vm4, %v1746_v59 }
 0x287   : > { %2116 = vrot.lane.b32.xlu0 %v8627_v50, %s10002_s10  ;;  %2118 = vrot.lane.b32.xlu1 %v8628_v51, %s10002_s10  ;;  %v8659_v50 = vld [vmem:[%s10091_s5 + $0x120] sm:$0xff]  ;;  %v8660_v51 = vld [vmem:[%s10091_s5 + $0x128] sm:$0xff] }
 0x289   : > { %v1748_v10 = vpop.permute.xlu0 %1747  ;;  %v1750_v11 = vpop.permute.xlu1 %1749 }
 0x28a   : > { %1880 = vst.msk [vmem:[#allocation2 + $0x1e0] sm:$0xff] %vm1819_vm4, %v1748_v10  ;;  %1881 = vst.msk [vmem:[#allocation2 + $0x1e8] sm:$0xff] %vm1819_vm4, %v1750_v11 }
 0x28b   : > { %2120 = vrot.lane.b32.xlu0 %v8629_v2, %s10002_s10  ;;  %2122 = vrot.lane.b32.xlu1 %v8630_v3, %s10002_s10  ;;  %v8661_v2 = vld [vmem:[%s10091_s5 + $0x138] sm:$0xff]  ;;  %v8662_v3 = vld [vmem:[%s10091_s5 + $0x140] sm:$0xff] }
 0x28d   : > { %v1752_v28 = vpop.permute.xlu0 %1751  ;;  %v1754_v29 = vpop.permute.xlu1 %1753 }
 0x28e   : > { %1882 = vst.msk [vmem:[#allocation2 + $0x1f0] sm:$0xff] %vm1819_vm4, %v1752_v28  ;;  %1883 = vst.msk [vmem:[#allocation2 + $0x1f8] sm:$0xff] %vm1819_vm4, %v1754_v29 }
 0x28f   : > { %2124 = vrot.lane.b32.xlu0 %v8631_v63, %s10002_s10  ;;  %2126 = vrot.lane.b32.xlu1 %v8632_v7, %s10002_s10  ;;  %v8663_v63 = vld [vmem:[%s10091_s5 + $0x150] sm:$0xff]  ;;  %v8664_v7 = vld [vmem:[%s10091_s5 + $0x158] sm:$0xff] }
 0x291   : > { %v2013_v15 = vpop.permute.xlu0 %2012  ;;  %v2015_v44 = vpop.permute.xlu1 %2014 }
 0x292   : > { %2205 = vst.msk [vmem:[#allocation2] sm:$0xff] %vm2204_vm5, %v2013_v15  ;;  %2206 = vst.msk [vmem:[#allocation2 + $0x8] sm:$0xff] %vm2204_vm5, %v2015_v44 }
 0x293   : > { %2128 = vrot.lane.b32.xlu0 %v8633_v16, %s10002_s10  ;;  %2130 = vrot.lane.b32.xlu1 %v8634_v45, %s10002_s10  ;;  %v8665_v16 = vld [vmem:[%s10091_s5 + $0x168] sm:$0xff]  ;;  %v8666_v45 = vld [vmem:[%s10091_s5 + $0x170] sm:$0xff] }
 0x295   : > { %v2017_v6 = vpop.permute.xlu0 %2016  ;;  %v2019_v62 = vpop.permute.xlu1 %2018 }
 0x296   : > { %2207 = vst.msk [vmem:[#allocation2 + $0x10] sm:$0xff] %vm2204_vm5, %v2017_v6  ;;  %2208 = vst.msk [vmem:[#allocation2 + $0x18] sm:$0xff] %vm2204_vm5, %v2019_v62 }
 0x297   : > { %2132 = vrot.lane.b32.xlu0 %v8635_v54, %s10002_s10  ;;  %2134 = vrot.lane.b32.xlu1 %v8636_v55, %s10002_s10  ;;  %v8667_v54 = vld [vmem:[%s10091_s5 + $0x180] sm:$0xff]  ;;  %v8668_v55 = vld [vmem:[%s10091_s5 + $0x188] sm:$0xff] }
 0x299   : > { %v2021_v18 = vpop.permute.xlu0 %2020  ;;  %v2023_v19 = vpop.permute.xlu1 %2022 }
 0x29a   : > { %2209 = vst.msk [vmem:[#allocation2 + $0x20] sm:$0xff] %vm2204_vm5, %v2021_v18  ;;  %2210 = vst.msk [vmem:[#allocation2 + $0x28] sm:$0xff] %vm2204_vm5, %v2023_v19 }
 0x29b   : > { %2136 = vrot.lane.b32.xlu0 %v8637_v13, %s10002_s10  ;;  %2138 = vrot.lane.b32.xlu1 %v8638_v17, %s10002_s10  ;;  %v8669_v13 = vld [vmem:[%s10091_s5 + $0x198] sm:$0xff]  ;;  %v8670_v17 = vld [vmem:[%s10091_s5 + $0x1a0] sm:$0xff] }
 0x29d   : > { %v2025_v24 = vpop.permute.xlu0 %2024  ;;  %v2027_v25 = vpop.permute.xlu1 %2026 }
 0x29e   : > { %2211 = vst.msk [vmem:[#allocation2 + $0x30] sm:$0xff] %vm2204_vm5, %v2025_v24  ;;  %2212 = vst.msk [vmem:[#allocation2 + $0x38] sm:$0xff] %vm2204_vm5, %v2027_v25 }
 0x29f   : > { %2398 = vrot.lane.b32.xlu0 %v8639_v20, %s10003_s11  ;;  %2400 = vrot.lane.b32.xlu1 %v8640_v23, %s10003_s11  ;;  %v8671_v20 = vld [vmem:[%s10091_s5 + $0x1b0] sm:$0xff]  ;;  %v8672_v23 = vld [vmem:[%s10091_s5 + $0x1b8] sm:$0xff] }
 0x2a1   : > { %v2029_v30 = vpop.permute.xlu0 %2028  ;;  %v2031_v31 = vpop.permute.xlu1 %2030 }
 0x2a2   : > { %2213 = vst.msk [vmem:[#allocation2 + $0x40] sm:$0xff] %vm2204_vm5, %v2029_v30  ;;  %2214 = vst.msk [vmem:[#allocation2 + $0x48] sm:$0xff] %vm2204_vm5, %v2031_v31 }
 0x2a3   : > { %2402 = vrot.lane.b32.xlu0 %v8641_v26, %s10003_s11  ;;  %2404 = vrot.lane.b32.xlu1 %v8642_v27, %s10003_s11  ;;  %v8673_v26 = vld [vmem:[%s10091_s5 + $0x1c8] sm:$0xff]  ;;  %v8674_v27 = vld [vmem:[%s10091_s5 + $0x1d0] sm:$0xff] }
 0x2a5   : > { %v2033_v34 = vpop.permute.xlu0 %2032  ;;  %v2035_v36 = vpop.permute.xlu1 %2034 }
 0x2a6   : > { %2215 = vst.msk [vmem:[#allocation2 + $0x50] sm:$0xff] %vm2204_vm5, %v2033_v34  ;;  %2216 = vst.msk [vmem:[#allocation2 + $0x58] sm:$0xff] %vm2204_vm5, %v2035_v36 }
 0x2a7   : > { %2406 = vrot.lane.b32.xlu0 %v8643_v32, %s10003_s11  ;;  %2408 = vrot.lane.b32.xlu1 %v8644_v33, %s10003_s11  ;;  %v8675_v32 = vld [vmem:[%s10091_s5 + $0x1e0] sm:$0xff]  ;;  %v8676_v33 = vld [vmem:[%s10091_s5 + $0x1e8] sm:$0xff] }
 0x2a9   : > { %v2037_v40 = vpop.permute.xlu0 %2036  ;;  %v2039_v41 = vpop.permute.xlu1 %2038 }
 0x2aa   : > { %2217 = vst.msk [vmem:[#allocation2 + $0x60] sm:$0xff] %vm2204_vm5, %v2037_v40  ;;  %2218 = vst.msk [vmem:[#allocation2 + $0x68] sm:$0xff] %vm2204_vm5, %v2039_v41 }
 0x2ab   : > { %2410 = vrot.lane.b32.xlu0 %v8645_v38, %s10003_s11  ;;  %2412 = vrot.lane.b32.xlu1 %v8646_v39, %s10003_s11  ;;  %v8677_v38 = vld [vmem:[%s10091_s5 + $0x1f8] sm:$0xff]  ;;  %v8678_v39 = vld [vmem:[%s10091_s5 + $0x200] sm:$0xff] }
 0x2ad   : > { %v2041_v46 = vpop.permute.xlu0 %2040  ;;  %v2043_v47 = vpop.permute.xlu1 %2042 }
 0x2ae   : > { %2219 = vst.msk [vmem:[#allocation2 + $0x70] sm:$0xff] %vm2204_vm5, %v2041_v46  ;;  %2220 = vst.msk [vmem:[#allocation2 + $0x78] sm:$0xff] %vm2204_vm5, %v2043_v47 }
 0x2af   : > { %2414 = vrot.lane.b32.xlu0 %v8647_v42, %s10003_s11  ;;  %2416 = vrot.lane.b32.xlu1 %v8648_v43, %s10003_s11  ;;  %v8679_v42 = vld [vmem:[%s10091_s5 + $0x210] sm:$0xff]  ;;  %v8680_v43 = vld [vmem:[%s10091_s5 + $0x218] sm:$0xff] }
 0x2b1   : > { %v2045_v52 = vpop.permute.xlu0 %2044  ;;  %v2047_v53 = vpop.permute.xlu1 %2046 }
 0x2b2   : > { %2221 = vst.msk [vmem:[#allocation2 + $0x80] sm:$0xff] %vm2204_vm5, %v2045_v52  ;;  %2222 = vst.msk [vmem:[#allocation2 + $0x88] sm:$0xff] %vm2204_vm5, %v2047_v53 }
 0x2b3   : > { %2418 = vrot.lane.b32.xlu0 %v8649_v48, %s10003_s11  ;;  %2420 = vrot.lane.b32.xlu1 %v8650_v49, %s10003_s11  ;;  %v8681_v48 = vld [vmem:[%s10091_s5 + $0x228] sm:$0xff]  ;;  %v8682_v49 = vld [vmem:[%s10091_s5 + $0x230] sm:$0xff] }
 0x2b5   : > { %v2049_v60 = vpop.permute.xlu0 %2048  ;;  %v2051_v61 = vpop.permute.xlu1 %2050 }
 0x2b6   : > { %2223 = vst.msk [vmem:[#allocation2 + $0x90] sm:$0xff] %vm2204_vm5, %v2049_v60  ;;  %2224 = vst.msk [vmem:[#allocation2 + $0x98] sm:$0xff] %vm2204_vm5, %v2051_v61 }
 0x2b7   : > { %2422 = vrot.lane.b32.xlu0 %v8651_v56, %s10003_s11  ;;  %2424 = vrot.lane.b32.xlu1 %v8652_v57, %s10003_s11  ;;  %v8683_v56 = vld [vmem:[%s10091_s5 + $0x240] sm:$0xff]  ;;  %v8684_v57 = vld [vmem:[%s10091_s5 + $0x248] sm:$0xff] }
 0x2b9   : > { %v2053_v4 = vpop.permute.xlu0 %2052  ;;  %v2055_v5 = vpop.permute.xlu1 %2054 }
 0x2ba   : > { %2225 = vst.msk [vmem:[#allocation2 + $0xa0] sm:$0xff] %vm2204_vm5, %v2053_v4  ;;  %2226 = vst.msk [vmem:[#allocation2 + $0xa8] sm:$0xff] %vm2204_vm5, %v2055_v5 }
 0x2bb   : > { %2426 = vrot.lane.b32.xlu0 %v8653_v0, %s10003_s11  ;;  %2428 = vrot.lane.b32.xlu1 %v8654_v1, %s10003_s11  ;;  %v8685_v0 = vld [vmem:[%s10091_s5 + $0x258] sm:$0xff]  ;;  %v8686_v1 = vld [vmem:[%s10091_s5 + $0x260] sm:$0xff] }
 0x2bd   : > { %v2057_v12 = vpop.permute.xlu0 %2056  ;;  %v2059_v14 = vpop.permute.xlu1 %2058 }
 0x2be   : > { %2227 = vst.msk [vmem:[#allocation2 + $0xb0] sm:$0xff] %vm2204_vm5, %v2057_v12  ;;  %2228 = vst.msk [vmem:[#allocation2 + $0xb8] sm:$0xff] %vm2204_vm5, %v2059_v14 }
 0x2bf   : > { %2430 = vrot.lane.b32.xlu0 %v8655_v8, %s10003_s11  ;;  %2432 = vrot.lane.b32.xlu1 %v8656_v9, %s10003_s11  ;;  %v8687_v8 = vld [vmem:[%s10091_s5 + $0x270] sm:$0xff]  ;;  %v8688_v9 = vld [vmem:[%s10091_s5 + $0x278] sm:$0xff] }
 0x2c1   : > { %v2061_v35 = vpop.permute.xlu0 %2060  ;;  %v2063_v37 = vpop.permute.xlu1 %2062 }
 0x2c2   : > { %2229 = vst.msk [vmem:[#allocation2 + $0xc0] sm:$0xff] %vm2204_vm5, %v2061_v35  ;;  %2230 = vst.msk [vmem:[#allocation2 + $0xc8] sm:$0xff] %vm2204_vm5, %v2063_v37 }
 0x2c3   : > { %2434 = vrot.lane.b32.xlu0 %v8657_v21, %s10003_s11  ;;  %2436 = vrot.lane.b32.xlu1 %v8658_v22, %s10003_s11  ;;  %v8689_v21 = vld [vmem:[%s10091_s5 + $0x288] sm:$0xff]  ;;  %v8690_v22 = vld [vmem:[%s10091_s5 + $0x290] sm:$0xff] }
 0x2c5   : > { %v2065_v58 = vpop.permute.xlu0 %2064  ;;  %v2067_v59 = vpop.permute.xlu1 %2066 }
 0x2c6   : > { %2231 = vst.msk [vmem:[#allocation2 + $0xd0] sm:$0xff] %vm2204_vm5, %v2065_v58  ;;  %2232 = vst.msk [vmem:[#allocation2 + $0xd8] sm:$0xff] %vm2204_vm5, %v2067_v59 }
 0x2c7   : > { %2438 = vrot.lane.b32.xlu0 %v8659_v50, %s10003_s11  ;;  %2440 = vrot.lane.b32.xlu1 %v8660_v51, %s10003_s11  ;;  %v8691_v50 = vld [vmem:[%s10091_s5 + $0x2a0] sm:$0xff]  ;;  %v8692_v51 = vld [vmem:[%s10091_s5 + $0x2a8] sm:$0xff] }
 0x2c9   : > { %v2069_v10 = vpop.permute.xlu0 %2068  ;;  %v2071_v11 = vpop.permute.xlu1 %2070 }
 0x2ca   : > { %2233 = vst.msk [vmem:[#allocation2 + $0xe0] sm:$0xff] %vm2204_vm5, %v2069_v10  ;;  %2234 = vst.msk [vmem:[#allocation2 + $0xe8] sm:$0xff] %vm2204_vm5, %v2071_v11 }
 0x2cb   : > { %2442 = vrot.lane.b32.xlu0 %v8661_v2, %s10003_s11  ;;  %2444 = vrot.lane.b32.xlu1 %v8662_v3, %s10003_s11  ;;  %v8693_v2 = vld [vmem:[%s10091_s5 + $0x2b8] sm:$0xff]  ;;  %v8694_v3 = vld [vmem:[%s10091_s5 + $0x2c0] sm:$0xff] }
 0x2cd   : > { %v2073_v28 = vpop.permute.xlu0 %2072  ;;  %v2075_v29 = vpop.permute.xlu1 %2074 }
 0x2ce   : > { %2235 = vst.msk [vmem:[#allocation2 + $0xf0] sm:$0xff] %vm2204_vm5, %v2073_v28  ;;  %2236 = vst.msk [vmem:[#allocation2 + $0xf8] sm:$0xff] %vm2204_vm5, %v2075_v29 }
 0x2cf   : > { %2446 = vrot.lane.b32.xlu0 %v8663_v63, %s10003_s11  ;;  %2448 = vrot.lane.b32.xlu1 %v8664_v7, %s10003_s11  ;;  %v8695_v63 = vld [vmem:[%s10091_s5 + $0x2d0] sm:$0xff]  ;;  %v8696_v7 = vld [vmem:[%s10091_s5 + $0x2d8] sm:$0xff] }
 0x2d1   : > { %v2077_v15 = vpop.permute.xlu0 %2076  ;;  %v2079_v44 = vpop.permute.xlu1 %2078 }
 0x2d2   : > { %2237 = vst.msk [vmem:[#allocation2 + $0x100] sm:$0xff] %vm2204_vm5, %v2077_v15  ;;  %2238 = vst.msk [vmem:[#allocation2 + $0x108] sm:$0xff] %vm2204_vm5, %v2079_v44 }
 0x2d3   : > { %2450 = vrot.lane.b32.xlu0 %v8665_v16, %s10003_s11  ;;  %2452 = vrot.lane.b32.xlu1 %v8666_v45, %s10003_s11  ;;  %v8697_v16 = vld [vmem:[%s10091_s5 + $0x2e8] sm:$0xff]  ;;  %v8698_v45 = vld [vmem:[%s10091_s5 + $0x2f0] sm:$0xff] }
 0x2d5   : > { %v2081_v6 = vpop.permute.xlu0 %2080  ;;  %v2083_v62 = vpop.permute.xlu1 %2082 }
 0x2d6   : > { %2239 = vst.msk [vmem:[#allocation2 + $0x110] sm:$0xff] %vm2204_vm5, %v2081_v6  ;;  %2240 = vst.msk [vmem:[#allocation2 + $0x118] sm:$0xff] %vm2204_vm5, %v2083_v62 }
 0x2d7   : > { %2454 = vrot.lane.b32.xlu0 %v8667_v54, %s10003_s11  ;;  %2456 = vrot.lane.b32.xlu1 %v8668_v55, %s10003_s11  ;;  %v8699_v54 = vld [vmem:[%s10091_s5 + $0x300] sm:$0xff]  ;;  %v8700_v55 = vld [vmem:[%s10091_s5 + $0x308] sm:$0xff] }
 0x2d9   : > { %v2085_v18 = vpop.permute.xlu0 %2084  ;;  %v2087_v19 = vpop.permute.xlu1 %2086 }
 0x2da   : > { %2241 = vst.msk [vmem:[#allocation2 + $0x120] sm:$0xff] %vm2204_vm5, %v2085_v18  ;;  %2242 = vst.msk [vmem:[#allocation2 + $0x128] sm:$0xff] %vm2204_vm5, %v2087_v19 }
 0x2db   : > { %2458 = vrot.lane.b32.xlu0 %v8669_v13, %s10003_s11  ;;  %2460 = vrot.lane.b32.xlu1 %v8670_v17, %s10003_s11  ;;  %v8701_v13 = vld [vmem:[%s10091_s5 + $0x318] sm:$0xff]  ;;  %v8702_v17 = vld [vmem:[%s10091_s5 + $0x320] sm:$0xff] }
 0x2dd   : > { %v2089_v24 = vpop.permute.xlu0 %2088  ;;  %v2091_v25 = vpop.permute.xlu1 %2090 }
 0x2de   : > { %2243 = vst.msk [vmem:[#allocation2 + $0x130] sm:$0xff] %vm2204_vm5, %v2089_v24  ;;  %2244 = vst.msk [vmem:[#allocation2 + $0x138] sm:$0xff] %vm2204_vm5, %v2091_v25 }
 0x2df   : > { %2462 = vrot.lane.b32.xlu0 %v8671_v20, %s10003_s11  ;;  %2464 = vrot.lane.b32.xlu1 %v8672_v23, %s10003_s11  ;;  %v8703_v20 = vld [vmem:[%s10091_s5 + $0x360] sm:$0xff]  ;;  %v8704_v23 = vld [vmem:[%s10091_s5 + $0x368] sm:$0xff] }
 0x2e1   : > { %v2093_v30 = vpop.permute.xlu0 %2092  ;;  %v2095_v31 = vpop.permute.xlu1 %2094 }
 0x2e2   : > { %2245 = vst.msk [vmem:[#allocation2 + $0x140] sm:$0xff] %vm2204_vm5, %v2093_v30  ;;  %2246 = vst.msk [vmem:[#allocation2 + $0x148] sm:$0xff] %vm2204_vm5, %v2095_v31 }
 0x2e3   : > { %2466 = vrot.lane.b32.xlu0 %v8673_v26, %s10003_s11  ;;  %2468 = vrot.lane.b32.xlu1 %v8674_v27, %s10003_s11  ;;  %v8705_v26 = vld [vmem:[%s10091_s5 + $0x378] sm:$0xff]  ;;  %v8706_v27 = vld [vmem:[%s10091_s5 + $0x380] sm:$0xff] }
 0x2e5   : > { %v2097_v34 = vpop.permute.xlu0 %2096  ;;  %v2099_v36 = vpop.permute.xlu1 %2098 }
 0x2e6   : > { %2247 = vst.msk [vmem:[#allocation2 + $0x150] sm:$0xff] %vm2204_vm5, %v2097_v34  ;;  %2248 = vst.msk [vmem:[#allocation2 + $0x158] sm:$0xff] %vm2204_vm5, %v2099_v36 }
 0x2e7   : > { %2470 = vrot.lane.b32.xlu0 %v8675_v32, %s10003_s11  ;;  %2472 = vrot.lane.b32.xlu1 %v8676_v33, %s10003_s11  ;;  %v8707_v32 = vld [vmem:[%s10091_s5 + $0x390] sm:$0xff]  ;;  %v8708_v33 = vld [vmem:[%s10091_s5 + $0x398] sm:$0xff] }
 0x2e9   : > { %v2101_v40 = vpop.permute.xlu0 %2100  ;;  %v2103_v41 = vpop.permute.xlu1 %2102 }
 0x2ea   : > { %2249 = vst.msk [vmem:[#allocation2 + $0x160] sm:$0xff] %vm2204_vm5, %v2101_v40  ;;  %2250 = vst.msk [vmem:[#allocation2 + $0x168] sm:$0xff] %vm2204_vm5, %v2103_v41 }
 0x2eb   : > { %2474 = vrot.lane.b32.xlu0 %v8677_v38, %s10003_s11  ;;  %2476 = vrot.lane.b32.xlu1 %v8678_v39, %s10003_s11  ;;  %v8709_v38 = vld [vmem:[%s10091_s5 + $0x3a8] sm:$0xff]  ;;  %v8710_v39 = vld [vmem:[%s10091_s5 + $0x3b0] sm:$0xff] }
 0x2ed   : > { %v2105_v46 = vpop.permute.xlu0 %2104  ;;  %v2107_v47 = vpop.permute.xlu1 %2106 }
 0x2ee   : > { %2251 = vst.msk [vmem:[#allocation2 + $0x170] sm:$0xff] %vm2204_vm5, %v2105_v46  ;;  %2252 = vst.msk [vmem:[#allocation2 + $0x178] sm:$0xff] %vm2204_vm5, %v2107_v47 }
 0x2ef   : > { %2478 = vrot.lane.b32.xlu0 %v8679_v42, %s10003_s11  ;;  %2480 = vrot.lane.b32.xlu1 %v8680_v43, %s10003_s11  ;;  %v8711_v42 = vld [vmem:[%s10091_s5 + $0x3c0] sm:$0xff]  ;;  %v8712_v43 = vld [vmem:[%s10091_s5 + $0x3c8] sm:$0xff] }
 0x2f1   : > { %v2109_v52 = vpop.permute.xlu0 %2108  ;;  %v2111_v53 = vpop.permute.xlu1 %2110 }
 0x2f2   : > { %2253 = vst.msk [vmem:[#allocation2 + $0x180] sm:$0xff] %vm2204_vm5, %v2109_v52  ;;  %2254 = vst.msk [vmem:[#allocation2 + $0x188] sm:$0xff] %vm2204_vm5, %v2111_v53 }
 0x2f3   : > { %2482 = vrot.lane.b32.xlu0 %v8681_v48, %s10003_s11  ;;  %2484 = vrot.lane.b32.xlu1 %v8682_v49, %s10003_s11  ;;  %v8713_v48 = vld [vmem:[%s10091_s5 + $0x3d8] sm:$0xff]  ;;  %v8714_v49 = vld [vmem:[%s10091_s5 + $0x3e0] sm:$0xff] }
 0x2f5   : > { %v2113_v60 = vpop.permute.xlu0 %2112  ;;  %v2115_v61 = vpop.permute.xlu1 %2114 }
 0x2f6   : > { %2255 = vst.msk [vmem:[#allocation2 + $0x190] sm:$0xff] %vm2204_vm5, %v2113_v60  ;;  %2256 = vst.msk [vmem:[#allocation2 + $0x198] sm:$0xff] %vm2204_vm5, %v2115_v61 }
 0x2f7   : > { %2486 = vrot.lane.b32.xlu0 %v8683_v56, %s10003_s11  ;;  %2488 = vrot.lane.b32.xlu1 %v8684_v57, %s10003_s11  ;;  %v8715_v56 = vld [vmem:[%s10091_s5 + $0x3f0] sm:$0xff]  ;;  %v8716_v57 = vld [vmem:[%s10091_s5 + $0x3f8] sm:$0xff] }
 0x2f9   : > { %v2117_v4 = vpop.permute.xlu0 %2116  ;;  %v2119_v5 = vpop.permute.xlu1 %2118 }
 0x2fa   : > { %2257 = vst.msk [vmem:[#allocation2 + $0x1a0] sm:$0xff] %vm2204_vm5, %v2117_v4  ;;  %2258 = vst.msk [vmem:[#allocation2 + $0x1a8] sm:$0xff] %vm2204_vm5, %v2119_v5 }
 0x2fb   : > { %2490 = vrot.lane.b32.xlu0 %v8685_v0, %s10003_s11  ;;  %2492 = vrot.lane.b32.xlu1 %v8686_v1, %s10003_s11  ;;  %v8717_v0 = vld [vmem:[%s10091_s5 + $0x408] sm:$0xff]  ;;  %v8718_v1 = vld [vmem:[%s10091_s5 + $0x410] sm:$0xff] }
 0x2fd   : > { %v2121_v12 = vpop.permute.xlu0 %2120  ;;  %v2123_v14 = vpop.permute.xlu1 %2122 }
 0x2fe   : > { %2259 = vst.msk [vmem:[#allocation2 + $0x1b0] sm:$0xff] %vm2204_vm5, %v2121_v12  ;;  %2260 = vst.msk [vmem:[#allocation2 + $0x1b8] sm:$0xff] %vm2204_vm5, %v2123_v14 }
 0x2ff   : > { %2494 = vrot.lane.b32.xlu0 %v8687_v8, %s10003_s11  ;;  %2496 = vrot.lane.b32.xlu1 %v8688_v9, %s10003_s11  ;;  %v8719_v8 = vld [vmem:[%s10091_s5 + $0x420] sm:$0xff]  ;;  %v8720_v9 = vld [vmem:[%s10091_s5 + $0x428] sm:$0xff] }
 0x301   : > { %v2125_v35 = vpop.permute.xlu0 %2124  ;;  %v2127_v37 = vpop.permute.xlu1 %2126 }
 0x302   : > { %2261 = vst.msk [vmem:[#allocation2 + $0x1c0] sm:$0xff] %vm2204_vm5, %v2125_v35  ;;  %2262 = vst.msk [vmem:[#allocation2 + $0x1c8] sm:$0xff] %vm2204_vm5, %v2127_v37 }
 0x303   : > { %2498 = vrot.lane.b32.xlu0 %v8689_v21, %s10003_s11  ;;  %2500 = vrot.lane.b32.xlu1 %v8690_v22, %s10003_s11  ;;  %v8721_v21 = vld [vmem:[%s10091_s5 + $0x438] sm:$0xff]  ;;  %v8722_v22 = vld [vmem:[%s10091_s5 + $0x440] sm:$0xff] }
 0x305   : > { %v2129_v58 = vpop.permute.xlu0 %2128  ;;  %v2131_v59 = vpop.permute.xlu1 %2130 }
 0x306   : > { %2263 = vst.msk [vmem:[#allocation2 + $0x1d0] sm:$0xff] %vm2204_vm5, %v2129_v58  ;;  %2264 = vst.msk [vmem:[#allocation2 + $0x1d8] sm:$0xff] %vm2204_vm5, %v2131_v59 }
 0x307   : > { %2502 = vrot.lane.b32.xlu0 %v8691_v50, %s10003_s11  ;;  %2504 = vrot.lane.b32.xlu1 %v8692_v51, %s10003_s11  ;;  %v8723_v50 = vld [vmem:[%s10091_s5 + $0x450] sm:$0xff]  ;;  %v8724_v51 = vld [vmem:[%s10091_s5 + $0x458] sm:$0xff] }
 0x309   : > { %v2133_v10 = vpop.permute.xlu0 %2132  ;;  %v2135_v11 = vpop.permute.xlu1 %2134 }
 0x30a   : > { %2265 = vst.msk [vmem:[#allocation2 + $0x1e0] sm:$0xff] %vm2204_vm5, %v2133_v10  ;;  %2266 = vst.msk [vmem:[#allocation2 + $0x1e8] sm:$0xff] %vm2204_vm5, %v2135_v11 }
 0x30b   : > { %2506 = vrot.lane.b32.xlu0 %v8693_v2, %s10003_s11  ;;  %2508 = vrot.lane.b32.xlu1 %v8694_v3, %s10003_s11  ;;  %v8725_v2 = vld [vmem:[%s10091_s5 + $0x468] sm:$0xff]  ;;  %v8726_v3 = vld [vmem:[%s10091_s5 + $0x470] sm:$0xff] }
 0x30d   : > { %v2137_v28 = vpop.permute.xlu0 %2136  ;;  %v2139_v29 = vpop.permute.xlu1 %2138 }
 0x30e   : > { %2267 = vst.msk [vmem:[#allocation2 + $0x1f0] sm:$0xff] %vm2204_vm5, %v2137_v28  ;;  %2268 = vst.msk [vmem:[#allocation2 + $0x1f8] sm:$0xff] %vm2204_vm5, %v2139_v29 }
 0x30f   : > { %2510 = vrot.lane.b32.xlu0 %v8695_v63, %s10003_s11  ;;  %2512 = vrot.lane.b32.xlu1 %v8696_v7, %s10003_s11  ;;  %v8727_v63 = vld [vmem:[%s10091_s5 + $0x480] sm:$0xff]  ;;  %v8728_v7 = vld [vmem:[%s10091_s5 + $0x488] sm:$0xff] }
 0x311   : > { %v2399_v15 = vpop.permute.xlu0 %2398  ;;  %v2401_v44 = vpop.permute.xlu1 %2400 }
 0x312   : > { %2591 = vst.msk [vmem:[#allocation2] sm:$0xff] %vm2590_vm6, %v2399_v15  ;;  %2592 = vst.msk [vmem:[#allocation2 + $0x8] sm:$0xff] %vm2590_vm6, %v2401_v44 }
 0x313   : > { %2514 = vrot.lane.b32.xlu0 %v8697_v16, %s10003_s11  ;;  %2516 = vrot.lane.b32.xlu1 %v8698_v45, %s10003_s11  ;;  %v8729_v16 = vld [vmem:[%s10091_s5 + $0x498] sm:$0xff]  ;;  %v8730_v45 = vld [vmem:[%s10091_s5 + $0x4a0] sm:$0xff] }
 0x315   : > { %v2403_v6 = vpop.permute.xlu0 %2402  ;;  %v2405_v62 = vpop.permute.xlu1 %2404 }
 0x316   : > { %2593 = vst.msk [vmem:[#allocation2 + $0x10] sm:$0xff] %vm2590_vm6, %v2403_v6  ;;  %2594 = vst.msk [vmem:[#allocation2 + $0x18] sm:$0xff] %vm2590_vm6, %v2405_v62 }
 0x317   : > { %2518 = vrot.lane.b32.xlu0 %v8699_v54, %s10003_s11  ;;  %2520 = vrot.lane.b32.xlu1 %v8700_v55, %s10003_s11  ;;  %v8731_v54 = vld [vmem:[%s10091_s5 + $0x4b0] sm:$0xff]  ;;  %v8732_v55 = vld [vmem:[%s10091_s5 + $0x4b8] sm:$0xff] }
 0x319   : > { %v2407_v18 = vpop.permute.xlu0 %2406  ;;  %v2409_v19 = vpop.permute.xlu1 %2408 }
 0x31a   : > { %2595 = vst.msk [vmem:[#allocation2 + $0x20] sm:$0xff] %vm2590_vm6, %v2407_v18  ;;  %2596 = vst.msk [vmem:[#allocation2 + $0x28] sm:$0xff] %vm2590_vm6, %v2409_v19 }
 0x31b   : > { %2522 = vrot.lane.b32.xlu0 %v8701_v13, %s10003_s11  ;;  %2524 = vrot.lane.b32.xlu1 %v8702_v17, %s10003_s11  ;;  %v8733_v13 = vld [vmem:[%s10091_s5 + $0x4c8] sm:$0xff]  ;;  %v8734_v17 = vld [vmem:[%s10091_s5 + $0x4d0] sm:$0xff] }
 0x31d   : > { %v2411_v24 = vpop.permute.xlu0 %2410  ;;  %v2413_v25 = vpop.permute.xlu1 %2412 }
 0x31e   : > { %2597 = vst.msk [vmem:[#allocation2 + $0x30] sm:$0xff] %vm2590_vm6, %v2411_v24  ;;  %2598 = vst.msk [vmem:[#allocation2 + $0x38] sm:$0xff] %vm2590_vm6, %v2413_v25 }
 0x31f   : > { %2784 = vrot.lane.b32.xlu0 %v8703_v20, %s10004_s12  ;;  %2786 = vrot.lane.b32.xlu1 %v8704_v23, %s10004_s12  ;;  %v8735_v20 = vld [vmem:[%s10091_s5 + $0x4e0] sm:$0xff]  ;;  %v8736_v23 = vld [vmem:[%s10091_s5 + $0x4e8] sm:$0xff] }
 0x321   : > { %v2415_v30 = vpop.permute.xlu0 %2414  ;;  %v2417_v31 = vpop.permute.xlu1 %2416 }
 0x322   : > { %2599 = vst.msk [vmem:[#allocation2 + $0x40] sm:$0xff] %vm2590_vm6, %v2415_v30  ;;  %2600 = vst.msk [vmem:[#allocation2 + $0x48] sm:$0xff] %vm2590_vm6, %v2417_v31 }
 0x323   : > { %2788 = vrot.lane.b32.xlu0 %v8705_v26, %s10004_s12  ;;  %2790 = vrot.lane.b32.xlu1 %v8706_v27, %s10004_s12  ;;  %v8737_v26 = vld [vmem:[%s10091_s5 + $0x4f8] sm:$0xff]  ;;  %v8738_v27 = vld [vmem:[%s10091_s5 + $0x500] sm:$0xff] }
 0x325   : > { %v2419_v34 = vpop.permute.xlu0 %2418  ;;  %v2421_v36 = vpop.permute.xlu1 %2420 }
 0x326   : > { %2601 = vst.msk [vmem:[#allocation2 + $0x50] sm:$0xff] %vm2590_vm6, %v2419_v34  ;;  %2602 = vst.msk [vmem:[#allocation2 + $0x58] sm:$0xff] %vm2590_vm6, %v2421_v36 }
 0x327   : > { %2792 = vrot.lane.b32.xlu0 %v8707_v32, %s10004_s12  ;;  %2794 = vrot.lane.b32.xlu1 %v8708_v33, %s10004_s12  ;;  %v8739_v32 = vld [vmem:[%s10091_s5 + $0x510] sm:$0xff]  ;;  %v8740_v33 = vld [vmem:[%s10091_s5 + $0x518] sm:$0xff] }
 0x329   : > { %v2423_v40 = vpop.permute.xlu0 %2422  ;;  %v2425_v41 = vpop.permute.xlu1 %2424 }
 0x32a   : > { %2603 = vst.msk [vmem:[#allocation2 + $0x60] sm:$0xff] %vm2590_vm6, %v2423_v40  ;;  %2604 = vst.msk [vmem:[#allocation2 + $0x68] sm:$0xff] %vm2590_vm6, %v2425_v41 }
 0x32b   : > { %2796 = vrot.lane.b32.xlu0 %v8709_v38, %s10004_s12  ;;  %2798 = vrot.lane.b32.xlu1 %v8710_v39, %s10004_s12  ;;  %v8741_v38 = vld [vmem:[%s10091_s5 + $0x528] sm:$0xff]  ;;  %v8742_v39 = vld [vmem:[%s10091_s5 + $0x530] sm:$0xff] }
 0x32d   : > { %v2427_v46 = vpop.permute.xlu0 %2426  ;;  %v2429_v47 = vpop.permute.xlu1 %2428 }
 0x32e   : > { %2605 = vst.msk [vmem:[#allocation2 + $0x70] sm:$0xff] %vm2590_vm6, %v2427_v46  ;;  %2606 = vst.msk [vmem:[#allocation2 + $0x78] sm:$0xff] %vm2590_vm6, %v2429_v47 }
 0x32f   : > { %2800 = vrot.lane.b32.xlu0 %v8711_v42, %s10004_s12  ;;  %2802 = vrot.lane.b32.xlu1 %v8712_v43, %s10004_s12  ;;  %v8743_v42 = vld [vmem:[%s10091_s5 + $0x540] sm:$0xff]  ;;  %v8744_v43 = vld [vmem:[%s10091_s5 + $0x548] sm:$0xff] }
 0x331   : > { %v2431_v52 = vpop.permute.xlu0 %2430  ;;  %v2433_v53 = vpop.permute.xlu1 %2432 }
 0x332   : > { %2607 = vst.msk [vmem:[#allocation2 + $0x80] sm:$0xff] %vm2590_vm6, %v2431_v52  ;;  %2608 = vst.msk [vmem:[#allocation2 + $0x88] sm:$0xff] %vm2590_vm6, %v2433_v53 }
 0x333   : > { %2804 = vrot.lane.b32.xlu0 %v8713_v48, %s10004_s12  ;;  %2806 = vrot.lane.b32.xlu1 %v8714_v49, %s10004_s12  ;;  %v8745_v48 = vld [vmem:[%s10091_s5 + $0x558] sm:$0xff]  ;;  %v8746_v49 = vld [vmem:[%s10091_s5 + $0x560] sm:$0xff] }
 0x335   : > { %v2435_v60 = vpop.permute.xlu0 %2434  ;;  %v2437_v61 = vpop.permute.xlu1 %2436 }
 0x336   : > { %2609 = vst.msk [vmem:[#allocation2 + $0x90] sm:$0xff] %vm2590_vm6, %v2435_v60  ;;  %2610 = vst.msk [vmem:[#allocation2 + $0x98] sm:$0xff] %vm2590_vm6, %v2437_v61 }
 0x337   : > { %2808 = vrot.lane.b32.xlu0 %v8715_v56, %s10004_s12  ;;  %2810 = vrot.lane.b32.xlu1 %v8716_v57, %s10004_s12  ;;  %v8747_v56 = vld [vmem:[%s10091_s5 + $0x570] sm:$0xff]  ;;  %v8748_v57 = vld [vmem:[%s10091_s5 + $0x578] sm:$0xff] }
 0x339   : > { %v2439_v4 = vpop.permute.xlu0 %2438  ;;  %v2441_v5 = vpop.permute.xlu1 %2440 }
 0x33a   : > { %2611 = vst.msk [vmem:[#allocation2 + $0xa0] sm:$0xff] %vm2590_vm6, %v2439_v4  ;;  %2612 = vst.msk [vmem:[#allocation2 + $0xa8] sm:$0xff] %vm2590_vm6, %v2441_v5 }
 0x33b   : > { %2812 = vrot.lane.b32.xlu0 %v8717_v0, %s10004_s12  ;;  %2814 = vrot.lane.b32.xlu1 %v8718_v1, %s10004_s12  ;;  %v8749_v0 = vld [vmem:[%s10091_s5 + $0x588] sm:$0xff]  ;;  %v8750_v1 = vld [vmem:[%s10091_s5 + $0x590] sm:$0xff] }
 0x33d   : > { %v2443_v12 = vpop.permute.xlu0 %2442  ;;  %v2445_v14 = vpop.permute.xlu1 %2444 }
 0x33e   : > { %2613 = vst.msk [vmem:[#allocation2 + $0xb0] sm:$0xff] %vm2590_vm6, %v2443_v12  ;;  %2614 = vst.msk [vmem:[#allocation2 + $0xb8] sm:$0xff] %vm2590_vm6, %v2445_v14 }
 0x33f   : > { %2816 = vrot.lane.b32.xlu0 %v8719_v8, %s10004_s12  ;;  %2818 = vrot.lane.b32.xlu1 %v8720_v9, %s10004_s12  ;;  %v8751_v8 = vld [vmem:[%s10091_s5 + $0x5a0] sm:$0xff]  ;;  %v8752_v9 = vld [vmem:[%s10091_s5 + $0x5a8] sm:$0xff] }
 0x341   : > { %v2447_v35 = vpop.permute.xlu0 %2446  ;;  %v2449_v37 = vpop.permute.xlu1 %2448 }
 0x342   : > { %2615 = vst.msk [vmem:[#allocation2 + $0xc0] sm:$0xff] %vm2590_vm6, %v2447_v35  ;;  %2616 = vst.msk [vmem:[#allocation2 + $0xc8] sm:$0xff] %vm2590_vm6, %v2449_v37 }
 0x343   : > { %2820 = vrot.lane.b32.xlu0 %v8721_v21, %s10004_s12  ;;  %2822 = vrot.lane.b32.xlu1 %v8722_v22, %s10004_s12  ;;  %v8753_v21 = vld [vmem:[%s10091_s5 + $0x5b8] sm:$0xff]  ;;  %v8754_v22 = vld [vmem:[%s10091_s5 + $0x5c0] sm:$0xff] }
 0x345   : > { %v2451_v58 = vpop.permute.xlu0 %2450  ;;  %v2453_v59 = vpop.permute.xlu1 %2452 }
 0x346   : > { %2617 = vst.msk [vmem:[#allocation2 + $0xd0] sm:$0xff] %vm2590_vm6, %v2451_v58  ;;  %2618 = vst.msk [vmem:[#allocation2 + $0xd8] sm:$0xff] %vm2590_vm6, %v2453_v59 }
 0x347   : > { %2824 = vrot.lane.b32.xlu0 %v8723_v50, %s10004_s12  ;;  %2826 = vrot.lane.b32.xlu1 %v8724_v51, %s10004_s12  ;;  %v8755_v50 = vld [vmem:[%s10091_s5 + $0x5d0] sm:$0xff]  ;;  %v8756_v51 = vld [vmem:[%s10091_s5 + $0x5d8] sm:$0xff] }
 0x349   : > { %v2455_v10 = vpop.permute.xlu0 %2454  ;;  %v2457_v11 = vpop.permute.xlu1 %2456 }
 0x34a   : > { %2619 = vst.msk [vmem:[#allocation2 + $0xe0] sm:$0xff] %vm2590_vm6, %v2455_v10  ;;  %2620 = vst.msk [vmem:[#allocation2 + $0xe8] sm:$0xff] %vm2590_vm6, %v2457_v11 }
 0x34b   : > { %2828 = vrot.lane.b32.xlu0 %v8725_v2, %s10004_s12  ;;  %2830 = vrot.lane.b32.xlu1 %v8726_v3, %s10004_s12  ;;  %v8757_v2 = vld [vmem:[%s10091_s5 + $0x5e8] sm:$0xff]  ;;  %v8758_v3 = vld [vmem:[%s10091_s5 + $0x5f0] sm:$0xff] }
 0x34d   : > { %v2459_v28 = vpop.permute.xlu0 %2458  ;;  %v2461_v29 = vpop.permute.xlu1 %2460 }
 0x34e   : > { %2621 = vst.msk [vmem:[#allocation2 + $0xf0] sm:$0xff] %vm2590_vm6, %v2459_v28  ;;  %2622 = vst.msk [vmem:[#allocation2 + $0xf8] sm:$0xff] %vm2590_vm6, %v2461_v29 }
 0x34f   : > { %2832 = vrot.lane.b32.xlu0 %v8727_v63, %s10004_s12  ;;  %2834 = vrot.lane.b32.xlu1 %v8728_v7, %s10004_s12  ;;  %v8759_v63 = vld [vmem:[%s10091_s5 + $0x600] sm:$0xff]  ;;  %v8760_v7 = vld [vmem:[%s10091_s5 + $0x608] sm:$0xff] }
 0x351   : > { %v2463_v15 = vpop.permute.xlu0 %2462  ;;  %v2465_v44 = vpop.permute.xlu1 %2464 }
 0x352   : > { %2623 = vst.msk [vmem:[#allocation2 + $0x100] sm:$0xff] %vm2590_vm6, %v2463_v15  ;;  %2624 = vst.msk [vmem:[#allocation2 + $0x108] sm:$0xff] %vm2590_vm6, %v2465_v44 }
 0x353   : > { %2836 = vrot.lane.b32.xlu0 %v8729_v16, %s10004_s12  ;;  %2838 = vrot.lane.b32.xlu1 %v8730_v45, %s10004_s12  ;;  %v8761_v16 = vld [vmem:[%s10091_s5 + $0x618] sm:$0xff]  ;;  %v8762_v45 = vld [vmem:[%s10091_s5 + $0x620] sm:$0xff] }
 0x355   : > { %v2467_v6 = vpop.permute.xlu0 %2466  ;;  %v2469_v62 = vpop.permute.xlu1 %2468 }
 0x356   : > { %2625 = vst.msk [vmem:[#allocation2 + $0x110] sm:$0xff] %vm2590_vm6, %v2467_v6  ;;  %2626 = vst.msk [vmem:[#allocation2 + $0x118] sm:$0xff] %vm2590_vm6, %v2469_v62  ;;  %v6754_v6 = vld [vmem:[%s14601_s1] sm:$0xff]  ;;  %v6755_v62 = vld [vmem:[%s14601_s1 + $0x8] sm:$0x1] }
 0x357   : > { %2840 = vrot.lane.b32.xlu0 %v8731_v54, %s10004_s12  ;;  %2842 = vrot.lane.b32.xlu1 %v8732_v55, %s10004_s12  ;;  %v8763_v54 = vld [vmem:[%s10091_s5 + $0x630] sm:$0xff]  ;;  %v8764_v55 = vld [vmem:[%s10091_s5 + $0x638] sm:$0xff] }
 0x359   : > { %v2471_v18 = vpop.permute.xlu0 %2470  ;;  %v2473_v19 = vpop.permute.xlu1 %2472 }
 0x35a   : > { %2627 = vst.msk [vmem:[#allocation2 + $0x120] sm:$0xff] %vm2590_vm6, %v2471_v18  ;;  %2628 = vst.msk [vmem:[#allocation2 + $0x128] sm:$0xff] %vm2590_vm6, %v2473_v19  ;;  %v9806_v18 = vpack.c.bf16 %v6755_v62, %v6754_v6  ;;  %v8765_v19 = vld [vmem:[%s10091_s5 + $0x648] sm:$0xff] }
 0x35b   : > { %2844 = vrot.lane.b32.xlu0 %v8733_v13, %s10004_s12  ;;  %2846 = vrot.lane.b32.xlu1 %v8734_v17, %s10004_s12  ;;  %v11868_v62 = vld [vmem:[%s10091_s5 + $0x181] sm:$0xff] }
 0x35c   : > { %9808 = vmatprep.subr.msk.bf16.mxu0 %vm9807_vm10, %v9806_v18  ;;  %9812 = vmatprep.subr.msk.bf16.mxu1 %vm9807_vm10, %v9806_v18 }
 0x35d   : > { %v2475_v24 = vpop.permute.xlu0 %2474  ;;  %v2477_v25 = vpop.permute.xlu1 %2476  ;;  %9811 = vmatpush3.bf16.msk.msra.mxu0 %vm9807_vm10, %v9806_v18  ;;  %9813 = vmatpush3.bf16.msk.msra.mxu1 %vm9807_vm10, %v9806_v18 }
 0x35e   : > { %2629 = vst.msk [vmem:[#allocation2 + $0x130] sm:$0xff] %vm2590_vm6, %v2475_v24  ;;  %2630 = vst.msk [vmem:[#allocation2 + $0x138] sm:$0xff] %vm2590_vm6, %v2477_v25  ;;  %v11700_v25 = vld [vmem:[%s10091_s5 + $0x31] sm:$0xff] }
 0x35f   : > { %2848 = vrot.lane.b32.xlu0 %v8735_v20, %s10004_s12  ;;  %2850 = vrot.lane.b32.xlu1 %v8736_v23, %s10004_s12  ;;  %v8766_v20 = vld [vmem:[%s10091_s5 + $0x650] sm:$0xff] }
 0x361   : > { %v2479_v30 = vpop.permute.xlu0 %2478  ;;  %v2481_v31 = vpop.permute.xlu1 %2480 }
 0x362   : > { %2631 = vst.msk [vmem:[#allocation2 + $0x140] sm:$0xff] %vm2590_vm6, %v2479_v30  ;;  %2632 = vst.msk [vmem:[#allocation2 + $0x148] sm:$0xff] %vm2590_vm6, %v2481_v31  ;;  %v11712_v31 = vld [vmem:[%s10091_s5 + $0x49] sm:$0xff] }
 0x363   : > { %2852 = vrot.lane.b32.xlu0 %v8737_v26, %s10004_s12  ;;  %2854 = vrot.lane.b32.xlu1 %v8738_v27, %s10004_s12  ;;  %v11703_v26 = vld [vmem:[%s10091_s5 + $0x39] sm:$0xff] }
 0x365   : > { %v2483_v34 = vpop.permute.xlu0 %2482  ;;  %v2485_v36 = vpop.permute.xlu1 %2484 }
 0x366   : > { %2633 = vst.msk [vmem:[#allocation2 + $0x150] sm:$0xff] %vm2590_vm6, %v2483_v34  ;;  %2634 = vst.msk [vmem:[#allocation2 + $0x158] sm:$0xff] %vm2590_vm6, %v2485_v36  ;;  %v11724_v36 = vld [vmem:[%s10091_s5 + $0x61] sm:$0xff] }
 0x367   : > { %2856 = vrot.lane.b32.xlu0 %v8739_v32, %s10004_s12  ;;  %2858 = vrot.lane.b32.xlu1 %v8740_v33, %s10004_s12  ;;  %v11715_v32 = vld [vmem:[%s10091_s5 + $0x51] sm:$0xff] }
 0x369   : > { %v2487_v40 = vpop.permute.xlu0 %2486  ;;  %v2489_v41 = vpop.permute.xlu1 %2488 }
 0x36a   : > { %2635 = vst.msk [vmem:[#allocation2 + $0x160] sm:$0xff] %vm2590_vm6, %v2487_v40  ;;  %2636 = vst.msk [vmem:[#allocation2 + $0x168] sm:$0xff] %vm2590_vm6, %v2489_v41  ;;  %v11736_v41 = vld [vmem:[%s10091_s5 + $0x79] sm:$0xff] }
 0x36b   : > { %2860 = vrot.lane.b32.xlu0 %v8741_v38, %s10004_s12  ;;  %2862 = vrot.lane.b32.xlu1 %v8742_v39, %s10004_s12  ;;  %v11727_v38 = vld [vmem:[%s10091_s5 + $0x69] sm:$0xff] }
 0x36d   : > { %v2491_v46 = vpop.permute.xlu0 %2490  ;;  %v2493_v47 = vpop.permute.xlu1 %2492 }
 0x36e   : > { %2637 = vst.msk [vmem:[#allocation2 + $0x170] sm:$0xff] %vm2590_vm6, %v2491_v46  ;;  %2638 = vst.msk [vmem:[#allocation2 + $0x178] sm:$0xff] %vm2590_vm6, %v2493_v47  ;;  %v11748_v47 = vld [vmem:[%s10091_s5 + $0x91] sm:$0xff] }
 0x36f   : > { %2864 = vrot.lane.b32.xlu0 %v8743_v42, %s10004_s12  ;;  %2866 = vrot.lane.b32.xlu1 %v8744_v43, %s10004_s12  ;;  %v11739_v42 = vld [vmem:[%s10091_s5 + $0x81] sm:$0xff] }
 0x371   : > { %v2495_v52 = vpop.permute.xlu0 %2494  ;;  %v2497_v53 = vpop.permute.xlu1 %2496 }
 0x372   : > { %2639 = vst.msk [vmem:[#allocation2 + $0x180] sm:$0xff] %vm2590_vm6, %v2495_v52  ;;  %2640 = vst.msk [vmem:[#allocation2 + $0x188] sm:$0xff] %vm2590_vm6, %v2497_v53  ;;  %v11760_v53 = vld [vmem:[%s10091_s5 + $0xa9] sm:$0xff] }
 0x373   : > { %2868 = vrot.lane.b32.xlu0 %v8745_v48, %s10004_s12  ;;  %2870 = vrot.lane.b32.xlu1 %v8746_v49, %s10004_s12  ;;  %v11751_v48 = vld [vmem:[%s10091_s5 + $0x99] sm:$0xff] }
 0x375   : > { %v2499_v60 = vpop.permute.xlu0 %2498  ;;  %v2501_v61 = vpop.permute.xlu1 %2500 }
 0x376   : > { %2641 = vst.msk [vmem:[#allocation2 + $0x190] sm:$0xff] %vm2590_vm6, %v2499_v60  ;;  %2642 = vst.msk [vmem:[#allocation2 + $0x198] sm:$0xff] %vm2590_vm6, %v2501_v61  ;;  %v11772_v61 = vld [vmem:[%s10091_s5 + $0xc1] sm:$0xff] }
 0x377   : > { %2872 = vrot.lane.b32.xlu0 %v8747_v56, %s10004_s12  ;;  %2874 = vrot.lane.b32.xlu1 %v8748_v57, %s10004_s12  ;;  %v11763_v56 = vld [vmem:[%s10091_s5 + $0xb1] sm:$0xff] }
 0x379   : > { %v2503_v4 = vpop.permute.xlu0 %2502  ;;  %v2505_v5 = vpop.permute.xlu1 %2504 }
 0x37a   : > { %2643 = vst.msk [vmem:[#allocation2 + $0x1a0] sm:$0xff] %vm2590_vm6, %v2503_v4  ;;  %2644 = vst.msk [vmem:[#allocation2 + $0x1a8] sm:$0xff] %vm2590_vm6, %v2505_v5  ;;  %v11784_v5 = vld [vmem:[%s10091_s5 + $0xd9] sm:$0xff] }
 0x37b   : > { %2876 = vrot.lane.b32.xlu0 %v8749_v0, %s10004_s12  ;;  %2878 = vrot.lane.b32.xlu1 %v8750_v1, %s10004_s12  ;;  %v11775_v0 = vld [vmem:[%s10091_s5 + $0xc9] sm:$0xff] }
 0x37d   : > { %v2507_v12 = vpop.permute.xlu0 %2506  ;;  %v2509_v14 = vpop.permute.xlu1 %2508 }
 0x37e   : > { %2645 = vst.msk [vmem:[#allocation2 + $0x1b0] sm:$0xff] %vm2590_vm6, %v2507_v12  ;;  %2646 = vst.msk [vmem:[#allocation2 + $0x1b8] sm:$0xff] %vm2590_vm6, %v2509_v14  ;;  %v11796_v14 = vld [vmem:[%s10091_s5 + $0xf1] sm:$0xff] }
 0x37f   : > { %2880 = vrot.lane.b32.xlu0 %v8751_v8, %s10004_s12  ;;  %2882 = vrot.lane.b32.xlu1 %v8752_v9, %s10004_s12  ;;  %v11787_v8 = vld [vmem:[%s10091_s5 + $0xe1] sm:$0xff] }
 0x381   : > { %v2511_v35 = vpop.permute.xlu0 %2510  ;;  %v2513_v37 = vpop.permute.xlu1 %2512 }
 0x382   : > { %2647 = vst.msk [vmem:[#allocation2 + $0x1c0] sm:$0xff] %vm2590_vm6, %v2511_v35  ;;  %2648 = vst.msk [vmem:[#allocation2 + $0x1c8] sm:$0xff] %vm2590_vm6, %v2513_v37  ;;  %v11808_v37 = vld [vmem:[%s10091_s5 + $0x109] sm:$0xff] }
 0x383   : > { %2884 = vrot.lane.b32.xlu0 %v8753_v21, %s10004_s12  ;;  %2886 = vrot.lane.b32.xlu1 %v8754_v22, %s10004_s12  ;;  %v11799_v21 = vld [vmem:[%s10091_s5 + $0xf9] sm:$0xff] }
 0x385   : > { %v2515_v58 = vpop.permute.xlu0 %2514  ;;  %v2517_v59 = vpop.permute.xlu1 %2516 }
 0x386   : > { %2649 = vst.msk [vmem:[#allocation2 + $0x1d0] sm:$0xff] %vm2590_vm6, %v2515_v58  ;;  %2650 = vst.msk [vmem:[#allocation2 + $0x1d8] sm:$0xff] %vm2590_vm6, %v2517_v59  ;;  %v11820_v59 = vld [vmem:[%s10091_s5 + $0x121] sm:$0xff] }
 0x387   : > { %2888 = vrot.lane.b32.xlu0 %v8755_v50, %s10004_s12  ;;  %2890 = vrot.lane.b32.xlu1 %v8756_v51, %s10004_s12  ;;  %v11811_v50 = vld [vmem:[%s10091_s5 + $0x111] sm:$0xff] }
 0x389   : > { %v2519_v10 = vpop.permute.xlu0 %2518  ;;  %v2521_v11 = vpop.permute.xlu1 %2520 }
 0x38a   : > { %2651 = vst.msk [vmem:[#allocation2 + $0x1e0] sm:$0xff] %vm2590_vm6, %v2519_v10  ;;  %2652 = vst.msk [vmem:[#allocation2 + $0x1e8] sm:$0xff] %vm2590_vm6, %v2521_v11  ;;  %v11832_v11 = vld [vmem:[%s10091_s5 + $0x139] sm:$0xff] }
 0x38b   : > { %2892 = vrot.lane.b32.xlu0 %v8757_v2, %s10004_s12  ;;  %2894 = vrot.lane.b32.xlu1 %v8758_v3, %s10004_s12  ;;  %v11823_v2 = vld [vmem:[%s10091_s5 + $0x129] sm:$0xff] }
 0x38d   : > { %v2523_v28 = vpop.permute.xlu0 %2522  ;;  %v2525_v29 = vpop.permute.xlu1 %2524 }
 0x38e   : > { %2653 = vst.msk [vmem:[#allocation2 + $0x1f0] sm:$0xff] %vm2590_vm6, %v2523_v28  ;;  %2654 = vst.msk [vmem:[#allocation2 + $0x1f8] sm:$0xff] %vm2590_vm6, %v2525_v29  ;;  %v11844_v29 = vld [vmem:[%s10091_s5 + $0x151] sm:$0xff] }
 0x38f   : > { %2896 = vrot.lane.b32.xlu0 %v8759_v63, %s10004_s12  ;;  %2898 = vrot.lane.b32.xlu1 %v8760_v7, %s10004_s12  ;;  %v11835_v63 = vld [vmem:[%s10091_s5 + $0x141] sm:$0xff] }
 0x391   : > { %v2785_v15 = vpop.permute.xlu0 %2784  ;;  %v2787_v44 = vpop.permute.xlu1 %2786 }
 0x392   : > { %2977 = vst.msk [vmem:[#allocation2] sm:$0xff] %vm2976_vm7, %v2785_v15  ;;  %2978 = vst.msk [vmem:[#allocation2 + $0x8] sm:$0xff] %vm2976_vm7, %v2787_v44  ;;  %v11856_v44 = vld [vmem:[%s10091_s5 + $0x169] sm:$0xff] }
 0x393   : > { %2900 = vrot.lane.b32.xlu0 %v8761_v16, %s10004_s12  ;;  %2902 = vrot.lane.b32.xlu1 %v8762_v45, %s10004_s12  ;;  %v11847_v16 = vld [vmem:[%s10091_s5 + $0x159] sm:$0xff] }
 0x395   : > { %v2789_v13 = vpop.permute.xlu0 %2788  ;;  %v2791_v17 = vpop.permute.xlu1 %2790 }
 0x396   : > { %2979 = vst.msk [vmem:[#allocation2 + $0x10] sm:$0xff] %vm2976_vm7, %v2789_v13  ;;  %2980 = vst.msk [vmem:[#allocation2 + $0x18] sm:$0xff] %vm2976_vm7, %v2791_v17  ;;  %v11871_v13 = vld [vmem:[%s10091_s5 + $0x189] sm:$0xff] }
 0x397   : > { %2904 = vrot.lane.b32.xlu0 %v8763_v54, %s10004_s12  ;;  %2906 = vrot.lane.b32.xlu1 %v8764_v55, %s10004_s12  ;;  %v11859_v54 = vld [vmem:[%s10091_s5 + $0x171] sm:$0xff] }
 0x399   : > { %v2793_v23 = vpop.permute.xlu0 %2792  ;;  %v2795_v24 = vpop.permute.xlu1 %2794 }
 0x39a   : > { %2981 = vst.msk [vmem:[#allocation2 + $0x20] sm:$0xff] %vm2976_vm7, %v2793_v23  ;;  %2982 = vst.msk [vmem:[#allocation2 + $0x28] sm:$0xff] %vm2976_vm7, %v2795_v24 }
 0x39b   : > { %2908 = vrot.lane.b32.xlu0 %v8765_v19, %s10004_s12  ;;  %2910 = vrot.lane.b32.xlu1 %v8766_v20, %s10004_s12  ;;  %v11880_v19 = vld [vmem:[%s10091_s5 + $0x199] sm:$0xff]  ;;  %v11883_v20 = vld [vmem:[%s10091_s5 + $0x1a1] sm:$0xff] }
 0x39d   : > { %v2797_v27 = vpop.permute.xlu0 %2796  ;;  %v2799_v30 = vpop.permute.xlu1 %2798 }
 0x39e   : > { %2983 = vst.msk [vmem:[#allocation2 + $0x30] sm:$0xff] %vm2976_vm7, %v2797_v27  ;;  %2984 = vst.msk [vmem:[#allocation2 + $0x38] sm:$0xff] %vm2976_vm7, %v2799_v30  ;;  %v11892_v27 = vld [vmem:[%s10091_s5 + $0x1b1] sm:$0xff]  ;;  %v11895_v30 = vld [vmem:[%s10091_s5 + $0x1b9] sm:$0xff] }
 0x39f   : > { %3169 = vrot.lane.b32.xlu0 %v11700_v25, %s10006_s27  ;;  %3171 = vrot.lane.b32.xlu1 %v11703_v26, %s10006_s27 }
 0x3a1   : > { %v2801_v33 = vpop.permute.xlu0 %2800  ;;  %v2803_v34 = vpop.permute.xlu1 %2802 }
 0x3a2   : > { %2985 = vst.msk [vmem:[#allocation2 + $0x40] sm:$0xff] %vm2976_vm7, %v2801_v33  ;;  %2986 = vst.msk [vmem:[#allocation2 + $0x48] sm:$0xff] %vm2976_vm7, %v2803_v34 }
 0x3a3   : > { %3173 = vrot.lane.b32.xlu0 %v11712_v31, %s10006_s27  ;;  %3175 = vrot.lane.b32.xlu1 %v11715_v32, %s10006_s27 }
 0x3a5   : > { %v2805_v39 = vpop.permute.xlu0 %2804  ;;  %v2807_v40 = vpop.permute.xlu1 %2806 }
 0x3a6   : > { %2987 = vst.msk [vmem:[#allocation2 + $0x50] sm:$0xff] %vm2976_vm7, %v2805_v39  ;;  %2988 = vst.msk [vmem:[#allocation2 + $0x58] sm:$0xff] %vm2976_vm7, %v2807_v40  ;;  %v11904_v39 = vld [vmem:[%s10091_s5 + $0x1c9] sm:$0xff]  ;;  %v11907_v40 = vld [vmem:[%s10091_s5 + $0x1d1] sm:$0xff] }
 0x3a7   : > { %3177 = vrot.lane.b32.xlu0 %v11724_v36, %s10006_s27  ;;  %3179 = vrot.lane.b32.xlu1 %v11727_v38, %s10006_s27 }
 0x3a9   : > { %v2809_v43 = vpop.permute.xlu0 %2808  ;;  %v2811_v46 = vpop.permute.xlu1 %2810 }
 0x3aa   : > { %2989 = vst.msk [vmem:[#allocation2 + $0x60] sm:$0xff] %vm2976_vm7, %v2809_v43  ;;  %2990 = vst.msk [vmem:[#allocation2 + $0x68] sm:$0xff] %vm2976_vm7, %v2811_v46 }
 0x3ab   : > { %3181 = vrot.lane.b32.xlu0 %v11736_v41, %s10006_s27  ;;  %3183 = vrot.lane.b32.xlu1 %v11739_v42, %s10006_s27 }
 0x3ad   : > { %v2813_v49 = vpop.permute.xlu0 %2812  ;;  %v2815_v52 = vpop.permute.xlu1 %2814 }
 0x3ae   : > { %2991 = vst.msk [vmem:[#allocation2 + $0x70] sm:$0xff] %vm2976_vm7, %v2813_v49  ;;  %2992 = vst.msk [vmem:[#allocation2 + $0x78] sm:$0xff] %vm2976_vm7, %v2815_v52  ;;  %v11916_v49 = vld [vmem:[%s10091_s5 + $0x1e1] sm:$0xff]  ;;  %v11919_v52 = vld [vmem:[%s10091_s5 + $0x1e9] sm:$0xff] }
 0x3af   : > { %3185 = vrot.lane.b32.xlu0 %v11748_v47, %s10006_s27  ;;  %3187 = vrot.lane.b32.xlu1 %v11751_v48, %s10006_s27 }
 0x3b1   : > { %v2817_v57 = vpop.permute.xlu0 %2816  ;;  %v2819_v60 = vpop.permute.xlu1 %2818 }
 0x3b2   : > { %2993 = vst.msk [vmem:[#allocation2 + $0x80] sm:$0xff] %vm2976_vm7, %v2817_v57  ;;  %2994 = vst.msk [vmem:[#allocation2 + $0x88] sm:$0xff] %vm2976_vm7, %v2819_v60 }
 0x3b3   : > { %3189 = vrot.lane.b32.xlu0 %v11760_v53, %s10006_s27  ;;  %3191 = vrot.lane.b32.xlu1 %v11763_v56, %s10006_s27 }
 0x3b5   : > { %v2821_v1 = vpop.permute.xlu0 %2820  ;;  %v2823_v4 = vpop.permute.xlu1 %2822 }
 0x3b6   : > { %2995 = vst.msk [vmem:[#allocation2 + $0x90] sm:$0xff] %vm2976_vm7, %v2821_v1  ;;  %2996 = vst.msk [vmem:[#allocation2 + $0x98] sm:$0xff] %vm2976_vm7, %v2823_v4  ;;  %v11928_v1 = vld [vmem:[%s10091_s5 + $0x1f9] sm:$0xff]  ;;  %v11931_v4 = vld [vmem:[%s10091_s5 + $0x201] sm:$0xff] }
 0x3b7   : > { %3193 = vrot.lane.b32.xlu0 %v11772_v61, %s10006_s27  ;;  %3195 = vrot.lane.b32.xlu1 %v11775_v0, %s10006_s27 }
 0x3b9   : > { %v2825_v9 = vpop.permute.xlu0 %2824  ;;  %v2827_v12 = vpop.permute.xlu1 %2826 }
 0x3ba   : > { %2997 = vst.msk [vmem:[#allocation2 + $0xa0] sm:$0xff] %vm2976_vm7, %v2825_v9  ;;  %2998 = vst.msk [vmem:[#allocation2 + $0xa8] sm:$0xff] %vm2976_vm7, %v2827_v12 }
 0x3bb   : > { %3197 = vrot.lane.b32.xlu0 %v11784_v5, %s10006_s27  ;;  %3199 = vrot.lane.b32.xlu1 %v11787_v8, %s10006_s27 }
 0x3bd   : > { %v2829_v22 = vpop.permute.xlu0 %2828  ;;  %v2831_v35 = vpop.permute.xlu1 %2830 }
 0x3be   : > { %2999 = vst.msk [vmem:[#allocation2 + $0xb0] sm:$0xff] %vm2976_vm7, %v2829_v22  ;;  %3000 = vst.msk [vmem:[#allocation2 + $0xb8] sm:$0xff] %vm2976_vm7, %v2831_v35  ;;  %v11940_v22 = vld [vmem:[%s10091_s5 + $0x211] sm:$0xff]  ;;  %v11943_v35 = vld [vmem:[%s10091_s5 + $0x219] sm:$0xff] }
 0x3bf   : > { %3201 = vrot.lane.b32.xlu0 %v11796_v14, %s10006_s27  ;;  %3203 = vrot.lane.b32.xlu1 %v11799_v21, %s10006_s27 }
 0x3c1   : > { %v2833_v51 = vpop.permute.xlu0 %2832  ;;  %v2835_v58 = vpop.permute.xlu1 %2834 }
 0x3c2   : > { %3001 = vst.msk [vmem:[#allocation2 + $0xc0] sm:$0xff] %vm2976_vm7, %v2833_v51  ;;  %3002 = vst.msk [vmem:[#allocation2 + $0xc8] sm:$0xff] %vm2976_vm7, %v2835_v58 }
 0x3c3   : > { %3205 = vrot.lane.b32.xlu0 %v11808_v37, %s10006_s27  ;;  %3207 = vrot.lane.b32.xlu1 %v11811_v50, %s10006_s27 }
 0x3c5   : > { %v2837_v3 = vpop.permute.xlu0 %2836  ;;  %v2839_v10 = vpop.permute.xlu1 %2838 }
 0x3c6   : > { %3003 = vst.msk [vmem:[#allocation2 + $0xd0] sm:$0xff] %vm2976_vm7, %v2837_v3  ;;  %3004 = vst.msk [vmem:[#allocation2 + $0xd8] sm:$0xff] %vm2976_vm7, %v2839_v10  ;;  %v11952_v3 = vld [vmem:[%s10091_s5 + $0x229] sm:$0xff]  ;;  %v11955_v10 = vld [vmem:[%s10091_s5 + $0x231] sm:$0xff] }
 0x3c7   : > { %3209 = vrot.lane.b32.xlu0 %v11820_v59, %s10006_s27  ;;  %3211 = vrot.lane.b32.xlu1 %v11823_v2, %s10006_s27 }
 0x3c9   : > { %v2841_v7 = vpop.permute.xlu0 %2840  ;;  %v2843_v28 = vpop.permute.xlu1 %2842 }
 0x3ca   : > { %3005 = vst.msk [vmem:[#allocation2 + $0xe0] sm:$0xff] %vm2976_vm7, %v2841_v7  ;;  %3006 = vst.msk [vmem:[#allocation2 + $0xe8] sm:$0xff] %vm2976_vm7, %v2843_v28 }
 0x3cb   : > { %3213 = vrot.lane.b32.xlu0 %v11832_v11, %s10006_s27  ;;  %3215 = vrot.lane.b32.xlu1 %v11835_v63, %s10006_s27 }
 0x3cd   : > { %v2845_v45 = vpop.permute.xlu0 %2844  ;;  %v2847_v15 = vpop.permute.xlu1 %2846 }
 0x3ce   : > { %3007 = vst.msk [vmem:[#allocation2 + $0xf0] sm:$0xff] %vm2976_vm7, %v2845_v45  ;;  %3008 = vst.msk [vmem:[#allocation2 + $0xf8] sm:$0xff] %vm2976_vm7, %v2847_v15  ;;  %v11964_v45 = vld [vmem:[%s10091_s5 + $0x241] sm:$0xff]  ;;  %v11967_v15 = vld [vmem:[%s10091_s5 + $0x249] sm:$0xff] }
 0x3cf   : > { %3217 = vrot.lane.b32.xlu0 %v11844_v29, %s10006_s27  ;;  %3219 = vrot.lane.b32.xlu1 %v11847_v16, %s10006_s27 }
 0x3d1   : > { %v2849_v55 = vpop.permute.xlu0 %2848  ;;  %v2851_v6 = vpop.permute.xlu1 %2850 }
 0x3d2   : > { %3009 = vst.msk [vmem:[#allocation2 + $0x100] sm:$0xff] %vm2976_vm7, %v2849_v55  ;;  %3010 = vst.msk [vmem:[#allocation2 + $0x108] sm:$0xff] %vm2976_vm7, %v2851_v6 }
 0x3d3   : > { %3221 = vrot.lane.b32.xlu0 %v11856_v44, %s10006_s27  ;;  %3223 = vrot.lane.b32.xlu1 %v11859_v54, %s10006_s27 }
 0x3d5   : > { %v2853_v17 = vpop.permute.xlu0 %2852  ;;  %v2855_v18 = vpop.permute.xlu1 %2854 }
 0x3d6   : > { %3011 = vst.msk [vmem:[#allocation2 + $0x110] sm:$0xff] %vm2976_vm7, %v2853_v17  ;;  %3012 = vst.msk [vmem:[#allocation2 + $0x118] sm:$0xff] %vm2976_vm7, %v2855_v18  ;;  %v11976_v17 = vld [vmem:[%s10091_s5 + $0x259] sm:$0xff]  ;;  %v11979_v18 = vld [vmem:[%s10091_s5 + $0x261] sm:$0xff] }
 0x3d7   : > { %3225 = vrot.lane.b32.xlu0 %v11868_v62, %s10006_s27  ;;  %3227 = vrot.lane.b32.xlu1 %v11871_v13, %s10006_s27 }
 0x3d9   : > { %v2857_v23 = vpop.permute.xlu0 %2856  ;;  %v2859_v24 = vpop.permute.xlu1 %2858 }
 0x3da   : > { %3013 = vst.msk [vmem:[#allocation2 + $0x120] sm:$0xff] %vm2976_vm7, %v2857_v23  ;;  %3014 = vst.msk [vmem:[#allocation2 + $0x128] sm:$0xff] %vm2976_vm7, %v2859_v24 }
 0x3db   : > { %3229 = vrot.lane.b32.xlu0 %v11880_v19, %s10006_s27  ;;  %3231 = vrot.lane.b32.xlu1 %v11883_v20, %s10006_s27 }
 0x3dd   : > { %v2861_v33 = vpop.permute.xlu0 %2860  ;;  %v2863_v34 = vpop.permute.xlu1 %2862 }
 0x3de   : > { %3015 = vst.msk [vmem:[#allocation2 + $0x130] sm:$0xff] %vm2976_vm7, %v2861_v33  ;;  %3016 = vst.msk [vmem:[#allocation2 + $0x138] sm:$0xff] %vm2976_vm7, %v2863_v34  ;;  %v11988_v33 = vld [vmem:[%s10091_s5 + $0x271] sm:$0xff]  ;;  %v11991_v34 = vld [vmem:[%s10091_s5 + $0x279] sm:$0xff] }
 0x3df   : > { %3233 = vrot.lane.b32.xlu0 %v11892_v27, %s10006_s27  ;;  %3235 = vrot.lane.b32.xlu1 %v11895_v30, %s10006_s27 }
 0x3e1   : > { %v2865_v43 = vpop.permute.xlu0 %2864  ;;  %v2867_v46 = vpop.permute.xlu1 %2866 }
 0x3e2   : > { %3017 = vst.msk [vmem:[#allocation2 + $0x140] sm:$0xff] %vm2976_vm7, %v2865_v43  ;;  %3018 = vst.msk [vmem:[#allocation2 + $0x148] sm:$0xff] %vm2976_vm7, %v2867_v46 }
 0x3e3   : > { %3237 = vrot.lane.b32.xlu0 %v11904_v39, %s10006_s27  ;;  %3239 = vrot.lane.b32.xlu1 %v11907_v40, %s10006_s27 }
 0x3e5   : > { %v2869_v57 = vpop.permute.xlu0 %2868  ;;  %v2871_v60 = vpop.permute.xlu1 %2870 }
 0x3e6   : > { %3019 = vst.msk [vmem:[#allocation2 + $0x150] sm:$0xff] %vm2976_vm7, %v2869_v57  ;;  %3020 = vst.msk [vmem:[#allocation2 + $0x158] sm:$0xff] %vm2976_vm7, %v2871_v60  ;;  %v12000_v57 = vld [vmem:[%s10091_s5 + $0x289] sm:$0xff]  ;;  %v12003_v60 = vld [vmem:[%s10091_s5 + $0x291] sm:$0xff] }
 0x3e7   : > { %3241 = vrot.lane.b32.xlu0 %v11916_v49, %s10006_s27  ;;  %3243 = vrot.lane.b32.xlu1 %v11919_v52, %s10006_s27 }
 0x3e9   : > { %v2873_v9 = vpop.permute.xlu0 %2872  ;;  %v2875_v12 = vpop.permute.xlu1 %2874 }
 0x3ea   : > { %3021 = vst.msk [vmem:[#allocation2 + $0x160] sm:$0xff] %vm2976_vm7, %v2873_v9  ;;  %3022 = vst.msk [vmem:[#allocation2 + $0x168] sm:$0xff] %vm2976_vm7, %v2875_v12 }
 0x3eb   : > { %3245 = vrot.lane.b32.xlu0 %v11928_v1, %s10006_s27  ;;  %3247 = vrot.lane.b32.xlu1 %v11931_v4, %s10006_s27 }
 0x3ed   : > { %v2877_v51 = vpop.permute.xlu0 %2876  ;;  %v2879_v58 = vpop.permute.xlu1 %2878 }
 0x3ee   : > { %3023 = vst.msk [vmem:[#allocation2 + $0x170] sm:$0xff] %vm2976_vm7, %v2877_v51  ;;  %3024 = vst.msk [vmem:[#allocation2 + $0x178] sm:$0xff] %vm2976_vm7, %v2879_v58  ;;  %v12012_v51 = vld [vmem:[%s10091_s5 + $0x2a1] sm:$0xff]  ;;  %v12015_v58 = vld [vmem:[%s10091_s5 + $0x2a9] sm:$0xff] }
 0x3ef   : > { %3249 = vrot.lane.b32.xlu0 %v11940_v22, %s10006_s27  ;;  %3251 = vrot.lane.b32.xlu1 %v11943_v35, %s10006_s27  ;;  %14648 = vst [vmem:[#allocation10_spill] sm:$0xff] %v12012_v51  ;;  %14649 = vst [vmem:[#allocation11_spill] sm:$0xff] %v12015_v58 }
 0x3f1   : > { %v2881_v7 = vpop.permute.xlu0 %2880  ;;  %v2883_v28 = vpop.permute.xlu1 %2882 }
 0x3f2   : > { %3025 = vst.msk [vmem:[#allocation2 + $0x180] sm:$0xff] %vm2976_vm7, %v2881_v7  ;;  %3026 = vst.msk [vmem:[#allocation2 + $0x188] sm:$0xff] %vm2976_vm7, %v2883_v28 }
 0x3f3   : > { %3253 = vrot.lane.b32.xlu0 %v11952_v3, %s10006_s27  ;;  %3255 = vrot.lane.b32.xlu1 %v11955_v10, %s10006_s27 }
 0x3f5   : > { %v2885_v55 = vpop.permute.xlu0 %2884  ;;  %v2887_v6 = vpop.permute.xlu1 %2886 }
 0x3f6   : > { %3027 = vst.msk [vmem:[#allocation2 + $0x190] sm:$0xff] %vm2976_vm7, %v2885_v55  ;;  %3028 = vst.msk [vmem:[#allocation2 + $0x198] sm:$0xff] %vm2976_vm7, %v2887_v6  ;;  %v12024_v55 = vld [vmem:[%s10091_s5 + $0x2b9] sm:$0xff]  ;;  %v12027_v6 = vld [vmem:[%s10091_s5 + $0x2c1] sm:$0xff] }
 0x3f7   : > { %3257 = vrot.lane.b32.xlu0 %v11964_v45, %s10006_s27  ;;  %3259 = vrot.lane.b32.xlu1 %v11967_v15, %s10006_s27  ;;  %14650 = vst [vmem:[#allocation12_spill] sm:$0xff] %v12024_v55  ;;  %14651 = vst [vmem:[#allocation13_spill] sm:$0xff] %v12027_v6 }
 0x3f9   : > { %v2889_v23 = vpop.permute.xlu0 %2888  ;;  %v2891_v24 = vpop.permute.xlu1 %2890 }
 0x3fa   : > { %3029 = vst.msk [vmem:[#allocation2 + $0x1a0] sm:$0xff] %vm2976_vm7, %v2889_v23  ;;  %3030 = vst.msk [vmem:[#allocation2 + $0x1a8] sm:$0xff] %vm2976_vm7, %v2891_v24 }
 0x3fb   : > { %3261 = vrot.lane.b32.xlu0 %v11976_v17, %s10006_s27  ;;  %3263 = vrot.lane.b32.xlu1 %v11979_v18, %s10006_s27 }
 0x3fd   : > { %v2893_v43 = vpop.permute.xlu0 %2892  ;;  %v2895_v46 = vpop.permute.xlu1 %2894 }
 0x3fe   : > { %3031 = vst.msk [vmem:[#allocation2 + $0x1b0] sm:$0xff] %vm2976_vm7, %v2893_v43  ;;  %3032 = vst.msk [vmem:[#allocation2 + $0x1b8] sm:$0xff] %vm2976_vm7, %v2895_v46  ;;  %v12036_v43 = vld [vmem:[%s10091_s5 + $0x2d1] sm:$0xff]  ;;  %v12039_v46 = vld [vmem:[%s10091_s5 + $0x2d9] sm:$0xff] }
 0x3ff   : > { %3265 = vrot.lane.b32.xlu0 %v11988_v33, %s10006_s27  ;;  %3267 = vrot.lane.b32.xlu1 %v11991_v34, %s10006_s27  ;;  %14652 = vst [vmem:[#allocation14_spill] sm:$0xff] %v12036_v43  ;;  %14653 = vst [vmem:[#allocation15_spill] sm:$0xff] %v12039_v46 }
 0x401   : > { %v2897_v9 = vpop.permute.xlu0 %2896  ;;  %v2899_v12 = vpop.permute.xlu1 %2898 }
 0x402   : > { %3033 = vst.msk [vmem:[#allocation2 + $0x1c0] sm:$0xff] %vm2976_vm7, %v2897_v9  ;;  %3034 = vst.msk [vmem:[#allocation2 + $0x1c8] sm:$0xff] %vm2976_vm7, %v2899_v12 }
 0x403   : > { %3269 = vrot.lane.b32.xlu0 %v12000_v57, %s10006_s27  ;;  %3271 = vrot.lane.b32.xlu1 %v12003_v60, %s10006_s27 }
 0x405   : > { %v2901_v7 = vpop.permute.xlu0 %2900  ;;  %v2903_v28 = vpop.permute.xlu1 %2902 }
 0x406   : > { %3035 = vst.msk [vmem:[#allocation2 + $0x1d0] sm:$0xff] %vm2976_vm7, %v2901_v7  ;;  %3036 = vst.msk [vmem:[#allocation2 + $0x1d8] sm:$0xff] %vm2976_vm7, %v2903_v28  ;;  %v12048_v7 = vld [vmem:[%s10091_s5 + $0x2e9] sm:$0xff]  ;;  %v12051_v28 = vld [vmem:[%s10091_s5 + $0x2f1] sm:$0xff] }
 0x407   : > { %3273 = vrot.lane.b32.xlu0 %v12012_v51, %s10006_s27  ;;  %3275 = vrot.lane.b32.xlu1 %v12015_v58, %s10006_s27  ;;  %14654 = vst [vmem:[#allocation16_spill] sm:$0xff] %v12048_v7  ;;  %14655 = vst [vmem:[#allocation17_spill] sm:$0xff] %v12051_v28 }
 0x409   : > { %v2905_v23 = vpop.permute.xlu0 %2904  ;;  %v2907_v24 = vpop.permute.xlu1 %2906 }
 0x40a   : > { %3037 = vst.msk [vmem:[#allocation2 + $0x1e0] sm:$0xff] %vm2976_vm7, %v2905_v23  ;;  %3038 = vst.msk [vmem:[#allocation2 + $0x1e8] sm:$0xff] %vm2976_vm7, %v2907_v24  ;;  %v8831_v23 = vld [vmem:[%s10091_s5 + $0x330] sm:$0xff] }
 0x40b   : > { %3277 = vrot.lane.b32.xlu0 %v12024_v55, %s10006_s27  ;;  %3279 = vrot.lane.b32.xlu1 %v12027_v6, %s10006_s27  ;;  %3490 = vst.msk [vmem:[#allocation2 + $0x200] sm:$0xff] %vm276_vm0, %v8831_v23  ;;  %v12066_v6 = vld [vmem:[%s10091_s5 + $0x348] sm:$0xff] }
 0x40c   : > { %14656 = vst [vmem:[#allocation18_spill] sm:$0xff] %v12066_v6  ;;  %3492 = vst.msk [vmem:[#allocation2 + $0x210] sm:$0xff] %vm276_vm0, %v12066_v6  ;;  %v12082_v6 = vld [vmem:[%s10091_s5 + $0x360] sm:$0xff] }
 0x40d   : > { %v2909_v9 = vpop.permute.xlu0 %2908  ;;  %v2911_v12 = vpop.permute.xlu1 %2910  ;;  %14658 = vst [vmem:[#allocation20_spill] sm:$0xff] %v12082_v6  ;;  %3494 = vst.msk [vmem:[#allocation2 + $0x220] sm:$0xff] %vm276_vm0, %v12082_v6  ;;  %v12100_v6 = vld [vmem:[%s10091_s5 + $0x378] sm:$0xff] }
 0x40e   : > { %3039 = vst.msk [vmem:[#allocation2 + $0x1f0] sm:$0xff] %vm2976_vm7, %v2909_v9  ;;  %3040 = vst.msk [vmem:[#allocation2 + $0x1f8] sm:$0xff] %vm2976_vm7, %v2911_v12  ;;  %v8832_v12 = vld [vmem:[%s10091_s5 + $0x338] sm:$0xff] }
 0x40f   : > { %3281 = vrot.lane.b32.xlu0 %v12036_v43, %s10006_s27  ;;  %3283 = vrot.lane.b32.xlu1 %v12039_v46, %s10006_s27  ;;  %3491 = vst.msk [vmem:[#allocation2 + $0x208] sm:$0xff] %vm276_vm0, %v8832_v12  ;;  %v8827_v46 = vld [vmem:[%s10091_s5 + $0x301] sm:$0xff]  ;;  %v8828_v43 = vld [vmem:[%s10091_s5 + $0x309] sm:$0xff]  ;;  %14660 = vst [vmem:[#allocation22_spill] sm:$0xff] %v12100_v6 }
 0x410   : > { %v8830_v12 = vld [vmem:[%s10091_s5 + $0x321] sm:$0xff]  ;;  %3496 = vst.msk [vmem:[#allocation2 + $0x230] sm:$0xff] %vm276_vm0, %v12100_v6 }
 0x411   : > { %v3170_v24 = vpop.permute.xlu0 %3169  ;;  %v3172_v9 = vpop.permute.xlu1 %3171 }
 0x412   : > { %3362 = vst.msk [vmem:[#allocation2] sm:$0xff] %vm3361_vm11, %v3170_v24  ;;  %3363 = vst.msk [vmem:[#allocation2 + $0x8] sm:$0xff] %vm3361_vm11, %v3172_v9  ;;  %v12071_v24 = vld [vmem:[%s10091_s5 + $0x350] sm:$0xff]  ;;  %v8829_v9 = vld [vmem:[%s10091_s5 + $0x319] sm:$0xff] }
 0x413   : > { %3285 = vrot.lane.b32.xlu0 %v12048_v7, %s10006_s27  ;;  %3287 = vrot.lane.b32.xlu1 %v12051_v28, %s10006_s27  ;;  %14657 = vst [vmem:[#allocation19_spill] sm:$0xff] %v12071_v24  ;;  %3493 = vst.msk [vmem:[#allocation2 + $0x218] sm:$0xff] %vm276_vm0, %v12071_v24 }
 0x415   : > { %v3174_v23 = vpop.permute.xlu0 %3173  ;;  %v3176_v55 = vpop.permute.xlu1 %3175 }
 0x416   : > { %3364 = vst.msk [vmem:[#allocation2 + $0x10] sm:$0xff] %vm3361_vm11, %v3174_v23  ;;  %3365 = vst.msk [vmem:[#allocation2 + $0x18] sm:$0xff] %vm3361_vm11, %v3176_v55  ;;  %v12087_v55 = vld [vmem:[%s10091_s5 + $0x368] sm:$0xff] }
 0x417   : > { %3289 = vrot.lane.b32.xlu0 %v8827_v46, %s10006_s27  ;;  %3291 = vrot.lane.b32.xlu1 %v8828_v43, %s10006_s27  ;;  %14659 = vst [vmem:[#allocation21_spill] sm:$0xff] %v12087_v55  ;;  %3495 = vst.msk [vmem:[#allocation2 + $0x228] sm:$0xff] %vm276_vm0, %v12087_v55  ;;  %v3554_v43 = vld [vmem:[%s10091_s5 + $0x1] sm:$0xff]  ;;  %v3555_v46 = vld [vmem:[%s10091_s5 + $0x9] sm:$0xff] }
 0x418   : > { %v12105_v55 = vld [vmem:[%s10091_s5 + $0x380] sm:$0xff] }
 0x419   : > { %v3178_v28 = vpop.permute.xlu0 %3177  ;;  %v3180_v7 = vpop.permute.xlu1 %3179  ;;  %v6626_v23 = vld [vmem:[#allocation2] sm:$0xff]  ;;  %v6627_v58 = vld [vmem:[#allocation2 + $0x8] sm:$0xff]  ;;  %3497 = vst.msk [vmem:[#allocation2 + $0x238] sm:$0xff] %vm276_vm0, %v12105_v55 }
 0x41a   : > { %3366 = vst.msk [vmem:[#allocation2 + $0x20] sm:$0xff] %vm3361_vm11, %v3178_v28  ;;  %3367 = vst.msk [vmem:[#allocation2 + $0x28] sm:$0xff] %vm3361_vm11, %v3180_v7  ;;  %9614 = vmatprep.mubr.msk.f32.mxu0 %vm6756_vm12, %v6626_v23 }
 0x41b   : > { %3293 = vrot.lane.b32.xlu0 %v8829_v9, %s10006_s27  ;;  %9615 = vmatmul.mubr.msk.f32.vlgmr.msra.gmra.mrb[0].mxu0 %vm6756_vm12, %v6627_v58  ;;  %v3556_v58 = vld [vmem:[%s10091_s5 + $0x19] sm:$0xff]  ;;  %v3557_v9 = vld [vmem:[%s10091_s5 + $0x21] sm:$0xff] }
 0x41c   : > { %3295 = vrot.lane.b32.xlu1 %v8830_v12, %s10006_s27  ;;  %v12118_v12 = vld [vmem:[%s10091_s5 + $0x390] sm:$0xff] }
 0x41d   : > { %v3182_v28 = vpop.permute.xlu0 %3181  ;;  %v3184_v7 = vpop.permute.xlu1 %3183  ;;  %v6628_v24 = vld [vmem:[#allocation2 + $0x10] sm:$0xff]  ;;  %v6629_v23 = vld [vmem:[#allocation2 + $0x18] sm:$0xff]  ;;  %14661 = vst [vmem:[#allocation23_spill] sm:$0xff] %v12118_v12  ;;  %3498 = vst.msk [vmem:[#allocation2 + $0x240] sm:$0xff] %vm276_vm0, %v12118_v12 }
 0x41e   : > { %3368 = vst.msk [vmem:[#allocation2 + $0x30] sm:$0xff] %vm3361_vm11, %v3182_v28  ;;  %3369 = vst.msk [vmem:[#allocation2 + $0x38] sm:$0xff] %vm3361_vm11, %v3184_v7  ;;  %9617 = vmatprep.mubr.msk.f32.mxu0 %vm6756_vm12, %v6628_v24  ;;  %v12123_v24 = vld [vmem:[%s10091_s5 + $0x398] sm:$0xff] }
 0x41f   : > { %3682 = vrot.lane.b32.xlu0 %v3554_v43, %s9998_s6  ;;  %9618 = vmatmul.mubr.msk.f32.gmra.mrb[2].mxu0 %vm6756_vm12, %v6629_v23  ;;  %3499 = vst.msk [vmem:[#allocation2 + $0x248] sm:$0xff] %vm276_vm0, %v12123_v24  ;;  %v12134_v43 = vld [vmem:[%s10091_s5 + $0x3a8] sm:$0xff] }
 0x420   : > { %3684 = vrot.lane.b32.xlu1 %v3555_v46, %s9998_s6  ;;  %3500 = vst.msk [vmem:[#allocation2 + $0x250] sm:$0xff] %vm276_vm0, %v12134_v43 }
 0x421   : > { %v3186_v6 = vpop.permute.xlu0 %3185  ;;  %v3188_v28 = vpop.permute.xlu1 %3187  ;;  %v6630_v51 = vld [vmem:[#allocation2 + $0x20] sm:$0xff]  ;;  %v6631_v7 = vld [vmem:[#allocation2 + $0x28] sm:$0xff] }
 0x422   : > { %3370 = vst.msk [vmem:[#allocation2 + $0x40] sm:$0xff] %vm3361_vm11, %v3186_v6  ;;  %3371 = vst.msk [vmem:[#allocation2 + $0x48] sm:$0xff] %vm3361_vm11, %v3188_v28  ;;  %9620 = vmatprep.mubr.msk.f32.mxu0 %vm6756_vm12, %v6630_v51  ;;  %v12139_v51 = vld [vmem:[%s10091_s5 + $0x3b0] sm:$0xff] }
 0x423   : > { %3686 = vrot.lane.b32.xlu0 %v3556_v58, %s9998_s6  ;;  %9621 = vmatmul.mubr.msk.f32.gmra.mrb[4].mxu0 %vm6756_vm12, %v6631_v7  ;;  %3501 = vst.msk [vmem:[#allocation2 + $0x258] sm:$0xff] %vm276_vm0, %v12139_v51  ;;  %v12152_v58 = vld [vmem:[%s10091_s5 + $0x3c0] sm:$0xff] }
 0x424   : > { %3688 = vrot.lane.b32.xlu1 %v3557_v9, %s9998_s6  ;;  %3502 = vst.msk [vmem:[#allocation2 + $0x260] sm:$0xff] %vm276_vm0, %v12152_v58 }
 0x425   : > { %v3190_v46 = vpop.permute.xlu0 %3189  ;;  %v3192_v23 = vpop.permute.xlu1 %3191  ;;  %v6632_v12 = vld [vmem:[#allocation2 + $0x30] sm:$0xff]  ;;  %v6633_v6 = vld [vmem:[#allocation2 + $0x38] sm:$0xff] }
 0x426   : > { %3372 = vst.msk [vmem:[#allocation2 + $0x50] sm:$0xff] %vm3361_vm11, %v3190_v46  ;;  %3373 = vst.msk [vmem:[#allocation2 + $0x58] sm:$0xff] %vm3361_vm11, %v3192_v23  ;;  %9623 = vmatprep.mubr.msk.f32.mxu0 %vm6756_vm12, %v6632_v12  ;;  %v12157_v12 = vld [vmem:[%s10091_s5 + $0x3c8] sm:$0xff] }
 0x427   : > { %3690 = vrot.lane.b32.xlu0 %v11700_v25, %s9998_s6  ;;  %9624 = vmatmul.mubr.msk.f32.gmra.mrb[6].mxu0 %vm6756_vm12, %v6633_v6  ;;  %3503 = vst.msk [vmem:[#allocation2 + $0x268] sm:$0xff] %vm276_vm0, %v12157_v12  ;;  %v12170_v25 = vld [vmem:[%s10091_s5 + $0x3d8] sm:$0xff] }
 0x428   : > { %3692 = vrot.lane.b32.xlu1 %v11703_v26, %s9998_s6  ;;  %3504 = vst.msk [vmem:[#allocation2 + $0x270] sm:$0xff] %vm276_vm0, %v12170_v25 }
 0x429   : > { %v3194_v9 = vpop.permute.xlu0 %3193  ;;  %v3196_v28 = vpop.permute.xlu1 %3195  ;;  %v6634_v7 = vld [vmem:[#allocation2 + $0x40] sm:$0xff]  ;;  %v6635_v46 = vld [vmem:[#allocation2 + $0x48] sm:$0xff] }
 0x42a   : > { %3374 = vst.msk [vmem:[#allocation2 + $0x60] sm:$0xff] %vm3361_vm11, %v3194_v9  ;;  %3375 = vst.msk [vmem:[#allocation2 + $0x68] sm:$0xff] %vm3361_vm11, %v3196_v28  ;;  %9626 = vmatprep.mubr.msk.f32.mxu0 %vm6756_vm12, %v6634_v7  ;;  %v12175_v28 = vld [vmem:[%s10091_s5 + $0x3e0] sm:$0xff] }
 0x42b   : > { %3694 = vrot.lane.b32.xlu0 %v11712_v31, %s9998_s6  ;;  %9627 = vmatmul.mubr.msk.f32.gmra.mrb[8].mxu0 %vm6756_vm12, %v6635_v46  ;;  %3505 = vst.msk [vmem:[#allocation2 + $0x278] sm:$0xff] %vm276_vm0, %v12175_v28  ;;  %v12188_v31 = vld [vmem:[%s10091_s5 + $0x3f0] sm:$0xff] }
 0x42c   : > { %3696 = vrot.lane.b32.xlu1 %v11715_v32, %s9998_s6  ;;  %3506 = vst.msk [vmem:[#allocation2 + $0x280] sm:$0xff] %vm276_vm0, %v12188_v31 }
 0x42d   : > { %v3198_v26 = vpop.permute.xlu0 %3197  ;;  %v3200_v23 = vpop.permute.xlu1 %3199  ;;  %v6636_v6 = vld [vmem:[#allocation2 + $0x50] sm:$0xff]  ;;  %v6637_v9 = vld [vmem:[#allocation2 + $0x58] sm:$0xff] }
 0x42e   : > { %3376 = vst.msk [vmem:[#allocation2 + $0x70] sm:$0xff] %vm3361_vm11, %v3198_v26  ;;  %3377 = vst.msk [vmem:[#allocation2 + $0x78] sm:$0xff] %vm3361_vm11, %v3200_v23  ;;  %9629 = vmatprep.mubr.msk.f32.mxu0 %vm6756_vm12, %v6636_v6  ;;  %v12193_v23 = vld [vmem:[%s10091_s5 + $0x3f8] sm:$0xff] }
 0x42f   : > { %3698 = vrot.lane.b32.xlu0 %v11724_v36, %s9998_s6  ;;  %9630 = vmatmul.mubr.msk.f32.gmra.mrb[10].mxu0 %vm6756_vm12, %v6637_v9  ;;  %3507 = vst.msk [vmem:[#allocation2 + $0x288] sm:$0xff] %vm276_vm0, %v12193_v23  ;;  %v12206_v36 = vld [vmem:[%s10091_s5 + $0x408] sm:$0xff] }
 0x430   : > { %3700 = vrot.lane.b32.xlu1 %v11727_v38, %s9998_s6  ;;  %3508 = vst.msk [vmem:[#allocation2 + $0x290] sm:$0xff] %vm276_vm0, %v12206_v36 }
 0x431   : > { %v3202_v32 = vpop.permute.xlu0 %3201  ;;  %v3204_v7 = vpop.permute.xlu1 %3203  ;;  %v6638_v46 = vld [vmem:[#allocation2 + $0x60] sm:$0xff]  ;;  %v6639_v26 = vld [vmem:[#allocation2 + $0x68] sm:$0xff] }
 0x432   : > { %3378 = vst.msk [vmem:[#allocation2 + $0x80] sm:$0xff] %vm3361_vm11, %v3202_v32  ;;  %3379 = vst.msk [vmem:[#allocation2 + $0x88] sm:$0xff] %vm3361_vm11, %v3204_v7  ;;  %9632 = vmatprep.mubr.msk.f32.mxu0 %vm6756_vm12, %v6638_v46  ;;  %v12211_v7 = vld [vmem:[%s10091_s5 + $0x410] sm:$0xff] }
 0x433   : > { %3702 = vrot.lane.b32.xlu0 %v11736_v41, %s9998_s6  ;;  %9633 = vmatmul.mubr.msk.f32.gmra.mrb[12].mxu0 %vm6756_vm12, %v6639_v26  ;;  %3509 = vst.msk [vmem:[#allocation2 + $0x298] sm:$0xff] %vm276_vm0, %v12211_v7  ;;  %v12224_v41 = vld [vmem:[%s10091_s5 + $0x420] sm:$0xff] }
 0x434   : > { %3704 = vrot.lane.b32.xlu1 %v11739_v42, %s9998_s6  ;;  %3510 = vst.msk [vmem:[#allocation2 + $0x2a0] sm:$0xff] %vm276_vm0, %v12224_v41 }
 0x435   : > { %v3206_v38 = vpop.permute.xlu0 %3205  ;;  %v3208_v6 = vpop.permute.xlu1 %3207  ;;  %v6640_v9 = vld [vmem:[#allocation2 + $0x70] sm:$0xff]  ;;  %v6641_v32 = vld [vmem:[#allocation2 + $0x78] sm:$0xff] }
 0x436   : > { %3380 = vst.msk [vmem:[#allocation2 + $0x90] sm:$0xff] %vm3361_vm11, %v3206_v38  ;;  %3381 = vst.msk [vmem:[#allocation2 + $0x98] sm:$0xff] %vm3361_vm11, %v3208_v6  ;;  %9635 = vmatprep.mubr.msk.f32.mxu0 %vm6756_vm12, %v6640_v9  ;;  %v12229_v6 = vld [vmem:[%s10091_s5 + $0x428] sm:$0xff] }
 0x437   : > { %3706 = vrot.lane.b32.xlu0 %v11748_v47, %s9998_s6  ;;  %9636 = vmatmul.mubr.msk.f32.gmra.mrb[14].mxu0 %vm6756_vm12, %v6641_v32  ;;  %3511 = vst.msk [vmem:[#allocation2 + $0x2a8] sm:$0xff] %vm276_vm0, %v12229_v6  ;;  %v12242_v47 = vld [vmem:[%s10091_s5 + $0x438] sm:$0xff] }
 0x438   : > { %3708 = vrot.lane.b32.xlu1 %v11751_v48, %s9998_s6  ;;  %3512 = vst.msk [vmem:[#allocation2 + $0x2b0] sm:$0xff] %vm276_vm0, %v12242_v47 }
 0x439   : > { %v3210_v42 = vpop.permute.xlu0 %3209  ;;  %v3212_v46 = vpop.permute.xlu1 %3211  ;;  %v6642_v26 = vld [vmem:[#allocation2 + $0x80] sm:$0xff]  ;;  %v6643_v38 = vld [vmem:[#allocation2 + $0x88] sm:$0xff] }
 0x43a   : > { %3382 = vst.msk [vmem:[#allocation2 + $0xa0] sm:$0xff] %vm3361_vm11, %v3210_v42  ;;  %3383 = vst.msk [vmem:[#allocation2 + $0xa8] sm:$0xff] %vm3361_vm11, %v3212_v46  ;;  %9638 = vmatprep.mubr.msk.f32.mxu0 %vm6756_vm12, %v6642_v26  ;;  %v12247_v46 = vld [vmem:[%s10091_s5 + $0x440] sm:$0xff] }
 0x43b   : > { %3710 = vrot.lane.b32.xlu0 %v11760_v53, %s9998_s6  ;;  %9639 = vmatmul.mubr.msk.f32.gmra.mrb[16].mxu0 %vm6756_vm12, %v6643_v38  ;;  %3513 = vst.msk [vmem:[#allocation2 + $0x2b8] sm:$0xff] %vm276_vm0, %v12247_v46  ;;  %v12260_v53 = vld [vmem:[%s10091_s5 + $0x450] sm:$0xff] }
 0x43c   : > { %3712 = vrot.lane.b32.xlu1 %v11763_v56, %s9998_s6  ;;  %3514 = vst.msk [vmem:[#allocation2 + $0x2c0] sm:$0xff] %vm276_vm0, %v12260_v53 }
 0x43d   : > { %v3214_v48 = vpop.permute.xlu0 %3213  ;;  %v3216_v9 = vpop.permute.xlu1 %3215  ;;  %v6644_v32 = vld [vmem:[#allocation2 + $0x90] sm:$0xff]  ;;  %v6645_v42 = vld [vmem:[#allocation2 + $0x98] sm:$0xff] }
 0x43e   : > { %3384 = vst.msk [vmem:[#allocation2 + $0xb0] sm:$0xff] %vm3361_vm11, %v3214_v48  ;;  %3385 = vst.msk [vmem:[#allocation2 + $0xb8] sm:$0xff] %vm3361_vm11, %v3216_v9  ;;  %9641 = vmatprep.mubr.msk.f32.mxu0 %vm6756_vm12, %v6644_v32  ;;  %v12265_v9 = vld [vmem:[%s10091_s5 + $0x458] sm:$0xff] }
 0x43f   : > { %3714 = vrot.lane.b32.xlu0 %v11772_v61, %s9998_s6  ;;  %9642 = vmatmul.mubr.msk.f32.gmra.mrb[18].mxu0 %vm6756_vm12, %v6645_v42  ;;  %3515 = vst.msk [vmem:[#allocation2 + $0x2c8] sm:$0xff] %vm276_vm0, %v12265_v9  ;;  %v12278_v61 = vld [vmem:[%s10091_s5 + $0x468] sm:$0xff] }
 0x440   : > { %3716 = vrot.lane.b32.xlu1 %v11775_v0, %s9998_s6  ;;  %3516 = vst.msk [vmem:[#allocation2 + $0x2d0] sm:$0xff] %vm276_vm0, %v12278_v61 }
 0x441   : > { %v3218_v56 = vpop.permute.xlu0 %3217  ;;  %v3220_v26 = vpop.permute.xlu1 %3219  ;;  %v6646_v38 = vld [vmem:[#allocation2 + $0xa0] sm:$0xff]  ;;  %v6647_v48 = vld [vmem:[#allocation2 + $0xa8] sm:$0xff] }
 0x442   : > { %3386 = vst.msk [vmem:[#allocation2 + $0xc0] sm:$0xff] %vm3361_vm11, %v3218_v56  ;;  %3387 = vst.msk [vmem:[#allocation2 + $0xc8] sm:$0xff] %vm3361_vm11, %v3220_v26  ;;  %9644 = vmatprep.mubr.msk.f32.mxu0 %vm6756_vm12, %v6646_v38  ;;  %v12283_v26 = vld [vmem:[%s10091_s5 + $0x470] sm:$0xff] }
 0x443   : > { %3718 = vrot.lane.b32.xlu0 %v11784_v5, %s9998_s6  ;;  %9645 = vmatmul.mubr.msk.f32.gmra.mrb[20].mxu0 %vm6756_vm12, %v6647_v48  ;;  %3517 = vst.msk [vmem:[#allocation2 + $0x2d8] sm:$0xff] %vm276_vm0, %v12283_v26  ;;  %v12296_v5 = vld [vmem:[%s10091_s5 + $0x480] sm:$0xff] }
 0x444   : > { %3720 = vrot.lane.b32.xlu1 %v11787_v8, %s9998_s6  ;;  %3518 = vst.msk [vmem:[#allocation2 + $0x2e0] sm:$0xff] %vm276_vm0, %v12296_v5 }
 0x445   : > { %v3222_v0 = vpop.permute.xlu0 %3221  ;;  %v3224_v32 = vpop.permute.xlu1 %3223  ;;  %v6648_v42 = vld [vmem:[#allocation2 + $0xb0] sm:$0xff]  ;;  %v6649_v56 = vld [vmem:[#allocation2 + $0xb8] sm:$0xff] }
 0x446   : > { %3388 = vst.msk [vmem:[#allocation2 + $0xd0] sm:$0xff] %vm3361_vm11, %v3222_v0  ;;  %3389 = vst.msk [vmem:[#allocation2 + $0xd8] sm:$0xff] %vm3361_vm11, %v3224_v32  ;;  %9647 = vmatprep.mubr.msk.f32.mxu0 %vm6756_vm12, %v6648_v42  ;;  %v12301_v32 = vld [vmem:[%s10091_s5 + $0x488] sm:$0xff] }
 0x447   : > { %3722 = vrot.lane.b32.xlu0 %v11796_v14, %s9998_s6  ;;  %9648 = vmatmul.mubr.msk.f32.gmra.mrb[22].mxu0 %vm6756_vm12, %v6649_v56  ;;  %3519 = vst.msk [vmem:[#allocation2 + $0x2e8] sm:$0xff] %vm276_vm0, %v12301_v32  ;;  %v12314_v14 = vld [vmem:[%s10091_s5 + $0x498] sm:$0xff] }
 0x448   : > { %3724 = vrot.lane.b32.xlu1 %v11799_v21, %s9998_s6  ;;  %3520 = vst.msk [vmem:[#allocation2 + $0x2f0] sm:$0xff] %vm276_vm0, %v12314_v14 }
 0x449   : > { %v3226_v8 = vpop.permute.xlu0 %3225  ;;  %v3228_v38 = vpop.permute.xlu1 %3227  ;;  %v6650_v48 = vld [vmem:[#allocation2 + $0xc0] sm:$0xff]  ;;  %v6651_v0 = vld [vmem:[#allocation2 + $0xc8] sm:$0xff] }
 0x44a   : > { %3390 = vst.msk [vmem:[#allocation2 + $0xe0] sm:$0xff] %vm3361_vm11, %v3226_v8  ;;  %3391 = vst.msk [vmem:[#allocation2 + $0xe8] sm:$0xff] %vm3361_vm11, %v3228_v38  ;;  %9650 = vmatprep.mubr.msk.f32.mxu0 %vm6756_vm12, %v6650_v48  ;;  %v12319_v38 = vld [vmem:[%s10091_s5 + $0x4a0] sm:$0xff] }
 0x44b   : > { %3726 = vrot.lane.b32.xlu0 %v11808_v37, %s9998_s6  ;;  %9651 = vmatmul.mubr.msk.f32.gmra.mrb[24].mxu0 %vm6756_vm12, %v6651_v0  ;;  %3521 = vst.msk [vmem:[#allocation2 + $0x2f8] sm:$0xff] %vm276_vm0, %v12319_v38  ;;  %v12332_v37 = vld [vmem:[%s10091_s5 + $0x4b0] sm:$0xff] }
 0x44c   : > { %3728 = vrot.lane.b32.xlu1 %v11811_v50, %s9998_s6  ;;  %3522 = vst.msk [vmem:[#allocation2 + $0x300] sm:$0xff] %vm276_vm0, %v12332_v37 }
 0x44d   : > { %v3230_v21 = vpop.permute.xlu0 %3229  ;;  %v3232_v42 = vpop.permute.xlu1 %3231  ;;  %v6652_v56 = vld [vmem:[#allocation2 + $0xd0] sm:$0xff]  ;;  %v6653_v8 = vld [vmem:[#allocation2 + $0xd8] sm:$0xff] }
 0x44e   : > { %3392 = vst.msk [vmem:[#allocation2 + $0xf0] sm:$0xff] %vm3361_vm11, %v3230_v21  ;;  %3393 = vst.msk [vmem:[#allocation2 + $0xf8] sm:$0xff] %vm3361_vm11, %v3232_v42  ;;  %9653 = vmatprep.mubr.msk.f32.mxu0 %vm6756_vm12, %v6652_v56  ;;  %v12337_v42 = vld [vmem:[%s10091_s5 + $0x4b8] sm:$0xff] }
 0x44f   : > { %3730 = vrot.lane.b32.xlu0 %v11820_v59, %s9998_s6  ;;  %9654 = vmatmul.mubr.msk.f32.gmra.mrb[26].mxu0 %vm6756_vm12, %v6653_v8  ;;  %3523 = vst.msk [vmem:[#allocation2 + $0x308] sm:$0xff] %vm276_vm0, %v12337_v42  ;;  %v12350_v59 = vld [vmem:[%s10091_s5 + $0x4c8] sm:$0xff] }
 0x450   : > { %3732 = vrot.lane.b32.xlu1 %v11823_v2, %s9998_s6  ;;  %3524 = vst.msk [vmem:[#allocation2 + $0x310] sm:$0xff] %vm276_vm0, %v12350_v59 }
 0x451   : > { %v3234_v50 = vpop.permute.xlu0 %3233  ;;  %v3236_v48 = vpop.permute.xlu1 %3235  ;;  %v6654_v0 = vld [vmem:[#allocation2 + $0xe0] sm:$0xff]  ;;  %v6655_v21 = vld [vmem:[#allocation2 + $0xe8] sm:$0xff] }
 0x452   : > { %3394 = vst.msk [vmem:[#allocation2 + $0x100] sm:$0xff] %vm3361_vm11, %v3234_v50  ;;  %3395 = vst.msk [vmem:[#allocation2 + $0x108] sm:$0xff] %vm3361_vm11, %v3236_v48  ;;  %9656 = vmatprep.mubr.msk.f32.mxu0 %vm6756_vm12, %v6654_v0  ;;  %v12355_v48 = vld [vmem:[%s10091_s5 + $0x4d0] sm:$0xff] }
 0x453   : > { %3734 = vrot.lane.b32.xlu0 %v11832_v11, %s9998_s6  ;;  %9657 = vmatmul.mubr.msk.f32.gmra.mrb[28].mxu0 %vm6756_vm12, %v6655_v21  ;;  %3525 = vst.msk [vmem:[#allocation2 + $0x318] sm:$0xff] %vm276_vm0, %v12355_v48  ;;  %v12368_v11 = vld [vmem:[%s10091_s5 + $0x4e0] sm:$0xff] }
 0x454   : > { %3736 = vrot.lane.b32.xlu1 %v11835_v63, %s9998_s6  ;;  %3526 = vst.msk [vmem:[#allocation2 + $0x320] sm:$0xff] %vm276_vm0, %v12368_v11 }
 0x455   : > { %v3238_v2 = vpop.permute.xlu0 %3237  ;;  %v3240_v56 = vpop.permute.xlu1 %3239  ;;  %v6656_v8 = vld [vmem:[#allocation2 + $0xf0] sm:$0xff]  ;;  %v6657_v50 = vld [vmem:[#allocation2 + $0xf8] sm:$0xff] }
 0x456   : > { %3396 = vst.msk [vmem:[#allocation2 + $0x110] sm:$0xff] %vm3361_vm11, %v3238_v2  ;;  %3397 = vst.msk [vmem:[#allocation2 + $0x118] sm:$0xff] %vm3361_vm11, %v3240_v56  ;;  %9659 = vmatprep.mubr.msk.f32.mxu0 %vm6756_vm12, %v6656_v8  ;;  %v12373_v56 = vld [vmem:[%s10091_s5 + $0x4e8] sm:$0xff] }
 0x457   : > { %3738 = vrot.lane.b32.xlu0 %v11844_v29, %s9998_s6  ;;  %9660 = vmatmul.mubr.msk.f32.gmra.mrb[30].mxu0 %vm6756_vm12, %v6657_v50  ;;  %3527 = vst.msk [vmem:[#allocation2 + $0x328] sm:$0xff] %vm276_vm0, %v12373_v56  ;;  %v12386_v29 = vld [vmem:[%s10091_s5 + $0x4f8] sm:$0xff] }
 0x458   : > { %3740 = vrot.lane.b32.xlu1 %v11847_v16, %s9998_s6  ;;  %3528 = vst.msk [vmem:[#allocation2 + $0x330] sm:$0xff] %vm276_vm0, %v12386_v29 }
 0x459   : > { %v3242_v63 = vpop.permute.xlu0 %3241  ;;  %v3244_v0 = vpop.permute.xlu1 %3243  ;;  %v6658_v21 = vld [vmem:[#allocation2 + $0x100] sm:$0xff]  ;;  %v6659_v2 = vld [vmem:[#allocation2 + $0x108] sm:$0xff] }
 0x45a   : > { %3398 = vst.msk [vmem:[#allocation2 + $0x120] sm:$0xff] %vm3361_vm11, %v3242_v63  ;;  %3399 = vst.msk [vmem:[#allocation2 + $0x128] sm:$0xff] %vm3361_vm11, %v3244_v0  ;;  %9662 = vmatprep.mubr.msk.f32.mxu0 %vm6756_vm12, %v6658_v21  ;;  %v12391_v0 = vld [vmem:[%s10091_s5 + $0x500] sm:$0xff] }
 0x45b   : > { %3742 = vrot.lane.b32.xlu0 %v11856_v44, %s9998_s6  ;;  %9663 = vmatmul.mubr.msk.f32.gmra.mrb[32].mxu0 %vm6756_vm12, %v6659_v2  ;;  %3529 = vst.msk [vmem:[#allocation2 + $0x338] sm:$0xff] %vm276_vm0, %v12391_v0  ;;  %v12404_v44 = vld [vmem:[%s10091_s5 + $0x510] sm:$0xff] }
 0x45c   : > { %3744 = vrot.lane.b32.xlu1 %v11859_v54, %s9998_s6  ;;  %3530 = vst.msk [vmem:[#allocation2 + $0x340] sm:$0xff] %vm276_vm0, %v12404_v44 }
 0x45d   : > { %v3246_v16 = vpop.permute.xlu0 %3245  ;;  %v3248_v8 = vpop.permute.xlu1 %3247  ;;  %v6660_v50 = vld [vmem:[#allocation2 + $0x110] sm:$0xff]  ;;  %v6661_v63 = vld [vmem:[#allocation2 + $0x118] sm:$0xff] }
 0x45e   : > { %3400 = vst.msk [vmem:[#allocation2 + $0x130] sm:$0xff] %vm3361_vm11, %v3246_v16  ;;  %3401 = vst.msk [vmem:[#allocation2 + $0x138] sm:$0xff] %vm3361_vm11, %v3248_v8  ;;  %9665 = vmatprep.mubr.msk.f32.mxu0 %vm6756_vm12, %v6660_v50  ;;  %v12409_v8 = vld [vmem:[%s10091_s5 + $0x518] sm:$0xff] }
 0x45f   : > { %3746 = vrot.lane.b32.xlu0 %v11868_v62, %s9998_s6  ;;  %9666 = vmatmul.mubr.msk.f32.gmra.mrb[34].mxu0 %vm6756_vm12, %v6661_v63  ;;  %3531 = vst.msk [vmem:[#allocation2 + $0x348] sm:$0xff] %vm276_vm0, %v12409_v8  ;;  %v12422_v62 = vld [vmem:[%s10091_s5 + $0x528] sm:$0xff] }
 0x460   : > { %3748 = vrot.lane.b32.xlu1 %v11871_v13, %s9998_s6  ;;  %3532 = vst.msk [vmem:[#allocation2 + $0x350] sm:$0xff] %vm276_vm0, %v12422_v62 }
 0x461   : > { %v3250_v54 = vpop.permute.xlu0 %3249  ;;  %v3252_v21 = vpop.permute.xlu1 %3251  ;;  %v6662_v2 = vld [vmem:[#allocation2 + $0x120] sm:$0xff]  ;;  %v6663_v16 = vld [vmem:[#allocation2 + $0x128] sm:$0xff] }
 0x462   : > { %3402 = vst.msk [vmem:[#allocation2 + $0x140] sm:$0xff] %vm3361_vm11, %v3250_v54  ;;  %3403 = vst.msk [vmem:[#allocation2 + $0x148] sm:$0xff] %vm3361_vm11, %v3252_v21  ;;  %9668 = vmatprep.mubr.msk.f32.mxu0 %vm6756_vm12, %v6662_v2  ;;  %v12427_v21 = vld [vmem:[%s10091_s5 + $0x530] sm:$0xff] }
 0x463   : > { %3750 = vrot.lane.b32.xlu0 %v11880_v19, %s9998_s6  ;;  %9669 = vmatmul.mubr.msk.f32.gmra.mrb[36].mxu0 %vm6756_vm12, %v6663_v16  ;;  %3533 = vst.msk [vmem:[#allocation2 + $0x358] sm:$0xff] %vm276_vm0, %v12427_v21  ;;  %v12440_v19 = vld [vmem:[%s10091_s5 + $0x540] sm:$0xff] }
 0x464   : > { %3752 = vrot.lane.b32.xlu1 %v11883_v20, %s9998_s6  ;;  %3534 = vst.msk [vmem:[#allocation2 + $0x360] sm:$0xff] %vm276_vm0, %v12440_v19 }
 0x465   : > { %v3254_v13 = vpop.permute.xlu0 %3253  ;;  %v3256_v50 = vpop.permute.xlu1 %3255  ;;  %v6664_v63 = vld [vmem:[#allocation2 + $0x130] sm:$0xff]  ;;  %v6665_v54 = vld [vmem:[#allocation2 + $0x138] sm:$0xff] }
 0x466   : > { %3404 = vst.msk [vmem:[#allocation2 + $0x150] sm:$0xff] %vm3361_vm11, %v3254_v13  ;;  %3405 = vst.msk [vmem:[#allocation2 + $0x158] sm:$0xff] %vm3361_vm11, %v3256_v50  ;;  %9671 = vmatprep.mubr.msk.f32.mxu0 %vm6756_vm12, %v6664_v63  ;;  %v12445_v50 = vld [vmem:[%s10091_s5 + $0x548] sm:$0xff] }
 0x467   : > { %3754 = vrot.lane.b32.xlu0 %v11892_v27, %s9998_s6  ;;  %9672 = vmatmul.mubr.msk.f32.gmra.mrb[38].mxu0 %vm6756_vm12, %v6665_v54  ;;  %3535 = vst.msk [vmem:[#allocation2 + $0x368] sm:$0xff] %vm276_vm0, %v12445_v50  ;;  %v12458_v27 = vld [vmem:[%s10091_s5 + $0x558] sm:$0xff] }
 0x468   : > { %3756 = vrot.lane.b32.xlu1 %v11895_v30, %s9998_s6  ;;  %3536 = vst.msk [vmem:[#allocation2 + $0x370] sm:$0xff] %vm276_vm0, %v12458_v27 }
 0x469   : > { %v3258_v20 = vpop.permute.xlu0 %3257  ;;  %v3260_v2 = vpop.permute.xlu1 %3259  ;;  %v6666_v16 = vld [vmem:[#allocation2 + $0x140] sm:$0xff]  ;;  %v6667_v13 = vld [vmem:[#allocation2 + $0x148] sm:$0xff] }
 0x46a   : > { %3406 = vst.msk [vmem:[#allocation2 + $0x160] sm:$0xff] %vm3361_vm11, %v3258_v20  ;;  %3407 = vst.msk [vmem:[#allocation2 + $0x168] sm:$0xff] %vm3361_vm11, %v3260_v2  ;;  %9674 = vmatprep.mubr.msk.f32.mxu0 %vm6756_vm12, %v6666_v16  ;;  %v12463_v2 = vld [vmem:[%s10091_s5 + $0x560] sm:$0xff] }
 0x46b   : > { %3758 = vrot.lane.b32.xlu0 %v11904_v39, %s9998_s6  ;;  %9675 = vmatmul.mubr.msk.f32.gmra.mrb[40].mxu0 %vm6756_vm12, %v6667_v13  ;;  %3537 = vst.msk [vmem:[#allocation2 + $0x378] sm:$0xff] %vm276_vm0, %v12463_v2  ;;  %v12476_v39 = vld [vmem:[%s10091_s5 + $0x570] sm:$0xff] }
 0x46c   : > { %3760 = vrot.lane.b32.xlu1 %v11907_v40, %s9998_s6  ;;  %3538 = vst.msk [vmem:[#allocation2 + $0x380] sm:$0xff] %vm276_vm0, %v12476_v39 }
 0x46d   : > { %v3262_v30 = vpop.permute.xlu0 %3261  ;;  %v3264_v63 = vpop.permute.xlu1 %3263  ;;  %v6668_v54 = vld [vmem:[#allocation2 + $0x150] sm:$0xff]  ;;  %v6669_v20 = vld [vmem:[#allocation2 + $0x158] sm:$0xff] }
 0x46e   : > { %3408 = vst.msk [vmem:[#allocation2 + $0x170] sm:$0xff] %vm3361_vm11, %v3262_v30  ;;  %3409 = vst.msk [vmem:[#allocation2 + $0x178] sm:$0xff] %vm3361_vm11, %v3264_v63  ;;  %9677 = vmatprep.mubr.msk.f32.mxu0 %vm6756_vm12, %v6668_v54  ;;  %v12481_v63 = vld [vmem:[%s10091_s5 + $0x578] sm:$0xff] }
 0x46f   : > { %3762 = vrot.lane.b32.xlu0 %v11916_v49, %s9998_s6  ;;  %9678 = vmatmul.mubr.msk.f32.gmra.mrb[42].mxu0 %vm6756_vm12, %v6669_v20  ;;  %3539 = vst.msk [vmem:[#allocation2 + $0x388] sm:$0xff] %vm276_vm0, %v12481_v63  ;;  %v12494_v49 = vld [vmem:[%s10091_s5 + $0x588] sm:$0xff] }
 0x470   : > { %3764 = vrot.lane.b32.xlu1 %v11919_v52, %s9998_s6  ;;  %3540 = vst.msk [vmem:[#allocation2 + $0x390] sm:$0xff] %vm276_vm0, %v12494_v49 }
 0x471   : > { %v3266_v40 = vpop.permute.xlu0 %3265  ;;  %v3268_v16 = vpop.permute.xlu1 %3267  ;;  %v6670_v13 = vld [vmem:[#allocation2 + $0x160] sm:$0xff]  ;;  %v6671_v30 = vld [vmem:[#allocation2 + $0x168] sm:$0xff] }
 0x472   : > { %3410 = vst.msk [vmem:[#allocation2 + $0x180] sm:$0xff] %vm3361_vm11, %v3266_v40  ;;  %3411 = vst.msk [vmem:[#allocation2 + $0x188] sm:$0xff] %vm3361_vm11, %v3268_v16  ;;  %9680 = vmatprep.mubr.msk.f32.mxu0 %vm6756_vm12, %v6670_v13  ;;  %v12499_v16 = vld [vmem:[%s10091_s5 + $0x590] sm:$0xff] }
 0x473   : > { %3766 = vrot.lane.b32.xlu0 %v11928_v1, %s9998_s6  ;;  %9681 = vmatmul.mubr.msk.f32.gmra.mrb[44].mxu0 %vm6756_vm12, %v6671_v30  ;;  %3541 = vst.msk [vmem:[#allocation2 + $0x398] sm:$0xff] %vm276_vm0, %v12499_v16  ;;  %v12512_v1 = vld [vmem:[%s10091_s5 + $0x5a0] sm:$0xff] }
 0x474   : > { %3768 = vrot.lane.b32.xlu1 %v11931_v4, %s9998_s6  ;;  %3542 = vst.msk [vmem:[#allocation2 + $0x3a0] sm:$0xff] %vm276_vm0, %v12512_v1 }
 0x475   : > { %v3270_v52 = vpop.permute.xlu0 %3269  ;;  %v3272_v54 = vpop.permute.xlu1 %3271  ;;  %v6672_v20 = vld [vmem:[#allocation2 + $0x170] sm:$0xff]  ;;  %v6673_v40 = vld [vmem:[#allocation2 + $0x178] sm:$0xff] }
 0x476   : > { %3412 = vst.msk [vmem:[#allocation2 + $0x190] sm:$0xff] %vm3361_vm11, %v3270_v52  ;;  %3413 = vst.msk [vmem:[#allocation2 + $0x198] sm:$0xff] %vm3361_vm11, %v3272_v54  ;;  %9683 = vmatprep.mubr.msk.f32.mxu0 %vm6756_vm12, %v6672_v20  ;;  %v12517_v54 = vld [vmem:[%s10091_s5 + $0x5a8] sm:$0xff] }
 0x477   : > { %3770 = vrot.lane.b32.xlu0 %v11940_v22, %s9998_s6  ;;  %9684 = vmatmul.mubr.msk.f32.gmra.mrb[46].mxu0 %vm6756_vm12, %v6673_v40  ;;  %3543 = vst.msk [vmem:[#allocation2 + $0x3a8] sm:$0xff] %vm276_vm0, %v12517_v54  ;;  %v12530_v22 = vld [vmem:[%s10091_s5 + $0x5b8] sm:$0xff] }
 0x478   : > { %3772 = vrot.lane.b32.xlu1 %v11943_v35, %s9998_s6  ;;  %3544 = vst.msk [vmem:[#allocation2 + $0x3b0] sm:$0xff] %vm276_vm0, %v12530_v22 }
 0x479   : > { %v3274_v4 = vpop.permute.xlu0 %3273  ;;  %v3276_v13 = vpop.permute.xlu1 %3275  ;;  %v6674_v30 = vld [vmem:[#allocation2 + $0x180] sm:$0xff]  ;;  %v6675_v52 = vld [vmem:[#allocation2 + $0x188] sm:$0xff] }
 0x47a   : > { %3414 = vst.msk [vmem:[#allocation2 + $0x1a0] sm:$0xff] %vm3361_vm11, %v3274_v4  ;;  %3415 = vst.msk [vmem:[#allocation2 + $0x1a8] sm:$0xff] %vm3361_vm11, %v3276_v13  ;;  %9686 = vmatprep.mubr.msk.f32.mxu0 %vm6756_vm12, %v6674_v30  ;;  %v12535_v13 = vld [vmem:[%s10091_s5 + $0x5c0] sm:$0xff] }
 0x47b   : > { %3774 = vrot.lane.b32.xlu0 %v11952_v3, %s9998_s6  ;;  %9687 = vmatmul.mubr.msk.f32.gmra.mrb[48].mxu0 %vm6756_vm12, %v6675_v52  ;;  %3545 = vst.msk [vmem:[#allocation2 + $0x3b8] sm:$0xff] %vm276_vm0, %v12535_v13  ;;  %v12548_v3 = vld [vmem:[%s10091_s5 + $0x5d0] sm:$0xff] }
 0x47c   : > { %3776 = vrot.lane.b32.xlu1 %v11955_v10, %s9998_s6  ;;  %3546 = vst.msk [vmem:[#allocation2 + $0x3c0] sm:$0xff] %vm276_vm0, %v12548_v3 }
 0x47d   : > { %v3278_v35 = vpop.permute.xlu0 %3277  ;;  %v3280_v20 = vpop.permute.xlu1 %3279  ;;  %v6676_v40 = vld [vmem:[#allocation2 + $0x190] sm:$0xff]  ;;  %v6677_v4 = vld [vmem:[#allocation2 + $0x198] sm:$0xff] }
 0x47e   : > { %3416 = vst.msk [vmem:[#allocation2 + $0x1b0] sm:$0xff] %vm3361_vm11, %v3278_v35  ;;  %3417 = vst.msk [vmem:[#allocation2 + $0x1b8] sm:$0xff] %vm3361_vm11, %v3280_v20  ;;  %9689 = vmatprep.mubr.msk.f32.mxu0 %vm6756_vm12, %v6676_v40  ;;  %v12553_v20 = vld [vmem:[%s10091_s5 + $0x5d8] sm:$0xff] }
 0x47f   : > { %3778 = vrot.lane.b32.xlu0 %v11964_v45, %s9998_s6  ;;  %9690 = vmatmul.mubr.msk.f32.gmra.mrb[50].mxu0 %vm6756_vm12, %v6677_v4  ;;  %3547 = vst.msk [vmem:[#allocation2 + $0x3c8] sm:$0xff] %vm276_vm0, %v12553_v20  ;;  %v12566_v45 = vld [vmem:[%s10091_s5 + $0x5e8] sm:$0xff] }
 0x480   : > { %3780 = vrot.lane.b32.xlu1 %v11967_v15, %s9998_s6  ;;  %3548 = vst.msk [vmem:[#allocation2 + $0x3d0] sm:$0xff] %vm276_vm0, %v12566_v45 }
 0x481   : > { %v3282_v10 = vpop.permute.xlu0 %3281  ;;  %v3284_v30 = vpop.permute.xlu1 %3283  ;;  %v6678_v52 = vld [vmem:[#allocation2 + $0x1a0] sm:$0xff]  ;;  %v6679_v35 = vld [vmem:[#allocation2 + $0x1a8] sm:$0xff] }
 0x482   : > { %3418 = vst.msk [vmem:[#allocation2 + $0x1c0] sm:$0xff] %vm3361_vm11, %v3282_v10  ;;  %3419 = vst.msk [vmem:[#allocation2 + $0x1c8] sm:$0xff] %vm3361_vm11, %v3284_v30  ;;  %9692 = vmatprep.mubr.msk.f32.mxu0 %vm6756_vm12, %v6678_v52  ;;  %v12571_v30 = vld [vmem:[%s10091_s5 + $0x5f0] sm:$0xff] }
 0x483   : > { %3782 = vrot.lane.b32.xlu0 %v11976_v17, %s9998_s6  ;;  %9693 = vmatmul.mubr.msk.f32.gmra.mrb[52].mxu0 %vm6756_vm12, %v6679_v35  ;;  %3549 = vst.msk [vmem:[#allocation2 + $0x3d8] sm:$0xff] %vm276_vm0, %v12571_v30  ;;  %v12584_v17 = vld [vmem:[%s10091_s5 + $0x600] sm:$0xff] }
 0x484   : > { %3784 = vrot.lane.b32.xlu1 %v11979_v18, %s9998_s6  ;;  %3550 = vst.msk [vmem:[#allocation2 + $0x3e0] sm:$0xff] %vm276_vm0, %v12584_v17 }
 0x485   : > { %v3286_v15 = vpop.permute.xlu0 %3285  ;;  %v3288_v40 = vpop.permute.xlu1 %3287  ;;  %v6680_v4 = vld [vmem:[#allocation2 + $0x1b0] sm:$0xff]  ;;  %v6681_v10 = vld [vmem:[#allocation2 + $0x1b8] sm:$0xff] }
 0x486   : > { %3420 = vst.msk [vmem:[#allocation2 + $0x1d0] sm:$0xff] %vm3361_vm11, %v3286_v15  ;;  %3421 = vst.msk [vmem:[#allocation2 + $0x1d8] sm:$0xff] %vm3361_vm11, %v3288_v40  ;;  %9695 = vmatprep.mubr.msk.f32.mxu0 %vm6756_vm12, %v6680_v4  ;;  %v12589_v40 = vld [vmem:[%s10091_s5 + $0x608] sm:$0xff] }
 0x487   : > { %3786 = vrot.lane.b32.xlu0 %v11988_v33, %s9998_s6  ;;  %9696 = vmatmul.mubr.msk.f32.gmra.mrb[54].mxu0 %vm6756_vm12, %v6681_v10  ;;  %14662 = vst [vmem:[#allocation24_spill] sm:$0xff] %v12589_v40  ;;  %3551 = vst.msk [vmem:[#allocation2 + $0x3e8] sm:$0xff] %vm276_vm0, %v12589_v40  ;;  %v12602_v33 = vld [vmem:[%s10091_s5 + $0x618] sm:$0xff] }
 0x488   : > { %3788 = vrot.lane.b32.xlu1 %v11991_v34, %s9998_s6  ;;  %14663 = vst [vmem:[#allocation25_spill] sm:$0xff] %v12602_v33  ;;  %3552 = vst.msk [vmem:[#allocation2 + $0x3f0] sm:$0xff] %vm276_vm0, %v12602_v33 }
 0x489   : > { %v3290_v18 = vpop.permute.xlu0 %3289  ;;  %v3292_v52 = vpop.permute.xlu1 %3291  ;;  %v6682_v35 = vld [vmem:[#allocation2 + $0x1c0] sm:$0xff]  ;;  %v6683_v15 = vld [vmem:[#allocation2 + $0x1c8] sm:$0xff] }
 0x48a   : > { %3422 = vst.msk [vmem:[#allocation2 + $0x1e0] sm:$0xff] %vm3361_vm11, %v3290_v18  ;;  %3423 = vst.msk [vmem:[#allocation2 + $0x1e8] sm:$0xff] %vm3361_vm11, %v3292_v52  ;;  %9698 = vmatprep.mubr.msk.f32.mxu0 %vm6756_vm12, %v6682_v35  ;;  %v12607_v18 = vld [vmem:[%s10091_s5 + $0x620] sm:$0xff] }
 0x48b   : > { %3790 = vrot.lane.b32.xlu0 %v12000_v57, %s9998_s6  ;;  %9699 = vmatmul.mubr.msk.f32.gmra.mrb[56].mxu0 %vm6756_vm12, %v6683_v15  ;;  %14664 = vst [vmem:[#allocation26_spill] sm:$0xff] %v12607_v18  ;;  %3553 = vst.msk [vmem:[#allocation2 + $0x3f8] sm:$0xff] %vm276_vm0, %v12607_v18  ;;  %v14665_v57 = vld [vmem:[#allocation10_spill] sm:$0xff] }
 0x48c   : > { %3792 = vrot.lane.b32.xlu1 %v12003_v60, %s9998_s6  ;;  %v14666_v60 = vld [vmem:[#allocation11_spill] sm:$0xff] }
 0x48d   : > { %v3294_v34 = vpop.permute.xlu0 %3293  ;;  %v6684_v4 = vld [vmem:[#allocation2 + $0x1d0] sm:$0xff]  ;;  %v6685_v10 = vld [vmem:[#allocation2 + $0x1d8] sm:$0xff] }
 0x48e   : > { %3424 = vst.msk [vmem:[#allocation2 + $0x1f0] sm:$0xff] %vm3361_vm11, %v3294_v34  ;;  %v3296_v52 = vpop.permute.xlu1 %3295  ;;  %9701 = vmatprep.mubr.msk.f32.mxu0 %vm6756_vm12, %v6684_v4  ;;  %v14667_v4 = vld [vmem:[#allocation12_spill] sm:$0xff] }
 0x48f   : > { %3425 = vst.msk [vmem:[#allocation2 + $0x1f8] sm:$0xff] %vm3361_vm11, %v3296_v52  ;;  %3794 = vrot.lane.b32.xlu0 %v14665_v57, %s9998_s6  ;;  %9702 = vmatmul.mubr.msk.f32.gmra.mrb[58].mxu0 %vm6756_vm12, %v6685_v10  ;;  %v14668_v10 = vld [vmem:[#allocation13_spill] sm:$0xff] }
 0x490   : > { %3796 = vrot.lane.b32.xlu1 %v14666_v60, %s9998_s6 }
 0x491   : > { %v3683_v35 = vpop.permute.xlu0 %3682  ;;  %v6686_v15 = vld [vmem:[#allocation2 + $0x1e0] sm:$0xff]  ;;  %v6687_v33 = vld [vmem:[#allocation2 + $0x1e8] sm:$0xff] }
 0x492   : > { %3874 = vst.msk [vmem:[#allocation2 + $0x200] sm:$0xff] %vm662_vm1, %v3683_v35  ;;  %v3685_v34 = vpop.permute.xlu1 %3684  ;;  %9704 = vmatprep.mubr.msk.f32.mxu0 %vm6756_vm12, %v6686_v15  ;;  %v14669_v15 = vld [vmem:[#allocation14_spill] sm:$0xff] }
 0x493   : > { %3875 = vst.msk [vmem:[#allocation2 + $0x208] sm:$0xff] %vm662_vm1, %v3685_v34  ;;  %3798 = vrot.lane.b32.xlu0 %v14667_v4, %s9998_s6  ;;  %9705 = vmatmul.mubr.msk.f32.gmra.mrb[60].mxu0 %vm6756_vm12, %v6687_v33  ;;  %v14670_v33 = vld [vmem:[#allocation15_spill] sm:$0xff] }
 0x494   : > { %3800 = vrot.lane.b32.xlu1 %v14668_v10, %s9998_s6  ;;  %v14671_v10 = vld [vmem:[#allocation16_spill] sm:$0xff] }
 0x495   : > { %v3687_v52 = vpop.permute.xlu0 %3686  ;;  %v6688_v57 = vld [vmem:[#allocation2 + $0x1f0] sm:$0xff] }
 0x496   : > { %3876 = vst.msk [vmem:[#allocation2 + $0x210] sm:$0xff] %vm662_vm1, %v3687_v52  ;;  %v3689_v60 = vpop.permute.xlu1 %3688  ;;  %9707 = vmatprep.mubr.msk.f32.mxu0 %vm6756_vm12, %v6688_v57  ;;  %v6689_v35 = vld [vmem:[#allocation2 + $0x1f8] sm:$0xff] }
 0x497   : > { %3877 = vst.msk [vmem:[#allocation2 + $0x218] sm:$0xff] %vm662_vm1, %v3689_v60  ;;  %3802 = vrot.lane.b32.xlu0 %v14669_v15, %s9998_s6  ;;  %9708 = vmatmul.mubr.msk.f32.gmra.mrb[62].mxu0 %vm6756_vm12, %v6689_v35  ;;  %v14672_v52 = vld [vmem:[#allocation17_spill] sm:$0xff]  ;;  %v8895_v57 = vld [vmem:[%s10091_s5 + $0x331] sm:$0xff] }
 0x498   : > { %3804 = vrot.lane.b32.xlu1 %v14670_v33, %s9998_s6  ;;  %v8896_v35 = vld [vmem:[%s10091_s5 + $0x339] sm:$0xff]  ;;  %v8897_v33 = vld [vmem:[%s10091_s5 + $0x349] sm:$0xff] }
 0x499   : > { %v3691_v34 = vpop.permute.xlu0 %3690 }
 0x49a   : > { %3878 = vst.msk [vmem:[#allocation2 + $0x220] sm:$0xff] %vm662_vm1, %v3691_v34  ;;  %v3693_v4 = vpop.permute.xlu1 %3692 }
 0x49b   : > { %3879 = vst.msk [vmem:[#allocation2 + $0x228] sm:$0xff] %vm662_vm1, %v3693_v4  ;;  %3806 = vrot.lane.b32.xlu0 %v14671_v10, %s9998_s6  ;;  %v8898_v4 = vld [vmem:[%s10091_s5 + $0x351] sm:$0xff] }
 0x49c   : > { %3808 = vrot.lane.b32.xlu1 %v14672_v52, %s9998_s6  ;;  %v8899_v52 = vld [vmem:[%s10091_s5 + $0x361] sm:$0xff]  ;;  %s8236_s6 = sshll.u32 %s14201_s30, 4  ;;  %s14484_s6 = int_to_ptr.vmem [resolvable:$true] %s8236_s6 }
 0x49d   : > { %v3695_v60 = vpop.permute.xlu0 %3694 }
 0x49e   : > { %3880 = vst.msk [vmem:[#allocation2 + $0x230] sm:$0xff] %vm662_vm1, %v3695_v60  ;;  %v3697_v15 = vpop.permute.xlu1 %3696 }
 0x49f   : > { %3881 = vst.msk [vmem:[#allocation2 + $0x238] sm:$0xff] %vm662_vm1, %v3697_v15  ;;  %4066 = vrot.lane.b32.xlu0 %v8895_v57, %s9999_s7  ;;  %v8900_v57 = vld [vmem:[%s10091_s5 + $0x369] sm:$0xff]  ;;  %v8901_v15 = vld [vmem:[%s10091_s5 + $0x379] sm:$0xff] }
 0x4a0   : > { %4068 = vrot.lane.b32.xlu1 %v8896_v35, %s9999_s7 }
 0x4a1   : > { %v3699_v34 = vpop.permute.xlu0 %3698 }
 0x4a2   : > { %3882 = vst.msk [vmem:[#allocation2 + $0x240] sm:$0xff] %vm662_vm1, %v3699_v34  ;;  %v3701_v10 = vpop.permute.xlu1 %3700 }
 0x4a3   : > { %3883 = vst.msk [vmem:[#allocation2 + $0x248] sm:$0xff] %vm662_vm1, %v3701_v10  ;;  %4070 = vrot.lane.b32.xlu0 %v8897_v33, %s9999_s7  ;;  %v8902_v33 = vld [vmem:[%s10091_s5 + $0x381] sm:$0xff]  ;;  %v8903_v10 = vld [vmem:[%s10091_s5 + $0x391] sm:$0xff] }
 0x4a4   : > { %4072 = vrot.lane.b32.xlu1 %v8898_v4, %s9999_s7 }
 0x4a5   : > { %v3703_v60 = vpop.permute.xlu0 %3702 }
 0x4a6   : > { %3884 = vst.msk [vmem:[#allocation2 + $0x250] sm:$0xff] %vm662_vm1, %v3703_v60  ;;  %v3705_v35 = vpop.permute.xlu1 %3704 }
 0x4a7   : > { %3885 = vst.msk [vmem:[#allocation2 + $0x258] sm:$0xff] %vm662_vm1, %v3705_v35  ;;  %4074 = vrot.lane.b32.xlu0 %v8899_v52, %s9999_s7  ;;  %v8904_v52 = vld [vmem:[%s10091_s5 + $0x399] sm:$0xff]  ;;  %v8905_v35 = vld [vmem:[%s10091_s5 + $0x3a9] sm:$0xff] }
 0x4a8   : > { %4076 = vrot.lane.b32.xlu1 %v8900_v57, %s9999_s7 }
 0x4a9   : > { %v3707_v34 = vpop.permute.xlu0 %3706 }
 0x4aa   : > { %3886 = vst.msk [vmem:[#allocation2 + $0x260] sm:$0xff] %vm662_vm1, %v3707_v34  ;;  %v3709_v4 = vpop.permute.xlu1 %3708 }
 0x4ab   : > { %3887 = vst.msk [vmem:[#allocation2 + $0x268] sm:$0xff] %vm662_vm1, %v3709_v4  ;;  %4078 = vrot.lane.b32.xlu0 %v8901_v15, %s9999_s7  ;;  %v8906_v15 = vld [vmem:[%s10091_s5 + $0x3b1] sm:$0xff]  ;;  %v8907_v4 = vld [vmem:[%s10091_s5 + $0x3c1] sm:$0xff] }
 0x4ac   : > { %4080 = vrot.lane.b32.xlu1 %v8902_v33, %s9999_s7 }
 0x4ad   : > { %v3711_v60 = vpop.permute.xlu0 %3710 }
 0x4ae   : > { %3888 = vst.msk [vmem:[#allocation2 + $0x270] sm:$0xff] %vm662_vm1, %v3711_v60  ;;  %v3713_v57 = vpop.permute.xlu1 %3712 }
 0x4af   : > { %3889 = vst.msk [vmem:[#allocation2 + $0x278] sm:$0xff] %vm662_vm1, %v3713_v57  ;;  %4082 = vrot.lane.b32.xlu0 %v8903_v10, %s9999_s7  ;;  %v8908_v10 = vld [vmem:[%s10091_s5 + $0x3c9] sm:$0xff]  ;;  %v8909_v57 = vld [vmem:[%s10091_s5 + $0x3d9] sm:$0xff] }
 0x4b0   : > { %4084 = vrot.lane.b32.xlu1 %v8904_v52, %s9999_s7 }
 0x4b1   : > { %v3715_v34 = vpop.permute.xlu0 %3714 }
 0x4b2   : > { %3890 = vst.msk [vmem:[#allocation2 + $0x280] sm:$0xff] %vm662_vm1, %v3715_v34  ;;  %v3717_v33 = vpop.permute.xlu1 %3716 }
 0x4b3   : > { %3891 = vst.msk [vmem:[#allocation2 + $0x288] sm:$0xff] %vm662_vm1, %v3717_v33  ;;  %4086 = vrot.lane.b32.xlu0 %v8905_v35, %s9999_s7  ;;  %v8910_v35 = vld [vmem:[%s10091_s5 + $0x3e1] sm:$0xff]  ;;  %v8911_v33 = vld [vmem:[%s10091_s5 + $0x3f1] sm:$0xff] }
 0x4b4   : > { %4088 = vrot.lane.b32.xlu1 %v8906_v15, %s9999_s7 }
 0x4b5   : > { %v3719_v60 = vpop.permute.xlu0 %3718 }
 0x4b6   : > { %3892 = vst.msk [vmem:[#allocation2 + $0x290] sm:$0xff] %vm662_vm1, %v3719_v60  ;;  %v3721_v52 = vpop.permute.xlu1 %3720 }
 0x4b7   : > { %3893 = vst.msk [vmem:[#allocation2 + $0x298] sm:$0xff] %vm662_vm1, %v3721_v52  ;;  %4090 = vrot.lane.b32.xlu0 %v8907_v4, %s9999_s7  ;;  %v8912_v4 = vld [vmem:[%s10091_s5 + $0x3f9] sm:$0xff]  ;;  %v8913_v52 = vld [vmem:[%s10091_s5 + $0x409] sm:$0xff] }
 0x4b8   : > { %4092 = vrot.lane.b32.xlu1 %v8908_v10, %s9999_s7 }
 0x4b9   : > { %v3723_v34 = vpop.permute.xlu0 %3722 }
 0x4ba   : > { %3894 = vst.msk [vmem:[#allocation2 + $0x2a0] sm:$0xff] %vm662_vm1, %v3723_v34  ;;  %v3725_v15 = vpop.permute.xlu1 %3724 }
 0x4bb   : > { %3895 = vst.msk [vmem:[#allocation2 + $0x2a8] sm:$0xff] %vm662_vm1, %v3725_v15  ;;  %4094 = vrot.lane.b32.xlu0 %v8909_v57, %s9999_s7  ;;  %v8914_v57 = vld [vmem:[%s10091_s5 + $0x411] sm:$0xff]  ;;  %v8915_v15 = vld [vmem:[%s10091_s5 + $0x421] sm:$0xff] }
 0x4bc   : > { %4096 = vrot.lane.b32.xlu1 %v8910_v35, %s9999_s7 }
 0x4bd   : > { %v3727_v60 = vpop.permute.xlu0 %3726 }
 0x4be   : > { %3896 = vst.msk [vmem:[#allocation2 + $0x2b0] sm:$0xff] %vm662_vm1, %v3727_v60  ;;  %v3729_v10 = vpop.permute.xlu1 %3728 }
 0x4bf   : > { %3897 = vst.msk [vmem:[#allocation2 + $0x2b8] sm:$0xff] %vm662_vm1, %v3729_v10  ;;  %4098 = vrot.lane.b32.xlu0 %v8911_v33, %s9999_s7  ;;  %v8916_v33 = vld [vmem:[%s10091_s5 + $0x429] sm:$0xff]  ;;  %v8917_v10 = vld [vmem:[%s10091_s5 + $0x439] sm:$0xff] }
 0x4c0   : > { %4100 = vrot.lane.b32.xlu1 %v8912_v4, %s9999_s7 }
 0x4c1   : > { %v3731_v34 = vpop.permute.xlu0 %3730 }
 0x4c2   : > { %3898 = vst.msk [vmem:[#allocation2 + $0x2c0] sm:$0xff] %vm662_vm1, %v3731_v34  ;;  %v3733_v35 = vpop.permute.xlu1 %3732 }
 0x4c3   : > { %3899 = vst.msk [vmem:[#allocation2 + $0x2c8] sm:$0xff] %vm662_vm1, %v3733_v35  ;;  %4102 = vrot.lane.b32.xlu0 %v8913_v52, %s9999_s7  ;;  %v8918_v52 = vld [vmem:[%s10091_s5 + $0x441] sm:$0xff]  ;;  %v8919_v35 = vld [vmem:[%s10091_s5 + $0x451] sm:$0xff] }
 0x4c4   : > { %4104 = vrot.lane.b32.xlu1 %v8914_v57, %s9999_s7 }
 0x4c5   : > { %v3735_v60 = vpop.permute.xlu0 %3734 }
 0x4c6   : > { %3900 = vst.msk [vmem:[#allocation2 + $0x2d0] sm:$0xff] %vm662_vm1, %v3735_v60  ;;  %v3737_v4 = vpop.permute.xlu1 %3736 }
 0x4c7   : > { %3901 = vst.msk [vmem:[#allocation2 + $0x2d8] sm:$0xff] %vm662_vm1, %v3737_v4  ;;  %4106 = vrot.lane.b32.xlu0 %v8915_v15, %s9999_s7  ;;  %v8920_v15 = vld [vmem:[%s10091_s5 + $0x459] sm:$0xff]  ;;  %v8921_v4 = vld [vmem:[%s10091_s5 + $0x469] sm:$0xff] }
 0x4c8   : > { %4108 = vrot.lane.b32.xlu1 %v8916_v33, %s9999_s7 }
 0x4c9   : > { %v3739_v34 = vpop.permute.xlu0 %3738 }
 0x4ca   : > { %3902 = vst.msk [vmem:[#allocation2 + $0x2e0] sm:$0xff] %vm662_vm1, %v3739_v34  ;;  %v3741_v57 = vpop.permute.xlu1 %3740 }
 0x4cb   : > { %3903 = vst.msk [vmem:[#allocation2 + $0x2e8] sm:$0xff] %vm662_vm1, %v3741_v57  ;;  %4110 = vrot.lane.b32.xlu0 %v8917_v10, %s9999_s7  ;;  %v8922_v10 = vld [vmem:[%s10091_s5 + $0x471] sm:$0xff]  ;;  %v8923_v57 = vld [vmem:[%s10091_s5 + $0x481] sm:$0xff] }
 0x4cc   : > { %4112 = vrot.lane.b32.xlu1 %v8918_v52, %s9999_s7 }
 0x4cd   : > { %v3743_v60 = vpop.permute.xlu0 %3742 }
 0x4ce   : > { %3904 = vst.msk [vmem:[#allocation2 + $0x2f0] sm:$0xff] %vm662_vm1, %v3743_v60  ;;  %v3745_v33 = vpop.permute.xlu1 %3744 }
 0x4cf   : > { %3905 = vst.msk [vmem:[#allocation2 + $0x2f8] sm:$0xff] %vm662_vm1, %v3745_v33  ;;  %4114 = vrot.lane.b32.xlu0 %v8919_v35, %s9999_s7  ;;  %v8924_v35 = vld [vmem:[%s10091_s5 + $0x489] sm:$0xff]  ;;  %v8925_v33 = vld [vmem:[%s10091_s5 + $0x499] sm:$0xff] }
 0x4d0   : > { %4116 = vrot.lane.b32.xlu1 %v8920_v15, %s9999_s7 }
 0x4d1   : > { %v3747_v34 = vpop.permute.xlu0 %3746 }
 0x4d2   : > { %3906 = vst.msk [vmem:[#allocation2 + $0x300] sm:$0xff] %vm662_vm1, %v3747_v34  ;;  %v3749_v52 = vpop.permute.xlu1 %3748 }
 0x4d3   : > { %3907 = vst.msk [vmem:[#allocation2 + $0x308] sm:$0xff] %vm662_vm1, %v3749_v52  ;;  %4118 = vrot.lane.b32.xlu0 %v8921_v4, %s9999_s7  ;;  %v8926_v4 = vld [vmem:[%s10091_s5 + $0x4a1] sm:$0xff]  ;;  %v8927_v52 = vld [vmem:[%s10091_s5 + $0x4b1] sm:$0xff] }
 0x4d4   : > { %4120 = vrot.lane.b32.xlu1 %v8922_v10, %s9999_s7 }
 0x4d5   : > { %v3751_v60 = vpop.permute.xlu0 %3750 }
 0x4d6   : > { %3908 = vst.msk [vmem:[#allocation2 + $0x310] sm:$0xff] %vm662_vm1, %v3751_v60  ;;  %v3753_v15 = vpop.permute.xlu1 %3752 }
 0x4d7   : > { %3909 = vst.msk [vmem:[#allocation2 + $0x318] sm:$0xff] %vm662_vm1, %v3753_v15  ;;  %4122 = vrot.lane.b32.xlu0 %v8923_v57, %s9999_s7  ;;  %v8928_v57 = vld [vmem:[%s10091_s5 + $0x4b9] sm:$0xff]  ;;  %v8929_v15 = vld [vmem:[%s10091_s5 + $0x4c9] sm:$0xff] }
 0x4d8   : > { %4124 = vrot.lane.b32.xlu1 %v8924_v35, %s9999_s7 }
 0x4d9   : > { %v3755_v34 = vpop.permute.xlu0 %3754 }
 0x4da   : > { %3910 = vst.msk [vmem:[#allocation2 + $0x320] sm:$0xff] %vm662_vm1, %v3755_v34  ;;  %v3757_v10 = vpop.permute.xlu1 %3756 }
 0x4db   : > { %3911 = vst.msk [vmem:[#allocation2 + $0x328] sm:$0xff] %vm662_vm1, %v3757_v10  ;;  %4126 = vrot.lane.b32.xlu0 %v8925_v33, %s9999_s7  ;;  %v8930_v33 = vld [vmem:[%s10091_s5 + $0x4d1] sm:$0xff]  ;;  %v8931_v10 = vld [vmem:[%s10091_s5 + $0x4e1] sm:$0xff] }
 0x4dc   : > { %4128 = vrot.lane.b32.xlu1 %v8926_v4, %s9999_s7 }
 0x4dd   : > { %v3759_v60 = vpop.permute.xlu0 %3758 }
 0x4de   : > { %3912 = vst.msk [vmem:[#allocation2 + $0x330] sm:$0xff] %vm662_vm1, %v3759_v60  ;;  %v3761_v35 = vpop.permute.xlu1 %3760 }
 0x4df   : > { %3913 = vst.msk [vmem:[#allocation2 + $0x338] sm:$0xff] %vm662_vm1, %v3761_v35  ;;  %4130 = vrot.lane.b32.xlu0 %v8927_v52, %s9999_s7  ;;  %v8932_v52 = vld [vmem:[%s10091_s5 + $0x4e9] sm:$0xff]  ;;  %v8933_v35 = vld [vmem:[%s10091_s5 + $0x4f9] sm:$0xff] }
 0x4e0   : > { %4132 = vrot.lane.b32.xlu1 %v8928_v57, %s9999_s7 }
 0x4e1   : > { %v3763_v34 = vpop.permute.xlu0 %3762 }
 0x4e2   : > { %3914 = vst.msk [vmem:[#allocation2 + $0x340] sm:$0xff] %vm662_vm1, %v3763_v34  ;;  %v3765_v4 = vpop.permute.xlu1 %3764 }
 0x4e3   : > { %3915 = vst.msk [vmem:[#allocation2 + $0x348] sm:$0xff] %vm662_vm1, %v3765_v4  ;;  %4134 = vrot.lane.b32.xlu0 %v8929_v15, %s9999_s7  ;;  %v8934_v4 = vld [vmem:[%s10091_s5 + $0x501] sm:$0xff] }
 0x4e4   : > { %4136 = vrot.lane.b32.xlu1 %v8930_v33, %s9999_s7  ;;  %v8935_v33 = vld [vmem:[%s10091_s5 + $0x511] sm:$0xff] }
 0x4e5   : > { %v3767_v60 = vpop.permute.xlu0 %3766 }
 0x4e6   : > { %3916 = vst.msk [vmem:[#allocation2 + $0x350] sm:$0xff] %vm662_vm1, %v3767_v60  ;;  %v3769_v57 = vpop.permute.xlu1 %3768 }
 0x4e7   : > { %3917 = vst.msk [vmem:[#allocation2 + $0x358] sm:$0xff] %vm662_vm1, %v3769_v57  ;;  %4138 = vrot.lane.b32.xlu0 %v8931_v10, %s9999_s7  ;;  %v8936_v57 = vld [vmem:[%s10091_s5 + $0x519] sm:$0xff] }
 0x4e8   : > { %4140 = vrot.lane.b32.xlu1 %v8932_v52, %s9999_s7 }
 0x4e9   : > { %v3771_v34 = vpop.permute.xlu0 %3770 }
 0x4ea   : > { %3918 = vst.msk [vmem:[#allocation2 + $0x360] sm:$0xff] %vm662_vm1, %v3771_v34  ;;  %v3773_v15 = vpop.permute.xlu1 %3772 }
 0x4eb   : > { %3919 = vst.msk [vmem:[#allocation2 + $0x368] sm:$0xff] %vm662_vm1, %v3773_v15  ;;  %4142 = vrot.lane.b32.xlu0 %v8933_v35, %s9999_s7  ;;  %v8937_v35 = vld [vmem:[%s10091_s5 + $0x529] sm:$0xff]  ;;  %v8938_v15 = vld [vmem:[%s10091_s5 + $0x531] sm:$0xff] }
 0x4ec   : > { %4144 = vrot.lane.b32.xlu1 %v8934_v4, %s9999_s7 }
 0x4ed   : > { %v3775_v60 = vpop.permute.xlu0 %3774 }
 0x4ee   : > { %3920 = vst.msk [vmem:[#allocation2 + $0x370] sm:$0xff] %vm662_vm1, %v3775_v60  ;;  %v3777_v10 = vpop.permute.xlu1 %3776  ;;  %v12764_v52 = vpop.f32.mrb[0].mxu0 }
 0x4ef   : > { %14673 = vst [vmem:[#allocation10_spill] sm:$0xff] %v12764_v52  ;;  %3921 = vst.msk [vmem:[#allocation2 + $0x378] sm:$0xff] %vm662_vm1, %v3777_v10  ;;  %4146 = vrot.lane.b32.xlu0 %v8935_v33, %s9999_s7  ;;  %v12768_v34 = vpop.f32.mrb[1].mxu0  ;;  %v8939_v33 = vld [vmem:[%s10091_s5 + $0x541] sm:$0xff] }
 0x4f0   : > { %14674 = vst [vmem:[#allocation11_spill] sm:$0xff] %v12768_v34  ;;  %4148 = vrot.lane.b32.xlu1 %v8936_v57, %s9999_s7  ;;  %v8940_v34 = vld [vmem:[%s10091_s5 + $0x549] sm:$0xff] }
 0x4f1   : > { %v3779_v4 = vpop.permute.xlu0 %3778 }
 0x4f2   : > { %3922 = vst.msk [vmem:[#allocation2 + $0x380] sm:$0xff] %vm662_vm1, %v3779_v4  ;;  %v3781_v18 = vpop.permute.xlu1 %3780  ;;  %v12774_v60 = vpop.f32.mrb[2].mxu0 }
 0x4f3   : > { %14675 = vst [vmem:[#allocation12_spill] sm:$0xff] %v12774_v60  ;;  %3923 = vst.msk [vmem:[#allocation2 + $0x388] sm:$0xff] %vm662_vm1, %v3781_v18  ;;  %4150 = vrot.lane.b32.xlu0 %v8937_v35, %s9999_s7  ;;  %v12778_v10 = vpop.f32.mrb[3].mxu0  ;;  %v8941_v35 = vld [vmem:[%s10091_s5 + $0x559] sm:$0xff] }
 0x4f4   : > { %14676 = vst [vmem:[#allocation13_spill] sm:$0xff] %v12778_v10  ;;  %4152 = vrot.lane.b32.xlu1 %v8938_v15, %s9999_s7  ;;  %v8942_v10 = vld [vmem:[%s10091_s5 + $0x561] sm:$0xff] }
 0x4f5   : > { %v3783_v57 = vpop.permute.xlu0 %3782 }
 0x4f6   : > { %3924 = vst.msk [vmem:[#allocation2 + $0x390] sm:$0xff] %vm662_vm1, %v3783_v57  ;;  %v3785_v52 = vpop.permute.xlu1 %3784  ;;  %v12784_v4 = vpop.f32.mrb[4].mxu0 }
 0x4f7   : > { %14677 = vst [vmem:[#allocation14_spill] sm:$0xff] %v12784_v4  ;;  %3925 = vst.msk [vmem:[#allocation2 + $0x398] sm:$0xff] %vm662_vm1, %v3785_v52  ;;  %4154 = vrot.lane.b32.xlu0 %v8939_v33, %s9999_s7  ;;  %v12788_v18 = vpop.f32.mrb[5].mxu0  ;;  %v8943_v33 = vld [vmem:[%s10091_s5 + $0x571] sm:$0xff] }
 0x4f8   : > { %14678 = vst [vmem:[#allocation15_spill] sm:$0xff] %v12788_v18  ;;  %4156 = vrot.lane.b32.xlu1 %v8940_v34, %s9999_s7  ;;  %v8944_v18 = vld [vmem:[%s10091_s5 + $0x579] sm:$0xff] }
 0x4f9   : > { %v3787_v15 = vpop.permute.xlu0 %3786 }
 0x4fa   : > { %3926 = vst.msk [vmem:[#allocation2 + $0x3a0] sm:$0xff] %vm662_vm1, %v3787_v15  ;;  %v3789_v60 = vpop.permute.xlu1 %3788  ;;  %v12794_v57 = vpop.f32.mrb[6].mxu0 }
 0x4fb   : > { %14679 = vst [vmem:[#allocation16_spill] sm:$0xff] %v12794_v57  ;;  %3927 = vst.msk [vmem:[#allocation2 + $0x3a8] sm:$0xff] %vm662_vm1, %v3789_v60  ;;  %4158 = vrot.lane.b32.xlu0 %v8941_v35, %s9999_s7  ;;  %v12798_v52 = vpop.f32.mrb[7].mxu0  ;;  %v8945_v35 = vld [vmem:[%s10091_s5 + $0x589] sm:$0xff] }
 0x4fc   : > { %14680 = vst [vmem:[#allocation17_spill] sm:$0xff] %v12798_v52  ;;  %4160 = vrot.lane.b32.xlu1 %v8942_v10, %s9999_s7  ;;  %v8946_v52 = vld [vmem:[%s10091_s5 + $0x591] sm:$0xff] }
 0x4fd   : > { %v3791_v34 = vpop.permute.xlu0 %3790 }
 0x4fe   : > { %3928 = vst.msk [vmem:[#allocation2 + $0x3b0] sm:$0xff] %vm662_vm1, %v3791_v34  ;;  %v3793_v4 = vpop.permute.xlu1 %3792  ;;  %v12804_v15 = vpop.f32.mrb[8].mxu0 }
 0x4ff   : > { %14681 = vst [vmem:[#allocation27_spill] sm:$0xff] %v12804_v15  ;;  %3929 = vst.msk [vmem:[#allocation2 + $0x3b8] sm:$0xff] %vm662_vm1, %v3793_v4  ;;  %4162 = vrot.lane.b32.xlu0 %v8943_v33, %s9999_s7  ;;  %v12808_v60 = vpop.f32.mrb[9].mxu0  ;;  %v8947_v33 = vld [vmem:[%s10091_s5 + $0x5a1] sm:$0xff] }
 0x500   : > { %14682 = vst [vmem:[#allocation28_spill] sm:$0xff] %v12808_v60  ;;  %4164 = vrot.lane.b32.xlu1 %v8944_v18, %s9999_s7  ;;  %v8948_v60 = vld [vmem:[%s10091_s5 + $0x5a9] sm:$0xff] }
 0x501   : > { %v3795_v10 = vpop.permute.xlu0 %3794 }
 0x502   : > { %3930 = vst.msk [vmem:[#allocation2 + $0x3c0] sm:$0xff] %vm662_vm1, %v3795_v10  ;;  %v3797_v57 = vpop.permute.xlu1 %3796  ;;  %v12814_v34 = vpop.f32.mrb[10].mxu0 }
 0x503   : > { %14683 = vst [vmem:[#allocation29_spill] sm:$0xff] %v12814_v34  ;;  %3931 = vst.msk [vmem:[#allocation2 + $0x3c8] sm:$0xff] %vm662_vm1, %v3797_v57  ;;  %4166 = vrot.lane.b32.xlu0 %v8945_v35, %s9999_s7  ;;  %v12818_v4 = vpop.f32.mrb[11].mxu0  ;;  %v8949_v35 = vld [vmem:[%s10091_s5 + $0x5b9] sm:$0xff] }
 0x504   : > { %14684 = vst [vmem:[#allocation30_spill] sm:$0xff] %v12818_v4  ;;  %4168 = vrot.lane.b32.xlu1 %v8946_v52, %s9999_s7  ;;  %v8950_v4 = vld [vmem:[%s10091_s5 + $0x5c1] sm:$0xff] }
 0x505   : > { %v3799_v18 = vpop.permute.xlu0 %3798 }
 0x506   : > { %3932 = vst.msk [vmem:[#allocation2 + $0x3d0] sm:$0xff] %vm662_vm1, %v3799_v18  ;;  %v3801_v15 = vpop.permute.xlu1 %3800  ;;  %v12824_v10 = vpop.f32.mrb[12].mxu0 }
 0x507   : > { %14685 = vst [vmem:[#allocation31_spill] sm:$0xff] %v12824_v10  ;;  %3933 = vst.msk [vmem:[#allocation2 + $0x3d8] sm:$0xff] %vm662_vm1, %v3801_v15  ;;  %4170 = vrot.lane.b32.xlu0 %v8947_v33, %s9999_s7  ;;  %v12828_v57 = vpop.f32.mrb[13].mxu0  ;;  %v8951_v33 = vld [vmem:[%s10091_s5 + $0x5d1] sm:$0xff] }
 0x508   : > { %14686 = vst [vmem:[#allocation32_spill] sm:$0xff] %v12828_v57  ;;  %4172 = vrot.lane.b32.xlu1 %v8948_v60, %s9999_s7  ;;  %v8952_v57 = vld [vmem:[%s10091_s5 + $0x5d9] sm:$0xff] }
 0x509   : > { %v3803_v52 = vpop.permute.xlu0 %3802 }
 0x50a   : > { %3934 = vst.msk [vmem:[#allocation2 + $0x3e0] sm:$0xff] %vm662_vm1, %v3803_v52  ;;  %v3805_v34 = vpop.permute.xlu1 %3804  ;;  %v12834_v18 = vpop.f32.mrb[14].mxu0 }
 0x50b   : > { %14687 = vst [vmem:[#allocation33_spill] sm:$0xff] %v12834_v18  ;;  %3935 = vst.msk [vmem:[#allocation2 + $0x3e8] sm:$0xff] %vm662_vm1, %v3805_v34  ;;  %4174 = vrot.lane.b32.xlu0 %v8949_v35, %s9999_s7  ;;  %v12838_v15 = vpop.f32.mrb[15].mxu0  ;;  %v8953_v35 = vld [vmem:[%s10091_s5 + $0x5e9] sm:$0xff] }
 0x50c   : > { %14688 = vst [vmem:[#allocation34_spill] sm:$0xff] %v12838_v15  ;;  %4176 = vrot.lane.b32.xlu1 %v8950_v4, %s9999_s7  ;;  %v8954_v15 = vld [vmem:[%s10091_s5 + $0x5f1] sm:$0xff] }
 0x50d   : > { %v3807_v60 = vpop.permute.xlu0 %3806 }
 0x50e   : > { %3936 = vst.msk [vmem:[#allocation2 + $0x3f0] sm:$0xff] %vm662_vm1, %v3807_v60  ;;  %v3809_v10 = vpop.permute.xlu1 %3808  ;;  %v12844_v52 = vpop.f32.mrb[16].mxu0 }
 0x50f   : > { %14689 = vst [vmem:[#allocation35_spill] sm:$0xff] %v12844_v52  ;;  %3937 = vst.msk [vmem:[#allocation2 + $0x3f8] sm:$0xff] %vm662_vm1, %v3809_v10  ;;  %4178 = vrot.lane.b32.xlu0 %v8951_v33, %s9999_s7  ;;  %v12848_v34 = vpop.f32.mrb[17].mxu0  ;;  %v8955_v33 = vld [vmem:[%s10091_s5 + $0x601] sm:$0xff] }
 0x510   : > { %14690 = vst [vmem:[#allocation36_spill] sm:$0xff] %v12848_v34  ;;  %4180 = vrot.lane.b32.xlu1 %v8952_v57, %s9999_s7  ;;  %v8956_v34 = vld [vmem:[%s10091_s5 + $0x609] sm:$0xff] }
 0x511   : > { %v4067_v4 = vpop.permute.xlu0 %4066 }
 0x512   : > { %4258 = vst.msk [vmem:[#allocation2 + $0x200] sm:$0xff] %vm1047_vm2, %v4067_v4  ;;  %v4069_v18 = vpop.permute.xlu1 %4068  ;;  %v12854_v60 = vpop.f32.mrb[18].mxu0 }
 0x513   : > { %14691 = vst [vmem:[#allocation37_spill] sm:$0xff] %v12854_v60  ;;  %4259 = vst.msk [vmem:[#allocation2 + $0x208] sm:$0xff] %vm1047_vm2, %v4069_v18  ;;  %4182 = vrot.lane.b32.xlu0 %v8953_v35, %s9999_s7  ;;  %v12858_v10 = vpop.f32.mrb[19].mxu0  ;;  %v8957_v35 = vld [vmem:[%s10091_s5 + $0x619] sm:$0xff]  ;;  %v8958_v60 = vld [vmem:[%s10091_s5 + $0x621] sm:$0xff] }
 0x514   : > { %14692 = vst [vmem:[#allocation38_spill] sm:$0xff] %v12858_v10  ;;  %4184 = vrot.lane.b32.xlu1 %v8954_v15, %s9999_s7 }
 0x515   : > { %v4071_v57 = vpop.permute.xlu0 %4070 }
 0x516   : > { %4260 = vst.msk [vmem:[#allocation2 + $0x210] sm:$0xff] %vm1047_vm2, %v4071_v57  ;;  %v4073_v52 = vpop.permute.xlu1 %4072  ;;  %v12864_v4 = vpop.f32.mrb[20].mxu0 }
 0x517   : > { %4261 = vst.msk [vmem:[#allocation2 + $0x218] sm:$0xff] %vm1047_vm2, %v4073_v52  ;;  %4186 = vrot.lane.b32.xlu0 %v8955_v33, %s9999_s7  ;;  %v12868_v18 = vpop.f32.mrb[21].mxu0 }
 0x518   : > { %4188 = vrot.lane.b32.xlu1 %v8956_v34, %s9999_s7 }
 0x519   : > { %v4075_v10 = vpop.permute.xlu0 %4074 }
 0x51a   : > { %4262 = vst.msk [vmem:[#allocation2 + $0x220] sm:$0xff] %vm1047_vm2, %v4075_v10  ;;  %v4077_v15 = vpop.permute.xlu1 %4076  ;;  %v12874_v40 = vpop.f32.mrb[22].mxu0  ;;  %v14696_v10 = vld [vmem:[#allocation18_spill] sm:$0xff] }
 0x51b   : > { %14693 = vst [vmem:[#allocation39_spill] sm:$0xff] %v12874_v40  ;;  %4263 = vst.msk [vmem:[#allocation2 + $0x228] sm:$0xff] %vm1047_vm2, %v4077_v15  ;;  %4190 = vrot.lane.b32.xlu0 %v8957_v35, %s9999_s7  ;;  %v12878_v57 = vpop.f32.mrb[23].mxu0  ;;  %v14698_v15 = vld [vmem:[#allocation19_spill] sm:$0xff] }
 0x51c   : > { %14694 = vst [vmem:[#allocation40_spill] sm:$0xff] %v12878_v57  ;;  %4192 = vrot.lane.b32.xlu1 %v8958_v60, %s9999_s7 }
 0x51d   : > { %v4079_v52 = vpop.permute.xlu0 %4078 }
 0x51e   : > { %4264 = vst.msk [vmem:[#allocation2 + $0x230] sm:$0xff] %vm1047_vm2, %v4079_v52  ;;  %v4081_v34 = vpop.permute.xlu1 %4080  ;;  %v12882_v33 = vpop.f32.mrb[24].mxu0  ;;  %v14699_v52 = vld [vmem:[#allocation20_spill] sm:$0xff] }
 0x51f   : > { %14695 = vst [vmem:[#allocation41_spill] sm:$0xff] %v12882_v33  ;;  %4265 = vst.msk [vmem:[#allocation2 + $0x238] sm:$0xff] %vm1047_vm2, %v4081_v34  ;;  %4450 = vrot.lane.b32.xlu0 %v14696_v10, %s10000_s8  ;;  %v12887_v40 = vpop.f32.mrb[25].mxu0  ;;  %v14701_v10 = vld [vmem:[#allocation21_spill] sm:$0xff] }
 0x520   : > { %14697 = vst [vmem:[#allocation18_spill] sm:$0xff] %v12887_v40  ;;  %4452 = vrot.lane.b32.xlu1 %v14698_v15, %s10000_s8 }
 0x521   : > { %v4083_v35 = vpop.permute.xlu0 %4082 }
 0x522   : > { %4266 = vst.msk [vmem:[#allocation2 + $0x240] sm:$0xff] %vm1047_vm2, %v4083_v35  ;;  %v4085_v60 = vpop.permute.xlu1 %4084  ;;  %v12892_v57 = vpop.f32.mrb[26].mxu0  ;;  %v14702_v35 = vld [vmem:[#allocation22_spill] sm:$0xff] }
 0x523   : > { %4267 = vst.msk [vmem:[#allocation2 + $0x248] sm:$0xff] %vm1047_vm2, %v4085_v60  ;;  %4454 = vrot.lane.b32.xlu0 %v14699_v52, %s10000_s8  ;;  %v12897_v34 = vpop.f32.mrb[27].mxu0 }
 0x524   : > { %14700 = vst [vmem:[#allocation19_spill] sm:$0xff] %v12897_v34  ;;  %4456 = vrot.lane.b32.xlu1 %v14701_v10, %s10000_s8 }
 0x525   : > { %v4087_v40 = vpop.permute.xlu0 %4086 }
 0x526   : > { %4268 = vst.msk [vmem:[#allocation2 + $0x250] sm:$0xff] %vm1047_vm2, %v4087_v40  ;;  %v4089_v15 = vpop.permute.xlu1 %4088  ;;  %v12902_v33 = vpop.f32.mrb[28].mxu0  ;;  %v14704_v40 = vld [vmem:[#allocation23_spill] sm:$0xff] }
 0x527   : > { %4269 = vst.msk [vmem:[#allocation2 + $0x258] sm:$0xff] %vm1047_vm2, %v4089_v15  ;;  %4458 = vrot.lane.b32.xlu0 %v14702_v35, %s10000_s8  ;;  %v12907_v60 = vpop.f32.mrb[29].mxu0 }
 0x528   : > { %14703 = vst [vmem:[#allocation20_spill] sm:$0xff] %v12907_v60  ;;  %4460 = vrot.lane.b32.xlu1 %v12105_v55, %s10000_s8 }
 0x529   : > { %v4091_v52 = vpop.permute.xlu0 %4090 }
 0x52a   : > { %4270 = vst.msk [vmem:[#allocation2 + $0x260] sm:$0xff] %vm1047_vm2, %v4091_v52  ;;  %v4093_v10 = vpop.permute.xlu1 %4092  ;;  %v12912_v34 = vpop.f32.mrb[30].mxu0 }
 0x52b   : > { %4271 = vst.msk [vmem:[#allocation2 + $0x268] sm:$0xff] %vm1047_vm2, %v4093_v10  ;;  %4462 = vrot.lane.b32.xlu0 %v14704_v40, %s10000_s8  ;;  %v12917_v15 = vpop.f32.mrb[31].mxu0 }
 0x52c   : > { %4464 = vrot.lane.b32.xlu1 %v12123_v24, %s10000_s8 }
 0x52d   : > { %v4095_v35 = vpop.permute.xlu0 %4094 }
 0x52e   : > { %4272 = vst.msk [vmem:[#allocation2 + $0x270] sm:$0xff] %vm1047_vm2, %v4095_v35  ;;  %v4097_v55 = vpop.permute.xlu1 %4096  ;;  %v12922_v60 = vpop.f32.mrb[32].mxu0 }
 0x52f   : > { %4273 = vst.msk [vmem:[#allocation2 + $0x278] sm:$0xff] %vm1047_vm2, %v4097_v55  ;;  %4466 = vrot.lane.b32.xlu0 %v12134_v43, %s10000_s8  ;;  %v12927_v52 = vpop.f32.mrb[33].mxu0 }
 0x530   : > { %14705 = vst [vmem:[#allocation21_spill] sm:$0xff] %v12927_v52  ;;  %4468 = vrot.lane.b32.xlu1 %v12139_v51, %s10000_s8 }
 0x531   : > { %v4099_v10 = vpop.permute.xlu0 %4098 }
 0x532   : > { %4274 = vst.msk [vmem:[#allocation2 + $0x280] sm:$0xff] %vm1047_vm2, %v4099_v10  ;;  %v4101_v24 = vpop.permute.xlu1 %4100  ;;  %v12932_v40 = vpop.f32.mrb[34].mxu0 }
 0x533   : > { %14706 = vst [vmem:[#allocation22_spill] sm:$0xff] %v12932_v40  ;;  %4275 = vst.msk [vmem:[#allocation2 + $0x288] sm:$0xff] %vm1047_vm2, %v4101_v24  ;;  %4470 = vrot.lane.b32.xlu0 %v12152_v58, %s10000_s8  ;;  %v12937_v35 = vpop.f32.mrb[35].mxu0 }
 0x534   : > { %14707 = vst [vmem:[#allocation23_spill] sm:$0xff] %v12937_v35  ;;  %4472 = vrot.lane.b32.xlu1 %v12157_v12, %s10000_s8  ;;  %v9151_v35 = vld [vmem:[%s10091_s5 + $0x360] sm:$0xff] }
 0x535   : > { %v4103_v43 = vpop.permute.xlu0 %4102 }
 0x536   : > { %4276 = vst.msk [vmem:[#allocation2 + $0x290] sm:$0xff] %vm1047_vm2, %v4103_v43  ;;  %v4105_v51 = vpop.permute.xlu1 %4104  ;;  %v12942_v55 = vpop.f32.mrb[36].mxu0 }
 0x537   : > { %14708 = vst [vmem:[#allocation42_spill] sm:$0xff] %v12942_v55  ;;  %4277 = vst.msk [vmem:[#allocation2 + $0x298] sm:$0xff] %vm1047_vm2, %v4105_v51  ;;  %4474 = vrot.lane.b32.xlu0 %v12170_v25, %s10000_s8  ;;  %v12947_v10 = vpop.f32.mrb[37].mxu0 }
 0x538   : > { %14709 = vst [vmem:[#allocation43_spill] sm:$0xff] %v12947_v10  ;;  %4476 = vrot.lane.b32.xlu1 %v12175_v28, %s10000_s8  ;;  %v13607_v10 = vld [vmem:[%s10091_s5 + $0x519] sm:$0xff] }
 0x539   : > { %v4107_v58 = vpop.permute.xlu0 %4106 }
 0x53a   : > { %4278 = vst.msk [vmem:[#allocation2 + $0x2a0] sm:$0xff] %vm1047_vm2, %v4107_v58  ;;  %v4109_v12 = vpop.permute.xlu1 %4108  ;;  %v12952_v24 = vpop.f32.mrb[38].mxu0 }
 0x53b   : > { %14710 = vst [vmem:[#allocation44_spill] sm:$0xff] %v12952_v24  ;;  %4279 = vst.msk [vmem:[#allocation2 + $0x2a8] sm:$0xff] %vm1047_vm2, %v4109_v12  ;;  %4478 = vrot.lane.b32.xlu0 %v12188_v31, %s10000_s8  ;;  %v12957_v43 = vpop.f32.mrb[39].mxu0 }
 0x53c   : > { %14711 = vst [vmem:[#allocation45_spill] sm:$0xff] %v12957_v43  ;;  %4480 = vrot.lane.b32.xlu1 %v12193_v23, %s10000_s8  ;;  %v13595_v43 = vld [vmem:[%s10091_s5 + $0x501] sm:$0xff] }
 0x53d   : > { %v4111_v25 = vpop.permute.xlu0 %4110 }
 0x53e   : > { %4280 = vst.msk [vmem:[#allocation2 + $0x2b0] sm:$0xff] %vm1047_vm2, %v4111_v25  ;;  %v4113_v28 = vpop.permute.xlu1 %4112  ;;  %v12962_v51 = vpop.f32.mrb[40].mxu0 }
 0x53f   : > { %14712 = vst [vmem:[#allocation46_spill] sm:$0xff] %v12962_v51  ;;  %4281 = vst.msk [vmem:[#allocation2 + $0x2b8] sm:$0xff] %vm1047_vm2, %v4113_v28  ;;  %4482 = vrot.lane.b32.xlu0 %v12206_v36, %s10000_s8  ;;  %v12967_v58 = vpop.f32.mrb[41].mxu0 }
 0x540   : > { %14713 = vst [vmem:[#allocation47_spill] sm:$0xff] %v12967_v58  ;;  %4484 = vrot.lane.b32.xlu1 %v12211_v7, %s10000_s8  ;;  %v13583_v58 = vld [vmem:[%s10091_s5 + $0x4e9] sm:$0xff] }
 0x541   : > { %v4115_v31 = vpop.permute.xlu0 %4114 }
 0x542   : > { %4282 = vst.msk [vmem:[#allocation2 + $0x2c0] sm:$0xff] %vm1047_vm2, %v4115_v31  ;;  %v4117_v23 = vpop.permute.xlu1 %4116  ;;  %v12972_v12 = vpop.f32.mrb[42].mxu0 }
 0x543   : > { %14714 = vst [vmem:[#allocation48_spill] sm:$0xff] %v12972_v12  ;;  %4283 = vst.msk [vmem:[#allocation2 + $0x2c8] sm:$0xff] %vm1047_vm2, %v4117_v23  ;;  %4486 = vrot.lane.b32.xlu0 %v12224_v41, %s10000_s8  ;;  %v12977_v25 = vpop.f32.mrb[43].mxu0 }
 0x544   : > { %14715 = vst [vmem:[#allocation49_spill] sm:$0xff] %v12977_v25  ;;  %4488 = vrot.lane.b32.xlu1 %v12229_v6, %s10000_s8  ;;  %v13571_v25 = vld [vmem:[%s10091_s5 + $0x4d1] sm:$0xff] }
 0x545   : > { %v4119_v36 = vpop.permute.xlu0 %4118 }
 0x546   : > { %4284 = vst.msk [vmem:[#allocation2 + $0x2d0] sm:$0xff] %vm1047_vm2, %v4119_v36  ;;  %v4121_v7 = vpop.permute.xlu1 %4120  ;;  %v12982_v28 = vpop.f32.mrb[44].mxu0 }
 0x547   : > { %14716 = vst [vmem:[#allocation50_spill] sm:$0xff] %v12982_v28  ;;  %4285 = vst.msk [vmem:[#allocation2 + $0x2d8] sm:$0xff] %vm1047_vm2, %v4121_v7  ;;  %4490 = vrot.lane.b32.xlu0 %v12242_v47, %s10000_s8  ;;  %v12987_v31 = vpop.f32.mrb[45].mxu0 }
 0x548   : > { %14717 = vst [vmem:[#allocation51_spill] sm:$0xff] %v12987_v31  ;;  %4492 = vrot.lane.b32.xlu1 %v12247_v46, %s10000_s8  ;;  %v13559_v31 = vld [vmem:[%s10091_s5 + $0x4b9] sm:$0xff] }
 0x549   : > { %v4123_v41 = vpop.permute.xlu0 %4122 }
 0x54a   : > { %4286 = vst.msk [vmem:[#allocation2 + $0x2e0] sm:$0xff] %vm1047_vm2, %v4123_v41  ;;  %v4125_v6 = vpop.permute.xlu1 %4124  ;;  %v12992_v23 = vpop.f32.mrb[46].mxu0 }
 0x54b   : > { %14718 = vst [vmem:[#allocation52_spill] sm:$0xff] %v12992_v23  ;;  %4287 = vst.msk [vmem:[#allocation2 + $0x2e8] sm:$0xff] %vm1047_vm2, %v4125_v6  ;;  %4494 = vrot.lane.b32.xlu0 %v12260_v53, %s10000_s8  ;;  %v12997_v36 = vpop.f32.mrb[47].mxu0 }
 0x54c   : > { %14719 = vst [vmem:[#allocation53_spill] sm:$0xff] %v12997_v36  ;;  %4496 = vrot.lane.b32.xlu1 %v12265_v9, %s10000_s8  ;;  %v13547_v36 = vld [vmem:[%s10091_s5 + $0x4a1] sm:$0xff] }
 0x54d   : > { %v4127_v47 = vpop.permute.xlu0 %4126 }
 0x54e   : > { %4288 = vst.msk [vmem:[#allocation2 + $0x2f0] sm:$0xff] %vm1047_vm2, %v4127_v47  ;;  %v4129_v46 = vpop.permute.xlu1 %4128  ;;  %v13002_v7 = vpop.f32.mrb[48].mxu0 }
 0x54f   : > { %14720 = vst [vmem:[#allocation54_spill] sm:$0xff] %v13002_v7  ;;  %4289 = vst.msk [vmem:[#allocation2 + $0x2f8] sm:$0xff] %vm1047_vm2, %v4129_v46  ;;  %4498 = vrot.lane.b32.xlu0 %v12278_v61, %s10000_s8  ;;  %v13007_v41 = vpop.f32.mrb[49].mxu0 }
 0x550   : > { %14721 = vst [vmem:[#allocation55_spill] sm:$0xff] %v13007_v41  ;;  %4500 = vrot.lane.b32.xlu1 %v12283_v26, %s10000_s8  ;;  %v13535_v41 = vld [vmem:[%s10091_s5 + $0x489] sm:$0xff] }
 0x551   : > { %v4131_v53 = vpop.permute.xlu0 %4130 }
 0x552   : > { %4290 = vst.msk [vmem:[#allocation2 + $0x300] sm:$0xff] %vm1047_vm2, %v4131_v53  ;;  %v4133_v9 = vpop.permute.xlu1 %4132  ;;  %v13012_v6 = vpop.f32.mrb[50].mxu0 }
 0x553   : > { %14722 = vst [vmem:[#allocation56_spill] sm:$0xff] %v13012_v6  ;;  %4291 = vst.msk [vmem:[#allocation2 + $0x308] sm:$0xff] %vm1047_vm2, %v4133_v9  ;;  %4502 = vrot.lane.b32.xlu0 %v12296_v5, %s10000_s8  ;;  %v13017_v47 = vpop.f32.mrb[51].mxu0 }
 0x554   : > { %14723 = vst [vmem:[#allocation57_spill] sm:$0xff] %v13017_v47  ;;  %4504 = vrot.lane.b32.xlu1 %v12301_v32, %s10000_s8  ;;  %v13523_v47 = vld [vmem:[%s10091_s5 + $0x471] sm:$0xff] }
 0x555   : > { %v4135_v61 = vpop.permute.xlu0 %4134 }
 0x556   : > { %4292 = vst.msk [vmem:[#allocation2 + $0x310] sm:$0xff] %vm1047_vm2, %v4135_v61  ;;  %v4137_v26 = vpop.permute.xlu1 %4136  ;;  %v13022_v46 = vpop.f32.mrb[52].mxu0 }
 0x557   : > { %14724 = vst [vmem:[#allocation58_spill] sm:$0xff] %v13022_v46  ;;  %4293 = vst.msk [vmem:[#allocation2 + $0x318] sm:$0xff] %vm1047_vm2, %v4137_v26  ;;  %4506 = vrot.lane.b32.xlu0 %v12314_v14, %s10000_s8  ;;  %v13027_v53 = vpop.f32.mrb[53].mxu0 }
 0x558   : > { %14725 = vst [vmem:[#allocation59_spill] sm:$0xff] %v13027_v53  ;;  %4508 = vrot.lane.b32.xlu1 %v12319_v38, %s10000_s8  ;;  %v13511_v53 = vld [vmem:[%s10091_s5 + $0x459] sm:$0xff] }
 0x559   : > { %v4139_v5 = vpop.permute.xlu0 %4138 }
 0x55a   : > { %4294 = vst.msk [vmem:[#allocation2 + $0x320] sm:$0xff] %vm1047_vm2, %v4139_v5  ;;  %v4141_v32 = vpop.permute.xlu1 %4140  ;;  %v13032_v9 = vpop.f32.mrb[54].mxu0 }
 0x55b   : > { %14726 = vst [vmem:[#allocation60_spill] sm:$0xff] %v13032_v9  ;;  %4295 = vst.msk [vmem:[#allocation2 + $0x328] sm:$0xff] %vm1047_vm2, %v4141_v32  ;;  %4510 = vrot.lane.b32.xlu0 %v12332_v37, %s10000_s8  ;;  %v13037_v61 = vpop.f32.mrb[55].mxu0 }
 0x55c   : > { %14727 = vst [vmem:[#allocation61_spill] sm:$0xff] %v13037_v61  ;;  %4512 = vrot.lane.b32.xlu1 %v12337_v42, %s10000_s8  ;;  %v13499_v61 = vld [vmem:[%s10091_s5 + $0x441] sm:$0xff] }
 0x55d   : > { %v4143_v14 = vpop.permute.xlu0 %4142 }
 0x55e   : > { %4296 = vst.msk [vmem:[#allocation2 + $0x330] sm:$0xff] %vm1047_vm2, %v4143_v14  ;;  %v4145_v38 = vpop.permute.xlu1 %4144  ;;  %v13042_v26 = vpop.f32.mrb[56].mxu0 }
 0x55f   : > { %14728 = vst [vmem:[#allocation62_spill] sm:$0xff] %v13042_v26  ;;  %4297 = vst.msk [vmem:[#allocation2 + $0x338] sm:$0xff] %vm1047_vm2, %v4145_v38  ;;  %4514 = vrot.lane.b32.xlu0 %v12350_v59, %s10000_s8  ;;  %v13047_v5 = vpop.f32.mrb[57].mxu0 }
 0x560   : > { %14729 = vst [vmem:[#allocation63_spill] sm:$0xff] %v13047_v5  ;;  %4516 = vrot.lane.b32.xlu1 %v12355_v48, %s10000_s8  ;;  %v13487_v5 = vld [vmem:[%s10091_s5 + $0x429] sm:$0xff] }
 0x561   : > { %v4147_v37 = vpop.permute.xlu0 %4146 }
 0x562   : > { %4298 = vst.msk [vmem:[#allocation2 + $0x340] sm:$0xff] %vm1047_vm2, %v4147_v37  ;;  %v4149_v42 = vpop.permute.xlu1 %4148  ;;  %v13052_v32 = vpop.f32.mrb[58].mxu0 }
 0x563   : > { %14730 = vst [vmem:[#allocation64_spill] sm:$0xff] %v13052_v32  ;;  %4299 = vst.msk [vmem:[#allocation2 + $0x348] sm:$0xff] %vm1047_vm2, %v4149_v42  ;;  %4518 = vrot.lane.b32.xlu0 %v12368_v11, %s10000_s8  ;;  %v13057_v14 = vpop.f32.mrb[59].mxu0 }
 0x564   : > { %14731 = vst [vmem:[#allocation65_spill] sm:$0xff] %v13057_v14  ;;  %4520 = vrot.lane.b32.xlu1 %v12373_v56, %s10000_s8  ;;  %v13475_v14 = vld [vmem:[%s10091_s5 + $0x411] sm:$0xff] }
 0x565   : > { %v4151_v59 = vpop.permute.xlu0 %4150 }
 0x566   : > { %4300 = vst.msk [vmem:[#allocation2 + $0x350] sm:$0xff] %vm1047_vm2, %v4151_v59  ;;  %v4153_v48 = vpop.permute.xlu1 %4152  ;;  %v13062_v38 = vpop.f32.mrb[60].mxu0 }
 0x567   : > { %14732 = vst [vmem:[#allocation66_spill] sm:$0xff] %v13062_v38  ;;  %4301 = vst.msk [vmem:[#allocation2 + $0x358] sm:$0xff] %vm1047_vm2, %v4153_v48  ;;  %4522 = vrot.lane.b32.xlu0 %v12386_v29, %s10000_s8  ;;  %v13067_v37 = vpop.f32.mrb[61].mxu0 }
 0x568   : > { %14733 = vst [vmem:[#allocation67_spill] sm:$0xff] %v13067_v37  ;;  %4524 = vrot.lane.b32.xlu1 %v12391_v0, %s10000_s8  ;;  %v13463_v37 = vld [vmem:[%s10091_s5 + $0x3f9] sm:$0xff] }
 0x569   : > { %v4155_v11 = vpop.permute.xlu0 %4154 }
 0x56a   : > { %4302 = vst.msk [vmem:[#allocation2 + $0x360] sm:$0xff] %vm1047_vm2, %v4155_v11  ;;  %v4157_v56 = vpop.permute.xlu1 %4156  ;;  %v13072_v42 = vpop.f32.mrb[62].mxu0 }
 0x56b   : > { %14734 = vst [vmem:[#allocation68_spill] sm:$0xff] %v13072_v42  ;;  %4303 = vst.msk [vmem:[#allocation2 + $0x368] sm:$0xff] %vm1047_vm2, %v4157_v56  ;;  %4526 = vrot.lane.b32.xlu0 %v12404_v44, %s10000_s8  ;;  %v13077_v59 = vpop.f32.mrb[63].mxu0  ;;  %v14738_v56 = vld [vmem:[#allocation26_spill] sm:$0xff] }
 0x56c   : > { %14735 = vst [vmem:[#allocation69_spill] sm:$0xff] %v13077_v59  ;;  %4528 = vrot.lane.b32.xlu1 %v12409_v8, %s10000_s8  ;;  %v13451_v59 = vld [vmem:[%s10091_s5 + $0x3e1] sm:$0xff] }
 0x56d   : > { %v4159_v29 = vpop.permute.xlu0 %4158 }
 0x56e   : > { %4304 = vst.msk [vmem:[#allocation2 + $0x370] sm:$0xff] %vm1047_vm2, %v4159_v29  ;;  %v4161_v0 = vpop.permute.xlu1 %4160  ;;  %v9021_v29 = vld [vmem:[%s10091_s5 + $0x630] sm:$0xff] }
 0x56f   : > { %4305 = vst.msk [vmem:[#allocation2 + $0x378] sm:$0xff] %vm1047_vm2, %v4161_v0  ;;  %4530 = vrot.lane.b32.xlu0 %v12422_v62, %s10000_s8  ;;  %v9022_v0 = vld [vmem:[%s10091_s5 + $0x638] sm:$0xff] }
 0x570   : > { %4532 = vrot.lane.b32.xlu1 %v12427_v21, %s10000_s8 }
 0x571   : > { %v4163_v48 = vpop.permute.xlu0 %4162 }
 0x572   : > { %4306 = vst.msk [vmem:[#allocation2 + $0x380] sm:$0xff] %vm1047_vm2, %v4163_v48  ;;  %v4165_v44 = vpop.permute.xlu1 %4164 }
 0x573   : > { %4307 = vst.msk [vmem:[#allocation2 + $0x388] sm:$0xff] %vm1047_vm2, %v4165_v44  ;;  %4534 = vrot.lane.b32.xlu0 %v12440_v19, %s10000_s8  ;;  %v9023_v44 = vld [vmem:[%s10091_s5 + $0x19] sm:$0xff] }
 0x574   : > { %4536 = vrot.lane.b32.xlu1 %v12445_v50, %s10000_s8 }
 0x575   : > { %v4167_v8 = vpop.permute.xlu0 %4166 }
 0x576   : > { %4308 = vst.msk [vmem:[#allocation2 + $0x390] sm:$0xff] %vm1047_vm2, %v4167_v8  ;;  %v4169_v11 = vpop.permute.xlu1 %4168 }
 0x577   : > { %4309 = vst.msk [vmem:[#allocation2 + $0x398] sm:$0xff] %vm1047_vm2, %v4169_v11  ;;  %4538 = vrot.lane.b32.xlu0 %v12458_v27, %s10000_s8  ;;  %v9024_v11 = vld [vmem:[%s10091_s5 + $0x21] sm:$0xff] }
 0x578   : > { %4540 = vrot.lane.b32.xlu1 %v12463_v2, %s10000_s8 }
 0x579   : > { %v4171_v62 = vpop.permute.xlu0 %4170 }
 0x57a   : > { %4310 = vst.msk [vmem:[#allocation2 + $0x3a0] sm:$0xff] %vm1047_vm2, %v4171_v62  ;;  %v4173_v21 = vpop.permute.xlu1 %4172 }
 0x57b   : > { %4311 = vst.msk [vmem:[#allocation2 + $0x3a8] sm:$0xff] %vm1047_vm2, %v4173_v21  ;;  %4542 = vrot.lane.b32.xlu0 %v12476_v39, %s10000_s8  ;;  %v13160_v21 = vld [vmem:[%s10091_s5 + $0x31] sm:$0xff] }
 0x57c   : > { %4544 = vrot.lane.b32.xlu1 %v12481_v63, %s10000_s8 }
 0x57d   : > { %v4175_v19 = vpop.permute.xlu0 %4174 }
 0x57e   : > { %4312 = vst.msk [vmem:[#allocation2 + $0x3b0] sm:$0xff] %vm1047_vm2, %v4175_v19  ;;  %v4177_v50 = vpop.permute.xlu1 %4176 }
 0x57f   : > { %4313 = vst.msk [vmem:[#allocation2 + $0x3b8] sm:$0xff] %vm1047_vm2, %v4177_v50  ;;  %4546 = vrot.lane.b32.xlu0 %v12494_v49, %s10000_s8  ;;  %v13163_v50 = vld [vmem:[%s10091_s5 + $0x39] sm:$0xff] }
 0x580   : > { %4548 = vrot.lane.b32.xlu1 %v12499_v16, %s10000_s8 }
 0x581   : > { %v4179_v27 = vpop.permute.xlu0 %4178 }
 0x582   : > { %4314 = vst.msk [vmem:[#allocation2 + $0x3c0] sm:$0xff] %vm1047_vm2, %v4179_v27  ;;  %v4181_v2 = vpop.permute.xlu1 %4180 }
 0x583   : > { %4315 = vst.msk [vmem:[#allocation2 + $0x3c8] sm:$0xff] %vm1047_vm2, %v4181_v2  ;;  %4550 = vrot.lane.b32.xlu0 %v12512_v1, %s10000_s8  ;;  %v13172_v2 = vld [vmem:[%s10091_s5 + $0x49] sm:$0xff] }
 0x584   : > { %4552 = vrot.lane.b32.xlu1 %v12517_v54, %s10000_s8 }
 0x585   : > { %v4183_v39 = vpop.permute.xlu0 %4182 }
 0x586   : > { %4316 = vst.msk [vmem:[#allocation2 + $0x3d0] sm:$0xff] %vm1047_vm2, %v4183_v39  ;;  %v4185_v63 = vpop.permute.xlu1 %4184 }
 0x587   : > { %4317 = vst.msk [vmem:[#allocation2 + $0x3d8] sm:$0xff] %vm1047_vm2, %v4185_v63  ;;  %4554 = vrot.lane.b32.xlu0 %v12530_v22, %s10000_s8  ;;  %v13175_v63 = vld [vmem:[%s10091_s5 + $0x51] sm:$0xff] }
 0x588   : > { %4556 = vrot.lane.b32.xlu1 %v12535_v13, %s10000_s8 }
 0x589   : > { %v4187_v49 = vpop.permute.xlu0 %4186 }
 0x58a   : > { %4318 = vst.msk [vmem:[#allocation2 + $0x3e0] sm:$0xff] %vm1047_vm2, %v4187_v49  ;;  %v4189_v16 = vpop.permute.xlu1 %4188 }
 0x58b   : > { %4319 = vst.msk [vmem:[#allocation2 + $0x3e8] sm:$0xff] %vm1047_vm2, %v4189_v16  ;;  %4558 = vrot.lane.b32.xlu0 %v12548_v3, %s10000_s8  ;;  %v14736_v3 = vld [vmem:[#allocation24_spill] sm:$0xff]  ;;  %v13184_v16 = vld [vmem:[%s10091_s5 + $0x61] sm:$0xff] }
 0x58c   : > { %4560 = vrot.lane.b32.xlu1 %v12553_v20, %s10000_s8 }
 0x58d   : > { %v4191_v1 = vpop.permute.xlu0 %4190 }
 0x58e   : > { %4320 = vst.msk [vmem:[#allocation2 + $0x3f0] sm:$0xff] %vm1047_vm2, %v4191_v1  ;;  %v4193_v54 = vpop.permute.xlu1 %4192 }
 0x58f   : > { %4321 = vst.msk [vmem:[#allocation2 + $0x3f8] sm:$0xff] %vm1047_vm2, %v4193_v54  ;;  %4562 = vrot.lane.b32.xlu0 %v12566_v45, %s10000_s8  ;;  %v13187_v54 = vld [vmem:[%s10091_s5 + $0x69] sm:$0xff] }
 0x590   : > { %4564 = vrot.lane.b32.xlu1 %v12571_v30, %s10000_s8  ;;  %v14737_v30 = vld [vmem:[#allocation25_spill] sm:$0xff] }
 0x591   : > { %v4451_v22 = vpop.permute.xlu0 %4450 }
 0x592   : > { %4642 = vst.msk [vmem:[#allocation2 + $0x200] sm:$0xff] %vm1433_vm3, %v4451_v22  ;;  %v4453_v13 = vpop.permute.xlu1 %4452 }
 0x593   : > { %4643 = vst.msk [vmem:[#allocation2 + $0x208] sm:$0xff] %vm1433_vm3, %v4453_v13  ;;  %4566 = vrot.lane.b32.xlu0 %v12584_v17, %s10000_s8  ;;  %v13196_v13 = vld [vmem:[%s10091_s5 + $0x79] sm:$0xff] }
 0x594   : > { %4568 = vrot.lane.b32.xlu1 %v14736_v3, %s10000_s8 }
 0x595   : > { %v4455_v20 = vpop.permute.xlu0 %4454 }
 0x596   : > { %4644 = vst.msk [vmem:[#allocation2 + $0x210] sm:$0xff] %vm1433_vm3, %v4455_v20  ;;  %v4457_v45 = vpop.permute.xlu1 %4456  ;;  %v13199_v20 = vld [vmem:[%s10091_s5 + $0x81] sm:$0xff] }
 0x597   : > { %4645 = vst.msk [vmem:[#allocation2 + $0x218] sm:$0xff] %vm1433_vm3, %v4457_v45  ;;  %4570 = vrot.lane.b32.xlu0 %v14737_v30, %s10000_s8  ;;  %v13208_v30 = vld [vmem:[%s10091_s5 + $0x91] sm:$0xff] }
 0x598   : > { %4572 = vrot.lane.b32.xlu1 %v14738_v56, %s10000_s8 }
 0x599   : > { %v4459_v17 = vpop.permute.xlu0 %4458 }
 0x59a   : > { %4646 = vst.msk [vmem:[#allocation2 + $0x220] sm:$0xff] %vm1433_vm3, %v4459_v17  ;;  %v4461_v48 = vpop.permute.xlu1 %4460 }
 0x59b   : > { %4647 = vst.msk [vmem:[#allocation2 + $0x228] sm:$0xff] %vm1433_vm3, %v4461_v48  ;;  %4574 = vrot.lane.b32.xlu0 %v9021_v29, %s10000_s8  ;;  %v13211_v29 = vld [vmem:[%s10091_s5 + $0x99] sm:$0xff] }
 0x59c   : > { %4576 = vrot.lane.b32.xlu1 %v9022_v0, %s10000_s8  ;;  %v13220_v0 = vld [vmem:[%s10091_s5 + $0xa9] sm:$0xff] }
 0x59d   : > { %v4463_v8 = vpop.permute.xlu0 %4462 }
 0x59e   : > { %4648 = vst.msk [vmem:[#allocation2 + $0x230] sm:$0xff] %vm1433_vm3, %v4463_v8  ;;  %v4465_v62 = vpop.permute.xlu1 %4464 }
 0x59f   : > { %4649 = vst.msk [vmem:[#allocation2 + $0x238] sm:$0xff] %vm1433_vm3, %v4465_v62  ;;  %4834 = vrot.lane.b32.xlu0 %v9023_v44, %s10001_s9  ;;  %v13223_v44 = vld [vmem:[%s10091_s5 + $0xb1] sm:$0xff] }
 0x5a0   : > { %4836 = vrot.lane.b32.xlu1 %v9024_v11, %s10001_s9  ;;  %v9037_v11 = vld [vmem:[%s10091_s5 + $0xc1] sm:$0xff] }
 0x5a1   : > { %v4467_v19 = vpop.permute.xlu0 %4466 }
 0x5a2   : > { %4650 = vst.msk [vmem:[#allocation2 + $0x240] sm:$0xff] %vm1433_vm3, %v4467_v19  ;;  %v4469_v27 = vpop.permute.xlu1 %4468  ;;  %v9038_v19 = vld [vmem:[%s10091_s5 + $0xc9] sm:$0xff] }
 0x5a3   : > { %4651 = vst.msk [vmem:[#allocation2 + $0x248] sm:$0xff] %vm1433_vm3, %v4469_v27  ;;  %4838 = vrot.lane.b32.xlu0 %v13160_v21, %s10001_s9 }
 0x5a4   : > { %4840 = vrot.lane.b32.xlu1 %v13163_v50, %s10001_s9 }
 0x5a5   : > { %v4471_v39 = vpop.permute.xlu0 %4470 }
 0x5a6   : > { %4652 = vst.msk [vmem:[#allocation2 + $0x250] sm:$0xff] %vm1433_vm3, %v4471_v39  ;;  %v4473_v49 = vpop.permute.xlu1 %4472  ;;  %v9039_v39 = vld [vmem:[%s10091_s5 + $0xd9] sm:$0xff] }
 0x5a7   : > { %4653 = vst.msk [vmem:[#allocation2 + $0x258] sm:$0xff] %vm1433_vm3, %v4473_v49  ;;  %4842 = vrot.lane.b32.xlu0 %v13172_v2, %s10001_s9 }
 0x5a8   : > { %4844 = vrot.lane.b32.xlu1 %v13175_v63, %s10001_s9 }
 0x5a9   : > { %v4475_v1 = vpop.permute.xlu0 %4474 }
 0x5aa   : > { %4654 = vst.msk [vmem:[#allocation2 + $0x260] sm:$0xff] %vm1433_vm3, %v4475_v1  ;;  %v4477_v22 = vpop.permute.xlu1 %4476  ;;  %v9040_v1 = vld [vmem:[%s10091_s5 + $0xe1] sm:$0xff] }
 0x5ab   : > { %4655 = vst.msk [vmem:[#allocation2 + $0x268] sm:$0xff] %vm1433_vm3, %v4477_v22  ;;  %4846 = vrot.lane.b32.xlu0 %v13184_v16, %s10001_s9 }
 0x5ac   : > { %4848 = vrot.lane.b32.xlu1 %v13187_v54, %s10001_s9 }
 0x5ad   : > { %v4479_v3 = vpop.permute.xlu0 %4478 }
 0x5ae   : > { %4656 = vst.msk [vmem:[#allocation2 + $0x270] sm:$0xff] %vm1433_vm3, %v4479_v3  ;;  %v4481_v45 = vpop.permute.xlu1 %4480  ;;  %v9041_v3 = vld [vmem:[%s10091_s5 + $0xf1] sm:$0xff] }
 0x5af   : > { %4657 = vst.msk [vmem:[#allocation2 + $0x278] sm:$0xff] %vm1433_vm3, %v4481_v45  ;;  %4850 = vrot.lane.b32.xlu0 %v13196_v13, %s10001_s9 }
 0x5b0   : > { %4852 = vrot.lane.b32.xlu1 %v13199_v20, %s10001_s9 }
 0x5b1   : > { %v4483_v56 = vpop.permute.xlu0 %4482 }
 0x5b2   : > { %4658 = vst.msk [vmem:[#allocation2 + $0x280] sm:$0xff] %vm1433_vm3, %v4483_v56  ;;  %v4485_v17 = vpop.permute.xlu1 %4484  ;;  %v9042_v56 = vld [vmem:[%s10091_s5 + $0xf9] sm:$0xff] }
 0x5b3   : > { %4659 = vst.msk [vmem:[#allocation2 + $0x288] sm:$0xff] %vm1433_vm3, %v4485_v17  ;;  %4854 = vrot.lane.b32.xlu0 %v13208_v30, %s10001_s9 }
 0x5b4   : > { %4856 = vrot.lane.b32.xlu1 %v13211_v29, %s10001_s9 }
 0x5b5   : > { %v4487_v48 = vpop.permute.xlu0 %4486 }
 0x5b6   : > { %4660 = vst.msk [vmem:[#allocation2 + $0x290] sm:$0xff] %vm1433_vm3, %v4487_v48  ;;  %v4489_v8 = vpop.permute.xlu1 %4488  ;;  %v9043_v48 = vld [vmem:[%s10091_s5 + $0x109] sm:$0xff] }
 0x5b7   : > { %4661 = vst.msk [vmem:[#allocation2 + $0x298] sm:$0xff] %vm1433_vm3, %v4489_v8  ;;  %4858 = vrot.lane.b32.xlu0 %v13220_v0, %s10001_s9 }
 0x5b8   : > { %4860 = vrot.lane.b32.xlu1 %v13223_v44, %s10001_s9 }
 0x5b9   : > { %v4491_v62 = vpop.permute.xlu0 %4490 }
 0x5ba   : > { %4662 = vst.msk [vmem:[#allocation2 + $0x2a0] sm:$0xff] %vm1433_vm3, %v4491_v62  ;;  %v4493_v27 = vpop.permute.xlu1 %4492 }
 0x5bb   : > { %4663 = vst.msk [vmem:[#allocation2 + $0x2a8] sm:$0xff] %vm1433_vm3, %v4493_v27  ;;  %4862 = vrot.lane.b32.xlu0 %v9037_v11, %s10001_s9  ;;  %v9044_v11 = vld [vmem:[%s10091_s5 + $0x111] sm:$0xff] }
 0x5bc   : > { %4864 = vrot.lane.b32.xlu1 %v9038_v19, %s10001_s9  ;;  %v9045_v19 = vld [vmem:[%s10091_s5 + $0x121] sm:$0xff] }
 0x5bd   : > { %v4495_v49 = vpop.permute.xlu0 %4494 }
 0x5be   : > { %4664 = vst.msk [vmem:[#allocation2 + $0x2b0] sm:$0xff] %vm1433_vm3, %v4495_v49  ;;  %v4497_v22 = vpop.permute.xlu1 %4496 }
 0x5bf   : > { %4665 = vst.msk [vmem:[#allocation2 + $0x2b8] sm:$0xff] %vm1433_vm3, %v4497_v22  ;;  %4866 = vrot.lane.b32.xlu0 %v9039_v39, %s10001_s9  ;;  %v9046_v39 = vld [vmem:[%s10091_s5 + $0x129] sm:$0xff] }
 0x5c0   : > { %4868 = vrot.lane.b32.xlu1 %v9040_v1, %s10001_s9  ;;  %v9047_v1 = vld [vmem:[%s10091_s5 + $0x139] sm:$0xff] }
 0x5c1   : > { %v4499_v45 = vpop.permute.xlu0 %4498 }
 0x5c2   : > { %4666 = vst.msk [vmem:[#allocation2 + $0x2c0] sm:$0xff] %vm1433_vm3, %v4499_v45  ;;  %v4501_v17 = vpop.permute.xlu1 %4500 }
 0x5c3   : > { %4667 = vst.msk [vmem:[#allocation2 + $0x2c8] sm:$0xff] %vm1433_vm3, %v4501_v17  ;;  %4870 = vrot.lane.b32.xlu0 %v9041_v3, %s10001_s9  ;;  %v9048_v3 = vld [vmem:[%s10091_s5 + $0x141] sm:$0xff] }
 0x5c4   : > { %4872 = vrot.lane.b32.xlu1 %v9042_v56, %s10001_s9  ;;  %v9049_v56 = vld [vmem:[%s10091_s5 + $0x151] sm:$0xff] }
 0x5c5   : > { %v4503_v8 = vpop.permute.xlu0 %4502 }
 0x5c6   : > { %4668 = vst.msk [vmem:[#allocation2 + $0x2d0] sm:$0xff] %vm1433_vm3, %v4503_v8  ;;  %v4505_v62 = vpop.permute.xlu1 %4504 }
 0x5c7   : > { %4669 = vst.msk [vmem:[#allocation2 + $0x2d8] sm:$0xff] %vm1433_vm3, %v4505_v62  ;;  %4874 = vrot.lane.b32.xlu0 %v9043_v48, %s10001_s9  ;;  %v9050_v48 = vld [vmem:[%s10091_s5 + $0x159] sm:$0xff] }
 0x5c8   : > { %4876 = vrot.lane.b32.xlu1 %v9044_v11, %s10001_s9  ;;  %v9051_v11 = vld [vmem:[%s10091_s5 + $0x169] sm:$0xff] }
 0x5c9   : > { %v4507_v27 = vpop.permute.xlu0 %4506 }
 0x5ca   : > { %4670 = vst.msk [vmem:[#allocation2 + $0x2e0] sm:$0xff] %vm1433_vm3, %v4507_v27  ;;  %v4509_v49 = vpop.permute.xlu1 %4508 }
 0x5cb   : > { %4671 = vst.msk [vmem:[#allocation2 + $0x2e8] sm:$0xff] %vm1433_vm3, %v4509_v49  ;;  %4878 = vrot.lane.b32.xlu0 %v9045_v19, %s10001_s9  ;;  %v9052_v19 = vld [vmem:[%s10091_s5 + $0x171] sm:$0xff] }
 0x5cc   : > { %4880 = vrot.lane.b32.xlu1 %v9046_v39, %s10001_s9  ;;  %v9053_v39 = vld [vmem:[%s10091_s5 + $0x181] sm:$0xff] }
 0x5cd   : > { %v4511_v22 = vpop.permute.xlu0 %4510 }
 0x5ce   : > { %4672 = vst.msk [vmem:[#allocation2 + $0x2f0] sm:$0xff] %vm1433_vm3, %v4511_v22  ;;  %v4513_v45 = vpop.permute.xlu1 %4512 }
 0x5cf   : > { %4673 = vst.msk [vmem:[#allocation2 + $0x2f8] sm:$0xff] %vm1433_vm3, %v4513_v45  ;;  %4882 = vrot.lane.b32.xlu0 %v9047_v1, %s10001_s9  ;;  %v9054_v1 = vld [vmem:[%s10091_s5 + $0x189] sm:$0xff] }
 0x5d0   : > { %4884 = vrot.lane.b32.xlu1 %v9048_v3, %s10001_s9  ;;  %v9055_v3 = vld [vmem:[%s10091_s5 + $0x199] sm:$0xff] }
 0x5d1   : > { %v4515_v17 = vpop.permute.xlu0 %4514 }
 0x5d2   : > { %4674 = vst.msk [vmem:[#allocation2 + $0x300] sm:$0xff] %vm1433_vm3, %v4515_v17  ;;  %v4517_v8 = vpop.permute.xlu1 %4516 }
 0x5d3   : > { %4675 = vst.msk [vmem:[#allocation2 + $0x308] sm:$0xff] %vm1433_vm3, %v4517_v8  ;;  %4886 = vrot.lane.b32.xlu0 %v9049_v56, %s10001_s9  ;;  %v9056_v56 = vld [vmem:[%s10091_s5 + $0x1a1] sm:$0xff] }
 0x5d4   : > { %4888 = vrot.lane.b32.xlu1 %v9050_v48, %s10001_s9  ;;  %v9057_v48 = vld [vmem:[%s10091_s5 + $0x1b1] sm:$0xff] }
 0x5d5   : > { %v4519_v62 = vpop.permute.xlu0 %4518 }
 0x5d6   : > { %4676 = vst.msk [vmem:[#allocation2 + $0x310] sm:$0xff] %vm1433_vm3, %v4519_v62  ;;  %v4521_v27 = vpop.permute.xlu1 %4520 }
 0x5d7   : > { %4677 = vst.msk [vmem:[#allocation2 + $0x318] sm:$0xff] %vm1433_vm3, %v4521_v27  ;;  %4890 = vrot.lane.b32.xlu0 %v9051_v11, %s10001_s9  ;;  %v9058_v11 = vld [vmem:[%s10091_s5 + $0x1b9] sm:$0xff] }
 0x5d8   : > { %4892 = vrot.lane.b32.xlu1 %v9052_v19, %s10001_s9  ;;  %v9059_v19 = vld [vmem:[%s10091_s5 + $0x1c9] sm:$0xff] }
 0x5d9   : > { %v4523_v49 = vpop.permute.xlu0 %4522 }
 0x5da   : > { %4678 = vst.msk [vmem:[#allocation2 + $0x320] sm:$0xff] %vm1433_vm3, %v4523_v49  ;;  %v4525_v22 = vpop.permute.xlu1 %4524 }
 0x5db   : > { %4679 = vst.msk [vmem:[#allocation2 + $0x328] sm:$0xff] %vm1433_vm3, %v4525_v22  ;;  %4894 = vrot.lane.b32.xlu0 %v9053_v39, %s10001_s9  ;;  %v9060_v39 = vld [vmem:[%s10091_s5 + $0x1d1] sm:$0xff] }
 0x5dc   : > { %4896 = vrot.lane.b32.xlu1 %v9054_v1, %s10001_s9  ;;  %v9061_v1 = vld [vmem:[%s10091_s5 + $0x1e1] sm:$0xff] }
 0x5dd   : > { %v4527_v45 = vpop.permute.xlu0 %4526 }
 0x5de   : > { %4680 = vst.msk [vmem:[#allocation2 + $0x330] sm:$0xff] %vm1433_vm3, %v4527_v45  ;;  %v4529_v17 = vpop.permute.xlu1 %4528 }
 0x5df   : > { %4681 = vst.msk [vmem:[#allocation2 + $0x338] sm:$0xff] %vm1433_vm3, %v4529_v17  ;;  %4898 = vrot.lane.b32.xlu0 %v9055_v3, %s10001_s9  ;;  %v9062_v3 = vld [vmem:[%s10091_s5 + $0x1e9] sm:$0xff] }
 0x5e0   : > { %4900 = vrot.lane.b32.xlu1 %v9056_v56, %s10001_s9  ;;  %v9063_v56 = vld [vmem:[%s10091_s5 + $0x1f9] sm:$0xff] }
 0x5e1   : > { %v4531_v8 = vpop.permute.xlu0 %4530 }
 0x5e2   : > { %4682 = vst.msk [vmem:[#allocation2 + $0x340] sm:$0xff] %vm1433_vm3, %v4531_v8  ;;  %v4533_v62 = vpop.permute.xlu1 %4532 }
 0x5e3   : > { %4683 = vst.msk [vmem:[#allocation2 + $0x348] sm:$0xff] %vm1433_vm3, %v4533_v62  ;;  %4902 = vrot.lane.b32.xlu0 %v9057_v48, %s10001_s9  ;;  %v9064_v48 = vld [vmem:[%s10091_s5 + $0x201] sm:$0xff] }
 0x5e4   : > { %4904 = vrot.lane.b32.xlu1 %v9058_v11, %s10001_s9  ;;  %v9065_v11 = vld [vmem:[%s10091_s5 + $0x211] sm:$0xff] }
 0x5e5   : > { %v4535_v27 = vpop.permute.xlu0 %4534 }
 0x5e6   : > { %4684 = vst.msk [vmem:[#allocation2 + $0x350] sm:$0xff] %vm1433_vm3, %v4535_v27  ;;  %v4537_v49 = vpop.permute.xlu1 %4536 }
 0x5e7   : > { %4685 = vst.msk [vmem:[#allocation2 + $0x358] sm:$0xff] %vm1433_vm3, %v4537_v49  ;;  %4906 = vrot.lane.b32.xlu0 %v9059_v19, %s10001_s9  ;;  %v9066_v19 = vld [vmem:[%s10091_s5 + $0x219] sm:$0xff] }
 0x5e8   : > { %4908 = vrot.lane.b32.xlu1 %v9060_v39, %s10001_s9  ;;  %v9067_v39 = vld [vmem:[%s10091_s5 + $0x229] sm:$0xff] }
 0x5e9   : > { %v4539_v22 = vpop.permute.xlu0 %4538 }
 0x5ea   : > { %4686 = vst.msk [vmem:[#allocation2 + $0x360] sm:$0xff] %vm1433_vm3, %v4539_v22  ;;  %v4541_v45 = vpop.permute.xlu1 %4540 }
 0x5eb   : > { %4687 = vst.msk [vmem:[#allocation2 + $0x368] sm:$0xff] %vm1433_vm3, %v4541_v45  ;;  %4910 = vrot.lane.b32.xlu0 %v9061_v1, %s10001_s9  ;;  %v9068_v1 = vld [vmem:[%s10091_s5 + $0x231] sm:$0xff] }
 0x5ec   : > { %4912 = vrot.lane.b32.xlu1 %v9062_v3, %s10001_s9  ;;  %v9069_v3 = vld [vmem:[%s10091_s5 + $0x241] sm:$0xff] }
 0x5ed   : > { %v4543_v17 = vpop.permute.xlu0 %4542 }
 0x5ee   : > { %4688 = vst.msk [vmem:[#allocation2 + $0x370] sm:$0xff] %vm1433_vm3, %v4543_v17  ;;  %v4545_v8 = vpop.permute.xlu1 %4544 }
 0x5ef   : > { %4689 = vst.msk [vmem:[#allocation2 + $0x378] sm:$0xff] %vm1433_vm3, %v4545_v8  ;;  %4914 = vrot.lane.b32.xlu0 %v9063_v56, %s10001_s9  ;;  %v9070_v56 = vld [vmem:[%s10091_s5 + $0x249] sm:$0xff] }
 0x5f0   : > { %4916 = vrot.lane.b32.xlu1 %v9064_v48, %s10001_s9  ;;  %v9071_v48 = vld [vmem:[%s10091_s5 + $0x259] sm:$0xff] }
 0x5f1   : > { %v4547_v62 = vpop.permute.xlu0 %4546 }
 0x5f2   : > { %4690 = vst.msk [vmem:[#allocation2 + $0x380] sm:$0xff] %vm1433_vm3, %v4547_v62  ;;  %v4549_v27 = vpop.permute.xlu1 %4548 }
 0x5f3   : > { %4691 = vst.msk [vmem:[#allocation2 + $0x388] sm:$0xff] %vm1433_vm3, %v4549_v27  ;;  %4918 = vrot.lane.b32.xlu0 %v9065_v11, %s10001_s9  ;;  %v9072_v11 = vld [vmem:[%s10091_s5 + $0x261] sm:$0xff] }
 0x5f4   : > { %4920 = vrot.lane.b32.xlu1 %v9066_v19, %s10001_s9  ;;  %v9073_v19 = vld [vmem:[%s10091_s5 + $0x271] sm:$0xff] }
 0x5f5   : > { %v4551_v49 = vpop.permute.xlu0 %4550 }
 0x5f6   : > { %4692 = vst.msk [vmem:[#allocation2 + $0x390] sm:$0xff] %vm1433_vm3, %v4551_v49  ;;  %v4553_v22 = vpop.permute.xlu1 %4552 }
 0x5f7   : > { %4693 = vst.msk [vmem:[#allocation2 + $0x398] sm:$0xff] %vm1433_vm3, %v4553_v22  ;;  %4922 = vrot.lane.b32.xlu0 %v9067_v39, %s10001_s9  ;;  %v9074_v39 = vld [vmem:[%s10091_s5 + $0x279] sm:$0xff] }
 0x5f8   : > { %4924 = vrot.lane.b32.xlu1 %v9068_v1, %s10001_s9  ;;  %v9075_v1 = vld [vmem:[%s10091_s5 + $0x289] sm:$0xff] }
 0x5f9   : > { %v4555_v45 = vpop.permute.xlu0 %4554 }
 0x5fa   : > { %4694 = vst.msk [vmem:[#allocation2 + $0x3a0] sm:$0xff] %vm1433_vm3, %v4555_v45  ;;  %v4557_v17 = vpop.permute.xlu1 %4556 }
 0x5fb   : > { %4695 = vst.msk [vmem:[#allocation2 + $0x3a8] sm:$0xff] %vm1433_vm3, %v4557_v17  ;;  %4926 = vrot.lane.b32.xlu0 %v9069_v3, %s10001_s9  ;;  %v9076_v3 = vld [vmem:[%s10091_s5 + $0x291] sm:$0xff] }
 0x5fc   : > { %4928 = vrot.lane.b32.xlu1 %v9070_v56, %s10001_s9  ;;  %v9077_v56 = vld [vmem:[%s10091_s5 + $0x2a1] sm:$0xff] }
 0x5fd   : > { %v4559_v8 = vpop.permute.xlu0 %4558 }
 0x5fe   : > { %4696 = vst.msk [vmem:[#allocation2 + $0x3b0] sm:$0xff] %vm1433_vm3, %v4559_v8  ;;  %v4561_v62 = vpop.permute.xlu1 %4560 }
 0x5ff   : > { %4697 = vst.msk [vmem:[#allocation2 + $0x3b8] sm:$0xff] %vm1433_vm3, %v4561_v62  ;;  %4930 = vrot.lane.b32.xlu0 %v9071_v48, %s10001_s9  ;;  %v9078_v48 = vld [vmem:[%s10091_s5 + $0x2a9] sm:$0xff] }
 0x600   : > { %4932 = vrot.lane.b32.xlu1 %v9072_v11, %s10001_s9  ;;  %v9079_v11 = vld [vmem:[%s10091_s5 + $0x2b9] sm:$0xff] }
 0x601   : > { %v4563_v27 = vpop.permute.xlu0 %4562 }
 0x602   : > { %4698 = vst.msk [vmem:[#allocation2 + $0x3c0] sm:$0xff] %vm1433_vm3, %v4563_v27  ;;  %v4565_v49 = vpop.permute.xlu1 %4564 }
 0x603   : > { %4699 = vst.msk [vmem:[#allocation2 + $0x3c8] sm:$0xff] %vm1433_vm3, %v4565_v49  ;;  %4934 = vrot.lane.b32.xlu0 %v9073_v19, %s10001_s9  ;;  %v9080_v19 = vld [vmem:[%s10091_s5 + $0x2c1] sm:$0xff] }
 0x604   : > { %4936 = vrot.lane.b32.xlu1 %v9074_v39, %s10001_s9  ;;  %v9081_v39 = vld [vmem:[%s10091_s5 + $0x2d1] sm:$0xff] }
 0x605   : > { %v4567_v22 = vpop.permute.xlu0 %4566 }
 0x606   : > { %4700 = vst.msk [vmem:[#allocation2 + $0x3d0] sm:$0xff] %vm1433_vm3, %v4567_v22  ;;  %v4569_v45 = vpop.permute.xlu1 %4568 }
 0x607   : > { %4701 = vst.msk [vmem:[#allocation2 + $0x3d8] sm:$0xff] %vm1433_vm3, %v4569_v45  ;;  %4938 = vrot.lane.b32.xlu0 %v9075_v1, %s10001_s9  ;;  %v9082_v1 = vld [vmem:[%s10091_s5 + $0x2d9] sm:$0xff] }
 0x608   : > { %4940 = vrot.lane.b32.xlu1 %v9076_v3, %s10001_s9  ;;  %v9083_v3 = vld [vmem:[%s10091_s5 + $0x2e9] sm:$0xff] }
 0x609   : > { %v4571_v17 = vpop.permute.xlu0 %4570 }
 0x60a   : > { %4702 = vst.msk [vmem:[#allocation2 + $0x3e0] sm:$0xff] %vm1433_vm3, %v4571_v17  ;;  %v4573_v8 = vpop.permute.xlu1 %4572 }
 0x60b   : > { %4703 = vst.msk [vmem:[#allocation2 + $0x3e8] sm:$0xff] %vm1433_vm3, %v4573_v8  ;;  %4942 = vrot.lane.b32.xlu0 %v9077_v56, %s10001_s9  ;;  %v9084_v56 = vld [vmem:[%s10091_s5 + $0x2f1] sm:$0xff] }
 0x60c   : > { %4944 = vrot.lane.b32.xlu1 %v9078_v48, %s10001_s9  ;;  %v9085_v48 = vld [vmem:[%s10091_s5 + $0x301] sm:$0xff] }
 0x60d   : > { %v4575_v62 = vpop.permute.xlu0 %4574 }
 0x60e   : > { %4704 = vst.msk [vmem:[#allocation2 + $0x3f0] sm:$0xff] %vm1433_vm3, %v4575_v62  ;;  %v4577_v27 = vpop.permute.xlu1 %4576 }
 0x60f   : > { %4705 = vst.msk [vmem:[#allocation2 + $0x3f8] sm:$0xff] %vm1433_vm3, %v4577_v27  ;;  %4946 = vrot.lane.b32.xlu0 %v9079_v11, %s10001_s9  ;;  %v9086_v11 = vld [vmem:[%s10091_s5 + $0x309] sm:$0xff] }
 0x610   : > { %4948 = vrot.lane.b32.xlu1 %v9080_v19, %s10001_s9  ;;  %v9087_v19 = vld [vmem:[%s10091_s5 + $0x349] sm:$0xff] }
 0x611   : > { %v4835_v49 = vpop.permute.xlu0 %4834 }
 0x612   : > { %5026 = vst.msk [vmem:[#allocation2 + $0x200] sm:$0xff] %vm1819_vm4, %v4835_v49  ;;  %v4837_v22 = vpop.permute.xlu1 %4836 }
 0x613   : > { %5027 = vst.msk [vmem:[#allocation2 + $0x208] sm:$0xff] %vm1819_vm4, %v4837_v22  ;;  %4950 = vrot.lane.b32.xlu0 %v9081_v39, %s10001_s9  ;;  %v9088_v39 = vld [vmem:[%s10091_s5 + $0x351] sm:$0xff] }
 0x614   : > { %4952 = vrot.lane.b32.xlu1 %v9082_v1, %s10001_s9  ;;  %v13388_v1 = vld [vmem:[%s10091_s5 + $0x361] sm:$0xff] }
 0x615   : > { %v4839_v45 = vpop.permute.xlu0 %4838 }
 0x616   : > { %5028 = vst.msk [vmem:[#allocation2 + $0x210] sm:$0xff] %vm1819_vm4, %v4839_v45  ;;  %v4841_v17 = vpop.permute.xlu1 %4840 }
 0x617   : > { %5029 = vst.msk [vmem:[#allocation2 + $0x218] sm:$0xff] %vm1819_vm4, %v4841_v17  ;;  %4954 = vrot.lane.b32.xlu0 %v9083_v3, %s10001_s9  ;;  %v13391_v3 = vld [vmem:[%s10091_s5 + $0x369] sm:$0xff] }
 0x618   : > { %4956 = vrot.lane.b32.xlu1 %v9084_v56, %s10001_s9  ;;  %v13400_v56 = vld [vmem:[%s10091_s5 + $0x379] sm:$0xff] }
 0x619   : > { %v4843_v8 = vpop.permute.xlu0 %4842 }
 0x61a   : > { %5030 = vst.msk [vmem:[#allocation2 + $0x220] sm:$0xff] %vm1819_vm4, %v4843_v8  ;;  %v4845_v62 = vpop.permute.xlu1 %4844 }
 0x61b   : > { %5031 = vst.msk [vmem:[#allocation2 + $0x228] sm:$0xff] %vm1819_vm4, %v4845_v62  ;;  %4958 = vrot.lane.b32.xlu0 %v9085_v48, %s10001_s9  ;;  %v13403_v48 = vld [vmem:[%s10091_s5 + $0x381] sm:$0xff] }
 0x61c   : > { %4960 = vrot.lane.b32.xlu1 %v9086_v11, %s10001_s9  ;;  %v13412_v11 = vld [vmem:[%s10091_s5 + $0x391] sm:$0xff] }
 0x61d   : > { %v4847_v27 = vpop.permute.xlu0 %4846 }
 0x61e   : > { %5032 = vst.msk [vmem:[#allocation2 + $0x230] sm:$0xff] %vm1819_vm4, %v4847_v27  ;;  %v4849_v49 = vpop.permute.xlu1 %4848 }
 0x61f   : > { %5033 = vst.msk [vmem:[#allocation2 + $0x238] sm:$0xff] %vm1819_vm4, %v4849_v49  ;;  %5218 = vrot.lane.b32.xlu0 %v9087_v19, %s10002_s10  ;;  %v13415_v19 = vld [vmem:[%s10091_s5 + $0x399] sm:$0xff] }
 0x620   : > { %5220 = vrot.lane.b32.xlu1 %v9088_v39, %s10002_s10  ;;  %v13424_v39 = vld [vmem:[%s10091_s5 + $0x3a9] sm:$0xff] }
 0x621   : > { %v4851_v22 = vpop.permute.xlu0 %4850 }
 0x622   : > { %5034 = vst.msk [vmem:[#allocation2 + $0x240] sm:$0xff] %vm1819_vm4, %v4851_v22  ;;  %v4853_v45 = vpop.permute.xlu1 %4852  ;;  %v13427_v22 = vld [vmem:[%s10091_s5 + $0x3b1] sm:$0xff] }
 0x623   : > { %5035 = vst.msk [vmem:[#allocation2 + $0x248] sm:$0xff] %vm1819_vm4, %v4853_v45  ;;  %5222 = vrot.lane.b32.xlu0 %v13388_v1, %s10002_s10 }
 0x624   : > { %5224 = vrot.lane.b32.xlu1 %v13391_v3, %s10002_s10 }
 0x625   : > { %v4855_v17 = vpop.permute.xlu0 %4854 }
 0x626   : > { %5036 = vst.msk [vmem:[#allocation2 + $0x250] sm:$0xff] %vm1819_vm4, %v4855_v17  ;;  %v4857_v8 = vpop.permute.xlu1 %4856  ;;  %v13436_v17 = vld [vmem:[%s10091_s5 + $0x3c1] sm:$0xff] }
 0x627   : > { %5037 = vst.msk [vmem:[#allocation2 + $0x258] sm:$0xff] %vm1819_vm4, %v4857_v8  ;;  %5226 = vrot.lane.b32.xlu0 %v13400_v56, %s10002_s10 }
 0x628   : > { %5228 = vrot.lane.b32.xlu1 %v13403_v48, %s10002_s10 }
 0x629   : > { %v4859_v62 = vpop.permute.xlu0 %4858 }
 0x62a   : > { %5038 = vst.msk [vmem:[#allocation2 + $0x260] sm:$0xff] %vm1819_vm4, %v4859_v62  ;;  %v4861_v27 = vpop.permute.xlu1 %4860  ;;  %v13439_v62 = vld [vmem:[%s10091_s5 + $0x3c9] sm:$0xff] }
 0x62b   : > { %5039 = vst.msk [vmem:[#allocation2 + $0x268] sm:$0xff] %vm1819_vm4, %v4861_v27  ;;  %5230 = vrot.lane.b32.xlu0 %v13412_v11, %s10002_s10 }
 0x62c   : > { %5232 = vrot.lane.b32.xlu1 %v13415_v19, %s10002_s10 }
 0x62d   : > { %v4863_v49 = vpop.permute.xlu0 %4862 }
 0x62e   : > { %5040 = vst.msk [vmem:[#allocation2 + $0x270] sm:$0xff] %vm1819_vm4, %v4863_v49  ;;  %v4865_v45 = vpop.permute.xlu1 %4864  ;;  %v13448_v49 = vld [vmem:[%s10091_s5 + $0x3d9] sm:$0xff] }
 0x62f   : > { %5041 = vst.msk [vmem:[#allocation2 + $0x278] sm:$0xff] %vm1819_vm4, %v4865_v45  ;;  %5234 = vrot.lane.b32.xlu0 %v13424_v39, %s10002_s10 }
 0x630   : > { %5236 = vrot.lane.b32.xlu1 %v13427_v22, %s10002_s10 }
 0x631   : > { %v4867_v8 = vpop.permute.xlu0 %4866 }
 0x632   : > { %5042 = vst.msk [vmem:[#allocation2 + $0x280] sm:$0xff] %vm1819_vm4, %v4867_v8  ;;  %v4869_v27 = vpop.permute.xlu1 %4868  ;;  %v13460_v8 = vld [vmem:[%s10091_s5 + $0x3f1] sm:$0xff] }
 0x633   : > { %5043 = vst.msk [vmem:[#allocation2 + $0x288] sm:$0xff] %vm1819_vm4, %v4869_v27  ;;  %5238 = vrot.lane.b32.xlu0 %v13436_v17, %s10002_s10 }
 0x634   : > { %5240 = vrot.lane.b32.xlu1 %v13439_v62, %s10002_s10 }
 0x635   : > { %v4871_v45 = vpop.permute.xlu0 %4870 }
 0x636   : > { %5044 = vst.msk [vmem:[#allocation2 + $0x290] sm:$0xff] %vm1819_vm4, %v4871_v45  ;;  %v4873_v42 = vpop.permute.xlu1 %4872 }
 0x637   : > { %5045 = vst.msk [vmem:[#allocation2 + $0x298] sm:$0xff] %vm1819_vm4, %v4873_v42  ;;  %5242 = vrot.lane.b32.xlu0 %v13448_v49, %s10002_s10  ;;  %v13472_v42 = vld [vmem:[%s10091_s5 + $0x409] sm:$0xff] }
 0x638   : > { %5244 = vrot.lane.b32.xlu1 %v13451_v59, %s10002_s10 }
 0x639   : > { %v4875_v27 = vpop.permute.xlu0 %4874 }
 0x63a   : > { %5046 = vst.msk [vmem:[#allocation2 + $0x2a0] sm:$0xff] %vm1819_vm4, %v4875_v27  ;;  %v4877_v38 = vpop.permute.xlu1 %4876 }
 0x63b   : > { %5047 = vst.msk [vmem:[#allocation2 + $0x2a8] sm:$0xff] %vm1819_vm4, %v4877_v38  ;;  %5246 = vrot.lane.b32.xlu0 %v13460_v8, %s10002_s10  ;;  %v13484_v38 = vld [vmem:[%s10091_s5 + $0x421] sm:$0xff] }
 0x63c   : > { %5248 = vrot.lane.b32.xlu1 %v13463_v37, %s10002_s10 }
 0x63d   : > { %v4879_v45 = vpop.permute.xlu0 %4878 }
 0x63e   : > { %5048 = vst.msk [vmem:[#allocation2 + $0x2b0] sm:$0xff] %vm1819_vm4, %v4879_v45  ;;  %v4881_v32 = vpop.permute.xlu1 %4880 }
 0x63f   : > { %5049 = vst.msk [vmem:[#allocation2 + $0x2b8] sm:$0xff] %vm1819_vm4, %v4881_v32  ;;  %5250 = vrot.lane.b32.xlu0 %v13472_v42, %s10002_s10  ;;  %v13496_v32 = vld [vmem:[%s10091_s5 + $0x439] sm:$0xff] }
 0x640   : > { %5252 = vrot.lane.b32.xlu1 %v13475_v14, %s10002_s10 }
 0x641   : > { %v4883_v27 = vpop.permute.xlu0 %4882 }
 0x642   : > { %5050 = vst.msk [vmem:[#allocation2 + $0x2c0] sm:$0xff] %vm1819_vm4, %v4883_v27  ;;  %v4885_v26 = vpop.permute.xlu1 %4884 }
 0x643   : > { %5051 = vst.msk [vmem:[#allocation2 + $0x2c8] sm:$0xff] %vm1819_vm4, %v4885_v26  ;;  %5254 = vrot.lane.b32.xlu0 %v13484_v38, %s10002_s10  ;;  %v13508_v26 = vld [vmem:[%s10091_s5 + $0x451] sm:$0xff] }
 0x644   : > { %5256 = vrot.lane.b32.xlu1 %v13487_v5, %s10002_s10 }
 0x645   : > { %v4887_v45 = vpop.permute.xlu0 %4886 }
 0x646   : > { %5052 = vst.msk [vmem:[#allocation2 + $0x2d0] sm:$0xff] %vm1819_vm4, %v4887_v45  ;;  %v4889_v9 = vpop.permute.xlu1 %4888 }
 0x647   : > { %5053 = vst.msk [vmem:[#allocation2 + $0x2d8] sm:$0xff] %vm1819_vm4, %v4889_v9  ;;  %5258 = vrot.lane.b32.xlu0 %v13496_v32, %s10002_s10  ;;  %v13520_v9 = vld [vmem:[%s10091_s5 + $0x469] sm:$0xff] }
 0x648   : > { %5260 = vrot.lane.b32.xlu1 %v13499_v61, %s10002_s10 }
 0x649   : > { %v4891_v27 = vpop.permute.xlu0 %4890 }
 0x64a   : > { %5054 = vst.msk [vmem:[#allocation2 + $0x2e0] sm:$0xff] %vm1819_vm4, %v4891_v27  ;;  %v4893_v46 = vpop.permute.xlu1 %4892 }
 0x64b   : > { %5055 = vst.msk [vmem:[#allocation2 + $0x2e8] sm:$0xff] %vm1819_vm4, %v4893_v46  ;;  %5262 = vrot.lane.b32.xlu0 %v13508_v26, %s10002_s10  ;;  %v13532_v46 = vld [vmem:[%s10091_s5 + $0x481] sm:$0xff] }
 0x64c   : > { %5264 = vrot.lane.b32.xlu1 %v13511_v53, %s10002_s10 }
 0x64d   : > { %v4895_v45 = vpop.permute.xlu0 %4894 }
 0x64e   : > { %5056 = vst.msk [vmem:[#allocation2 + $0x2f0] sm:$0xff] %vm1819_vm4, %v4895_v45  ;;  %v4897_v6 = vpop.permute.xlu1 %4896 }
 0x64f   : > { %5057 = vst.msk [vmem:[#allocation2 + $0x2f8] sm:$0xff] %vm1819_vm4, %v4897_v6  ;;  %5266 = vrot.lane.b32.xlu0 %v13520_v9, %s10002_s10  ;;  %v13544_v6 = vld [vmem:[%s10091_s5 + $0x499] sm:$0xff] }
 0x650   : > { %5268 = vrot.lane.b32.xlu1 %v13523_v47, %s10002_s10 }
 0x651   : > { %v4899_v27 = vpop.permute.xlu0 %4898 }
 0x652   : > { %5058 = vst.msk [vmem:[#allocation2 + $0x300] sm:$0xff] %vm1819_vm4, %v4899_v27  ;;  %v4901_v7 = vpop.permute.xlu1 %4900 }
 0x653   : > { %5059 = vst.msk [vmem:[#allocation2 + $0x308] sm:$0xff] %vm1819_vm4, %v4901_v7  ;;  %5270 = vrot.lane.b32.xlu0 %v13532_v46, %s10002_s10  ;;  %v13556_v7 = vld [vmem:[%s10091_s5 + $0x4b1] sm:$0xff] }
 0x654   : > { %5272 = vrot.lane.b32.xlu1 %v13535_v41, %s10002_s10 }
 0x655   : > { %v4903_v45 = vpop.permute.xlu0 %4902 }
 0x656   : > { %5060 = vst.msk [vmem:[#allocation2 + $0x310] sm:$0xff] %vm1819_vm4, %v4903_v45  ;;  %v4905_v23 = vpop.permute.xlu1 %4904 }
 0x657   : > { %5061 = vst.msk [vmem:[#allocation2 + $0x318] sm:$0xff] %vm1819_vm4, %v4905_v23  ;;  %5274 = vrot.lane.b32.xlu0 %v13544_v6, %s10002_s10  ;;  %v13568_v23 = vld [vmem:[%s10091_s5 + $0x4c9] sm:$0xff] }
 0x658   : > { %5276 = vrot.lane.b32.xlu1 %v13547_v36, %s10002_s10 }
 0x659   : > { %v4907_v27 = vpop.permute.xlu0 %4906 }
 0x65a   : > { %5062 = vst.msk [vmem:[#allocation2 + $0x320] sm:$0xff] %vm1819_vm4, %v4907_v27  ;;  %v4909_v28 = vpop.permute.xlu1 %4908 }
 0x65b   : > { %5063 = vst.msk [vmem:[#allocation2 + $0x328] sm:$0xff] %vm1819_vm4, %v4909_v28  ;;  %5278 = vrot.lane.b32.xlu0 %v13556_v7, %s10002_s10  ;;  %v13580_v28 = vld [vmem:[%s10091_s5 + $0x4e1] sm:$0xff] }
 0x65c   : > { %5280 = vrot.lane.b32.xlu1 %v13559_v31, %s10002_s10 }
 0x65d   : > { %v4911_v45 = vpop.permute.xlu0 %4910 }
 0x65e   : > { %5064 = vst.msk [vmem:[#allocation2 + $0x330] sm:$0xff] %vm1819_vm4, %v4911_v45  ;;  %v4913_v12 = vpop.permute.xlu1 %4912 }
 0x65f   : > { %5065 = vst.msk [vmem:[#allocation2 + $0x338] sm:$0xff] %vm1819_vm4, %v4913_v12  ;;  %5282 = vrot.lane.b32.xlu0 %v13568_v23, %s10002_s10  ;;  %v13592_v12 = vld [vmem:[%s10091_s5 + $0x4f9] sm:$0xff] }
 0x660   : > { %5284 = vrot.lane.b32.xlu1 %v13571_v25, %s10002_s10 }
 0x661   : > { %v4915_v27 = vpop.permute.xlu0 %4914 }
 0x662   : > { %5066 = vst.msk [vmem:[#allocation2 + $0x340] sm:$0xff] %vm1819_vm4, %v4915_v27  ;;  %v4917_v51 = vpop.permute.xlu1 %4916 }
 0x663   : > { %5067 = vst.msk [vmem:[#allocation2 + $0x348] sm:$0xff] %vm1819_vm4, %v4917_v51  ;;  %5286 = vrot.lane.b32.xlu0 %v13580_v28, %s10002_s10  ;;  %v13604_v51 = vld [vmem:[%s10091_s5 + $0x511] sm:$0xff] }
 0x664   : > { %5288 = vrot.lane.b32.xlu1 %v13583_v58, %s10002_s10 }
 0x665   : > { %v4919_v45 = vpop.permute.xlu0 %4918 }
 0x666   : > { %5068 = vst.msk [vmem:[#allocation2 + $0x350] sm:$0xff] %vm1819_vm4, %v4919_v45  ;;  %v4921_v24 = vpop.permute.xlu1 %4920 }
 0x667   : > { %5069 = vst.msk [vmem:[#allocation2 + $0x358] sm:$0xff] %vm1819_vm4, %v4921_v24  ;;  %5290 = vrot.lane.b32.xlu0 %v13592_v12, %s10002_s10  ;;  %v13616_v24 = vld [vmem:[%s10091_s5 + $0x529] sm:$0xff] }
 0x668   : > { %5292 = vrot.lane.b32.xlu1 %v13595_v43, %s10002_s10 }
 0x669   : > { %v4923_v27 = vpop.permute.xlu0 %4922 }
 0x66a   : > { %5070 = vst.msk [vmem:[#allocation2 + $0x360] sm:$0xff] %vm1819_vm4, %v4923_v27  ;;  %v4925_v55 = vpop.permute.xlu1 %4924 }
 0x66b   : > { %5071 = vst.msk [vmem:[#allocation2 + $0x368] sm:$0xff] %vm1819_vm4, %v4925_v55  ;;  %5294 = vrot.lane.b32.xlu0 %v13604_v51, %s10002_s10  ;;  %v9152_v55 = vld [vmem:[%s10091_s5 + $0x368] sm:$0xff] }
 0x66c   : > { %5296 = vrot.lane.b32.xlu1 %v13607_v10, %s10002_s10 }
 0x66d   : > { %v4927_v45 = vpop.permute.xlu0 %4926 }
 0x66e   : > { %5072 = vst.msk [vmem:[#allocation2 + $0x370] sm:$0xff] %vm1819_vm4, %v4927_v45  ;;  %v4929_v40 = vpop.permute.xlu1 %4928 }
 0x66f   : > { %5073 = vst.msk [vmem:[#allocation2 + $0x378] sm:$0xff] %vm1819_vm4, %v4929_v40  ;;  %5298 = vrot.lane.b32.xlu0 %v13616_v24, %s10002_s10 }
 0x670   : > { %5602 = vrot.lane.b32.xlu1 %v9151_v35, %s10003_s11 }
 0x671   : > { %v4931_v27 = vpop.permute.xlu0 %4930 }
 0x672   : > { %5074 = vst.msk [vmem:[#allocation2 + $0x380] sm:$0xff] %vm1819_vm4, %v4931_v27  ;;  %v4933_v52 = vpop.permute.xlu1 %4932 }
 0x673   : > { %5075 = vst.msk [vmem:[#allocation2 + $0x388] sm:$0xff] %vm1819_vm4, %v4933_v52  ;;  %5604 = vrot.lane.b32.xlu0 %v9152_v55, %s10003_s11  ;;  %v9153_v52 = vld [vmem:[%s10091_s5 + $0x378] sm:$0xff] }
 0x674   : > { %5986 = vrot.lane.b32.xlu1 %v13160_v21, %s10004_s12  ;;  %v9154_v21 = vld [vmem:[%s10091_s5 + $0x380] sm:$0xff] }
 0x675   : > { %v4935_v40 = vpop.permute.xlu0 %4934 }
 0x676   : > { %5076 = vst.msk [vmem:[#allocation2 + $0x390] sm:$0xff] %vm1819_vm4, %v4935_v40  ;;  %v4937_v45 = vpop.permute.xlu1 %4936 }
 0x677   : > { %5077 = vst.msk [vmem:[#allocation2 + $0x398] sm:$0xff] %vm1819_vm4, %v4937_v45  ;;  %5988 = vrot.lane.b32.xlu0 %v13163_v50, %s10004_s12  ;;  %v9155_v45 = vld [vmem:[%s10091_s5 + $0x390] sm:$0xff] }
 0x678   : > { %6370 = vrot.lane.b32.xlu1 %v13388_v1, %s10006_s27 }
 0x679   : > { %v4939_v35 = vpop.permute.xlu0 %4938 }
 0x67a   : > { %5078 = vst.msk [vmem:[#allocation2 + $0x3a0] sm:$0xff] %vm1819_vm4, %v4939_v35  ;;  %v4941_v55 = vpop.permute.xlu1 %4940 }
 0x67b   : > { %5079 = vst.msk [vmem:[#allocation2 + $0x3a8] sm:$0xff] %vm1819_vm4, %v4941_v55  ;;  %6372 = vrot.lane.b32.xlu0 %v13391_v3, %s10006_s27 }
 0x67c   : > { %5606 = vrot.lane.b32.xlu1 %v9153_v52, %s10003_s11 }
 0x67d   : > { %v4943_v27 = vpop.permute.xlu0 %4942 }
 0x67e   : > { %5080 = vst.msk [vmem:[#allocation2 + $0x3b0] sm:$0xff] %vm1819_vm4, %v4943_v27  ;;  %v4945_v50 = vpop.permute.xlu1 %4944 }
 0x67f   : > { %5081 = vst.msk [vmem:[#allocation2 + $0x3b8] sm:$0xff] %vm1819_vm4, %v4945_v50  ;;  %5608 = vrot.lane.b32.xlu0 %v9154_v21, %s10003_s11  ;;  %v9157_v21 = vld [vmem:[%s10091_s5 + $0x3a8] sm:$0xff] }
 0x680   : > { %5990 = vrot.lane.b32.xlu1 %v13172_v2, %s10004_s12  ;;  %v9156_v2 = vld [vmem:[%s10091_s5 + $0x398] sm:$0xff] }
 0x681   : > { %v4947_v1 = vpop.permute.xlu0 %4946 }
 0x682   : > { %5082 = vst.msk [vmem:[#allocation2 + $0x3c0] sm:$0xff] %vm1819_vm4, %v4947_v1  ;;  %v4949_v3 = vpop.permute.xlu1 %4948 }
 0x683   : > { %5083 = vst.msk [vmem:[#allocation2 + $0x3c8] sm:$0xff] %vm1819_vm4, %v4949_v3  ;;  %5992 = vrot.lane.b32.xlu0 %v13175_v63, %s10004_s12  ;;  %v9159_v3 = vld [vmem:[%s10091_s5 + $0x3c0] sm:$0xff] }
 0x684   : > { %6374 = vrot.lane.b32.xlu1 %v13400_v56, %s10006_s27 }
 0x685   : > { %v4951_v40 = vpop.permute.xlu0 %4950 }
 0x686   : > { %5084 = vst.msk [vmem:[#allocation2 + $0x3d0] sm:$0xff] %vm1819_vm4, %v4951_v40  ;;  %v4953_v35 = vpop.permute.xlu1 %4952 }
 0x687   : > { %5085 = vst.msk [vmem:[#allocation2 + $0x3d8] sm:$0xff] %vm1819_vm4, %v4953_v35  ;;  %6376 = vrot.lane.b32.xlu0 %v13403_v48, %s10006_s27 }
 0x688   : > { %5610 = vrot.lane.b32.xlu1 %v9155_v45, %s10003_s11 }
 0x689   : > { %v4955_v52 = vpop.permute.xlu0 %4954 }
 0x68a   : > { %5086 = vst.msk [vmem:[#allocation2 + $0x3e0] sm:$0xff] %vm1819_vm4, %v4955_v52  ;;  %v4957_v63 = vpop.permute.xlu1 %4956 }
 0x68b   : > { %5087 = vst.msk [vmem:[#allocation2 + $0x3e8] sm:$0xff] %vm1819_vm4, %v4957_v63  ;;  %5612 = vrot.lane.b32.xlu0 %v9156_v2, %s10003_s11  ;;  %v9161_v2 = vld [vmem:[%s10091_s5 + $0x3d8] sm:$0xff] }
 0x68c   : > { %5994 = vrot.lane.b32.xlu1 %v13184_v16, %s10004_s12  ;;  %v9158_v16 = vld [vmem:[%s10091_s5 + $0x3b0] sm:$0xff] }
 0x68d   : > { %v4959_v56 = vpop.permute.xlu0 %4958 }
 0x68e   : > { %5088 = vst.msk [vmem:[#allocation2 + $0x3f0] sm:$0xff] %vm1819_vm4, %v4959_v56  ;;  %v4961_v48 = vpop.permute.xlu1 %4960 }
 0x68f   : > { %5089 = vst.msk [vmem:[#allocation2 + $0x3f8] sm:$0xff] %vm1819_vm4, %v4961_v48  ;;  %5996 = vrot.lane.b32.xlu0 %v13187_v54, %s10004_s12  ;;  %v9163_v48 = vld [vmem:[%s10091_s5 + $0x3f0] sm:$0xff] }
 0x690   : > { %6378 = vrot.lane.b32.xlu1 %v13412_v11, %s10006_s27 }
 0x691   : > { %v5219_v55 = vpop.permute.xlu0 %5218 }
 0x692   : > { %5410 = vst.msk [vmem:[#allocation2 + $0x200] sm:$0xff] %vm2204_vm5, %v5219_v55  ;;  %v5221_v27 = vpop.permute.xlu1 %5220 }
 0x693   : > { %5411 = vst.msk [vmem:[#allocation2 + $0x208] sm:$0xff] %vm2204_vm5, %v5221_v27  ;;  %6380 = vrot.lane.b32.xlu0 %v13415_v19, %s10006_s27  ;;  %v9228_v27 = vld [vmem:[%s10091_s5 + $0xc9] sm:$0xff] }
 0x694   : > { %5614 = vrot.lane.b32.xlu1 %v9157_v21, %s10003_s11 }
 0x695   : > { %v5223_v50 = vpop.permute.xlu0 %5222 }
 0x696   : > { %5412 = vst.msk [vmem:[#allocation2 + $0x210] sm:$0xff] %vm2204_vm5, %v5223_v50  ;;  %v5225_v54 = vpop.permute.xlu1 %5224 }
 0x697   : > { %5413 = vst.msk [vmem:[#allocation2 + $0x218] sm:$0xff] %vm2204_vm5, %v5225_v54  ;;  %5616 = vrot.lane.b32.xlu0 %v9158_v16, %s10003_s11  ;;  %v9165_v54 = vld [vmem:[%s10091_s5 + $0x408] sm:$0xff] }
 0x698   : > { %5998 = vrot.lane.b32.xlu1 %v13196_v13, %s10004_s12  ;;  %v9160_v13 = vld [vmem:[%s10091_s5 + $0x3c8] sm:$0xff] }
 0x699   : > { %v5227_v11 = vpop.permute.xlu0 %5226 }
 0x69a   : > { %5414 = vst.msk [vmem:[#allocation2 + $0x220] sm:$0xff] %vm2204_vm5, %v5227_v11  ;;  %v5229_v19 = vpop.permute.xlu1 %5228 }
 0x69b   : > { %5415 = vst.msk [vmem:[#allocation2 + $0x228] sm:$0xff] %vm2204_vm5, %v5229_v19  ;;  %6000 = vrot.lane.b32.xlu0 %v13199_v20, %s10004_s12  ;;  %v9166_v19 = vld [vmem:[%s10091_s5 + $0x410] sm:$0xff] }
 0x69c   : > { %6382 = vrot.lane.b32.xlu1 %v13424_v39, %s10006_s27 }
 0x69d   : > { %v5231_v1 = vpop.permute.xlu0 %5230 }
 0x69e   : > { %5416 = vst.msk [vmem:[#allocation2 + $0x230] sm:$0xff] %vm2204_vm5, %v5231_v1  ;;  %v5233_v40 = vpop.permute.xlu1 %5232 }
 0x69f   : > { %5417 = vst.msk [vmem:[#allocation2 + $0x238] sm:$0xff] %vm2204_vm5, %v5233_v40  ;;  %6384 = vrot.lane.b32.xlu0 %v13427_v22, %s10006_s27  ;;  %v9230_v40 = vld [vmem:[%s10091_s5 + $0xe1] sm:$0xff] }
 0x6a0   : > { %5618 = vrot.lane.b32.xlu1 %v9159_v3, %s10003_s11  ;;  %v9229_v3 = vld [vmem:[%s10091_s5 + $0xd9] sm:$0xff] }
 0x6a1   : > { %v5235_v45 = vpop.permute.xlu0 %5234 }
 0x6a2   : > { %5418 = vst.msk [vmem:[#allocation2 + $0x240] sm:$0xff] %vm2204_vm5, %v5235_v45  ;;  %v5237_v20 = vpop.permute.xlu1 %5236 }
 0x6a3   : > { %5419 = vst.msk [vmem:[#allocation2 + $0x248] sm:$0xff] %vm2204_vm5, %v5237_v20  ;;  %5620 = vrot.lane.b32.xlu0 %v9160_v13, %s10003_s11  ;;  %v9167_v20 = vld [vmem:[%s10091_s5 + $0x420] sm:$0xff] }
 0x6a4   : > { %6002 = vrot.lane.b32.xlu1 %v13208_v30, %s10004_s12  ;;  %v9162_v30 = vld [vmem:[%s10091_s5 + $0x3e0] sm:$0xff] }
 0x6a5   : > { %v5239_v39 = vpop.permute.xlu0 %5238 }
 0x6a6   : > { %5420 = vst.msk [vmem:[#allocation2 + $0x250] sm:$0xff] %vm2204_vm5, %v5239_v39  ;;  %v5241_v22 = vpop.permute.xlu1 %5240 }
 0x6a7   : > { %5421 = vst.msk [vmem:[#allocation2 + $0x258] sm:$0xff] %vm2204_vm5, %v5241_v22  ;;  %6004 = vrot.lane.b32.xlu0 %v13211_v29, %s10004_s12  ;;  %v9168_v22 = vld [vmem:[%s10091_s5 + $0x428] sm:$0xff] }
 0x6a8   : > { %6386 = vrot.lane.b32.xlu1 %v13436_v17, %s10006_s27 }
 0x6a9   : > { %v5243_v35 = vpop.permute.xlu0 %5242 }
 0x6aa   : > { %5422 = vst.msk [vmem:[#allocation2 + $0x260] sm:$0xff] %vm2204_vm5, %v5243_v35  ;;  %v5245_v52 = vpop.permute.xlu1 %5244 }
 0x6ab   : > { %5423 = vst.msk [vmem:[#allocation2 + $0x268] sm:$0xff] %vm2204_vm5, %v5245_v52  ;;  %6388 = vrot.lane.b32.xlu0 %v13439_v62, %s10006_s27  ;;  %v9232_v52 = vld [vmem:[%s10091_s5 + $0xf9] sm:$0xff] }
 0x6ac   : > { %5622 = vrot.lane.b32.xlu1 %v9161_v2, %s10003_s11  ;;  %v9231_v2 = vld [vmem:[%s10091_s5 + $0xf1] sm:$0xff] }
 0x6ad   : > { %v5247_v63 = vpop.permute.xlu0 %5246 }
 0x6ae   : > { %5424 = vst.msk [vmem:[#allocation2 + $0x270] sm:$0xff] %vm2204_vm5, %v5247_v63  ;;  %v5249_v29 = vpop.permute.xlu1 %5248 }
 0x6af   : > { %5425 = vst.msk [vmem:[#allocation2 + $0x278] sm:$0xff] %vm2204_vm5, %v5249_v29  ;;  %5624 = vrot.lane.b32.xlu0 %v9162_v30, %s10003_s11  ;;  %v9169_v29 = vld [vmem:[%s10091_s5 + $0x438] sm:$0xff] }
 0x6b0   : > { %6006 = vrot.lane.b32.xlu1 %v13220_v0, %s10004_s12  ;;  %v9164_v0 = vld [vmem:[%s10091_s5 + $0x3f8] sm:$0xff] }
 0x6b1   : > { %v5251_v17 = vpop.permute.xlu0 %5250 }
 0x6b2   : > { %5426 = vst.msk [vmem:[#allocation2 + $0x280] sm:$0xff] %vm2204_vm5, %v5251_v17  ;;  %v5253_v62 = vpop.permute.xlu1 %5252 }
 0x6b3   : > { %5427 = vst.msk [vmem:[#allocation2 + $0x288] sm:$0xff] %vm2204_vm5, %v5253_v62  ;;  %6008 = vrot.lane.b32.xlu0 %v13223_v44, %s10004_s12  ;;  %v9227_v44 = vld [vmem:[%s10091_s5 + $0xc1] sm:$0xff] }
 0x6b4   : > { %6390 = vrot.lane.b32.xlu1 %v13448_v49, %s10006_s27  ;;  %v9170_v62 = vld [vmem:[%s10091_s5 + $0x440] sm:$0xff] }
 0x6b5   : > { %v5255_v56 = vpop.permute.xlu0 %5254 }
 0x6b6   : > { %5428 = vst.msk [vmem:[#allocation2 + $0x290] sm:$0xff] %vm2204_vm5, %v5255_v56  ;;  %v5257_v55 = vpop.permute.xlu1 %5256 }
 0x6b7   : > { %5429 = vst.msk [vmem:[#allocation2 + $0x298] sm:$0xff] %vm2204_vm5, %v5257_v55  ;;  %6392 = vrot.lane.b32.xlu0 %v13451_v59, %s10006_s27  ;;  %v9234_v55 = vld [vmem:[%s10091_s5 + $0x111] sm:$0xff] }
 0x6b8   : > { %5626 = vrot.lane.b32.xlu1 %v9163_v48, %s10003_s11  ;;  %v9233_v48 = vld [vmem:[%s10091_s5 + $0x109] sm:$0xff] }
 0x6b9   : > { %v5259_v21 = vpop.permute.xlu0 %5258 }
 0x6ba   : > { %5430 = vst.msk [vmem:[#allocation2 + $0x2a0] sm:$0xff] %vm2204_vm5, %v5259_v21  ;;  %v5261_v49 = vpop.permute.xlu1 %5260 }
 0x6bb   : > { %5431 = vst.msk [vmem:[#allocation2 + $0x2a8] sm:$0xff] %vm2204_vm5, %v5261_v49  ;;  %5628 = vrot.lane.b32.xlu0 %v9164_v0, %s10003_s11 }
 0x6bc   : > { %6010 = vrot.lane.b32.xlu1 %v9227_v44, %s10004_s12  ;;  %v9171_v44 = vld [vmem:[%s10091_s5 + $0x450] sm:$0xff] }
 0x6bd   : > { %v5263_v16 = vpop.permute.xlu0 %5262 }
 0x6be   : > { %5432 = vst.msk [vmem:[#allocation2 + $0x2b0] sm:$0xff] %vm2204_vm5, %v5263_v16  ;;  %v5265_v59 = vpop.permute.xlu1 %5264 }
 0x6bf   : > { %5433 = vst.msk [vmem:[#allocation2 + $0x2b8] sm:$0xff] %vm2204_vm5, %v5265_v59  ;;  %6012 = vrot.lane.b32.xlu0 %v9228_v27, %s10004_s12  ;;  %v9172_v27 = vld [vmem:[%s10091_s5 + $0x458] sm:$0xff]  ;;  %v9235_v59 = vld [vmem:[%s10091_s5 + $0x121] sm:$0xff] }
 0x6c0   : > { %6394 = vrot.lane.b32.xlu1 %v13460_v8, %s10006_s27 }
 0x6c1   : > { %v5267_v50 = vpop.permute.xlu0 %5266 }
 0x6c2   : > { %5434 = vst.msk [vmem:[#allocation2 + $0x2c0] sm:$0xff] %vm2204_vm5, %v5267_v50  ;;  %v5269_v11 = vpop.permute.xlu1 %5268  ;;  %v9236_v50 = vld [vmem:[%s10091_s5 + $0x129] sm:$0xff] }
 0x6c3   : > { %5435 = vst.msk [vmem:[#allocation2 + $0x2c8] sm:$0xff] %vm2204_vm5, %v5269_v11  ;;  %6396 = vrot.lane.b32.xlu0 %v13463_v37, %s10006_s27 }
 0x6c4   : > { %5630 = vrot.lane.b32.xlu1 %v9165_v54, %s10003_s11 }
 0x6c5   : > { %v5271_v1 = vpop.permute.xlu0 %5270 }
 0x6c6   : > { %5436 = vst.msk [vmem:[#allocation2 + $0x2d0] sm:$0xff] %vm2204_vm5, %v5271_v1  ;;  %v5273_v8 = vpop.permute.xlu1 %5272 }
 0x6c7   : > { %5437 = vst.msk [vmem:[#allocation2 + $0x2d8] sm:$0xff] %vm2204_vm5, %v5273_v8  ;;  %5632 = vrot.lane.b32.xlu0 %v9166_v19, %s10003_s11  ;;  %v9173_v19 = vld [vmem:[%s10091_s5 + $0x468] sm:$0xff]  ;;  %v9174_v8 = vld [vmem:[%s10091_s5 + $0x470] sm:$0xff] }
 0x6c8   : > { %6014 = vrot.lane.b32.xlu1 %v9229_v3, %s10004_s12 }
 0x6c9   : > { %v5275_v13 = vpop.permute.xlu0 %5274 }
 0x6ca   : > { %5438 = vst.msk [vmem:[#allocation2 + $0x2e0] sm:$0xff] %vm2204_vm5, %v5275_v13  ;;  %v5277_v37 = vpop.permute.xlu1 %5276 }
 0x6cb   : > { %5439 = vst.msk [vmem:[#allocation2 + $0x2e8] sm:$0xff] %vm2204_vm5, %v5277_v37  ;;  %6016 = vrot.lane.b32.xlu0 %v9230_v40, %s10004_s12 }
 0x6cc   : > { %6398 = vrot.lane.b32.xlu1 %v13472_v42, %s10006_s27 }
 0x6cd   : > { %v5279_v45 = vpop.permute.xlu0 %5278 }
 0x6ce   : > { %5440 = vst.msk [vmem:[#allocation2 + $0x2f0] sm:$0xff] %vm2204_vm5, %v5279_v45  ;;  %v5281_v39 = vpop.permute.xlu1 %5280  ;;  %v9238_v45 = vld [vmem:[%s10091_s5 + $0x141] sm:$0xff] }
 0x6cf   : > { %5441 = vst.msk [vmem:[#allocation2 + $0x2f8] sm:$0xff] %vm2204_vm5, %v5281_v39  ;;  %6400 = vrot.lane.b32.xlu0 %v13475_v14, %s10006_s27 }
 0x6d0   : > { %5634 = vrot.lane.b32.xlu1 %v9167_v20, %s10003_s11 }
 0x6d1   : > { %v5283_v35 = vpop.permute.xlu0 %5282 }
 0x6d2   : > { %5442 = vst.msk [vmem:[#allocation2 + $0x300] sm:$0xff] %vm2204_vm5, %v5283_v35  ;;  %v5285_v42 = vpop.permute.xlu1 %5284 }
 0x6d3   : > { %5443 = vst.msk [vmem:[#allocation2 + $0x308] sm:$0xff] %vm2204_vm5, %v5285_v42  ;;  %5636 = vrot.lane.b32.xlu0 %v9168_v22, %s10003_s11  ;;  %v9175_v22 = vld [vmem:[%s10091_s5 + $0x480] sm:$0xff]  ;;  %v9176_v42 = vld [vmem:[%s10091_s5 + $0x488] sm:$0xff] }
 0x6d4   : > { %6018 = vrot.lane.b32.xlu1 %v9231_v2, %s10004_s12 }
 0x6d5   : > { %v5287_v30 = vpop.permute.xlu0 %5286 }
 0x6d6   : > { %5444 = vst.msk [vmem:[#allocation2 + $0x310] sm:$0xff] %vm2204_vm5, %v5287_v30  ;;  %v5289_v14 = vpop.permute.xlu1 %5288 }
 0x6d7   : > { %5445 = vst.msk [vmem:[#allocation2 + $0x318] sm:$0xff] %vm2204_vm5, %v5289_v14  ;;  %6020 = vrot.lane.b32.xlu0 %v9232_v52, %s10004_s12 }
 0x6d8   : > { %6402 = vrot.lane.b32.xlu1 %v13484_v38, %s10006_s27 }
 0x6d9   : > { %v5291_v63 = vpop.permute.xlu0 %5290 }
 0x6da   : > { %5446 = vst.msk [vmem:[#allocation2 + $0x320] sm:$0xff] %vm2204_vm5, %v5291_v63  ;;  %v5293_v17 = vpop.permute.xlu1 %5292 }
 0x6db   : > { %5447 = vst.msk [vmem:[#allocation2 + $0x328] sm:$0xff] %vm2204_vm5, %v5293_v17  ;;  %6404 = vrot.lane.b32.xlu0 %v13487_v5, %s10006_s27 }
 0x6dc   : > { %5638 = vrot.lane.b32.xlu1 %v9169_v29, %s10003_s11 }
 0x6dd   : > { %v5295_v56 = vpop.permute.xlu0 %5294 }
 0x6de   : > { %5448 = vst.msk [vmem:[#allocation2 + $0x330] sm:$0xff] %vm2204_vm5, %v5295_v56  ;;  %v5297_v38 = vpop.permute.xlu1 %5296 }
 0x6df   : > { %5449 = vst.msk [vmem:[#allocation2 + $0x338] sm:$0xff] %vm2204_vm5, %v5297_v38  ;;  %5640 = vrot.lane.b32.xlu0 %v9170_v62, %s10003_s11  ;;  %v9177_v62 = vld [vmem:[%s10091_s5 + $0x498] sm:$0xff]  ;;  %v9178_v38 = vld [vmem:[%s10091_s5 + $0x4a0] sm:$0xff] }
 0x6e0   : > { %6022 = vrot.lane.b32.xlu1 %v9233_v48, %s10004_s12 }
 0x6e1   : > { %v5299_v0 = vpop.permute.xlu0 %5298 }
 0x6e2   : > { %5450 = vst.msk [vmem:[#allocation2 + $0x340] sm:$0xff] %vm2204_vm5, %v5299_v0  ;;  %v5603_v5 = vpop.permute.xlu1 %5602 }
 0x6e3   : > { %5794 = vst.msk [vmem:[#allocation2 + $0x200] sm:$0xff] %vm2590_vm6, %v5603_v5  ;;  %6024 = vrot.lane.b32.xlu0 %v9234_v55, %s10004_s12 }
 0x6e4   : > { %6406 = vrot.lane.b32.xlu1 %v13496_v32, %s10006_s27 }
 0x6e5   : > { %v5605_v21 = vpop.permute.xlu0 %5604 }
 0x6e6   : > { %5795 = vst.msk [vmem:[#allocation2 + $0x208] sm:$0xff] %vm2590_vm6, %v5605_v21  ;;  %v5987_v49 = vpop.permute.xlu1 %5986 }
 0x6e7   : > { %6178 = vst.msk [vmem:[#allocation2 + $0x200] sm:$0xff] %vm2976_vm7, %v5987_v49  ;;  %6408 = vrot.lane.b32.xlu0 %v13499_v61, %s10006_s27 }
 0x6e8   : > { %5642 = vrot.lane.b32.xlu1 %v9171_v44, %s10003_s11 }
 0x6e9   : > { %v5989_v16 = vpop.permute.xlu0 %5988 }
 0x6ea   : > { %6179 = vst.msk [vmem:[#allocation2 + $0x208] sm:$0xff] %vm2976_vm7, %v5989_v16  ;;  %v6371_v32 = vpop.permute.xlu1 %6370 }
 0x6eb   : > { %6562 = vst.msk [vmem:[#allocation2 + $0x200] sm:$0xff] %vm3361_vm11, %v6371_v32  ;;  %5644 = vrot.lane.b32.xlu0 %v9172_v27, %s10003_s11  ;;  %v9179_v27 = vld [vmem:[%s10091_s5 + $0x4b0] sm:$0xff]  ;;  %v9180_v32 = vld [vmem:[%s10091_s5 + $0x4b8] sm:$0xff] }
 0x6ec   : > { %6026 = vrot.lane.b32.xlu1 %v9235_v59, %s10004_s12 }
 0x6ed   : > { %v6373_v54 = vpop.permute.xlu0 %6372 }
 0x6ee   : > { %6563 = vst.msk [vmem:[#allocation2 + $0x208] sm:$0xff] %vm3361_vm11, %v6373_v54  ;;  %v5607_v61 = vpop.permute.xlu1 %5606 }
 0x6ef   : > { %5796 = vst.msk [vmem:[#allocation2 + $0x210] sm:$0xff] %vm2590_vm6, %v5607_v61  ;;  %6028 = vrot.lane.b32.xlu0 %v9236_v50, %s10004_s12 }
 0x6f0   : > { %6410 = vrot.lane.b32.xlu1 %v13508_v26, %s10006_s27  ;;  %v9237_v26 = vld [vmem:[%s10091_s5 + $0x139] sm:$0xff] }
 0x6f1   : > { %v5609_v11 = vpop.permute.xlu0 %5608 }
 0x6f2   : > { %5797 = vst.msk [vmem:[#allocation2 + $0x218] sm:$0xff] %vm2590_vm6, %v5609_v11  ;;  %v5991_v1 = vpop.permute.xlu1 %5990  ;;  %v6690_v3 = vld [vmem:[#allocation2 + $0x200] sm:$0xff] }
 0x6f3   : > { %6180 = vst.msk [vmem:[#allocation2 + $0x210] sm:$0xff] %vm2976_vm7, %v5991_v1  ;;  %9710 = vmatprep.mubr.msk.f32.mxu1 %vm6756_vm12, %v6690_v3  ;;  %6412 = vrot.lane.b32.xlu0 %v13511_v53, %s10006_s27  ;;  %v9181_v3 = vld [vmem:[%s10091_s5 + $0x4c8] sm:$0xff] }
 0x6f4   : > { %5646 = vrot.lane.b32.xlu1 %v9173_v19, %s10003_s11 }
 0x6f5   : > { %v5993_v40 = vpop.permute.xlu0 %5992  ;;  %v6691_v13 = vld [vmem:[#allocation2 + $0x208] sm:$0xff] }
 0x6f6   : > { %6181 = vst.msk [vmem:[#allocation2 + $0x218] sm:$0xff] %vm2976_vm7, %v5993_v40  ;;  %v6375_v37 = vpop.permute.xlu1 %6374  ;;  %9711 = vmatmul.mubr.msk.f32.vlgmr.msra.gmra.mrb[0].mxu1 %vm6756_vm12, %v6691_v13  ;;  %v9182_v13 = vld [vmem:[%s10091_s5 + $0x4d0] sm:$0xff] }
 0x6f7   : > { %6564 = vst.msk [vmem:[#allocation2 + $0x210] sm:$0xff] %vm3361_vm11, %v6375_v37  ;;  %5648 = vrot.lane.b32.xlu0 %v9174_v8, %s10003_s11 }
 0x6f8   : > { %6030 = vrot.lane.b32.xlu1 %v9237_v26, %s10004_s12 }
 0x6f9   : > { %v6377_v53 = vpop.permute.xlu0 %6376 }
 0x6fa   : > { %6565 = vst.msk [vmem:[#allocation2 + $0x218] sm:$0xff] %vm3361_vm11, %v6377_v53  ;;  %v5611_v20 = vpop.permute.xlu1 %5610 }
 0x6fb   : > { %5798 = vst.msk [vmem:[#allocation2 + $0x220] sm:$0xff] %vm2590_vm6, %v5611_v20  ;;  %6032 = vrot.lane.b32.xlu0 %v9238_v45, %s10004_s12 }
 0x6fc   : > { %6414 = vrot.lane.b32.xlu1 %v13520_v9, %s10006_s27  ;;  %v9239_v9 = vld [vmem:[%s10091_s5 + $0x151] sm:$0xff] }
 0x6fd   : > { %v5613_v39 = vpop.permute.xlu0 %5612 }
 0x6fe   : > { %5799 = vst.msk [vmem:[#allocation2 + $0x228] sm:$0xff] %vm2590_vm6, %v5613_v39  ;;  %v5995_v35 = vpop.permute.xlu1 %5994  ;;  %v6692_v2 = vld [vmem:[#allocation2 + $0x210] sm:$0xff] }
 0x6ff   : > { %6182 = vst.msk [vmem:[#allocation2 + $0x220] sm:$0xff] %vm2976_vm7, %v5995_v35  ;;  %6416 = vrot.lane.b32.xlu0 %v13523_v47, %s10006_s27  ;;  %9713 = vmatprep.mubr.msk.f32.mxu1 %vm6756_vm12, %v6692_v2  ;;  %v9240_v47 = vld [vmem:[%s10091_s5 + $0x159] sm:$0xff] }
 0x700   : > { %5650 = vrot.lane.b32.xlu1 %v9175_v22, %s10003_s11  ;;  %v9183_v22 = vld [vmem:[%s10091_s5 + $0x4e0] sm:$0xff] }
 0x701   : > { %v5997_v52 = vpop.permute.xlu0 %5996  ;;  %v6693_v30 = vld [vmem:[#allocation2 + $0x218] sm:$0xff] }
 0x702   : > { %6183 = vst.msk [vmem:[#allocation2 + $0x228] sm:$0xff] %vm2976_vm7, %v5997_v52  ;;  %v6379_v14 = vpop.permute.xlu1 %6378  ;;  %9714 = vmatmul.mubr.msk.f32.gmra.mrb[2].mxu1 %vm6756_vm12, %v6693_v30 }
 0x703   : > { %6566 = vst.msk [vmem:[#allocation2 + $0x220] sm:$0xff] %vm3361_vm11, %v6379_v14  ;;  %5652 = vrot.lane.b32.xlu0 %v9176_v42, %s10003_s11  ;;  %v9184_v42 = vld [vmem:[%s10091_s5 + $0x4e8] sm:$0xff] }
 0x704   : > { %6034 = vrot.lane.b32.xlu1 %v9239_v9, %s10004_s12 }
 0x705   : > { %v6381_v63 = vpop.permute.xlu0 %6380 }
 0x706   : > { %6567 = vst.msk [vmem:[#allocation2 + $0x228] sm:$0xff] %vm3361_vm11, %v6381_v63  ;;  %v5615_v29 = vpop.permute.xlu1 %5614 }
 0x707   : > { %5800 = vst.msk [vmem:[#allocation2 + $0x230] sm:$0xff] %vm2590_vm6, %v5615_v29  ;;  %6036 = vrot.lane.b32.xlu0 %v9240_v47, %s10004_s12  ;;  %v9185_v29 = vld [vmem:[%s10091_s5 + $0x4f8] sm:$0xff] }
 0x708   : > { %6418 = vrot.lane.b32.xlu1 %v13532_v46, %s10006_s27  ;;  %v9241_v46 = vld [vmem:[%s10091_s5 + $0x169] sm:$0xff] }
 0x709   : > { %v5617_v17 = vpop.permute.xlu0 %5616 }
 0x70a   : > { %5801 = vst.msk [vmem:[#allocation2 + $0x238] sm:$0xff] %vm2590_vm6, %v5617_v17  ;;  %v5999_v56 = vpop.permute.xlu1 %5998  ;;  %v6694_v48 = vld [vmem:[#allocation2 + $0x220] sm:$0xff] }
 0x70b   : > { %6184 = vst.msk [vmem:[#allocation2 + $0x230] sm:$0xff] %vm2976_vm7, %v5999_v56  ;;  %6420 = vrot.lane.b32.xlu0 %v13535_v41, %s10006_s27  ;;  %9716 = vmatprep.mubr.msk.f32.mxu1 %vm6756_vm12, %v6694_v48  ;;  %v9242_v41 = vld [vmem:[%s10091_s5 + $0x171] sm:$0xff]  ;;  %v9186_v56 = vld [vmem:[%s10091_s5 + $0x500] sm:$0xff] }
 0x70c   : > { %5654 = vrot.lane.b32.xlu1 %v9177_v62, %s10003_s11 }
 0x70d   : > { %v6001_v55 = vpop.permute.xlu0 %6000  ;;  %v6695_v0 = vld [vmem:[#allocation2 + $0x228] sm:$0xff] }
 0x70e   : > { %6185 = vst.msk [vmem:[#allocation2 + $0x238] sm:$0xff] %vm2976_vm7, %v6001_v55  ;;  %v6383_v5 = vpop.permute.xlu1 %6382  ;;  %9717 = vmatmul.mubr.msk.f32.gmra.mrb[4].mxu1 %vm6756_vm12, %v6695_v0 }
 0x70f   : > { %6568 = vst.msk [vmem:[#allocation2 + $0x230] sm:$0xff] %vm3361_vm11, %v6383_v5  ;;  %5656 = vrot.lane.b32.xlu0 %v9178_v38, %s10003_s11 }
 0x710   : > { %6038 = vrot.lane.b32.xlu1 %v9241_v46, %s10004_s12 }
 0x711   : > { %v6385_v21 = vpop.permute.xlu0 %6384 }
 0x712   : > { %6569 = vst.msk [vmem:[#allocation2 + $0x238] sm:$0xff] %vm3361_vm11, %v6385_v21  ;;  %v5619_v44 = vpop.permute.xlu1 %5618 }
 0x713   : > { %5802 = vst.msk [vmem:[#allocation2 + $0x240] sm:$0xff] %vm2590_vm6, %v5619_v44  ;;  %6040 = vrot.lane.b32.xlu0 %v9242_v41, %s10004_s12  ;;  %v9187_v41 = vld [vmem:[%s10091_s5 + $0x510] sm:$0xff] }
 0x714   : > { %6422 = vrot.lane.b32.xlu1 %v13544_v6, %s10006_s27  ;;  %v9243_v6 = vld [vmem:[%s10091_s5 + $0x181] sm:$0xff] }
 0x715   : > { %v5621_v49 = vpop.permute.xlu0 %5620 }
 0x716   : > { %5803 = vst.msk [vmem:[#allocation2 + $0x248] sm:$0xff] %vm2590_vm6, %v5621_v49  ;;  %v6003_v16 = vpop.permute.xlu1 %6002  ;;  %v6696_v59 = vld [vmem:[#allocation2 + $0x230] sm:$0xff]  ;;  %v9188_v49 = vld [vmem:[%s10091_s5 + $0x518] sm:$0xff] }
 0x717   : > { %6186 = vst.msk [vmem:[#allocation2 + $0x240] sm:$0xff] %vm2976_vm7, %v6003_v16  ;;  %6424 = vrot.lane.b32.xlu0 %v13547_v36, %s10006_s27  ;;  %9719 = vmatprep.mubr.msk.f32.mxu1 %vm6756_vm12, %v6696_v59  ;;  %v9244_v36 = vld [vmem:[%s10091_s5 + $0x189] sm:$0xff] }
 0x718   : > { %5658 = vrot.lane.b32.xlu1 %v9179_v27, %s10003_s11 }
 0x719   : > { %v6005_v50 = vpop.permute.xlu0 %6004  ;;  %v6697_v54 = vld [vmem:[#allocation2 + $0x238] sm:$0xff] }
 0x71a   : > { %6187 = vst.msk [vmem:[#allocation2 + $0x248] sm:$0xff] %vm2976_vm7, %v6005_v50  ;;  %v6387_v61 = vpop.permute.xlu1 %6386  ;;  %9720 = vmatmul.mubr.msk.f32.gmra.mrb[6].mxu1 %vm6756_vm12, %v6697_v54 }
 0x71b   : > { %6570 = vst.msk [vmem:[#allocation2 + $0x240] sm:$0xff] %vm3361_vm11, %v6387_v61  ;;  %5660 = vrot.lane.b32.xlu0 %v9180_v32, %s10003_s11 }
 0x71c   : > { %6042 = vrot.lane.b32.xlu1 %v9243_v6, %s10004_s12  ;;  %v9189_v6 = vld [vmem:[%s10091_s5 + $0x528] sm:$0xff] }
 0x71d   : > { %v6389_v11 = vpop.permute.xlu0 %6388 }
 0x71e   : > { %6571 = vst.msk [vmem:[#allocation2 + $0x248] sm:$0xff] %vm3361_vm11, %v6389_v11  ;;  %v5623_v19 = vpop.permute.xlu1 %5622  ;;  %v9190_v11 = vld [vmem:[%s10091_s5 + $0x530] sm:$0xff] }
 0x71f   : > { %5804 = vst.msk [vmem:[#allocation2 + $0x250] sm:$0xff] %vm2590_vm6, %v5623_v19  ;;  %6044 = vrot.lane.b32.xlu0 %v9244_v36, %s10004_s12 }
 0x720   : > { %6426 = vrot.lane.b32.xlu1 %v13556_v7, %s10006_s27  ;;  %v9245_v7 = vld [vmem:[%s10091_s5 + $0x199] sm:$0xff] }
 0x721   : > { %v5625_v1 = vpop.permute.xlu0 %5624 }
 0x722   : > { %5805 = vst.msk [vmem:[#allocation2 + $0x258] sm:$0xff] %vm2590_vm6, %v5625_v1  ;;  %v6007_v8 = vpop.permute.xlu1 %6006  ;;  %v6698_v40 = vld [vmem:[#allocation2 + $0x240] sm:$0xff] }
 0x723   : > { %6188 = vst.msk [vmem:[#allocation2 + $0x250] sm:$0xff] %vm2976_vm7, %v6007_v8  ;;  %6428 = vrot.lane.b32.xlu0 %v13559_v31, %s10006_s27  ;;  %9722 = vmatprep.mubr.msk.f32.mxu1 %vm6756_vm12, %v6698_v40  ;;  %v9246_v31 = vld [vmem:[%s10091_s5 + $0x1a1] sm:$0xff]  ;;  %v9253_v1 = vld [vmem:[%s10091_s5 + $0x1f9] sm:$0xff] }
 0x724   : > { %5662 = vrot.lane.b32.xlu1 %v9181_v3, %s10003_s11 }
 0x725   : > { %v6009_v26 = vpop.permute.xlu0 %6008  ;;  %v6699_v37 = vld [vmem:[#allocation2 + $0x248] sm:$0xff] }
 0x726   : > { %6189 = vst.msk [vmem:[#allocation2 + $0x258] sm:$0xff] %vm2976_vm7, %v6009_v26  ;;  %v6391_v45 = vpop.permute.xlu1 %6390  ;;  %9723 = vmatmul.mubr.msk.f32.gmra.mrb[8].mxu1 %vm6756_vm12, %v6699_v37 }
 0x727   : > { %6572 = vst.msk [vmem:[#allocation2 + $0x250] sm:$0xff] %vm3361_vm11, %v6391_v45  ;;  %5664 = vrot.lane.b32.xlu0 %v9182_v13, %s10003_s11  ;;  %v9318_v13 = vld [vmem:[%s10091_s5 + $0x531] sm:$0xff]  ;;  %v9191_v45 = vld [vmem:[%s10091_s5 + $0x540] sm:$0xff] }
 0x728   : > { %6046 = vrot.lane.b32.xlu1 %v9245_v7, %s10004_s12 }
 0x729   : > { %v6393_v53 = vpop.permute.xlu0 %6392 }
 0x72a   : > { %6573 = vst.msk [vmem:[#allocation2 + $0x258] sm:$0xff] %vm3361_vm11, %v6393_v53  ;;  %v5627_v20 = vpop.permute.xlu1 %5626 }
 0x72b   : > { %5806 = vst.msk [vmem:[#allocation2 + $0x260] sm:$0xff] %vm2590_vm6, %v5627_v20  ;;  %6048 = vrot.lane.b32.xlu0 %v9246_v31, %s10004_s12 }
 0x72c   : > { %6430 = vrot.lane.b32.xlu1 %v13568_v23, %s10006_s27  ;;  %v9247_v23 = vld [vmem:[%s10091_s5 + $0x1b1] sm:$0xff] }
 0x72d   : > { %v5629_v39 = vpop.permute.xlu0 %5628 }
 0x72e   : > { %5807 = vst.msk [vmem:[#allocation2 + $0x268] sm:$0xff] %vm2590_vm6, %v5629_v39  ;;  %v6011_v35 = vpop.permute.xlu1 %6010  ;;  %v6700_v2 = vld [vmem:[#allocation2 + $0x250] sm:$0xff] }
 0x72f   : > { %6190 = vst.msk [vmem:[#allocation2 + $0x260] sm:$0xff] %vm2976_vm7, %v6011_v35  ;;  %6432 = vrot.lane.b32.xlu0 %v13571_v25, %s10006_s27  ;;  %9725 = vmatprep.mubr.msk.f32.mxu1 %vm6756_vm12, %v6700_v2  ;;  %v9248_v25 = vld [vmem:[%s10091_s5 + $0x1b9] sm:$0xff]  ;;  %v9255_v39 = vld [vmem:[%s10091_s5 + $0x211] sm:$0xff] }
 0x730   : > { %5666 = vrot.lane.b32.xlu1 %v9183_v22, %s10003_s11  ;;  %v9256_v35 = vld [vmem:[%s10091_s5 + $0x219] sm:$0xff] }
 0x731   : > { %v6013_v52 = vpop.permute.xlu0 %6012  ;;  %v6701_v30 = vld [vmem:[#allocation2 + $0x258] sm:$0xff] }
 0x732   : > { %6191 = vst.msk [vmem:[#allocation2 + $0x268] sm:$0xff] %vm2976_vm7, %v6013_v52  ;;  %v6395_v9 = vpop.permute.xlu1 %6394  ;;  %9726 = vmatmul.mubr.msk.f32.gmra.mrb[10].mxu1 %vm6756_vm12, %v6701_v30 }
 0x733   : > { %6574 = vst.msk [vmem:[#allocation2 + $0x260] sm:$0xff] %vm3361_vm11, %v6395_v9  ;;  %5668 = vrot.lane.b32.xlu0 %v9184_v42, %s10003_s11  ;;  %v9319_v42 = vld [vmem:[%s10091_s5 + $0x541] sm:$0xff]  ;;  %v9320_v9 = vld [vmem:[%s10091_s5 + $0x549] sm:$0xff] }
 0x734   : > { %6050 = vrot.lane.b32.xlu1 %v9247_v23, %s10004_s12 }
 0x735   : > { %v6397_v14 = vpop.permute.xlu0 %6396 }
 0x736   : > { %6575 = vst.msk [vmem:[#allocation2 + $0x268] sm:$0xff] %vm3361_vm11, %v6397_v14  ;;  %v5631_v47 = vpop.permute.xlu1 %5630 }
 0x737   : > { %5808 = vst.msk [vmem:[#allocation2 + $0x270] sm:$0xff] %vm2590_vm6, %v5631_v47  ;;  %6052 = vrot.lane.b32.xlu0 %v9248_v25, %s10004_s12 }
 0x738   : > { %6434 = vrot.lane.b32.xlu1 %v13580_v28, %s10006_s27  ;;  %v9249_v28 = vld [vmem:[%s10091_s5 + $0x1c9] sm:$0xff] }
 0x739   : > { %v5633_v63 = vpop.permute.xlu0 %5632 }
 0x73a   : > { %5809 = vst.msk [vmem:[#allocation2 + $0x278] sm:$0xff] %vm2590_vm6, %v5633_v63  ;;  %v6015_v17 = vpop.permute.xlu1 %6014  ;;  %v6702_v62 = vld [vmem:[#allocation2 + $0x260] sm:$0xff]  ;;  %v9193_v63 = vld [vmem:[%s10091_s5 + $0x558] sm:$0xff] }
 0x73b   : > { %6192 = vst.msk [vmem:[#allocation2 + $0x270] sm:$0xff] %vm2976_vm7, %v6015_v17  ;;  %6436 = vrot.lane.b32.xlu0 %v13583_v58, %s10006_s27  ;;  %9728 = vmatprep.mubr.msk.f32.mxu1 %vm6756_vm12, %v6702_v62  ;;  %v9250_v58 = vld [vmem:[%s10091_s5 + $0x1d1] sm:$0xff]  ;;  %v9194_v17 = vld [vmem:[%s10091_s5 + $0x560] sm:$0xff] }
 0x73c   : > { %5670 = vrot.lane.b32.xlu1 %v9185_v29, %s10003_s11 }
 0x73d   : > { %v6017_v48 = vpop.permute.xlu0 %6016  ;;  %v6703_v38 = vld [vmem:[#allocation2 + $0x268] sm:$0xff] }
 0x73e   : > { %6193 = vst.msk [vmem:[#allocation2 + $0x278] sm:$0xff] %vm2976_vm7, %v6017_v48  ;;  %v6399_v55 = vpop.permute.xlu1 %6398  ;;  %9729 = vmatmul.mubr.msk.f32.gmra.mrb[12].mxu1 %vm6756_vm12, %v6703_v38  ;;  %v9258_v38 = vld [vmem:[%s10091_s5 + $0x231] sm:$0xff] }
 0x73f   : > { %6576 = vst.msk [vmem:[#allocation2 + $0x270] sm:$0xff] %vm3361_vm11, %v6399_v55  ;;  %5672 = vrot.lane.b32.xlu0 %v9186_v56, %s10003_s11  ;;  %v9257_v56 = vld [vmem:[%s10091_s5 + $0x229] sm:$0xff] }
 0x740   : > { %6054 = vrot.lane.b32.xlu1 %v9249_v28, %s10004_s12 }
 0x741   : > { %v6401_v0 = vpop.permute.xlu0 %6400 }
 0x742   : > { %6577 = vst.msk [vmem:[#allocation2 + $0x278] sm:$0xff] %vm3361_vm11, %v6401_v0  ;;  %v5635_v46 = vpop.permute.xlu1 %5634 }
 0x743   : > { %5810 = vst.msk [vmem:[#allocation2 + $0x280] sm:$0xff] %vm2590_vm6, %v5635_v46  ;;  %6056 = vrot.lane.b32.xlu0 %v9250_v58, %s10004_s12  ;;  %v9321_v58 = vld [vmem:[%s10091_s5 + $0x559] sm:$0xff] }
 0x744   : > { %6438 = vrot.lane.b32.xlu1 %v13592_v12, %s10006_s27  ;;  %v9251_v12 = vld [vmem:[%s10091_s5 + $0x1e1] sm:$0xff] }
 0x745   : > { %v5637_v5 = vpop.permute.xlu0 %5636 }
 0x746   : > { %5811 = vst.msk [vmem:[#allocation2 + $0x288] sm:$0xff] %vm2590_vm6, %v5637_v5  ;;  %v6019_v21 = vpop.permute.xlu1 %6018  ;;  %v6704_v44 = vld [vmem:[#allocation2 + $0x270] sm:$0xff] }
 0x747   : > { %6194 = vst.msk [vmem:[#allocation2 + $0x280] sm:$0xff] %vm2976_vm7, %v6019_v21  ;;  %6440 = vrot.lane.b32.xlu0 %v13595_v43, %s10006_s27  ;;  %9731 = vmatprep.mubr.msk.f32.mxu1 %vm6756_vm12, %v6704_v44  ;;  %v9252_v43 = vld [vmem:[%s10091_s5 + $0x1e9] sm:$0xff] }
 0x748   : > { %5674 = vrot.lane.b32.xlu1 %v9187_v41, %s10003_s11  ;;  %v9322_v41 = vld [vmem:[%s10091_s5 + $0x561] sm:$0xff] }
 0x749   : > { %v6021_v27 = vpop.permute.xlu0 %6020  ;;  %v6705_v16 = vld [vmem:[#allocation2 + $0x278] sm:$0xff] }
 0x74a   : > { %6195 = vst.msk [vmem:[#allocation2 + $0x288] sm:$0xff] %vm2976_vm7, %v6021_v27  ;;  %v6403_v59 = vpop.permute.xlu1 %6402  ;;  %9732 = vmatmul.mubr.msk.f32.gmra.mrb[14].mxu1 %vm6756_vm12, %v6705_v16  ;;  %v9196_v16 = vld [vmem:[%s10091_s5 + $0x578] sm:$0xff] }
 0x74b   : > { %6578 = vst.msk [vmem:[#allocation2 + $0x280] sm:$0xff] %vm3361_vm11, %v6403_v59  ;;  %5676 = vrot.lane.b32.xlu0 %v9188_v49, %s10003_s11  ;;  %v9195_v49 = vld [vmem:[%s10091_s5 + $0x570] sm:$0xff] }
 0x74c   : > { %6058 = vrot.lane.b32.xlu1 %v9251_v12, %s10004_s12 }
 0x74d   : > { %v6405_v32 = vpop.permute.xlu0 %6404 }
 0x74e   : > { %6579 = vst.msk [vmem:[#allocation2 + $0x288] sm:$0xff] %vm3361_vm11, %v6405_v32  ;;  %v5639_v50 = vpop.permute.xlu1 %5638 }
 0x74f   : > { %5812 = vst.msk [vmem:[#allocation2 + $0x290] sm:$0xff] %vm2590_vm6, %v5639_v50  ;;  %6060 = vrot.lane.b32.xlu0 %v9252_v43, %s10004_s12  ;;  %v9259_v43 = vld [vmem:[%s10091_s5 + $0x241] sm:$0xff] }
 0x750   : > { %6442 = vrot.lane.b32.xlu1 %v13604_v51, %s10006_s27 }
 0x751   : > { %v5641_v54 = vpop.permute.xlu0 %5640 }
 0x752   : > { %5813 = vst.msk [vmem:[#allocation2 + $0x298] sm:$0xff] %vm2590_vm6, %v5641_v54  ;;  %v6023_v61 = vpop.permute.xlu1 %6022  ;;  %v6706_v36 = vld [vmem:[#allocation2 + $0x280] sm:$0xff]  ;;  %v9260_v54 = vld [vmem:[%s10091_s5 + $0x249] sm:$0xff] }
 0x753   : > { %6196 = vst.msk [vmem:[#allocation2 + $0x290] sm:$0xff] %vm2976_vm7, %v6023_v61  ;;  %6444 = vrot.lane.b32.xlu0 %v13607_v10, %s10006_s27  ;;  %9734 = vmatprep.mubr.msk.f32.mxu1 %vm6756_vm12, %v6706_v36  ;;  %v9254_v10 = vld [vmem:[%s10091_s5 + $0x201] sm:$0xff]  ;;  %v9323_v61 = vld [vmem:[%s10091_s5 + $0x571] sm:$0xff] }
 0x754   : > { %5678 = vrot.lane.b32.xlu1 %v9189_v6, %s10003_s11 }
 0x755   : > { %v6025_v19 = vpop.permute.xlu0 %6024  ;;  %v6707_v51 = vld [vmem:[#allocation2 + $0x288] sm:$0xff] }
 0x756   : > { %6197 = vst.msk [vmem:[#allocation2 + $0x298] sm:$0xff] %vm2976_vm7, %v6025_v19  ;;  %v6407_v3 = vpop.permute.xlu1 %6406  ;;  %9735 = vmatmul.mubr.msk.f32.gmra.mrb[16].mxu1 %vm6756_vm12, %v6707_v51  ;;  %v9324_v19 = vld [vmem:[%s10091_s5 + $0x579] sm:$0xff] }
 0x757   : > { %6580 = vst.msk [vmem:[#allocation2 + $0x290] sm:$0xff] %vm3361_vm11, %v6407_v3  ;;  %5680 = vrot.lane.b32.xlu0 %v9190_v11, %s10003_s11 }
 0x758   : > { %6062 = vrot.lane.b32.xlu1 %v9253_v1, %s10004_s12 }
 0x759   : > { %v6409_v8 = vpop.permute.xlu0 %6408 }
 0x75a   : > { %6581 = vst.msk [vmem:[#allocation2 + $0x298] sm:$0xff] %vm3361_vm11, %v6409_v8  ;;  %v5643_v40 = vpop.permute.xlu1 %5642 }
 0x75b   : > { %5814 = vst.msk [vmem:[#allocation2 + $0x2a0] sm:$0xff] %vm2590_vm6, %v5643_v40  ;;  %6064 = vrot.lane.b32.xlu0 %v9254_v10, %s10004_s12  ;;  %v9197_v10 = vld [vmem:[%s10091_s5 + $0x588] sm:$0xff] }
 0x75c   : > { %6446 = vrot.lane.b32.xlu1 %v13616_v24, %s10006_s27  ;;  %v9192_v24 = vld [vmem:[%s10091_s5 + $0x548] sm:$0xff] }
 0x75d   : > { %v5645_v26 = vpop.permute.xlu0 %5644 }
 0x75e   : > { %5815 = vst.msk [vmem:[#allocation2 + $0x2a8] sm:$0xff] %vm2590_vm6, %v5645_v26  ;;  %v6027_v37 = vpop.permute.xlu1 %6026  ;;  %v6708_v7 = vld [vmem:[#allocation2 + $0x290] sm:$0xff] }
 0x75f   : > { %6198 = vst.msk [vmem:[#allocation2 + $0x2a0] sm:$0xff] %vm2976_vm7, %v6027_v37  ;;  %6448 = vrot.lane.b32.xlu0 %v9318_v13, %s10006_s27  ;;  %9737 = vmatprep.mubr.msk.f32.mxu1 %vm6756_vm12, %v6708_v7  ;;  %v9261_v37 = vld [vmem:[%s10091_s5 + $0x259] sm:$0xff] }
 0x760   : > { %5300 = vrot.lane.b32.xlu1 %v9318_v13, %s10002_s10  ;;  %v9198_v13 = vld [vmem:[%s10091_s5 + $0x590] sm:$0xff] }
 0x761   : > { %v6029_v31 = vpop.permute.xlu0 %6028  ;;  %v6709_v53 = vld [vmem:[#allocation2 + $0x298] sm:$0xff] }
 0x762   : > { %6199 = vst.msk [vmem:[#allocation2 + $0x2a8] sm:$0xff] %vm2976_vm7, %v6029_v31  ;;  %v6411_v20 = vpop.permute.xlu1 %6410  ;;  %9738 = vmatmul.mubr.msk.f32.gmra.mrb[18].mxu1 %vm6756_vm12, %v6709_v53  ;;  %v9325_v53 = vld [vmem:[%s10091_s5 + $0x589] sm:$0xff] }
 0x763   : > { %6582 = vst.msk [vmem:[#allocation2 + $0x2a0] sm:$0xff] %vm3361_vm11, %v6411_v20  ;;  %5682 = vrot.lane.b32.xlu0 %v9191_v45, %s10003_s11  ;;  %v9262_v45 = vld [vmem:[%s10091_s5 + $0x261] sm:$0xff] }
 0x764   : > { %5684 = vrot.lane.b32.xlu1 %v9192_v24, %s10003_s11 }
 0x765   : > { %v6413_v22 = vpop.permute.xlu0 %6412 }
 0x766   : > { %6583 = vst.msk [vmem:[#allocation2 + $0x2a8] sm:$0xff] %vm3361_vm11, %v6413_v22  ;;  %v5647_v2 = vpop.permute.xlu1 %5646  ;;  %v9326_v22 = vld [vmem:[%s10091_s5 + $0x591] sm:$0xff] }
 0x767   : > { %5816 = vst.msk [vmem:[#allocation2 + $0x2b0] sm:$0xff] %vm2590_vm6, %v5647_v2  ;;  %6066 = vrot.lane.b32.xlu0 %v9255_v39, %s10004_s12 }
 0x768   : > { %6068 = vrot.lane.b32.xlu1 %v9256_v35, %s10004_s12 }
 0x769   : > { %v5649_v52 = vpop.permute.xlu0 %5648 }
 0x76a   : > { %5817 = vst.msk [vmem:[#allocation2 + $0x2b8] sm:$0xff] %vm2590_vm6, %v5649_v52  ;;  %v6031_v30 = vpop.permute.xlu1 %6030  ;;  %v6710_v23 = vld [vmem:[#allocation2 + $0x2a0] sm:$0xff] }
 0x76b   : > { %6200 = vst.msk [vmem:[#allocation2 + $0x2b0] sm:$0xff] %vm2976_vm7, %v6031_v30  ;;  %6450 = vrot.lane.b32.xlu0 %v9319_v42, %s10006_s27  ;;  %9740 = vmatprep.mubr.msk.f32.mxu1 %vm6756_vm12, %v6710_v23  ;;  %v9199_v52 = vld [vmem:[%s10091_s5 + $0x5a0] sm:$0xff]  ;;  %v9200_v23 = vld [vmem:[%s10091_s5 + $0x5a8] sm:$0xff] }
 0x76c   : > { %5302 = vrot.lane.b32.xlu1 %v9319_v42, %s10002_s10 }
 0x76d   : > { %v6033_v25 = vpop.permute.xlu0 %6032  ;;  %v6711_v14 = vld [vmem:[#allocation2 + $0x2a8] sm:$0xff] }
 0x76e   : > { %6201 = vst.msk [vmem:[#allocation2 + $0x2b8] sm:$0xff] %vm2976_vm7, %v6033_v25  ;;  %v6415_v47 = vpop.permute.xlu1 %6414  ;;  %9741 = vmatmul.mubr.msk.f32.gmra.mrb[20].mxu1 %vm6756_vm12, %v6711_v14  ;;  %v9263_v25 = vld [vmem:[%s10091_s5 + $0x271] sm:$0xff] }
 0x76f   : > { %6584 = vst.msk [vmem:[#allocation2 + $0x2b0] sm:$0xff] %vm3361_vm11, %v6415_v47  ;;  %6452 = vrot.lane.b32.xlu0 %v9320_v9, %s10006_s27  ;;  %v9264_v47 = vld [vmem:[%s10091_s5 + $0x279] sm:$0xff] }
 0x770   : > { %5304 = vrot.lane.b32.xlu1 %v9320_v9, %s10002_s10 }
 0x771   : > { %v6417_v29 = vpop.permute.xlu0 %6416 }
 0x772   : > { %6585 = vst.msk [vmem:[#allocation2 + $0x2b8] sm:$0xff] %vm3361_vm11, %v6417_v29  ;;  %v5651_v62 = vpop.permute.xlu1 %5650 }
 0x773   : > { %5818 = vst.msk [vmem:[#allocation2 + $0x2c0] sm:$0xff] %vm2590_vm6, %v5651_v62  ;;  %5686 = vrot.lane.b32.xlu0 %v9193_v63, %s10003_s11 }
 0x774   : > { %5688 = vrot.lane.b32.xlu1 %v9194_v17, %s10003_s11  ;;  %v9327_v17 = vld [vmem:[%s10091_s5 + $0x5a1] sm:$0xff] }
 0x775   : > { %v5653_v48 = vpop.permute.xlu0 %5652 }
 0x776   : > { %5819 = vst.msk [vmem:[#allocation2 + $0x2c8] sm:$0xff] %vm2590_vm6, %v5653_v48  ;;  %v6035_v28 = vpop.permute.xlu1 %6034  ;;  %v6712_v55 = vld [vmem:[#allocation2 + $0x2b0] sm:$0xff] }
 0x777   : > { %6202 = vst.msk [vmem:[#allocation2 + $0x2c0] sm:$0xff] %vm2976_vm7, %v6035_v28  ;;  %6070 = vrot.lane.b32.xlu0 %v9257_v56, %s10004_s12  ;;  %9743 = vmatprep.mubr.msk.f32.mxu1 %vm6756_vm12, %v6712_v55 }
 0x778   : > { %6072 = vrot.lane.b32.xlu1 %v9258_v38, %s10004_s12  ;;  %v9328_v38 = vld [vmem:[%s10091_s5 + $0x5a9] sm:$0xff] }
 0x779   : > { %v6037_v0 = vpop.permute.xlu0 %6036  ;;  %v6713_v46 = vld [vmem:[#allocation2 + $0x2b8] sm:$0xff] }
 0x77a   : > { %6203 = vst.msk [vmem:[#allocation2 + $0x2c8] sm:$0xff] %vm2976_vm7, %v6037_v0  ;;  %v6419_v5 = vpop.permute.xlu1 %6418  ;;  %9744 = vmatmul.mubr.msk.f32.gmra.mrb[22].mxu1 %vm6756_vm12, %v6713_v46  ;;  %v9202_v46 = vld [vmem:[%s10091_s5 + $0x5c0] sm:$0xff] }
 0x77b   : > { %6586 = vst.msk [vmem:[#allocation2 + $0x2c0] sm:$0xff] %vm3361_vm11, %v6419_v5  ;;  %6454 = vrot.lane.b32.xlu0 %v9321_v58, %s10006_s27 }
 0x77c   : > { %5306 = vrot.lane.b32.xlu1 %v9321_v58, %s10002_s10  ;;  %v9201_v58 = vld [vmem:[%s10091_s5 + $0x5b8] sm:$0xff] }
 0x77d   : > { %v6421_v21 = vpop.permute.xlu0 %6420 }
 0x77e   : > { %6587 = vst.msk [vmem:[#allocation2 + $0x2c8] sm:$0xff] %vm3361_vm11, %v6421_v21  ;;  %v5655_v44 = vpop.permute.xlu1 %5654  ;;  %v9265_v21 = vld [vmem:[%s10091_s5 + $0x289] sm:$0xff] }
 0x77f   : > { %5820 = vst.msk [vmem:[#allocation2 + $0x2d0] sm:$0xff] %vm2590_vm6, %v5655_v44  ;;  %6456 = vrot.lane.b32.xlu0 %v9322_v41, %s10006_s27 }
 0x780   : > { %5308 = vrot.lane.b32.xlu1 %v9322_v41, %s10002_s10 }
 0x781   : > { %v5657_v27 = vpop.permute.xlu0 %5656 }
 0x782   : > { %5821 = vst.msk [vmem:[#allocation2 + $0x2d8] sm:$0xff] %vm2590_vm6, %v5657_v27  ;;  %v6039_v12 = vpop.permute.xlu1 %6038  ;;  %v6714_v59 = vld [vmem:[#allocation2 + $0x2c0] sm:$0xff]  ;;  %v9266_v27 = vld [vmem:[%s10091_s5 + $0x291] sm:$0xff] }
 0x783   : > { %6204 = vst.msk [vmem:[#allocation2 + $0x2d0] sm:$0xff] %vm2976_vm7, %v6039_v12  ;;  %5690 = vrot.lane.b32.xlu0 %v9195_v49, %s10003_s11  ;;  %9746 = vmatprep.mubr.msk.f32.mxu1 %vm6756_vm12, %v6714_v59  ;;  %v9329_v12 = vld [vmem:[%s10091_s5 + $0x5b9] sm:$0xff] }
 0x784   : > { %5692 = vrot.lane.b32.xlu1 %v9196_v16, %s10003_s11 }
 0x785   : > { %v6041_v32 = vpop.permute.xlu0 %6040  ;;  %v6715_v50 = vld [vmem:[#allocation2 + $0x2c8] sm:$0xff] }
 0x786   : > { %6205 = vst.msk [vmem:[#allocation2 + $0x2d8] sm:$0xff] %vm2976_vm7, %v6041_v32  ;;  %v6423_v6 = vpop.permute.xlu1 %6422  ;;  %9747 = vmatmul.mubr.msk.f32.gmra.mrb[24].mxu1 %vm6756_vm12, %v6715_v50  ;;  %v9330_v32 = vld [vmem:[%s10091_s5 + $0x5c1] sm:$0xff] }
 0x787   : > { %6588 = vst.msk [vmem:[#allocation2 + $0x2d0] sm:$0xff] %vm3361_vm11, %v6423_v6  ;;  %6074 = vrot.lane.b32.xlu0 %v9259_v43, %s10004_s12 }
 0x788   : > { %6076 = vrot.lane.b32.xlu1 %v9260_v54, %s10004_s12 }
 0x789   : > { %v6425_v36 = vpop.permute.xlu0 %6424 }
 0x78a   : > { %6589 = vst.msk [vmem:[#allocation2 + $0x2d8] sm:$0xff] %vm3361_vm11, %v6425_v36  ;;  %v5659_v11 = vpop.permute.xlu1 %5658 }
 0x78b   : > { %5822 = vst.msk [vmem:[#allocation2 + $0x2e0] sm:$0xff] %vm2590_vm6, %v5659_v11  ;;  %6458 = vrot.lane.b32.xlu0 %v9323_v61, %s10006_s27 }
 0x78c   : > { %5310 = vrot.lane.b32.xlu1 %v9323_v61, %s10002_s10  ;;  %v9203_v61 = vld [vmem:[%s10091_s5 + $0x5d0] sm:$0xff] }
 0x78d   : > { %v5661_v51 = vpop.permute.xlu0 %5660 }
 0x78e   : > { %5823 = vst.msk [vmem:[#allocation2 + $0x2e8] sm:$0xff] %vm2590_vm6, %v5661_v51  ;;  %v6043_v1 = vpop.permute.xlu1 %6042  ;;  %v6716_v3 = vld [vmem:[#allocation2 + $0x2d0] sm:$0xff] }
 0x78f   : > { %6206 = vst.msk [vmem:[#allocation2 + $0x2e0] sm:$0xff] %vm2976_vm7, %v6043_v1  ;;  %6460 = vrot.lane.b32.xlu0 %v9324_v19, %s10006_s27  ;;  %9749 = vmatprep.mubr.msk.f32.mxu1 %vm6756_vm12, %v6716_v3  ;;  %v9267_v1 = vld [vmem:[%s10091_s5 + $0x2a1] sm:$0xff] }
 0x790   : > { %5312 = vrot.lane.b32.xlu1 %v9324_v19, %s10002_s10  ;;  %v9204_v19 = vld [vmem:[%s10091_s5 + $0x5d8] sm:$0xff] }
 0x791   : > { %v6045_v8 = vpop.permute.xlu0 %6044  ;;  %v6717_v40 = vld [vmem:[#allocation2 + $0x2d8] sm:$0xff] }
 0x792   : > { %6207 = vst.msk [vmem:[#allocation2 + $0x2e8] sm:$0xff] %vm2976_vm7, %v6045_v8  ;;  %v6427_v26 = vpop.permute.xlu1 %6426  ;;  %9750 = vmatmul.mubr.msk.f32.gmra.mrb[26].mxu1 %vm6756_vm12, %v6717_v40  ;;  %v9331_v40 = vld [vmem:[%s10091_s5 + $0x5d1] sm:$0xff] }
 0x793   : > { %6590 = vst.msk [vmem:[#allocation2 + $0x2e0] sm:$0xff] %vm3361_vm11, %v6427_v26  ;;  %5694 = vrot.lane.b32.xlu0 %v9197_v10, %s10003_s11  ;;  %v9268_v10 = vld [vmem:[%s10091_s5 + $0x2a9] sm:$0xff] }
 0x794   : > { %5696 = vrot.lane.b32.xlu1 %v9198_v13, %s10003_s11 }
 0x795   : > { %v6429_v7 = vpop.permute.xlu0 %6428 }
 0x796   : > { %6591 = vst.msk [vmem:[#allocation2 + $0x2e8] sm:$0xff] %vm3361_vm11, %v6429_v7  ;;  %v5663_v31 = vpop.permute.xlu1 %5662 }
 0x797   : > { %5824 = vst.msk [vmem:[#allocation2 + $0x2f0] sm:$0xff] %vm2590_vm6, %v5663_v31  ;;  %6078 = vrot.lane.b32.xlu0 %v9261_v37, %s10004_s12  ;;  %v14739_v37 = vld [vmem:[#allocation10_spill] sm:$0xff] }
 0x798   : > { %6080 = vrot.lane.b32.xlu1 %v9262_v45, %s10004_s12  ;;  %v7851_v7 = vmax.f32 %v14739_v37, 0.0 }
 0x799   : > { %v5665_v24 = vpop.permute.xlu0 %5664 }
 0x79a   : > { %5825 = vst.msk [vmem:[#allocation2 + $0x2f8] sm:$0xff] %vm2590_vm6, %v5665_v24  ;;  %v6047_v20 = vpop.permute.xlu1 %6046  ;;  %v6718_v39 = vld [vmem:[#allocation2 + $0x2e0] sm:$0xff] }
 0x79b   : > { %6208 = vst.msk [vmem:[#allocation2 + $0x2f0] sm:$0xff] %vm2976_vm7, %v6047_v20  ;;  %6462 = vrot.lane.b32.xlu0 %v9325_v53, %s10006_s27  ;;  %9752 = vmatprep.mubr.msk.f32.mxu1 %vm6756_vm12, %v6718_v39  ;;  %v14740_v20 = vld [vmem:[#allocation11_spill] sm:$0xff] }
 0x79c   : > { %5314 = vrot.lane.b32.xlu1 %v9325_v53, %s10002_s10  ;;  %v7850_v39 = vmax.f32 %v14740_v20, 0.0 }
 0x79d   : > { %v6049_v35 = vpop.permute.xlu0 %6048  ;;  %v6719_v2 = vld [vmem:[#allocation2 + $0x2e8] sm:$0xff] }
 0x79e   : > { %6209 = vst.msk [vmem:[#allocation2 + $0x2f8] sm:$0xff] %vm2976_vm7, %v6049_v35  ;;  %v6431_v42 = vpop.permute.xlu1 %6430  ;;  %9753 = vmatmul.mubr.msk.f32.gmra.mrb[28].mxu1 %vm6756_vm12, %v6719_v2  ;;  %v9332_v2 = vld [vmem:[%s10091_s5 + $0x5d9] sm:$0xff] }
 0x79f   : > { %6592 = vst.msk [vmem:[#allocation2 + $0x2f0] sm:$0xff] %vm3361_vm11, %v6431_v42  ;;  %6464 = vrot.lane.b32.xlu0 %v9326_v22, %s10006_s27 }
 0x7a0   : > { %5316 = vrot.lane.b32.xlu1 %v9326_v22, %s10002_s10 }
 0x7a1   : > { %v6433_v30 = vpop.permute.xlu0 %6432 }
 0x7a2   : > { %6593 = vst.msk [vmem:[#allocation2 + $0x2f8] sm:$0xff] %vm3361_vm11, %v6433_v30  ;;  %v5667_v9 = vpop.permute.xlu1 %5666 }
 0x7a3   : > { %5826 = vst.msk [vmem:[#allocation2 + $0x300] sm:$0xff] %vm2590_vm6, %v5667_v9  ;;  %5698 = vrot.lane.b32.xlu0 %v9199_v52, %s10003_s11  ;;  %v9205_v9 = vld [vmem:[%s10091_s5 + $0x5e8] sm:$0xff] }
 0x7a4   : > { %5700 = vrot.lane.b32.xlu1 %v9200_v23, %s10003_s11 }
 0x7a5   : > { %v5669_v14 = vpop.permute.xlu0 %5668 }
 0x7a6   : > { %5827 = vst.msk [vmem:[#allocation2 + $0x308] sm:$0xff] %vm2590_vm6, %v5669_v14  ;;  %v6051_v63 = vpop.permute.xlu1 %6050  ;;  %v6720_v29 = vld [vmem:[#allocation2 + $0x2f0] sm:$0xff] }
 0x7a7   : > { %6210 = vst.msk [vmem:[#allocation2 + $0x300] sm:$0xff] %vm2976_vm7, %v6051_v63  ;;  %6082 = vrot.lane.b32.xlu0 %v9263_v25, %s10004_s12  ;;  %9755 = vmatprep.mubr.msk.f32.mxu1 %vm6756_vm12, %v6720_v29  ;;  %v9206_v14 = vld [vmem:[%s10091_s5 + $0x5f0] sm:$0xff]  ;;  %v9269_v63 = vld [vmem:[%s10091_s5 + $0x2b9] sm:$0xff] }
 0x7a8   : > { %6084 = vrot.lane.b32.xlu1 %v9264_v47, %s10004_s12 }
 0x7a9   : > { %v6053_v62 = vpop.permute.xlu0 %6052  ;;  %v6721_v56 = vld [vmem:[#allocation2 + $0x2f8] sm:$0xff] }
 0x7aa   : > { %6211 = vst.msk [vmem:[#allocation2 + $0x308] sm:$0xff] %vm2976_vm7, %v6053_v62  ;;  %v6435_v48 = vpop.permute.xlu1 %6434  ;;  %9756 = vmatmul.mubr.msk.f32.gmra.mrb[30].mxu1 %vm6756_vm12, %v6721_v56  ;;  %v9270_v62 = vld [vmem:[%s10091_s5 + $0x2c1] sm:$0xff]  ;;  %v14741_v56 = vld [vmem:[#allocation12_spill] sm:$0xff] }
 0x7ab   : > { %6594 = vst.msk [vmem:[#allocation2 + $0x300] sm:$0xff] %vm3361_vm11, %v6435_v48  ;;  %6466 = vrot.lane.b32.xlu0 %v9327_v17, %s10006_s27  ;;  %v7853_v48 = vmax.f32 %v14741_v56, 0.0 }
 0x7ac   : > { %5318 = vrot.lane.b32.xlu1 %v9327_v17, %s10002_s10 }
 0x7ad   : > { %v6437_v28 = vpop.permute.xlu0 %6436 }
 0x7ae   : > { %6595 = vst.msk [vmem:[#allocation2 + $0x308] sm:$0xff] %vm3361_vm11, %v6437_v28  ;;  %v5671_v55 = vpop.permute.xlu1 %5670 }
 0x7af   : > { %5828 = vst.msk [vmem:[#allocation2 + $0x310] sm:$0xff] %vm2590_vm6, %v5671_v55  ;;  %6468 = vrot.lane.b32.xlu0 %v9328_v38, %s10006_s27 }
 0x7b0   : > { %5320 = vrot.lane.b32.xlu1 %v9328_v38, %s10002_s10 }
 0x7b1   : > { %v5673_v0 = vpop.permute.xlu0 %5672 }
 0x7b2   : > { %5829 = vst.msk [vmem:[#allocation2 + $0x318] sm:$0xff] %vm2590_vm6, %v5673_v0  ;;  %v6055_v5 = vpop.permute.xlu1 %6054  ;;  %v6722_v41 = vld [vmem:[#allocation2 + $0x300] sm:$0xff] }
 0x7b3   : > { %6212 = vst.msk [vmem:[#allocation2 + $0x310] sm:$0xff] %vm2976_vm7, %v6055_v5  ;;  %5702 = vrot.lane.b32.xlu0 %v9201_v58, %s10003_s11  ;;  %9758 = vmatprep.mubr.msk.f32.mxu1 %vm6756_vm12, %v6722_v41  ;;  %v14742_v0 = vld [vmem:[#allocation13_spill] sm:$0xff] }
 0x7b4   : > { %5704 = vrot.lane.b32.xlu1 %v9202_v46, %s10003_s11  ;;  %v7852_v46 = vmax.f32 %v14742_v0, 0.0 }
 0x7b5   : > { %v6057_v44 = vpop.permute.xlu0 %6056  ;;  %v6723_v49 = vld [vmem:[#allocation2 + $0x308] sm:$0xff] }
 0x7b6   : > { %6213 = vst.msk [vmem:[#allocation2 + $0x318] sm:$0xff] %vm2976_vm7, %v6057_v44  ;;  %v6439_v16 = vpop.permute.xlu1 %6438  ;;  %9759 = vmatmul.mubr.msk.f32.gmra.mrb[32].mxu1 %vm6756_vm12, %v6723_v49 }
 0x7b7   : > { %6596 = vst.msk [vmem:[#allocation2 + $0x310] sm:$0xff] %vm3361_vm11, %v6439_v16  ;;  %6086 = vrot.lane.b32.xlu0 %v9265_v21, %s10004_s12  ;;  %v9333_v21 = vld [vmem:[%s10091_s5 + $0x5e9] sm:$0xff] }
 0x7b8   : > { %6088 = vrot.lane.b32.xlu1 %v9266_v27, %s10004_s12 }
 0x7b9   : > { %v6441_v59 = vpop.permute.xlu0 %6440 }
 0x7ba   : > { %6597 = vst.msk [vmem:[#allocation2 + $0x318] sm:$0xff] %vm3361_vm11, %v6441_v59  ;;  %v5675_v43 = vpop.permute.xlu1 %5674 }
 0x7bb   : > { %5830 = vst.msk [vmem:[#allocation2 + $0x320] sm:$0xff] %vm2590_vm6, %v5675_v43  ;;  %6470 = vrot.lane.b32.xlu0 %v9329_v12, %s10006_s27 }
 0x7bc   : > { %5322 = vrot.lane.b32.xlu1 %v9329_v12, %s10002_s10 }
 0x7bd   : > { %v5677_v50 = vpop.permute.xlu0 %5676 }
 0x7be   : > { %5831 = vst.msk [vmem:[#allocation2 + $0x328] sm:$0xff] %vm2590_vm6, %v5677_v50  ;;  %v6059_v54 = vpop.permute.xlu1 %6058  ;;  %v6724_v6 = vld [vmem:[#allocation2 + $0x310] sm:$0xff] }
 0x7bf   : > { %6214 = vst.msk [vmem:[#allocation2 + $0x320] sm:$0xff] %vm2976_vm7, %v6059_v54  ;;  %6472 = vrot.lane.b32.xlu0 %v9330_v32, %s10006_s27  ;;  %9761 = vmatprep.mubr.msk.f32.mxu1 %vm6756_vm12, %v6724_v6 }
 0x7c0   : > { %5324 = vrot.lane.b32.xlu1 %v9330_v32, %s10002_s10  ;;  %v9334_v32 = vld [vmem:[%s10091_s5 + $0x5f1] sm:$0xff] }
 0x7c1   : > { %v6061_v36 = vpop.permute.xlu0 %6060  ;;  %v6725_v11 = vld [vmem:[#allocation2 + $0x318] sm:$0xff] }
 0x7c2   : > { %6215 = vst.msk [vmem:[#allocation2 + $0x328] sm:$0xff] %vm2976_vm7, %v6061_v36  ;;  %v6443_v51 = vpop.permute.xlu1 %6442  ;;  %9762 = vmatmul.mubr.msk.f32.gmra.mrb[34].mxu1 %vm6756_vm12, %v6725_v11  ;;  %v9207_v11 = vld [vmem:[%s10091_s5 + $0x600] sm:$0xff] }
 0x7c3   : > { %6598 = vst.msk [vmem:[#allocation2 + $0x320] sm:$0xff] %vm3361_vm11, %v6443_v51  ;;  %5706 = vrot.lane.b32.xlu0 %v9203_v61, %s10003_s11 }
 0x7c4   : > { %5708 = vrot.lane.b32.xlu1 %v9204_v19, %s10003_s11 }
 0x7c5   : > { %v6445_v3 = vpop.permute.xlu0 %6444 }
 0x7c6   : > { %6599 = vst.msk [vmem:[#allocation2 + $0x328] sm:$0xff] %vm3361_vm11, %v6445_v3  ;;  %v5679_v8 = vpop.permute.xlu1 %5678  ;;  %v14743_v3 = vld [vmem:[#allocation14_spill] sm:$0xff] }
 0x7c7   : > { %5832 = vst.msk [vmem:[#allocation2 + $0x330] sm:$0xff] %vm2590_vm6, %v5679_v8  ;;  %6090 = vrot.lane.b32.xlu0 %v9267_v1, %s10004_s12  ;;  %v9208_v1 = vld [vmem:[%s10091_s5 + $0x608] sm:$0xff] }
 0x7c8   : > { %6092 = vrot.lane.b32.xlu1 %v9268_v10, %s10004_s12  ;;  %v7855_v10 = vmax.f32 %v14743_v3, 0.0 }
 0x7c9   : > { %v9712_v13 = vpop.f32.mrb[0].mxu1  ;;  %v5681_v26 = vpop.permute.xlu0 %5680 }
 0x7ca   : > { %v7915_v45 = vmax.f32 %v9712_v13, 0.0  ;;  %5833 = vst.msk [vmem:[#allocation2 + $0x338] sm:$0xff] %vm2590_vm6, %v5681_v26  ;;  %v6063_v31 = vpop.permute.xlu1 %6062  ;;  %v7531_v53 = vpop.f32.mrb[1].mxu1  ;;  %v6726_v24 = vld [vmem:[#allocation2 + $0x320] sm:$0xff]  ;;  %v14744_v26 = vld [vmem:[#allocation15_spill] sm:$0xff] }
 0x7cb   : > { %6216 = vst.msk [vmem:[#allocation2 + $0x330] sm:$0xff] %vm2976_vm7, %v6063_v31  ;;  %v7914_v22 = vmax.f32 %v7531_v53, 0.0  ;;  %6474 = vrot.lane.b32.xlu0 %v9331_v40, %s10006_s27  ;;  %9764 = vmatprep.mubr.msk.f32.mxu1 %vm6756_vm12, %v6726_v24  ;;  %v7854_v37 = vmax.f32 %v14744_v26, 0.0  ;;  %v9271_v31 = vld [vmem:[%s10091_s5 + $0x2d1] sm:$0xff]  ;;  %v9338_v26 = vld [vmem:[%s10091_s5 + $0x621] sm:$0xff] }
 0x7cc   : > { %v7979_v35 = vmax.f32 %v7851_v7, %v7915_v45  ;;  %5326 = vrot.lane.b32.xlu1 %v9331_v40, %s10002_s10 }
 0x7cd   : > { %v7978_v42 = vmax.f32 %v7850_v39, %v7914_v22  ;;  %v6065_v52 = vpop.permute.xlu0 %6064  ;;  %v6727_v30 = vld [vmem:[#allocation2 + $0x328] sm:$0xff]  ;;  %v9272_v39 = vld [vmem:[%s10091_s5 + $0x2d9] sm:$0xff] }
 0x7ce   : > { %6217 = vst.msk [vmem:[#allocation2 + $0x338] sm:$0xff] %vm2976_vm7, %v6065_v52  ;;  %v6447_v23 = vpop.permute.xlu1 %6446  ;;  %9765 = vmatmul.mubr.msk.f32.gmra.mrb[36].mxu1 %vm6756_vm12, %v6727_v30  ;;  %v9336_v30 = vld [vmem:[%s10091_s5 + $0x609] sm:$0xff] }
 0x7cf   : > { %6600 = vst.msk [vmem:[#allocation2 + $0x330] sm:$0xff] %vm3361_vm11, %v6447_v23  ;;  %6476 = vrot.lane.b32.xlu0 %v9332_v2, %s10006_s27 }
 0x7d0   : > { %5328 = vrot.lane.b32.xlu1 %v9332_v2, %s10002_s10 }
 0x7d1   : > { %v6449_v25 = vpop.permute.xlu0 %6448 }
 0x7d2   : > { %6601 = vst.msk [vmem:[#allocation2 + $0x338] sm:$0xff] %vm3361_vm11, %v6449_v25  ;;  %v5301_v47 = vpop.permute.xlu1 %5300  ;;  %v14745_v25 = vld [vmem:[#allocation16_spill] sm:$0xff] }
 0x7d3   : > { %5451 = vst.msk [vmem:[#allocation2 + $0x348] sm:$0xff] %vm2204_vm5, %v5301_v47  ;;  %5710 = vrot.lane.b32.xlu0 %v9205_v9, %s10003_s11 }
 0x7d4   : > { %5712 = vrot.lane.b32.xlu1 %v9206_v14, %s10003_s11  ;;  %v7857_v14 = vmax.f32 %v14745_v25, 0.0 }
 0x7d5   : > { %v9715_v29 = vpop.f32.mrb[2].mxu1  ;;  %v5683_v17 = vpop.permute.xlu0 %5682 }
 0x7d6   : > { %v7917_v38 = vmax.f32 %v9715_v29, 0.0  ;;  %5834 = vst.msk [vmem:[#allocation2 + $0x340] sm:$0xff] %vm2590_vm6, %v5683_v17  ;;  %v5685_v28 = vpop.permute.xlu1 %5684  ;;  %v7541_v55 = vpop.f32.mrb[3].mxu1  ;;  %v6728_v58 = vld [vmem:[#allocation2 + $0x330] sm:$0xff]  ;;  %v14746_v17 = vld [vmem:[#allocation17_spill] sm:$0xff] }
 0x7d7   : > { %5835 = vst.msk [vmem:[#allocation2 + $0x348] sm:$0xff] %vm2590_vm6, %v5685_v28  ;;  %v7916_v5 = vmax.f32 %v7541_v55, 0.0  ;;  %6094 = vrot.lane.b32.xlu0 %v9269_v63, %s10004_s12  ;;  %9767 = vmatprep.mubr.msk.f32.mxu1 %vm6756_vm12, %v6728_v58  ;;  %v9210_v58 = vld [vmem:[%s10091_s5 + $0x620] sm:$0xff] }
 0x7d8   : > { %v7981_v41 = vmax.f32 %v7853_v48, %v7917_v38  ;;  %6096 = vrot.lane.b32.xlu1 %v9270_v62, %s10004_s12  ;;  %v7856_v62 = vmax.f32 %v14746_v17, 0.0  ;;  %v9209_v38 = vld [vmem:[%s10091_s5 + $0x618] sm:$0xff] }
 0x7d9   : > { %v7980_v44 = vmax.f32 %v7852_v46, %v7916_v5  ;;  %v6067_v49 = vpop.permute.xlu0 %6066  ;;  %v6729_v27 = vld [vmem:[#allocation2 + $0x338] sm:$0xff] }
 0x7da   : > { %v8043_v16 = vmax.f32 %v7979_v35, %v7981_v41  ;;  %6218 = vst.msk [vmem:[#allocation2 + $0x340] sm:$0xff] %vm2976_vm7, %v6067_v49  ;;  %v6069_v12 = vpop.permute.xlu1 %6068  ;;  %9768 = vmatmul.mubr.msk.f32.gmra.mrb[38].mxu1 %vm6756_vm12, %v6729_v27  ;;  %v9335_v35 = vld [vmem:[%s10091_s5 + $0x601] sm:$0xff]  ;;  %v9273_v41 = vld [vmem:[%s10091_s5 + $0x2e9] sm:$0xff]  ;;  %v9339_v17 = vld [vmem:[%s10091_s5 + $0x631] sm:$0xff] }
 0x7db   : > { %v8042_v59 = vmax.f32 %v7978_v42, %v7980_v44  ;;  %6219 = vst.msk [vmem:[#allocation2 + $0x348] sm:$0xff] %vm2976_vm7, %v6069_v12  ;;  %6478 = vrot.lane.b32.xlu0 %v9333_v21, %s10006_s27 }
 0x7dc   : > { %8075 = vst [vmem:[%s14201_s30 + $0x8] sm:$0xff] %v8043_v16  ;;  %v8145_v43 = vmul.f32 %v8043_v16, %v8043_v16  ;;  %5330 = vrot.lane.b32.xlu1 %v9333_v21, %s10002_s10 }
 0x7dd   : > { %8074 = vst [vmem:[%s14201_s30] sm:$0xff] %v8042_v59  ;;  %v14207_v50 = vadd.f32 %v8043_v16, %v8042_v59  ;;  %v8144_v54 = vmul.f32 %v8042_v59, %v8042_v59  ;;  %v6451_v6 = vpop.permute.xlu0 %6450  ;;  %v9274_v16 = vld [vmem:[%s10091_s5 + $0x2f1] sm:$0xff] }
 0x7de   : > { %6602 = vst.msk [vmem:[#allocation2 + $0x340] sm:$0xff] %vm3361_vm11, %v6451_v6  ;;  %v5303_v61 = vpop.permute.xlu1 %5302 }
 0x7df   : > { %v14210_v36 = vadd.f32 %v8145_v43, %v8144_v54  ;;  %5452 = vst.msk [vmem:[#allocation2 + $0x350] sm:$0xff] %vm2204_vm5, %v5303_v61  ;;  %6480 = vrot.lane.b32.xlu0 %v9334_v32, %s10006_s27 }
 0x7e0   : > { %5332 = vrot.lane.b32.xlu1 %v9334_v32, %s10002_s10 }
 0x7e1   : > { %v9718_v19 = vpop.f32.mrb[4].mxu1  ;;  %v6453_v51 = vpop.permute.xlu0 %6452 }
 0x7e2   : > { %v7919_v8 = vmax.f32 %v9718_v19, 0.0  ;;  %6603 = vst.msk [vmem:[#allocation2 + $0x348] sm:$0xff] %vm3361_vm11, %v6453_v51  ;;  %v5305_v40 = vpop.permute.xlu1 %5304  ;;  %v7551_v13 = vpop.f32.mrb[5].mxu1  ;;  %v14747_v19 = vld [vmem:[#allocation27_spill] sm:$0xff] }
 0x7e3   : > { %5453 = vst.msk [vmem:[#allocation2 + $0x358] sm:$0xff] %vm2204_vm5, %v5305_v40  ;;  %v7918_v7 = vmax.f32 %v7551_v13, 0.0  ;;  %5714 = vrot.lane.b32.xlu0 %v9207_v11, %s10003_s11  ;;  %v7859_v51 = vmax.f32 %v14747_v19, 0.0 }
 0x7e4   : > { %v7983_v45 = vmax.f32 %v7855_v10, %v7919_v8  ;;  %5716 = vrot.lane.b32.xlu1 %v9208_v1, %s10003_s11  ;;  %v14748_v10 = vld [vmem:[#allocation28_spill] sm:$0xff] }
 0x7e5   : > { %v7982_v53 = vmax.f32 %v7854_v37, %v7918_v7  ;;  %v5687_v24 = vpop.permute.xlu0 %5686  ;;  %v6730_v20 = vld [vmem:[#allocation2 + $0x340] sm:$0xff]  ;;  %v7858_v8 = vmax.f32 %v14748_v10, 0.0 }
 0x7e6   : > { %5836 = vst.msk [vmem:[#allocation2 + $0x350] sm:$0xff] %vm2590_vm6, %v5687_v24  ;;  %v5689_v22 = vpop.permute.xlu1 %5688  ;;  %9770 = vmatprep.mubr.msk.f32.mxu1 %vm6756_vm12, %v6730_v20  ;;  %v9212_v24 = vld [vmem:[%s10091_s5 + $0x638] sm:$0xff] }
 0x7e7   : > { %5837 = vst.msk [vmem:[#allocation2 + $0x358] sm:$0xff] %vm2590_vm6, %v5689_v22  ;;  %6098 = vrot.lane.b32.xlu0 %v9271_v31, %s10004_s12  ;;  %v9211_v31 = vld [vmem:[%s10091_s5 + $0x630] sm:$0xff] }
 0x7e8   : > { %6100 = vrot.lane.b32.xlu1 %v9272_v39, %s10004_s12  ;;  %v9275_v39 = vld [vmem:[%s10091_s5 + $0x301] sm:$0xff] }
 0x7e9   : > { %v6071_v2 = vpop.permute.xlu0 %6070  ;;  %v6731_v42 = vld [vmem:[#allocation2 + $0x348] sm:$0xff] }
 0x7ea   : > { %6220 = vst.msk [vmem:[#allocation2 + $0x350] sm:$0xff] %vm2976_vm7, %v6071_v2  ;;  %v6073_v52 = vpop.permute.xlu1 %6072  ;;  %9771 = vmatmul.mubr.msk.f32.gmra.mrb[40].mxu1 %vm6756_vm12, %v6731_v42  ;;  %v9276_v42 = vld [vmem:[%s10091_s5 + $0x309] sm:$0xff] }
 0x7eb   : > { %6221 = vst.msk [vmem:[#allocation2 + $0x358] sm:$0xff] %vm2976_vm7, %v6073_v52  ;;  %6482 = vrot.lane.b32.xlu0 %v9335_v35, %s10006_s27  ;;  %v14749_v52 = vld [vmem:[#allocation29_spill] sm:$0xff] }
 0x7ec   : > { %5334 = vrot.lane.b32.xlu1 %v9335_v35, %s10002_s10 }
 0x7ed   : > { %v9721_v23 = vpop.f32.mrb[6].mxu1  ;;  %v6455_v9 = vpop.permute.xlu0 %6454 }
 0x7ee   : > { %v7921_v47 = vmax.f32 %v9721_v23, 0.0  ;;  %6604 = vst.msk [vmem:[#allocation2 + $0x350] sm:$0xff] %vm3361_vm11, %v6455_v9  ;;  %v5307_v63 = vpop.permute.xlu1 %5306  ;;  %v7561_v29 = vpop.f32.mrb[7].mxu1 }
 0x7ef   : > { %5454 = vst.msk [vmem:[#allocation2 + $0x360] sm:$0xff] %vm2204_vm5, %v5307_v63  ;;  %v7920_v56 = vmax.f32 %v7561_v29, 0.0  ;;  %6484 = vrot.lane.b32.xlu0 %v9336_v30, %s10006_s27 }
 0x7f0   : > { %v7985_v48 = vmax.f32 %v7857_v14, %v7921_v47  ;;  %5336 = vrot.lane.b32.xlu1 %v9336_v30, %s10002_s10  ;;  %v7861_v30 = vmax.f32 %v14749_v52, 0.0  ;;  %v14750_v14 = vld [vmem:[#allocation30_spill] sm:$0xff] }
 0x7f1   : > { %v7984_v28 = vmax.f32 %v7856_v62, %v7920_v56  ;;  %v6457_v55 = vpop.permute.xlu0 %6456  ;;  %v7860_v47 = vmax.f32 %v14750_v14, 0.0 }
 0x7f2   : > { %v8045_v0 = vmax.f32 %v7983_v45, %v7985_v48  ;;  %6605 = vst.msk [vmem:[#allocation2 + $0x358] sm:$0xff] %vm3361_vm11, %v6457_v55  ;;  %v5309_v46 = vpop.permute.xlu1 %5308 }
 0x7f3   : > { %v8044_v5 = vmax.f32 %v7982_v53, %v7984_v28  ;;  %5455 = vst.msk [vmem:[#allocation2 + $0x368] sm:$0xff] %vm2204_vm5, %v5309_v46  ;;  %5718 = vrot.lane.b32.xlu0 %v9209_v38, %s10003_s11 }
 0x7f4   : > { %8077 = vst [vmem:[%s14201_s30 + $0x18] sm:$0xff] %v8045_v0  ;;  %5720 = vrot.lane.b32.xlu1 %v9210_v58, %s10003_s11  ;;  %v8147_v59 = vmul.f32 %v8045_v0, %v8045_v0  ;;  %v9340_v58 = vld [vmem:[%s10091_s5 + $0x639] sm:$0xff] }
 0x7f5   : > { %8076 = vst [vmem:[%s14201_s30 + $0x10] sm:$0xff] %v8044_v5  ;;  %v8107_v21 = vadd.f32 %v14207_v50, %v8044_v5  ;;  %v8146_v44 = vmul.f32 %v8044_v5, %v8044_v5  ;;  %v5691_v49 = vpop.permute.xlu0 %5690  ;;  %v6732_v27 = vld [vmem:[#allocation2 + $0x350] sm:$0xff]  ;;  %v9337_v50 = vld [vmem:[%s10091_s5 + $0x619] sm:$0xff] }
 0x7f6   : > { %5838 = vst.msk [vmem:[#allocation2 + $0x360] sm:$0xff] %vm2590_vm6, %v5691_v49  ;;  %v5693_v12 = vpop.permute.xlu1 %5692  ;;  %9773 = vmatprep.mubr.msk.f32.mxu1 %vm6756_vm12, %v6732_v27  ;;  %v9213_v27 = vld [vmem:[%s10091_s5 + $0x648] sm:$0xff] }
 0x7f7   : > { %v8177_v43 = vadd.f32 %v14210_v36, %v8146_v44  ;;  %5839 = vst.msk [vmem:[#allocation2 + $0x368] sm:$0xff] %vm2590_vm6, %v5693_v12  ;;  %6102 = vrot.lane.b32.xlu0 %v9273_v41, %s10004_s12  ;;  %v14259_v32 = vadd.f32 %v8107_v21, %v8045_v0 }
 0x7f8   : > { %6104 = vrot.lane.b32.xlu1 %v9274_v16, %s10004_s12 }
 0x7f9   : > { %v9724_v54 = vpop.f32.mrb[8].mxu1  ;;  %v6075_v6 = vpop.permute.xlu0 %6074  ;;  %v6733_v61 = vld [vmem:[#allocation2 + $0x358] sm:$0xff]  ;;  %v14263_v11 = vadd.f32 %v8177_v43, %v8147_v59  ;;  %v9214_v59 = vld [vmem:[%s10091_s5 + $0x650] sm:$0xff] }
 0x7fa   : > { %v7923_v1 = vmax.f32 %v9724_v54, 0.0  ;;  %6222 = vst.msk [vmem:[#allocation2 + $0x360] sm:$0xff] %vm2976_vm7, %v6075_v6  ;;  %v6077_v36 = vpop.permute.xlu1 %6076  ;;  %v7571_v3 = vpop.f32.mrb[9].mxu1  ;;  %9774 = vmatmul.mubr.msk.f32.gmra.mrb[42].mxu1 %vm6756_vm12, %v6733_v61 }
 0x7fb   : > { %6223 = vst.msk [vmem:[#allocation2 + $0x368] sm:$0xff] %vm2976_vm7, %v6077_v36  ;;  %v7922_v40 = vmax.f32 %v7571_v3, 0.0  ;;  %6486 = vrot.lane.b32.xlu0 %v9337_v50, %s10006_s27  ;;  %v9277_v36 = vld [vmem:[%s10091_s5 + $0x319] sm:$0xff] }
 0x7fc   : > { %v7987_v13 = vmax.f32 %v7859_v51, %v7923_v1  ;;  %5338 = vrot.lane.b32.xlu1 %v9337_v50, %s10002_s10 }
 0x7fd   : > { %v7986_v37 = vmax.f32 %v7858_v8, %v7922_v40  ;;  %v6459_v7 = vpop.permute.xlu0 %6458  ;;  %v9278_v40 = vld [vmem:[%s10091_s5 + $0x321] sm:$0xff] }
 0x7fe   : > { %6606 = vst.msk [vmem:[#allocation2 + $0x360] sm:$0xff] %vm3361_vm11, %v6459_v7  ;;  %v5311_v45 = vpop.permute.xlu1 %5310 }
 0x7ff   : > { %5456 = vst.msk [vmem:[#allocation2 + $0x370] sm:$0xff] %vm2204_vm5, %v5311_v45  ;;  %6488 = vrot.lane.b32.xlu0 %v9338_v26, %s10006_s27  ;;  %v9342_v45 = vld [vmem:[%s10091_s5 + $0x651] sm:$0xff] }
 0x800   : > { %5340 = vrot.lane.b32.xlu1 %v9338_v26, %s10002_s10  ;;  %v9341_v26 = vld [vmem:[%s10091_s5 + $0x649] sm:$0xff]  ;;  %s9479_s5 = sshll.u32 %s10057_s19, 12 }
 0x801   : > { %v6461_v53 = vpop.permute.xlu0 %6460  ;;  %s14482_s9 = scalar_lea.hbm %s14602_s2, %s9479_s5 }
 0x802   : > { %6607 = vst.msk [vmem:[#allocation2 + $0x368] sm:$0xff] %vm3361_vm11, %v6461_v53  ;;  %v5313_v20 = vpop.permute.xlu1 %5312 }
 0x803   : > { %5457 = vst.msk [vmem:[#allocation2 + $0x378] sm:$0xff] %vm2204_vm5, %v5313_v20  ;;  %5722 = vrot.lane.b32.xlu0 %v9211_v31, %s10003_s11  ;;  %v14753_v20 = vld [vmem:[#allocation33_spill] sm:$0xff] }
 0x804   : > { %5724 = vrot.lane.b32.xlu1 %v9212_v24, %s10003_s11 }
 0x805   : > { %v9727_v22 = vpop.f32.mrb[10].mxu1  ;;  %v5695_v35 = vpop.permute.xlu0 %5694  ;;  %v6734_v2 = vld [vmem:[#allocation2 + $0x360] sm:$0xff] }
 0x806   : > { %v7925_v23 = vmax.f32 %v9727_v22, 0.0  ;;  %5840 = vst.msk [vmem:[#allocation2 + $0x370] sm:$0xff] %vm2590_vm6, %v5695_v35  ;;  %v5697_v9 = vpop.permute.xlu1 %5696  ;;  %v7581_v25 = vpop.f32.mrb[11].mxu1  ;;  %9776 = vmatprep.mubr.msk.f32.mxu1 %vm6756_vm12, %v6734_v2 }
 0x807   : > { %5841 = vst.msk [vmem:[#allocation2 + $0x378] sm:$0xff] %vm2590_vm6, %v5697_v9  ;;  %v7924_v63 = vmax.f32 %v7581_v25, 0.0  ;;  %6106 = vrot.lane.b32.xlu0 %v9275_v39, %s10004_s12  ;;  %v7865_v39 = vmax.f32 %v14753_v20, 0.0 }
 0x808   : > { %v7989_v29 = vmax.f32 %v7861_v30, %v7925_v23  ;;  %6108 = vrot.lane.b32.xlu1 %v9276_v42, %s10004_s12  ;;  %v14754_v42 = vld [vmem:[#allocation34_spill] sm:$0xff] }
 0x809   : > { %v7988_v62 = vmax.f32 %v7860_v47, %v7924_v63  ;;  %v6079_v56 = vpop.permute.xlu0 %6078  ;;  %v6735_v48 = vld [vmem:[#allocation2 + $0x368] sm:$0xff]  ;;  %v7864_v52 = vmax.f32 %v14754_v42, 0.0 }
 0x80a   : > { %v8047_v38 = vmax.f32 %v7987_v13, %v7989_v29  ;;  %6224 = vst.msk [vmem:[#allocation2 + $0x370] sm:$0xff] %vm2976_vm7, %v6079_v56  ;;  %v6081_v28 = vpop.permute.xlu1 %6080  ;;  %9777 = vmatmul.mubr.msk.f32.gmra.mrb[44].mxu1 %vm6756_vm12, %v6735_v48 }
 0x80b   : > { %v8046_v55 = vmax.f32 %v7986_v37, %v7988_v62  ;;  %6225 = vst.msk [vmem:[#allocation2 + $0x378] sm:$0xff] %vm2976_vm7, %v6081_v28  ;;  %6490 = vrot.lane.b32.xlu0 %v9339_v17, %s10006_s27 }
 0x80c   : > { %8079 = vst [vmem:[%s14201_s30 + $0x28] sm:$0xff] %v8047_v38  ;;  %5342 = vrot.lane.b32.xlu1 %v9339_v17, %s10002_s10  ;;  %v8149_v21 = vmul.f32 %v8047_v38, %v8047_v38 }
 0x80d   : > { %8078 = vst [vmem:[%s14201_s30 + $0x20] sm:$0xff] %v8046_v55  ;;  %v8109_v0 = vadd.f32 %v14259_v32, %v8046_v55  ;;  %v8148_v46 = vmul.f32 %v8046_v55, %v8046_v55  ;;  %v6463_v5 = vpop.permute.xlu0 %6462  ;;  %v14751_v32 = vld [vmem:[#allocation31_spill] sm:$0xff] }
 0x80e   : > { %6608 = vst.msk [vmem:[#allocation2 + $0x370] sm:$0xff] %vm3361_vm11, %v6463_v5  ;;  %v5315_v41 = vpop.permute.xlu1 %5314  ;;  %v7863_v50 = vmax.f32 %v14751_v32, 0.0 }
 0x80f   : > { %v8179_v44 = vadd.f32 %v14263_v11, %v8148_v46  ;;  %5458 = vst.msk [vmem:[#allocation2 + $0x380] sm:$0xff] %vm2204_vm5, %v5315_v41  ;;  %6492 = vrot.lane.b32.xlu0 %v9340_v58, %s10006_s27  ;;  %v8110_v49 = vadd.f32 %v8109_v0, %v8047_v38  ;;  %v14752_v11 = vld [vmem:[#allocation32_spill] sm:$0xff]  ;;  %v14755_v41 = vld [vmem:[#allocation35_spill] sm:$0xff] }
 0x810   : > { %5344 = vrot.lane.b32.xlu1 %v9340_v58, %s10002_s10  ;;  %v7862_v19 = vmax.f32 %v14752_v11, 0.0  ;;  %s8215_s10 = scalar_lea.sflag [#allocation4], %s14183_s28 }
 0x811   : > { %v9730_v16 = vpop.f32.mrb[12].mxu1  ;;  %v6465_v12 = vpop.permute.xlu0 %6464  ;;  %v8180_v43 = vadd.f32 %v8179_v44, %v8149_v21  ;;  %v7867_v21 = vmax.f32 %v14755_v41, 0.0 }
 0x812   : > { %v7927_v54 = vmax.f32 %v9730_v16, 0.0  ;;  %6609 = vst.msk [vmem:[#allocation2 + $0x378] sm:$0xff] %vm3361_vm11, %v6465_v12  ;;  %v5317_v6 = vpop.permute.xlu1 %5316  ;;  %v7591_v61 = vpop.f32.mrb[13].mxu1  ;;  %v14756_v16 = vld [vmem:[#allocation36_spill] sm:$0xff] }
 0x813   : > { %5459 = vst.msk [vmem:[#allocation2 + $0x388] sm:$0xff] %vm2204_vm5, %v5317_v6  ;;  %v7926_v51 = vmax.f32 %v7591_v61, 0.0  ;;  %5726 = vrot.lane.b32.xlu0 %v9213_v27, %s10003_s11  ;;  %v7866_v12 = vmax.f32 %v14756_v16, 0.0 }
 0x814   : > { %v7991_v1 = vmax.f32 %v7863_v50, %v7927_v54  ;;  %5728 = vrot.lane.b32.xlu1 %v9214_v59, %s10003_s11  ;;  %s9874_s11 = scalar_lea.vmem %s14484_s6, 4096 }
 0x815   : > { %v7990_v3 = vmax.f32 %v7862_v19, %v7926_v51  ;;  %v5699_v10 = vpop.permute.xlu0 %5698  ;;  %v6736_v8 = vld [vmem:[#allocation2 + $0x370] sm:$0xff]  ;;  %p9875_p11 = scmp.ne.s32.totalorder %s14484_s6, %s9874_s11 }
 0x816   : > { %5842 = vst.msk [vmem:[#allocation2 + $0x380] sm:$0xff] %vm2590_vm6, %v5699_v10  ;;  %v5701_v13 = vpop.permute.xlu1 %5700  ;;  %9779 = vmatprep.mubr.msk.f32.mxu1 %vm6756_vm12, %v6736_v8 }
 0x817   : > { %5843 = vst.msk [vmem:[#allocation2 + $0x388] sm:$0xff] %vm2590_vm6, %v5701_v13  ;;  %6110 = vrot.lane.b32.xlu0 %v9277_v36, %s10004_s12  ;;  %p9876_p12 = pnand %p9875_p11, %p10076_p5 }
 0x818   : > { %6112 = vrot.lane.b32.xlu1 %v9278_v40, %s10004_s12  ;;  %v14758_v40 = vld [vmem:[#allocation38_spill] sm:$0xff]  ;;  %s10007_s12 = smov [#allocation3]  }
 0x819   : > { %v6083_v37 = vpop.permute.xlu0 %6082  ;;  %v6737_v7 = vld [vmem:[#allocation2 + $0x378] sm:$0xff]  ;;  %v7868_v13 = vmax.f32 %v14758_v40, 0.0  ;;  %p9877_p13 = pneg %p9876_p12  ;;  %s9878_s13 = sshll.u32 %s10007_s12, 4  ;;  %s9879_s13 = int_to_ptr.vmem [resolvable:$false] %s9878_s13 }
 0x81a   : > { %6226 = vst.msk [vmem:[#allocation2 + $0x380] sm:$0xff] %vm2976_vm7, %v6083_v37  ;;  %v6085_v31 = vpop.permute.xlu1 %6084  ;;  %9780 = vmatmul.mubr.msk.f32.gmra.mrb[46].mxu1 %vm6756_vm12, %v6737_v7  ;;  %s9880_s14 = scalar_lea.vmem %s9879_s13, 8192  ;;  %p9881_p0 = scmp.lt.s32.totalorder %s14484_s6, %s9879_s13 }
 0x81b   : > { %6227 = vst.msk [vmem:[#allocation2 + $0x388] sm:$0xff] %vm2976_vm7, %v6085_v31  ;;  %6494 = vrot.lane.b32.xlu0 %v9341_v26, %s10006_s27  ;;  %p9882_p1 = scmp.lt.s32.totalorder %s9880_s14, %s9874_s11 }
 0x81c   : > { %6496 = vrot.lane.b32.xlu1 %v9342_v45, %s10006_s27 }
 0x81d   : > { %v9733_v53 = vpop.f32.mrb[14].mxu1  ;;  %v6467_v24 = vpop.permute.xlu0 %6466  ;;  %p9883_p2 = por %p9882_p1, %p9881_p0 }
 0x81e   : > { %v7929_v22 = vmax.f32 %v9733_v53, 0.0  ;;  %6610 = vst.msk [vmem:[#allocation2 + $0x380] sm:$0xff] %vm3361_vm11, %v6467_v24  ;;  %v5319_v35 = vpop.permute.xlu1 %5318  ;;  %v7601_v2 = vpop.f32.mrb[15].mxu1 }
 0x81f   : > { %5460 = vst.msk [vmem:[#allocation2 + $0x390] sm:$0xff] %vm2204_vm5, %v5319_v35  ;;  %v7928_v30 = vmax.f32 %v7601_v2, 0.0  ;;  %p9884_p3 = pnand %p9883_p2, %p9877_p13 }
 0x820   : > { %v7993_v23 = vmax.f32 %v7865_v39, %v7929_v22 }
 0x821   : > { %v7992_v9 = vmax.f32 %v7864_v52, %v7928_v30  ;;  %v6469_v25 = vpop.permute.xlu0 %6468 }
 0x822   : > { %v8049_v14 = vmax.f32 %v7991_v1, %v7993_v23  ;;  %6611 = vst.msk [vmem:[#allocation2 + $0x388] sm:$0xff] %vm3361_vm11, %v6469_v25  ;;  %v5321_v47 = vpop.permute.xlu1 %5320  ;;  %v14757_v1 = vld [vmem:[#allocation37_spill] sm:$0xff] }
 0x823   : > { %v8048_v63 = vmax.f32 %v7990_v3, %v7992_v9  ;;  %5461 = vst.msk [vmem:[#allocation2 + $0x398] sm:$0xff] %vm2204_vm5, %v5321_v47  ;;  %v7869_v36 = vmax.f32 %v14757_v1, 0.0 }
 0x824   : > { %8081 = vst [vmem:[%s14201_s30 + $0x38] sm:$0xff] %v8049_v14  ;;  %v8151_v38 = vmul.f32 %v8049_v14, %v8049_v14 }
 0x825   : > { %8080 = vst [vmem:[%s14201_s30 + $0x30] sm:$0xff] %v8048_v63  ;;  %v8111_v29 = vadd.f32 %v8110_v49, %v8048_v63  ;;  %v8150_v17 = vmul.f32 %v8048_v63, %v8048_v63  ;;  %v5703_v62 = vpop.permute.xlu0 %5702  ;;  %v6738_v56 = vld [vmem:[#allocation2 + $0x380] sm:$0xff] }
 0x826   : > { %5844 = vst.msk [vmem:[#allocation2 + $0x390] sm:$0xff] %vm2590_vm6, %v5703_v62  ;;  %v5705_v48 = vpop.permute.xlu1 %5704  ;;  %9782 = vmatprep.mubr.msk.f32.mxu1 %vm6756_vm12, %v6738_v56 }
 0x827   : > { %v8181_v28 = vadd.f32 %v8180_v43, %v8150_v17  ;;  %5845 = vst.msk [vmem:[#allocation2 + $0x398] sm:$0xff] %vm2590_vm6, %v5705_v48  ;;  %v8112_v55 = vadd.f32 %v8111_v29, %v8049_v14  ;;  %v7871_v14 = vmax.f32 %v12864_v4, 0.0  ;;  %v7870_v17 = vmax.f32 %v12868_v18, 0.0 }
 0x829   : > { %v9736_v58 = vpop.f32.mrb[16].mxu1  ;;  %v6087_v0 = vpop.permute.xlu0 %6086  ;;  %v6739_v46 = vld [vmem:[#allocation2 + $0x388] sm:$0xff]  ;;  %v8182_v5 = vadd.f32 %v8181_v28, %v8151_v38 }
 0x82a   : > { %v7931_v44 = vmax.f32 %v9736_v58, 0.0  ;;  %6228 = vst.msk [vmem:[#allocation2 + $0x390] sm:$0xff] %vm2976_vm7, %v6087_v0  ;;  %v6089_v49 = vpop.permute.xlu1 %6088  ;;  %v7611_v27 = vpop.f32.mrb[17].mxu1  ;;  %9783 = vmatmul.mubr.msk.f32.gmra.mrb[48].mxu1 %vm6756_vm12, %v6739_v46 }
 0x82b   : > { %6229 = vst.msk [vmem:[#allocation2 + $0x398] sm:$0xff] %vm2976_vm7, %v6089_v49  ;;  %v7930_v59 = vmax.f32 %v7611_v27, 0.0  ;;  %v14760_v27 = vld [vmem:[#allocation40_spill] sm:$0xff] }
 0x82c   : > { %v7995_v43 = vmax.f32 %v7867_v21, %v7931_v44  ;;  %v7872_v16 = vmax.f32 %v14760_v27, 0.0 }
 0x82d   : > { %v7994_v32 = vmax.f32 %v7866_v12, %v7930_v59  ;;  %v6471_v50 = vpop.permute.xlu0 %6470 }
 0x82e   : > { %6612 = vst.msk [vmem:[#allocation2 + $0x390] sm:$0xff] %vm3361_vm11, %v6471_v50  ;;  %v5323_v54 = vpop.permute.xlu1 %5322 }
 0x82f   : > { %5462 = vst.msk [vmem:[#allocation2 + $0x3a0] sm:$0xff] %vm2204_vm5, %v5323_v54 }
 0x831   : > { %v6473_v6 = vpop.permute.xlu0 %6472 }
 0x832   : > { %6613 = vst.msk [vmem:[#allocation2 + $0x398] sm:$0xff] %vm3361_vm11, %v6473_v6  ;;  %v5325_v61 = vpop.permute.xlu1 %5324 }
 0x833   : > { %5463 = vst.msk [vmem:[#allocation2 + $0x3a8] sm:$0xff] %vm2204_vm5, %v5325_v61 }
 0x835   : > { %v9739_v11 = vpop.f32.mrb[18].mxu1  ;;  %v5707_v19 = vpop.permute.xlu0 %5706  ;;  %v6740_v51 = vld [vmem:[#allocation2 + $0x390] sm:$0xff] }
 0x836   : > { %v7933_v3 = vmax.f32 %v9739_v11, 0.0  ;;  %5846 = vst.msk [vmem:[#allocation2 + $0x3a0] sm:$0xff] %vm2590_vm6, %v5707_v19  ;;  %v5709_v10 = vpop.permute.xlu1 %5708  ;;  %v7621_v8 = vpop.f32.mrb[19].mxu1  ;;  %9785 = vmatprep.mubr.msk.f32.mxu1 %vm6756_vm12, %v6740_v51 }
 0x837   : > { %5847 = vst.msk [vmem:[#allocation2 + $0x3a8] sm:$0xff] %vm2590_vm6, %v5709_v10  ;;  %v7932_v26 = vmax.f32 %v7621_v8, 0.0 }
 0x838   : > { %v7997_v37 = vmax.f32 %v7869_v36, %v7933_v3 }
 0x839   : > { %v7996_v7 = vmax.f32 %v7868_v13, %v7932_v26  ;;  %v6091_v45 = vpop.permute.xlu0 %6090  ;;  %v6741_v31 = vld [vmem:[#allocation2 + $0x398] sm:$0xff] }
 0x83a   : > { %v8051_v53 = vmax.f32 %v7995_v43, %v7997_v37  ;;  %6230 = vst.msk [vmem:[#allocation2 + $0x3a0] sm:$0xff] %vm2976_vm7, %v6091_v45  ;;  %v6093_v24 = vpop.permute.xlu1 %6092  ;;  %9786 = vmatmul.mubr.msk.f32.gmra.mrb[50].mxu1 %vm6756_vm12, %v6741_v31  ;;  %v14761_v37 = vld [vmem:[#allocation41_spill] sm:$0xff] }
 0x83b   : > { %v8050_v20 = vmax.f32 %v7994_v32, %v7996_v7  ;;  %6231 = vst.msk [vmem:[#allocation2 + $0x3a8] sm:$0xff] %vm2976_vm7, %v6093_v24  ;;  %v7875_v7 = vmax.f32 %v14761_v37, 0.0  ;;  %v14762_v24 = vld [vmem:[#allocation18_spill] sm:$0xff] }
 0x83c   : > { %8083 = vst [vmem:[%s14201_s30 + $0x48] sm:$0xff] %v8051_v53  ;;  %v8153_v42 = vmul.f32 %v8051_v53, %v8051_v53 }
 0x83d   : > { %8082 = vst [vmem:[%s14201_s30 + $0x40] sm:$0xff] %v8050_v20  ;;  %v8113_v39 = vadd.f32 %v8112_v55, %v8050_v20  ;;  %v8152_v22 = vmul.f32 %v8050_v20, %v8050_v20  ;;  %v6475_v35 = vpop.permute.xlu0 %6474  ;;  %v7874_v20 = vmax.f32 %v14762_v24, 0.0 }
 0x83e   : > { %6614 = vst.msk [vmem:[#allocation2 + $0x3a0] sm:$0xff] %vm3361_vm11, %v6475_v35  ;;  %v5327_v2 = vpop.permute.xlu1 %5326 }
 0x83f   : > { %v8183_v52 = vadd.f32 %v8182_v5, %v8152_v22  ;;  %5464 = vst.msk [vmem:[#allocation2 + $0x3b0] sm:$0xff] %vm2204_vm5, %v5327_v2  ;;  %v8114_v30 = vadd.f32 %v8113_v39, %v8051_v53  ;;  %v14759_v5 = vld [vmem:[#allocation39_spill] sm:$0xff] }
 0x840   : > { %v7873_v41 = vmax.f32 %v14759_v5, 0.0 }
 0x841   : > { %v9742_v23 = vpop.f32.mrb[20].mxu1  ;;  %v6477_v9 = vpop.permute.xlu0 %6476  ;;  %v8184_v25 = vadd.f32 %v8183_v52, %v8153_v42 }
 0x842   : > { %v7935_v47 = vmax.f32 %v9742_v23, 0.0  ;;  %6615 = vst.msk [vmem:[#allocation2 + $0x3a8] sm:$0xff] %vm3361_vm11, %v6477_v9  ;;  %v5329_v63 = vpop.permute.xlu1 %5328  ;;  %v7631_v29 = vpop.f32.mrb[21].mxu1 }
 0x843   : > { %5465 = vst.msk [vmem:[#allocation2 + $0x3b8] sm:$0xff] %vm2204_vm5, %v5329_v63  ;;  %v7934_v62 = vmax.f32 %v7631_v29, 0.0 }
 0x844   : > { %v7999_v56 = vmax.f32 %v7871_v14, %v7935_v47  ;;  %v7877_v14 = vmax.f32 %v12892_v57, 0.0 }
 0x845   : > { %v7998_v48 = vmax.f32 %v7870_v17, %v7934_v62  ;;  %v5711_v38 = vpop.permute.xlu0 %5710  ;;  %v6742_v28 = vld [vmem:[#allocation2 + $0x3a0] sm:$0xff]  ;;  %v14763_v17 = vld [vmem:[#allocation19_spill] sm:$0xff] }
 0x846   : > { %5848 = vst.msk [vmem:[#allocation2 + $0x3b0] sm:$0xff] %vm2590_vm6, %v5711_v38  ;;  %v5713_v55 = vpop.permute.xlu1 %5712  ;;  %9788 = vmatprep.mubr.msk.f32.mxu1 %vm6756_vm12, %v6742_v28  ;;  %v7876_v62 = vmax.f32 %v14763_v17, 0.0 }
 0x847   : > { %5849 = vst.msk [vmem:[#allocation2 + $0x3b8] sm:$0xff] %vm2590_vm6, %v5713_v55 }
 0x849   : > { %v6095_v4 = vpop.permute.xlu0 %6094  ;;  %v6743_v58 = vld [vmem:[#allocation2 + $0x3a8] sm:$0xff] }
 0x84a   : > { %6232 = vst.msk [vmem:[#allocation2 + $0x3b0] sm:$0xff] %vm2976_vm7, %v6095_v4  ;;  %v6097_v0 = vpop.permute.xlu1 %6096  ;;  %9789 = vmatmul.mubr.msk.f32.gmra.mrb[52].mxu1 %vm6756_vm12, %v6743_v58 }
 0x84b   : > { %6233 = vst.msk [vmem:[#allocation2 + $0x3b8] sm:$0xff] %vm2976_vm7, %v6097_v0 }
 0x84d   : > { %v9745_v18 = vpop.f32.mrb[22].mxu1  ;;  %v6479_v46 = vpop.permute.xlu0 %6478 }
 0x84e   : > { %v7937_v21 = vmax.f32 %v9745_v18, 0.0  ;;  %6616 = vst.msk [vmem:[#allocation2 + $0x3b0] sm:$0xff] %vm3361_vm11, %v6479_v46  ;;  %v5331_v44 = vpop.permute.xlu1 %5330  ;;  %v7641_v49 = vpop.f32.mrb[23].mxu1 }
 0x84f   : > { %5466 = vst.msk [vmem:[#allocation2 + $0x3c0] sm:$0xff] %vm2204_vm5, %v5331_v44  ;;  %v7936_v12 = vmax.f32 %v7641_v49, 0.0 }
 0x850   : > { %v8001_v59 = vmax.f32 %v7873_v41, %v7937_v21 }
 0x851   : > { %v8000_v43 = vmax.f32 %v7872_v16, %v7936_v12  ;;  %v6481_v32 = vpop.permute.xlu0 %6480  ;;  %v7879_v12 = vmax.f32 %v12902_v33, 0.0 }
 0x852   : > { %v8053_v50 = vmax.f32 %v7999_v56, %v8001_v59  ;;  %6617 = vst.msk [vmem:[#allocation2 + $0x3b8] sm:$0xff] %vm3361_vm11, %v6481_v32  ;;  %v5333_v54 = vpop.permute.xlu1 %5332 }
 0x853   : > { %v8052_v6 = vmax.f32 %v7998_v48, %v8000_v43  ;;  %5467 = vst.msk [vmem:[#allocation2 + $0x3c8] sm:$0xff] %vm2204_vm5, %v5333_v54 }
 0x854   : > { %8085 = vst [vmem:[%s14201_s30 + $0x58] sm:$0xff] %v8053_v50  ;;  %v8155_v36 = vmul.f32 %v8053_v50, %v8053_v50 }
 0x855   : > { %8084 = vst [vmem:[%s14201_s30 + $0x50] sm:$0xff] %v8052_v6  ;;  %v8115_v61 = vadd.f32 %v8114_v30, %v8052_v6  ;;  %v8154_v11 = vmul.f32 %v8052_v6, %v8052_v6  ;;  %v5715_v19 = vpop.permute.xlu0 %5714  ;;  %v6744_v51 = vld [vmem:[#allocation2 + $0x3b0] sm:$0xff] }
 0x856   : > { %5850 = vst.msk [vmem:[#allocation2 + $0x3c0] sm:$0xff] %vm2590_vm6, %v5715_v19  ;;  %v5717_v1 = vpop.permute.xlu1 %5716  ;;  %9791 = vmatprep.mubr.msk.f32.mxu1 %vm6756_vm12, %v6744_v51 }
 0x857   : > { %v8185_v3 = vadd.f32 %v8184_v25, %v8154_v11  ;;  %5851 = vst.msk [vmem:[#allocation2 + $0x3c8] sm:$0xff] %vm2590_vm6, %v5717_v1  ;;  %v8116_v10 = vadd.f32 %v8115_v61, %v8053_v50  ;;  %v14764_v50 = vld [vmem:[#allocation20_spill] sm:$0xff] }
 0x858   : > { %v7878_v54 = vmax.f32 %v14764_v50, 0.0 }
 0x859   : > { %v9748_v8 = vpop.f32.mrb[24].mxu1  ;;  %v6099_v40 = vpop.permute.xlu0 %6098  ;;  %v6745_v13 = vld [vmem:[#allocation2 + $0x3b8] sm:$0xff]  ;;  %v8186_v26 = vadd.f32 %v8185_v3, %v8155_v36 }
 0x85a   : > { %v7939_v45 = vmax.f32 %v9748_v8, 0.0  ;;  %6234 = vst.msk [vmem:[#allocation2 + $0x3c0] sm:$0xff] %vm2976_vm7, %v6099_v40  ;;  %v6101_v31 = vpop.permute.xlu1 %6100  ;;  %v7651_v53 = vpop.f32.mrb[25].mxu1  ;;  %9792 = vmatmul.mubr.msk.f32.gmra.mrb[54].mxu1 %vm6756_vm12, %v6745_v13  ;;  %v7881_v40 = vmax.f32 %v12912_v34, 0.0 }
 0x85b   : > { %6235 = vst.msk [vmem:[#allocation2 + $0x3c8] sm:$0xff] %vm2976_vm7, %v6101_v31  ;;  %v7938_v39 = vmax.f32 %v7651_v53, 0.0 }
 0x85c   : > { %v8003_v22 = vmax.f32 %v7875_v7, %v7939_v45  ;;  %v7880_v7 = vmax.f32 %v12917_v15, 0.0 }
 0x85d   : > { %v8002_v35 = vmax.f32 %v7874_v20, %v7938_v39  ;;  %v6483_v2 = vpop.permute.xlu0 %6482 }
 0x85e   : > { %6618 = vst.msk [vmem:[#allocation2 + $0x3c0] sm:$0xff] %vm3361_vm11, %v6483_v2  ;;  %v5335_v42 = vpop.permute.xlu1 %5334 }
 0x85f   : > { %5468 = vst.msk [vmem:[#allocation2 + $0x3d0] sm:$0xff] %vm2204_vm5, %v5335_v42 }
 0x861   : > { %v6485_v52 = vpop.permute.xlu0 %6484 }
 0x862   : > { %6619 = vst.msk [vmem:[#allocation2 + $0x3c8] sm:$0xff] %vm3361_vm11, %v6485_v52  ;;  %v5337_v30 = vpop.permute.xlu1 %5336 }
 0x863   : > { %5469 = vst.msk [vmem:[#allocation2 + $0x3d8] sm:$0xff] %vm2204_vm5, %v5337_v30 }
 0x865   : > { %v9751_v23 = vpop.f32.mrb[26].mxu1  ;;  %v5719_v9 = vpop.permute.xlu0 %5718  ;;  %v6746_v25 = vld [vmem:[#allocation2 + $0x3c0] sm:$0xff] }
 0x866   : > { %v7941_v47 = vmax.f32 %v9751_v23, 0.0  ;;  %5852 = vst.msk [vmem:[#allocation2 + $0x3d0] sm:$0xff] %vm2590_vm6, %v5719_v9  ;;  %v5721_v63 = vpop.permute.xlu1 %5720  ;;  %v7661_v29 = vpop.f32.mrb[27].mxu1  ;;  %9794 = vmatprep.mubr.msk.f32.mxu1 %vm6756_vm12, %v6746_v25 }
 0x867   : > { %5853 = vst.msk [vmem:[#allocation2 + $0x3d8] sm:$0xff] %vm2590_vm6, %v5721_v63  ;;  %v7940_v56 = vmax.f32 %v7661_v29, 0.0  ;;  %v7883_v63 = vmax.f32 %v12922_v60, 0.0 }
 0x868   : > { %v8005_v48 = vmax.f32 %v7877_v14, %v7941_v47 }
 0x869   : > { %v8004_v38 = vmax.f32 %v7876_v62, %v7940_v56  ;;  %v6103_v28 = vpop.permute.xlu0 %6102  ;;  %v6747_v55 = vld [vmem:[#allocation2 + $0x3c8] sm:$0xff]  ;;  %v14765_v56 = vld [vmem:[#allocation21_spill] sm:$0xff] }
 0x86a   : > { %v8055_v4 = vmax.f32 %v8003_v22, %v8005_v48  ;;  %6236 = vst.msk [vmem:[#allocation2 + $0x3d0] sm:$0xff] %vm2976_vm7, %v6103_v28  ;;  %v6105_v57 = vpop.permute.xlu1 %6104  ;;  %9795 = vmatmul.mubr.msk.f32.gmra.mrb[56].mxu1 %vm6756_vm12, %v6747_v55  ;;  %v7882_v48 = vmax.f32 %v14765_v56, 0.0 }
 0x86b   : > { %v8054_v58 = vmax.f32 %v8002_v35, %v8004_v38  ;;  %6237 = vst.msk [vmem:[#allocation2 + $0x3d8] sm:$0xff] %vm2976_vm7, %v6105_v57 }
 0x86c   : > { %8087 = vst [vmem:[%s14201_s30 + $0x68] sm:$0xff] %v8055_v4  ;;  %v8157_v41 = vmul.f32 %v8055_v4, %v8055_v4 }
 0x86d   : > { %8086 = vst [vmem:[%s14201_s30 + $0x60] sm:$0xff] %v8054_v58  ;;  %v8117_v0 = vadd.f32 %v8116_v10, %v8054_v58  ;;  %v8156_v18 = vmul.f32 %v8054_v58, %v8054_v58  ;;  %v6487_v46 = vpop.permute.xlu0 %6486 }
 0x86e   : > { %6620 = vst.msk [vmem:[#allocation2 + $0x3d0] sm:$0xff] %vm3361_vm11, %v6487_v46  ;;  %v5339_v5 = vpop.permute.xlu1 %5338 }
 0x86f   : > { %v8187_v21 = vadd.f32 %v8186_v26, %v8156_v18  ;;  %5470 = vst.msk [vmem:[#allocation2 + $0x3e0] sm:$0xff] %vm2204_vm5, %v5339_v5  ;;  %v8118_v44 = vadd.f32 %v8117_v0, %v8055_v4  ;;  %v14766_v0 = vld [vmem:[#allocation22_spill] sm:$0xff] }
 0x870   : > { %v7885_v18 = vmax.f32 %v14766_v0, 0.0 }
 0x871   : > { %v9754_v49 = vpop.f32.mrb[28].mxu1  ;;  %v6489_v27 = vpop.permute.xlu0 %6488  ;;  %v8188_v16 = vadd.f32 %v8187_v21, %v8157_v41  ;;  %v14767_v21 = vld [vmem:[#allocation23_spill] sm:$0xff] }
 0x872   : > { %v7943_v59 = vmax.f32 %v9754_v49, 0.0  ;;  %6621 = vst.msk [vmem:[#allocation2 + $0x3d8] sm:$0xff] %vm3361_vm11, %v6489_v27  ;;  %v5341_v43 = vpop.permute.xlu1 %5340  ;;  %v7671_v32 = vpop.f32.mrb[29].mxu1 }
 0x873   : > { %5471 = vst.msk [vmem:[#allocation2 + $0x3e8] sm:$0xff] %vm2204_vm5, %v5341_v43  ;;  %v7942_v6 = vmax.f32 %v7671_v32, 0.0 }
 0x874   : > { %v8007_v61 = vmax.f32 %v7879_v12, %v7943_v59 }
 0x875   : > { %v8006_v11 = vmax.f32 %v7878_v54, %v7942_v6  ;;  %v5723_v19 = vpop.permute.xlu0 %5722  ;;  %v6748_v51 = vld [vmem:[#allocation2 + $0x3d0] sm:$0xff] }
 0x876   : > { %5854 = vst.msk [vmem:[#allocation2 + $0x3e0] sm:$0xff] %vm2590_vm6, %v5723_v19  ;;  %v5725_v1 = vpop.permute.xlu1 %5724  ;;  %9797 = vmatprep.mubr.msk.f32.mxu1 %vm6756_vm12, %v6748_v51  ;;  %v14768_v19 = vld [vmem:[#allocation42_spill] sm:$0xff] }
 0x877   : > { %5855 = vst.msk [vmem:[#allocation2 + $0x3e8] sm:$0xff] %vm2590_vm6, %v5725_v1  ;;  %v7887_v51 = vmax.f32 %v14768_v19, 0.0 }
 0x879   : > { %v6107_v33 = vpop.permute.xlu0 %6106  ;;  %v6749_v36 = vld [vmem:[#allocation2 + $0x3d8] sm:$0xff] }
 0x87a   : > { %6238 = vst.msk [vmem:[#allocation2 + $0x3e0] sm:$0xff] %vm2976_vm7, %v6107_v33  ;;  %v6109_v3 = vpop.permute.xlu1 %6108  ;;  %9798 = vmatmul.mubr.msk.f32.gmra.mrb[58].mxu1 %vm6756_vm12, %v6749_v36  ;;  %v14769_v36 = vld [vmem:[#allocation43_spill] sm:$0xff] }
 0x87b   : > { %6239 = vst.msk [vmem:[#allocation2 + $0x3e8] sm:$0xff] %vm2976_vm7, %v6109_v3  ;;  %v7886_v3 = vmax.f32 %v14769_v36, 0.0 }
 0x87d   : > { %v9757_v10 = vpop.f32.mrb[30].mxu1  ;;  %v6491_v8 = vpop.permute.xlu0 %6490 }
 0x87e   : > { %v7945_v13 = vmax.f32 %v9757_v10, 0.0  ;;  %6622 = vst.msk [vmem:[#allocation2 + $0x3e0] sm:$0xff] %vm3361_vm11, %v6491_v8  ;;  %v5343_v26 = vpop.permute.xlu1 %5342  ;;  %v7681_v37 = vpop.f32.mrb[31].mxu1 }
 0x87f   : > { %5472 = vst.msk [vmem:[#allocation2 + $0x3f0] sm:$0xff] %vm2204_vm5, %v5343_v26  ;;  %v7944_v45 = vmax.f32 %v7681_v37, 0.0  ;;  %v14770_v26 = vld [vmem:[#allocation44_spill] sm:$0xff] }
 0x880   : > { %v8009_v31 = vmax.f32 %v7881_v40, %v7945_v13  ;;  %v7889_v37 = vmax.f32 %v14770_v26, 0.0 }
 0x881   : > { %v8008_v53 = vmax.f32 %v7880_v7, %v7944_v45  ;;  %v6493_v24 = vpop.permute.xlu0 %6492 }
 0x882   : > { %v8057_v20 = vmax.f32 %v8007_v61, %v8009_v31  ;;  %6623 = vst.msk [vmem:[#allocation2 + $0x3e8] sm:$0xff] %vm3361_vm11, %v6493_v24  ;;  %v5345_v39 = vpop.permute.xlu1 %5344  ;;  %v14771_v31 = vld [vmem:[#allocation45_spill] sm:$0xff] }
 0x883   : > { %v8056_v34 = vmax.f32 %v8006_v11, %v8008_v53  ;;  %5473 = vst.msk [vmem:[#allocation2 + $0x3f8] sm:$0xff] %vm2204_vm5, %v5345_v39  ;;  %v7888_v53 = vmax.f32 %v14771_v31, 0.0 }
 0x884   : > { %8089 = vst [vmem:[%s14201_s30 + $0x78] sm:$0xff] %v8057_v20  ;;  %v8159_v52 = vmul.f32 %v8057_v20, %v8057_v20 }
 0x885   : > { %8088 = vst [vmem:[%s14201_s30 + $0x70] sm:$0xff] %v8056_v34  ;;  %v8119_v22 = vadd.f32 %v8118_v44, %v8056_v34  ;;  %v8158_v35 = vmul.f32 %v8056_v34, %v8056_v34  ;;  %v5727_v2 = vpop.permute.xlu0 %5726  ;;  %v6750_v42 = vld [vmem:[#allocation2 + $0x3e0] sm:$0xff]  ;;  %v7884_v44 = vmax.f32 %v14767_v21, 0.0 }
 0x886   : > { %5856 = vst.msk [vmem:[#allocation2 + $0x3f0] sm:$0xff] %vm2590_vm6, %v5727_v2  ;;  %v5729_v15 = vpop.permute.xlu1 %5728  ;;  %9800 = vmatprep.mubr.msk.f32.mxu1 %vm6756_vm12, %v6750_v42 }
 0x887   : > { %v8189_v30 = vadd.f32 %v8188_v16, %v8158_v35  ;;  %5857 = vst.msk [vmem:[#allocation2 + $0x3f8] sm:$0xff] %vm2590_vm6, %v5729_v15  ;;  %v8120_v23 = vadd.f32 %v8119_v22, %v8057_v20 }
 0x889   : > { %v9760_v9 = vpop.f32.mrb[32].mxu1  ;;  %v6111_v25 = vpop.permute.xlu0 %6110  ;;  %v6751_v14 = vld [vmem:[#allocation2 + $0x3e8] sm:$0xff]  ;;  %v8190_v47 = vadd.f32 %v8189_v30, %v8159_v52 }
 0x88a   : > { %v7947_v29 = vmax.f32 %v9760_v9, 0.0  ;;  %6240 = vst.msk [vmem:[#allocation2 + $0x3f0] sm:$0xff] %vm2976_vm7, %v6111_v25  ;;  %v6113_v17 = vpop.permute.xlu1 %6112  ;;  %v7691_v62 = vpop.f32.mrb[33].mxu1  ;;  %9801 = vmatmul.mubr.msk.f32.gmra.mrb[60].mxu1 %vm6756_vm12, %v6751_v14  ;;  %v14772_v9 = vld [vmem:[#allocation46_spill] sm:$0xff] }
 0x88b   : > { %6241 = vst.msk [vmem:[#allocation2 + $0x3f8] sm:$0xff] %vm2976_vm7, %v6113_v17  ;;  %v7946_v38 = vmax.f32 %v7691_v62, 0.0  ;;  %v7891_v25 = vmax.f32 %v14772_v9, 0.0 }
 0x88c   : > { %v8011_v28 = vmax.f32 %v7883_v63, %v7947_v29  ;;  %v14773_v63 = vld [vmem:[#allocation47_spill] sm:$0xff] }
 0x88d   : > { %v8010_v55 = vmax.f32 %v7882_v48, %v7946_v38  ;;  %v6495_v4 = vpop.permute.xlu0 %6494  ;;  %v7890_v29 = vmax.f32 %v14773_v63, 0.0  ;;  %v14774_v38 = vld [vmem:[#allocation48_spill] sm:$0xff] }
 0x88e   : > { %6624 = vst.msk [vmem:[#allocation2 + $0x3f0] sm:$0xff] %vm3361_vm11, %v6495_v4  ;;  %v6497_v57 = vpop.permute.xlu1 %6496 }
 0x88f   : > { %6625 = vst.msk [vmem:[#allocation2 + $0x3f8] sm:$0xff] %vm3361_vm11, %v6497_v57  ;;  %v14775_v57 = vld [vmem:[#allocation49_spill] sm:$0xff] }
 0x895   : > { %v9763_v60 = vpop.f32.mrb[34].mxu1  ;;  %v6752_v58 = vld [vmem:[#allocation2 + $0x3f0] sm:$0xff] }
 0x896   : > { %v7949_v46 = vmax.f32 %v9763_v60, 0.0  ;;  %v7701_v5 = vpop.f32.mrb[35].mxu1  ;;  %9803 = vmatprep.mubr.msk.f32.mxu1 %vm6756_vm12, %v6752_v58  ;;  %v6753_v41 = vld [vmem:[#allocation2 + $0x3f8] sm:$0xff]  ;;  %v7892_v60 = vmax.f32 %v14775_v57, 0.0 }
 0x897   : > { %v7948_v49 = vmax.f32 %v7701_v5, 0.0  ;;  %9804 = vmatmul.mubr.msk.f32.gmra.mrb[62].mxu1 %vm6756_vm12, %v6753_v41 }
 0x898   : > { %v8013_v27 = vmax.f32 %v7885_v18, %v7949_v46 }
 0x899   : > { %v8012_v16 = vmax.f32 %v7884_v44, %v7948_v49 }
 0x89a   : > { %v8059_v12 = vmax.f32 %v8011_v28, %v8013_v27  ;;  %v7893_v28 = vmax.f32 %v14774_v38, 0.0 }
 0x89b   : > { %v8058_v59 = vmax.f32 %v8010_v55, %v8012_v16 }
 0x89c   : > { %8091 = vst [vmem:[%s14201_s30 + $0x88] sm:$0xff] %v8059_v12  ;;  %v8161_v50 = vmul.f32 %v8059_v12, %v8059_v12 }
 0x89d   : > { %8090 = vst [vmem:[%s14201_s30 + $0x80] sm:$0xff] %v8058_v59  ;;  %v8121_v43 = vadd.f32 %v8120_v23, %v8058_v59  ;;  %v8160_v32 = vmul.f32 %v8058_v59, %v8058_v59  ;;  %v14776_v59 = vld [vmem:[#allocation50_spill] sm:$0xff] }
 0x89f   : > { %v8191_v54 = vadd.f32 %v8190_v47, %v8160_v32  ;;  %v8122_v6 = vadd.f32 %v8121_v43, %v8059_v12  ;;  %v7895_v43 = vmax.f32 %v14776_v59, 0.0 }
 0x8a1   : > { %v9766_v61 = vpop.f32.mrb[36].mxu1  ;;  %v8192_v11 = vadd.f32 %v8191_v54, %v8161_v50  ;;  %v14777_v54 = vld [vmem:[#allocation51_spill] sm:$0xff] }
 0x8a2   : > { %v7951_v1 = vmax.f32 %v9766_v61, 0.0  ;;  %v7711_v33 = vpop.f32.mrb[37].mxu1 }
 0x8a3   : > { %v7950_v10 = vmax.f32 %v7711_v33, 0.0 }
 0x8a4   : > { %v8015_v8 = vmax.f32 %v7887_v51, %v7951_v1  ;;  %v14778_v1 = vld [vmem:[#allocation52_spill] sm:$0xff] }
 0x8a5   : > { %v8014_v40 = vmax.f32 %v7886_v3, %v7950_v10  ;;  %v7897_v33 = vmax.f32 %v14778_v1, 0.0  ;;  %v14779_v10 = vld [vmem:[#allocation53_spill] sm:$0xff] }
 0x8ad   : > { %v9769_v13 = vpop.f32.mrb[38].mxu1 }
 0x8ae   : > { %v7953_v7 = vmax.f32 %v9769_v13, 0.0  ;;  %v7721_v45 = vpop.f32.mrb[39].mxu1 }
 0x8af   : > { %v7952_v24 = vmax.f32 %v7721_v45, 0.0 }
 0x8b0   : > { %v8017_v20 = vmax.f32 %v7889_v37, %v7953_v7 }
 0x8b1   : > { %v8016_v39 = vmax.f32 %v7888_v53, %v7952_v24 }
 0x8b2   : > { %v8061_v34 = vmax.f32 %v8015_v8, %v8017_v20  ;;  %v7896_v8 = vmax.f32 %v14779_v10, 0.0 }
 0x8b3   : > { %v8060_v22 = vmax.f32 %v8014_v40, %v8016_v39 }
 0x8b4   : > { %8093 = vst [vmem:[%s14201_s30 + $0x98] sm:$0xff] %v8061_v34  ;;  %v8163_v42 = vmul.f32 %v8061_v34, %v8061_v34 }
 0x8b5   : > { %8092 = vst [vmem:[%s14201_s30 + $0x90] sm:$0xff] %v8060_v22  ;;  %v8123_v35 = vadd.f32 %v8122_v6, %v8060_v22  ;;  %v8162_v2 = vmul.f32 %v8060_v22, %v8060_v22  ;;  %v7894_v6 = vmax.f32 %v14777_v54, 0.0  ;;  %v14780_v22 = vld [vmem:[#allocation54_spill] sm:$0xff] }
 0x8b7   : > { %v8193_v15 = vadd.f32 %v8192_v11, %v8162_v2  ;;  %v8124_v52 = vadd.f32 %v8123_v35, %v8061_v34  ;;  %v7899_v35 = vmax.f32 %v14780_v22, 0.0 }
 0x8b9   : > { %v8194_v30 = vadd.f32 %v8193_v15, %v8163_v42  ;;  %v14781_v15 = vld [vmem:[#allocation55_spill] sm:$0xff] }
 0x8bd   : > { %v9772_v23 = vpop.f32.mrb[40].mxu1 }
 0x8be   : > { %v7955_v14 = vmax.f32 %v9772_v23, 0.0  ;;  %v7731_v47 = vpop.f32.mrb[41].mxu1 }
 0x8bf   : > { %v7954_v17 = vmax.f32 %v7731_v47, 0.0 }
 0x8c0   : > { %v8019_v62 = vmax.f32 %v7891_v25, %v7955_v14  ;;  %v14782_v14 = vld [vmem:[#allocation56_spill] sm:$0xff] }
 0x8c1   : > { %v8018_v56 = vmax.f32 %v7890_v29, %v7954_v17  ;;  %v7901_v47 = vmax.f32 %v14782_v14, 0.0  ;;  %v14783_v17 = vld [vmem:[#allocation57_spill] sm:$0xff] }
 0x8cd   : > { %v9775_v48 = vpop.f32.mrb[42].mxu1 }
 0x8ce   : > { %v7957_v55 = vmax.f32 %v9775_v48, 0.0  ;;  %v7741_v4 = vpop.f32.mrb[43].mxu1 }
 0x8cf   : > { %v7956_v58 = vmax.f32 %v7741_v4, 0.0 }
 0x8d0   : > { %v8021_v0 = vmax.f32 %v7893_v28, %v7957_v55 }
 0x8d1   : > { %v8020_v18 = vmax.f32 %v7892_v60, %v7956_v58 }
 0x8d2   : > { %v8063_v46 = vmax.f32 %v8019_v62, %v8021_v0  ;;  %v7900_v62 = vmax.f32 %v14783_v17, 0.0 }
 0x8d3   : > { %v8062_v5 = vmax.f32 %v8018_v56, %v8020_v18 }
 0x8d4   : > { %8095 = vst [vmem:[%s14201_s30 + $0xa8] sm:$0xff] %v8063_v46  ;;  %v8165_v44 = vmul.f32 %v8063_v46, %v8063_v46 }
 0x8d5   : > { %8094 = vst [vmem:[%s14201_s30 + $0xa0] sm:$0xff] %v8062_v5  ;;  %v8125_v41 = vadd.f32 %v8124_v52, %v8062_v5  ;;  %v8164_v21 = vmul.f32 %v8062_v5, %v8062_v5  ;;  %v7898_v52 = vmax.f32 %v14781_v15, 0.0  ;;  %v14784_v5 = vld [vmem:[#allocation58_spill] sm:$0xff] }
 0x8d7   : > { %v8195_v49 = vadd.f32 %v8194_v30, %v8164_v21  ;;  %v8126_v27 = vadd.f32 %v8125_v41, %v8063_v46  ;;  %v7903_v41 = vmax.f32 %v14784_v5, 0.0 }
 0x8d9   : > { %v8196_v16 = vadd.f32 %v8195_v49, %v8165_v44  ;;  %v14785_v49 = vld [vmem:[#allocation59_spill] sm:$0xff] }
 0x8dd   : > { %v9778_v12 = vpop.f32.mrb[44].mxu1 }
 0x8de   : > { %v7959_v32 = vmax.f32 %v9778_v12, 0.0  ;;  %v7751_v50 = vpop.f32.mrb[45].mxu1 }
 0x8df   : > { %v7958_v61 = vmax.f32 %v7751_v50, 0.0 }
 0x8e0   : > { %v8023_v11 = vmax.f32 %v7895_v43, %v7959_v32  ;;  %v14786_v32 = vld [vmem:[#allocation60_spill] sm:$0xff] }
 0x8e1   : > { %v8022_v19 = vmax.f32 %v7894_v6, %v7958_v61  ;;  %v7905_v50 = vmax.f32 %v14786_v32, 0.0  ;;  %v14787_v61 = vld [vmem:[#allocation61_spill] sm:$0xff] }
 0x8ed   : > { %v9781_v51 = vpop.f32.mrb[46].mxu1 }
 0x8ee   : > { %v7961_v36 = vmax.f32 %v9781_v51, 0.0  ;;  %v7761_v3 = vpop.f32.mrb[47].mxu1 }
 0x8ef   : > { %v7960_v40 = vmax.f32 %v7761_v3, 0.0 }
 0x8f0   : > { %v8025_v13 = vmax.f32 %v7897_v33, %v7961_v36 }
 0x8f1   : > { %v8024_v26 = vmax.f32 %v7896_v8, %v7960_v40 }
 0x8f2   : > { %v8065_v37 = vmax.f32 %v8023_v11, %v8025_v13  ;;  %v7904_v11 = vmax.f32 %v14787_v61, 0.0 }
 0x8f3   : > { %v8064_v7 = vmax.f32 %v8022_v19, %v8024_v26 }
 0x8f4   : > { %8097 = vst [vmem:[%s14201_s30 + $0xb8] sm:$0xff] %v8065_v37  ;;  %v8167_v53 = vmul.f32 %v8065_v37, %v8065_v37 }
 0x8f5   : > { %8096 = vst [vmem:[%s14201_s30 + $0xb0] sm:$0xff] %v8064_v7  ;;  %v8127_v45 = vadd.f32 %v8126_v27, %v8064_v7  ;;  %v8166_v31 = vmul.f32 %v8064_v7, %v8064_v7  ;;  %v7902_v27 = vmax.f32 %v14785_v49, 0.0  ;;  %v14788_v7 = vld [vmem:[#allocation62_spill] sm:$0xff] }
 0x8f7   : > { %v8197_v24 = vadd.f32 %v8196_v16, %v8166_v31  ;;  %v8128_v20 = vadd.f32 %v8127_v45, %v8065_v37  ;;  %v7907_v45 = vmax.f32 %v14788_v7, 0.0 }
 0x8f9   : > { %v8198_v39 = vadd.f32 %v8197_v24, %v8167_v53  ;;  %v14789_v24 = vld [vmem:[#allocation63_spill] sm:$0xff] }
 0x8fd   : > { %v9784_v34 = vpop.f32.mrb[48].mxu1 }
 0x8fe   : > { %v7963_v2 = vmax.f32 %v9784_v34, 0.0  ;;  %v7771_v42 = vpop.f32.mrb[49].mxu1 }
 0x8ff   : > { %v7962_v30 = vmax.f32 %v7771_v42, 0.0 }
 0x900   : > { %v8027_v23 = vmax.f32 %v7899_v35, %v7963_v2  ;;  %v14790_v2 = vld [vmem:[#allocation64_spill] sm:$0xff] }
 0x901   : > { %v8026_v9 = vmax.f32 %v7898_v52, %v7962_v30  ;;  %v7909_v42 = vmax.f32 %v14790_v2, 0.0  ;;  %v14791_v30 = vld [vmem:[#allocation65_spill] sm:$0xff] }
 0x90d   : > { %v9787_v25 = vpop.f32.mrb[50].mxu1 }
 0x90e   : > { %v7965_v63 = vmax.f32 %v9787_v25, 0.0  ;;  %v7781_v29 = vpop.f32.mrb[51].mxu1 }
 0x90f   : > { %v7964_v56 = vmax.f32 %v7781_v29, 0.0 }
 0x910   : > { %v8029_v48 = vmax.f32 %v7901_v47, %v7965_v63 }
 0x911   : > { %v8028_v38 = vmax.f32 %v7900_v62, %v7964_v56 }
 0x912   : > { %v8067_v28 = vmax.f32 %v8027_v23, %v8029_v48  ;;  %v7908_v23 = vmax.f32 %v14791_v30, 0.0 }
 0x913   : > { %v8066_v55 = vmax.f32 %v8026_v9, %v8028_v38 }
 0x914   : > { %8099 = vst [vmem:[%s14201_s30 + $0xc8] sm:$0xff] %v8067_v28  ;;  %v8169_v60 = vmul.f32 %v8067_v28, %v8067_v28 }
 0x915   : > { %8098 = vst [vmem:[%s14201_s30 + $0xc0] sm:$0xff] %v8066_v55  ;;  %v8129_v4 = vadd.f32 %v8128_v20, %v8066_v55  ;;  %v8168_v57 = vmul.f32 %v8066_v55, %v8066_v55  ;;  %v7906_v20 = vmax.f32 %v14789_v24, 0.0  ;;  %v14792_v55 = vld [vmem:[#allocation66_spill] sm:$0xff] }
 0x917   : > { %v8199_v58 = vadd.f32 %v8198_v39, %v8168_v57  ;;  %v8130_v0 = vadd.f32 %v8129_v4, %v8067_v28  ;;  %v7911_v4 = vmax.f32 %v14792_v55, 0.0 }
 0x919   : > { %v8200_v18 = vadd.f32 %v8199_v58, %v8169_v60  ;;  %v14793_v58 = vld [vmem:[#allocation67_spill] sm:$0xff] }
 0x91d   : > { %v9790_v46 = vpop.f32.mrb[52].mxu1 }
 0x91e   : > { %v7967_v21 = vmax.f32 %v9790_v46, 0.0  ;;  %v7791_v44 = vpop.f32.mrb[53].mxu1 }
 0x91f   : > { %v7966_v16 = vmax.f32 %v7791_v44, 0.0 }
 0x920   : > { %v8031_v12 = vmax.f32 %v7903_v41, %v7967_v21  ;;  %v14794_v21 = vld [vmem:[#allocation68_spill] sm:$0xff] }
 0x921   : > { %v8030_v59 = vmax.f32 %v7902_v27, %v7966_v16  ;;  %v7913_v44 = vmax.f32 %v14794_v21, 0.0  ;;  %v14795_v16 = vld [vmem:[#allocation69_spill] sm:$0xff] }
 0x92d   : > { %v9793_v43 = vpop.f32.mrb[54].mxu1 }
 0x92e   : > { %v7969_v54 = vmax.f32 %v9793_v43, 0.0  ;;  %v7801_v6 = vpop.f32.mrb[55].mxu1 }
 0x92f   : > { %v7968_v19 = vmax.f32 %v7801_v6, 0.0 }
 0x930   : > { %v8033_v51 = vmax.f32 %v7905_v50, %v7969_v54 }
 0x931   : > { %v8032_v1 = vmax.f32 %v7904_v11, %v7968_v19 }
 0x932   : > { %v8069_v33 = vmax.f32 %v8031_v12, %v8033_v51  ;;  %v7912_v12 = vmax.f32 %v14795_v16, 0.0 }
 0x933   : > { %v8068_v36 = vmax.f32 %v8030_v59, %v8032_v1 }
 0x934   : > { %8101 = vst [vmem:[%s14201_s30 + $0xd8] sm:$0xff] %v8069_v33  ;;  %v8171_v8 = vmul.f32 %v8069_v33, %v8069_v33 }
 0x935   : > { %8100 = vst [vmem:[%s14201_s30 + $0xd0] sm:$0xff] %v8068_v36  ;;  %v8131_v3 = vadd.f32 %v8130_v0, %v8068_v36  ;;  %v8170_v10 = vmul.f32 %v8068_v36, %v8068_v36  ;;  %v7910_v0 = vmax.f32 %v14793_v58, 0.0 }
 0x937   : > { %v8201_v40 = vadd.f32 %v8200_v18, %v8170_v10  ;;  %v8132_v13 = vadd.f32 %v8131_v3, %v8069_v33 }
 0x939   : > { %v8202_v26 = vadd.f32 %v8201_v40, %v8171_v8 }
 0x93d   : > { %v9796_v37 = vpop.f32.mrb[56].mxu1 }
 0x93e   : > { %v7971_v31 = vmax.f32 %v9796_v37, 0.0  ;;  %v7811_v53 = vpop.f32.mrb[57].mxu1 }
 0x93f   : > { %v7970_v39 = vmax.f32 %v7811_v53, 0.0 }
 0x940   : > { %v8035_v34 = vmax.f32 %v7907_v45, %v7971_v31 }
 0x941   : > { %v8034_v22 = vmax.f32 %v7906_v20, %v7970_v39 }
 0x94d   : > { %v9799_v35 = vpop.f32.mrb[58].mxu1 }
 0x94e   : > { %v7973_v15 = vmax.f32 %v9799_v35, 0.0  ;;  %v7821_v52 = vpop.f32.mrb[59].mxu1 }
 0x94f   : > { %v7972_v9 = vmax.f32 %v7821_v52, 0.0 }
 0x950   : > { %v8037_v25 = vmax.f32 %v7909_v42, %v7973_v15 }
 0x951   : > { %v8036_v14 = vmax.f32 %v7908_v23, %v7972_v9 }
 0x952   : > { %v8071_v47 = vmax.f32 %v8035_v34, %v8037_v25 }
 0x953   : > { %v8070_v63 = vmax.f32 %v8034_v22, %v8036_v14 }
 0x954   : > { %8103 = vst [vmem:[%s14201_s30 + $0xe8] sm:$0xff] %v8071_v47  ;;  %v8173_v62 = vmul.f32 %v8071_v47, %v8071_v47 }
 0x955   : > { %8102 = vst [vmem:[%s14201_s30 + $0xe0] sm:$0xff] %v8070_v63  ;;  %v8133_v29 = vadd.f32 %v8132_v13, %v8070_v63  ;;  %v8172_v17 = vmul.f32 %v8070_v63, %v8070_v63 }
 0x957   : > { %v8203_v56 = vadd.f32 %v8202_v26, %v8172_v17  ;;  %v8134_v48 = vadd.f32 %v8133_v29, %v8071_v47 }
 0x959   : > { %v8204_v38 = vadd.f32 %v8203_v56, %v8173_v62 }
 0x95d   : > { %v9802_v28 = vpop.f32.mrb[60].mxu1 }
 0x95e   : > { %v7975_v57 = vmax.f32 %v9802_v28, 0.0  ;;  %v7831_v60 = vpop.f32.mrb[61].mxu1 }
 0x95f   : > { %v7974_v18 = vmax.f32 %v7831_v60, 0.0 }
 0x960   : > { %v8039_v46 = vmax.f32 %v7911_v4, %v7975_v57 }
 0x961   : > { %v8038_v5 = vmax.f32 %v7910_v0, %v7974_v18 }
 0x96a   : > { %v9805_v41 = vpop.f32.mrb[62].mxu1 }
 0x96b   : > { %v7977_v49 = vmax.f32 %v9805_v41, 0.0  ;;  %v7841_v27 = vpop.f32.mrb[63].mxu1 }
 0x96c   : > { %v7976_v59 = vmax.f32 %v7841_v27, 0.0 }
 0x96d   : > { %v8041_v43 = vmax.f32 %v7913_v44, %v7977_v49 }
 0x96e   : > { %v8040_v32 = vmax.f32 %v7912_v12, %v7976_v59 }
 0x96f   : > { %v8073_v50 = vmax.f32 %v8039_v46, %v8041_v43 }
 0x970   : > { %v8072_v54 = vmax.f32 %v8038_v5, %v8040_v32 }
 0x971   : > { %8105 = vst [vmem:[%s14201_s30 + $0xf8] sm:$0xff] %v8073_v50 }
 0x972   : > { %8104 = vst [vmem:[%s14201_s30 + $0xf0] sm:$0xff] %v8072_v54  ;;  %v8135_v6 = vadd.f32 %v8134_v48, %v8072_v54  ;;  %v8174_v61 = vmul.f32 %v8072_v54, %v8072_v54 }
 0x973   : > { %9887 = shalt.err (!%p9884_p3)
}
 0x974   : > { %s9888_s22 = scalar_lea.hbm %s14482_s9, 4096  ;;  %s9892_s30 = scalar_lea.hbm %s14602_s2, 8192 }
 0x975   : > { %p9889_p4 = scmp.ne.s32.totalorder %s14482_s9, %s9888_s22  ;;  %p9893_p9 = scmp.lt.u32.totalorder %s14482_s9, %s14602_s2 }
 0x976   : > { %p9894_p10 = scmp.lt.u32.totalorder %s9892_s30, %s9888_s22  ;;  %p9896_p12 = scmp.lt.u32.totalorder %s9888_s22, %s14482_s9 }
 0x977   : > { %p9890_p7 = pnand %p9889_p4, %p10076_p5 }
 0x978   : > { %p9895_p11 = por %p9894_p10, %p9893_p9 }
 0x979   : > { %p9891_p8 = pneg %p9890_p7 }
 0x97a   : > { %p9897_p13 = por %p9896_p12, %p9895_p11 }
 0x97c   : > { %p9898_p0 = pnand %p9897_p13, %p9891_p8 }
 0x97e   : > { %9901 = shalt.err (!%p9898_p0)
}
 0x97f   : > { %s10008_s8 = smov 128   ;;  %v8175_v11 = vmul.f32 %v8073_v50, %v8073_v50  ;;  %v8136_v19 = vadd.f32 %v8135_v6, %v8073_v50  ;;  %v8205_v51 = vadd.f32 %v8204_v38, %v8174_v61  ;;  %s8219_s11 = sand.u32 1, %s10057_s19  }
 0x980   : > { %9815 = dma.vmem_to_hbm [thread:$0]  (%p10076_p5), %s14484_s6, 4096, %s14482_s9, %s8215_s10, %s10008_s8, %s10008_s8, %s10006_s27  }
 0x981   : > { %v8206_v1 = vadd.f32 %v8205_v51, %v8175_v11  ;;  %v8137_v33 = vrot.slane %v8136_v19, 4  ;;  %s9475_s12 = sshll.u32 %s10057_s19, 4  ;;  %s200_s13 = scalar_lea.vmem [#allocation5], %s14183_s28 }
 0x982   : > { %s8252_s14 = sshll.u32 %s200_s13, 4  ;;  %s206_s27 = scalar_lea.vmem [#allocation7], %s14183_s28  ;;  %s14524_s14 = int_to_ptr.vmem [resolvable:$true] %s8252_s14 }
 0x983   : > { %v8138_v36 = vadd.f32 %v8137_v33, %v8136_v19  ;;  %v8207_v3 = vrot.slane %v8206_v1, 4  ;;  %s8265_s6 = sshll.u32 %s206_s27, 4  ;;  %s14522_s22 = scalar_lea.hbm %s14603_s3, %s9475_s12  ;;  %s14531_s6 = int_to_ptr.vmem [resolvable:$true] %s8265_s6 }
 0x984   : > { %s14529_s29 = scalar_lea.hbm %s14604_s4, %s9475_s12  ;;  %s14533_s30 = scalar_lea.sflag [#allocation6], %s8219_s11 }
 0x985   : > { %v8139_v10 = vrot.slane %v8138_v36, 2  ;;  %v8208_v8 = vadd.f32 %v8207_v3, %v8206_v1  ;;  %s9902_s5 = scalar_lea.vmem %s14524_s14, 16  ;;  %s10009_s7 = smov [#allocation5]  }
 0x986   : > { %p9903_p1 = scmp.ne.s32.totalorder %s14524_s14, %s9902_s5  ;;  %s9906_s8 = sshll.u32 %s10009_s7, 4  ;;  %s9907_s8 = int_to_ptr.vmem [resolvable:$false] %s9906_s8 }
 0x987   : > { %v8140_v40 = vadd.f32 %v8139_v10, %v8138_v36  ;;  %v8209_v13 = vrot.slane %v8208_v8, 2  ;;  %s9908_s9 = scalar_lea.vmem %s9907_s8, 32  ;;  %p9909_p4 = scmp.lt.s32.totalorder %s14524_s14, %s9907_s8 }
 0x988   : > { %p9904_p2 = pnand %p9903_p1, %p10076_p5  ;;  %p9910_p7 = scmp.lt.s32.totalorder %s9908_s9, %s9902_s5 }
 0x989   : > { %v8141_v26 = vrot.slane %v8140_v40, 1  ;;  %v8210_v37 = vadd.f32 %v8209_v13, %v8208_v8 }
 0x98a   : > { %p9905_p3 = pneg %p9904_p2  ;;  %p9911_p8 = por %p9910_p7, %p9909_p4 }
 0x98b   : > { %v8142_v7 = vadd.f32 %v8141_v26, %v8140_v40  ;;  %v8211_v45 = vrot.slane %v8210_v37, 1 }
 0x98c   : > { %p9912_p9 = pnand %p9911_p8, %p9905_p3 }
 0x98d   : > { %8143 = vst [vmem:[%s200_s13] sm:$0x1] %v8142_v7  ;;  %v8212_v31 = vadd.f32 %v8211_v45, %v8210_v37 }
 0x98e   : > { %9915 = shalt.err (!%p9912_p9)
}
 0x98f   : > { %s9916_s11 = scalar_lea.hbm %s14522_s22, 16  ;;  %s9920_s10 = scalar_lea.hbm %s14603_s3, 32 }
 0x990   : > { %p9917_p10 = scmp.ne.s32.totalorder %s14522_s22, %s9916_s11  ;;  %p9921_p13 = scmp.lt.u32.totalorder %s14522_s22, %s14603_s3 }
 0x991   : > { %p9922_p0 = scmp.lt.u32.totalorder %s9920_s10, %s9916_s11  ;;  %p9924_p2 = scmp.lt.u32.totalorder %s9916_s11, %s14522_s22 }
 0x992   : > { %p9918_p11 = pnand %p9917_p10, %p10076_p5 }
 0x993   : > { %p9923_p1 = por %p9922_p0, %p9921_p13 }
 0x994   : > { %p9919_p12 = pneg %p9918_p11 }
 0x995   : > { %p9925_p3 = por %p9924_p2, %p9923_p1 }
 0x997   : > { %p9926_p4 = pnand %p9925_p3, %p9919_p12 }
 0x999   : > { %9929 = shalt.err (!%p9926_p4)
}
 0x99a   : > { %9816 = dma.vmem_to_hbm [thread:$0]  (%p10076_p5), %s14524_s14, 16, %s14522_s22, %s14533_s30   ;;  %8213 = vst [vmem:[%s206_s27] sm:$0x1] %v8212_v31 }
 0x99b   : > { %s9930_s5 = scalar_lea.vmem %s14531_s6, 16  ;;  %s10010_s7 = smov [#allocation7]  }
 0x99c   : > { %p9931_p7 = scmp.ne.s32.totalorder %s14531_s6, %s9930_s5  ;;  %s9934_s8 = sshll.u32 %s10010_s7, 4  ;;  %s9935_s8 = int_to_ptr.vmem [resolvable:$false] %s9934_s8 }
 0x99d   : > { %s9936_s9 = scalar_lea.vmem %s9935_s8, 32  ;;  %p9937_p10 = scmp.lt.s32.totalorder %s14531_s6, %s9935_s8 }
 0x99e   : > { %p9932_p8 = pnand %p9931_p7, %p10076_p5  ;;  %p9938_p11 = scmp.lt.s32.totalorder %s9936_s9, %s9930_s5 }
 0x9a0   : > { %p9933_p9 = pneg %p9932_p8  ;;  %p9939_p12 = por %p9938_p11, %p9937_p10 }
 0x9a2   : > { %p9940_p13 = pnand %p9939_p12, %p9933_p9 }
 0x9a4   : > { %9943 = shalt.err (!%p9940_p13)
}
 0x9a5   : > { %s9944_s28 = scalar_lea.hbm %s14529_s29, 16  ;;  %s9948_s22 = scalar_lea.hbm %s14604_s4, 32 }
 0x9a6   : > { %p9945_p0 = scmp.ne.s32.totalorder %s14529_s29, %s9944_s28  ;;  %p9949_p3 = scmp.lt.u32.totalorder %s14529_s29, %s14604_s4 }
 0x9a7   : > { %p9950_p4 = scmp.lt.u32.totalorder %s9948_s22, %s9944_s28  ;;  %p9952_p8 = scmp.lt.u32.totalorder %s9944_s28, %s14529_s29 }
 0x9a8   : > { %p9946_p1 = pnand %p9945_p0, %p10076_p5 }
 0x9a9   : > { %p9951_p7 = por %p9950_p4, %p9949_p3 }
 0x9aa   : > { %p9947_p2 = pneg %p9946_p1 }
 0x9ab   : > { %p9953_p9 = por %p9952_p8, %p9951_p7 }
 0x9ad   : > { %p9954_p10 = pnand %p9953_p9, %p9947_p2 }
 0x9af   : > { %9957 = shalt.err (!%p9954_p10)
}
 0x9b0   : > { %9817 = dma.vmem_to_hbm [thread:$0]  (%p10076_p5), %s14531_s6, 16, %s14529_s29, %s14533_s30  }
 0x9b1 PF: > { %p9831_p11 = scmp.ge.s32.totalorder %s9996_s18, 2  ;;  %s8277_s13 = sand.u32 1, %s9984_s15  }
 0x9b2   : > { %s8278_s10 = scalar_lea.sflag [#allocation4], %s8277_s13 }
 0x9b3   : > { %p9822_p12 = pnand %p9831_p11, %p10080_p6 }
 0x9b5   : > { %9975 = dma.done.wait (!%p9822_p12), %s8278_s10, 4096  }
 0x9b6   : > { %9977 = vsyncadd (!%p9822_p12), %s8278_s10, 4294963200  ;;  %s8286_s19 = sand.u32 1, %s8377_s20  }
 0x9b7   : > { %s8287_s23 = scalar_lea.sflag [#allocation6], %s8286_s19 }
 0x9b8   : > { %9979 = dma.done.wait (!%p9822_p12), %s8287_s23, 32  }
 0x9b9   : > { %9981 = vsyncadd (!%p9822_p12), %s8287_s23, 4294967264  ;;  %p18_p5 = scmp.ge.s32.totalorder %s10061_s21, 4   ;;  %s14796_s15 = smov %s9988_s16 }
 0x9ba   : > { %s14797_s16 = smov %s9992_s17  ;;  %s14798_s17 = smov %s10074_s24 }
 0x9bb   : > { %s14799_s18 = smov %s10061_s21  ;;  %20 = sbr.rel (!%p18_p5) target bundleno = 5 (0x5), region = 100 }
 0x9c2   :  { %8299 = vsyncpa [#allocation4], 1 }
 0x9c3   :  { %8301 = vsyncpa [#allocation4 + $0x1], 1 }
 0x9c4   :  { %8302 = vsyncpa [#allocation6], 1 }
 0x9c5   :  { %8304 = vsyncpa [#allocation6 + $0x1], 1 }

</bundles_post_ra>
